<compile_context>
chip_gen: v6e
topology: v6e:2x2x1
jax: 0.10.0
libtpu: 0.0.40
codegen_flags: <defaults>
</compile_context>

<pallas_src>
import functools
import math

import jax
import jax.numpy as jnp
from jax.experimental import pallas as pl
from jax.experimental.pallas import tpu as pltpu

# ----------------------------- config ---------------------------------------
B = 2              # batch
C_IN = 3           # image channels
IMG = 16           # image H = W
PATCH = 4          # patch size -> 16 patches, seq_img = 17 (with CLS)
EMB = 128          # embed_dim (stands in for 768; lane-dense)
HEADS = 2
DH = EMB // HEADS
PROJ = 64          # proj_dim (stands in for 256)
VIT_LAYERS = 2     # stands in for 8
BERT_LAYERS = 2    # stands in for 6
MLP_HID = 4 * EMB
VOCAB = 64
SEQ_TXT = 8
MAX_POS = 16

_VMEM = pl.BlockSpec(memory_space=pltpu.MemorySpace.VMEM)
_SMEM = pl.BlockSpec(memory_space=pltpu.MemorySpace.SMEM)


def _ln(v, g, b, eps):
    mu = jnp.mean(v, axis=-1, keepdims=True)
    var = jnp.mean((v - mu) ** 2, axis=-1, keepdims=True)
    return (v - mu) * jax.lax.rsqrt(var + eps) * g + b


# --------------------------- Pallas kernels ----------------------------------
def _mm_bias_kernel(a_ref, w_ref, bias_ref, o_ref):
    # bf16 matmul, f32 accumulation
    o_ref[...] = jnp.dot(a_ref[...].astype(jnp.bfloat16), w_ref[...],
                         preferred_element_type=jnp.float32) + bias_ref[...]


def _stack_kernel(x_ref, *rest, heads, pre_ln, eps, has_mask, fuse_emb_ln,
                  emb_eps):
    """Whole encoder stack.  grid = (batch_blocks, L).

    The layer axis (axis 1) is "arbitrary": the activation tensor lives in the
    persistent VMEM scratch `xc_ref` across all L steps, while per-layer weight
    blocks stream through the pipeline (prefetched one layer ahead).

    pre_ln=True  : ViT        (x += MHA(LN1(x)); x += MLP(LN2(x)))
    pre_ln=False : DistilBert (x = LN1(x + MHA(x)); x = LN2(x + FFN(x)))
    """
    idx = 0
    if has_mask:
        mask_ref = rest[idx]; idx += 1
    if fuse_emb_ln:
        embg_ref = rest[idx]; embb_ref = rest[idx + 1]; idx += 2
    (ln1g_ref, ln1b_ref, wqkv_ref, bqkv_ref, wo_ref, bo_ref,
     ln2g_ref, ln2b_ref, w1_ref, b1_ref, w2_ref, b2_ref) = rest[idx:idx + 12]
    o_ref = rest[idx + 12]
    xc_ref = rest[idx + 13]

    l = pl.program_id(1)
    bblk, S, E = xc_ref.shape
    H = heads

    @pl.when(l == 0)
    def _():
        x0 = x_ref[...]
        if fuse_emb_ln:
            # DistilBert embedding LayerNorm fused into layer 0 (saves a call)
            x0 = _ln(x0, embg_ref[...], embb_ref[...], emb_eps)
        xc_ref[...] = x0

    ln1g = ln1g_ref[0]; ln1b = ln1b_ref[0]
    ln2g = ln2g_ref[0]; ln2b = ln2b_ref[0]
    bo = bo_ref[0]
    b1 = b1_ref[0]; b2 = b2_ref[0]

    for b in range(bblk):
        x = xc_ref[b]                                       # (S, E) f32

        # ---------------- attention sub-block ----------------
        h = _ln(x, ln1g, ln1b, eps) if pre_ln else x
        hb = h.astype(jnp.bfloat16)
        acc = None
        for hh in range(H):
            # per-head weights are free leading-axis ref slices (no lane slicing)
            q = jnp.dot(hb, wqkv_ref[0, hh],
                        preferred_element_type=jnp.float32) + bqkv_ref[0, hh]
            k = jnp.dot(hb, wqkv_ref[0, H + hh],
                        preferred_element_type=jnp.float32) + bqkv_ref[0, H + hh]
            v = jnp.dot(hb, wqkv_ref[0, 2 * H + hh],
                        preferred_element_type=jnp.float32) + bqkv_ref[0, 2 * H + hh]
            # 1/sqrt(dh) is folded into the Q weights at init; contract last dims
            s = jax.lax.dot_general(q.astype(jnp.bfloat16), k.astype(jnp.bfloat16),
                                    (((1,), (1,)), ((), ())),
                                    preferred_element_type=jnp.float32)   # (S, S)
            if has_mask:
                s = s + mask_ref[b]                         # (1, S) additive mask
            s = s - jnp.max(s, axis=-1, keepdims=True)
            p = jnp.exp(s)
            p = p * pl.reciprocal(jnp.sum(p, axis=-1, keepdims=True), approx=True)
            oh = jnp.dot(p.astype(jnp.bfloat16), v.astype(jnp.bfloat16),
                         preferred_element_type=jnp.float32)              # (S, dh)
            contrib = jnp.dot(oh.astype(jnp.bfloat16), wo_ref[0, hh],
                              preferred_element_type=jnp.float32)          # (S, E)
            acc = contrib if acc is None else acc + contrib
        x = x + acc + bo
        if not pre_ln:
            x = _ln(x, ln1g, ln1b, eps)                     # sa_layer_norm

        # ---------------- MLP sub-block ----------------
        h = _ln(x, ln2g, ln2b, eps) if pre_ln else x
        h1 = jnp.dot(h.astype(jnp.bfloat16), w1_ref[0],
                     preferred_element_type=jnp.float32) + b1
        # TODO(synk): PyTorch nn.GELU / DistilBert use exact erf-GELU; tanh
        # approximation used here for robust Mosaic lowering.
        h1 = jax.nn.gelu(h1, approximate=True)
        h2 = jnp.dot(h1.astype(jnp.bfloat16), w2_ref[0],
                     preferred_element_type=jnp.float32) + b2
        x = x + h2
        if not pre_ln:
            x = _ln(x, ln2g, ln2b, eps)                     # output_layer_norm

        xc_ref[b] = x

    @pl.when(l == pl.num_programs(1) - 1)
    def _():
        o_ref[...] = xc_ref[...]


def _head_kernel(icls_ref, tcls_ref, lnfg_ref, lnfb_ref,
                 ipw_ref, ipb_ref, ilg_ref, ilb_ref,
                 tpw_ref, tpb_ref, tlg_ref, tlb_ref,
                 scale_ref, logits_ref, loss_ref):
    """ViT final LN (on CLS) + both projection heads + logits + symmetric CE."""
    # image side: final ViT LayerNorm, projection, proj LayerNorm
    feat = _ln(icls_ref[...], lnfg_ref[...], lnfb_ref[...], 1e-5)
    I = jnp.dot(feat.astype(jnp.bfloat16), ipw_ref[...],
                preferred_element_type=jnp.float32) + ipb_ref[...]
    I = _ln(I, ilg_ref[...], ilb_ref[...], 1e-5)
    # text side: projection, proj LayerNorm
    T = jnp.dot(tcls_ref[...].astype(jnp.bfloat16), tpw_ref[...],
                preferred_element_type=jnp.float32) + tpb_ref[...]
    T = _ln(T, tlg_ref[...], tlb_ref[...], 1e-5)

    scale = scale_ref[0, 0]                        # exp(temperature) from SMEM
    # logits in f32 (contract last dims -> I @ T.T without transpose)
    logits = jax.lax.dot_general(I, T, (((1,), (1,)), ((), ())),
                                 preferred_element_type=jnp.float32) * scale
    logits_ref[...] = logits

    n = logits.shape[0]
    row = jax.lax.broadcasted_iota(jnp.int32, (n, n), 0)
    col = jax.lax.broadcasted_iota(jnp.int32, (n, n), 1)
    diag_mat = jnp.where(row == col, logits, 0.0)
    diag_col = jnp.sum(diag_mat, axis=1, keepdims=True)   # (B, 1)
    diag_row = jnp.sum(diag_mat, axis=0, keepdims=True)   # (1, B)

    # loss_T = CE(logits, arange)  -> row-wise logsumexp
    m_r = jnp.max(logits, axis=1, keepdims=True)
    lse_r = m_r + jnp.log(jnp.sum(jnp.exp(logits - m_r), axis=1, keepdims=True))
    # loss_I = CE(logits.T, arange) -> column-wise logsumexp
    m_c = jnp.max(logits, axis=0, keepdims=True)
    lse_c = m_c + jnp.log(jnp.sum(jnp.exp(logits - m_c), axis=0, keepdims=True))

    loss_T = jnp.mean(lse_r - diag_col, keepdims=True)     # (1, 1)
    loss_I = jnp.mean(lse_c - diag_row, keepdims=True)     # (1, 1)
    loss_ref[...] = (loss_I + loss_T) * 0.5


# --------------------------- Pallas wrappers ---------------------------------
def linear(x2d, w_bf16, b_row):
    """x2d: (M, K) @ w: (K, N) bf16 + b: (1, N) — single call, all in VMEM."""
    M = x2d.shape[0]
    N = w_bf16.shape[1]
    return pl.pallas_call(
        _mm_bias_kernel,
        out_shape=jax.ShapeDtypeStruct((M, N), jnp.float32),
        in_specs=[_VMEM, _VMEM, _VMEM],
        out_specs=_VMEM,
    )(x2d, w_bf16, b_row)


def encoder_stack(x, mask_add, sp, *, pre_ln, eps, emb_ln=None, emb_eps=1e-12,
                  batch_block=None):
    """One pallas_call for the whole encoder stack.

    grid = (batch_blocks, L); batch "parallel", layer "arbitrary" so layer l+1
    weights are DMA-prefetched under layer l compute.
    """
    Bb, S, E = x.shape
    L = sp["ln1_g"].shape[0]
    bblk = Bb if batch_block is None else batch_block
    nb = Bb // bblk
    has_mask = mask_add is not None
    fuse_emb_ln = emb_ln is not None

    inputs = [x]
    in_specs = [pl.BlockSpec((bblk, S, E), lambda b, l: (b, 0, 0))]
    if has_mask:
        inputs.append(mask_add)
        in_specs.append(pl.BlockSpec((bblk, 1, S), lambda b, l: (b, 0, 0)))
    if fuse_emb_ln:
        inputs.extend(emb_ln)
        in_specs.extend([pl.BlockSpec((1, E), lambda b, l: (0, 0))] * 2)

    wnames = ("ln1_g", "ln1_b", "wqkv", "bqkv", "wo", "bo",
              "ln2_g", "ln2_b", "w1", "b1", "w2", "b2")
    for name in wnames:
        w = sp[name]
        inputs.append(w)
        in_specs.append(pl.BlockSpec(
            (1,) + w.shape[1:],
            lambda b, l, _nd=w.ndim: (l,) + (0,) * (_nd - 1)))

    kern = functools.partial(_stack_kernel, heads=HEADS, pre_ln=pre_ln, eps=eps,
                             has_mask=has_mask, fuse_emb_ln=fuse_emb_ln,
                             emb_eps=emb_eps)
    return pl.pallas_call(
        kern,
        out_shape=jax.ShapeDtypeStruct((Bb, S, E), jnp.float32),
        grid=(nb, L),
        in_specs=in_specs,
        out_specs=pl.BlockSpec((bblk, S, E), lambda b, l: (b, 0, 0)),
        scratch_shapes=[pltpu.VMEM((bblk, S, E), jnp.float32)],
        compiler_params=pltpu.CompilerParams(
            dimension_semantics=("parallel", "arbitrary"),
            vmem_limit_bytes=48 * 1024 * 1024),
    )(*inputs)


def clip_head(i_cls, t_cls, params, scale11):
    Bn = i_cls.shape[0]
    vit = params["vit"]
    logits, loss = pl.pallas_call(
        _head_kernel,
        out_shape=(jax.ShapeDtypeStruct((Bn, Bn), jnp.float32),
                   jax.ShapeDtypeStruct((1, 1), jnp.float32)),
        in_specs=[_VMEM] * 12 + [_SMEM],
        out_specs=(_VMEM, _VMEM),
    )(i_cls, t_cls, vit["lnf_g"], vit["lnf_b"],
      params["img_proj_w"], params["img_proj_b"],
      params["img_ln_g"], params["img_ln_b"],
      params["txt_proj_w"], params["txt_proj_b"],
      params["txt_ln_g"], params["txt_ln_b"],
      scale11)
    return logits, loss


# --------------------------- model blocks ------------------------------------
def vit_forward(img, p):
    """Pre-LN ViT; num_class=False -> returns CLS-token features (B, EMB).
    Final LayerNorm is applied to the CLS row inside the fused head kernel."""
    Bb, C, H, W_ = img.shape
    nh, nw = H // PATCH, W_ // PATCH
    patches = (img.reshape(Bb, C, nh, PATCH, nw, PATCH)
                  .transpose(0, 2, 4, 1, 3, 5)
                  .reshape(Bb * nh * nw, C * PATCH * PATCH))
    emb = linear(patches, p["patch_w"], p["patch_b"]).reshape(Bb, nh * nw, EMB)
    cls = jnp.broadcast_to(p["cls"], (Bb, 1, EMB))
    x = jnp.concatenate([cls, emb], axis=1) + p["pos"]       # (B, S, EMB)
    x = encoder_stack(x, None, p["layers"], pre_ln=True, eps=1e-5)
    return x[:, 0, :]                                        # CLS (pre final-LN)


def distilbert_forward(input_ids, attn_mask, p):
    """Post-LN DistilBert-style encoder; returns CLS hidden state (B, EMB)."""
    Bb, S = input_ids.shape
    # embedding gather is glue (plain JAX)
    x = jnp.take(p["word_emb"], input_ids, axis=0) + p["pos_emb"][:S][None]
    # TODO(synk): DistilBert dropout omitted (eval-mode / deterministic).
    mask_add = (1.0 - attn_mask.astype(jnp.float32))[:, None, :] * -1e9  # (B,1,S)
    x = encoder_stack(x, mask_add, p["layers"], pre_ln=False, eps=1e-12,
                      emb_ln=(p["emb_ln_g"], p["emb_ln_b"]), emb_eps=1e-12)
    return x[:, 0, :]


def clip_forward(image, input_ids, mask, params):
    i_cls = vit_forward(image, params["vit"])                    # (B, EMB)
    t_cls = distilbert_forward(input_ids, mask, params["bert"])  # (B, EMB)
    scale11 = jnp.exp(params["temperature"]).reshape(1, 1).astype(jnp.float32)
    logits, loss = clip_head(i_cls, t_cls, params, scale11)
    return loss[0, 0], logits


# --------------------------- parameter init ----------------------------------
def init_params():
    keys = iter(jax.random.split(jax.random.PRNGKey(0), 4096))

    def W(shape, s=0.02):
        return (s * jax.random.normal(next(keys), shape)).astype(jnp.float32)

    def Z(shape):
        return jnp.zeros(shape, jnp.float32)

    def O(shape):
        return jnp.ones(shape, jnp.float32)

    def layer_params():
        scale = 1.0 / math.sqrt(DH)
        # 1/sqrt(dh) folded into Q projection (weights + bias); bias is zero-init
        wq = W((EMB, EMB)) * scale
        wk = W((EMB, EMB))
        wv = W((EMB, EMB))

        def heads_of(w):                         # (E, E) -> (H, E, dh) head-major
            return w.reshape(EMB, HEADS, DH).transpose(1, 0, 2)

        return {
            "ln1_g": O((1, EMB)), "ln1_b": Z((1, EMB)),
            # fused QKV, head-major: index = {0..H-1: Q, H..2H-1: K, 2H..3H-1: V}
            "wqkv": jnp.concatenate(
                [heads_of(wq), heads_of(wk), heads_of(wv)], axis=0
            ).astype(jnp.bfloat16),                              # (3H, E, dh)
            "bqkv": Z((3 * HEADS, 1, DH)),
            "wo": W((EMB, EMB)).reshape(HEADS, DH, EMB).astype(jnp.bfloat16),
            "bo": Z((1, EMB)),
            "ln2_g": O((1, EMB)), "ln2_b": Z((1, EMB)),
            "w1": W((EMB, MLP_HID)).astype(jnp.bfloat16), "b1": Z((1, MLP_HID)),
            "w2": W((MLP_HID, EMB)).astype(jnp.bfloat16), "b2": Z((1, EMB)),
        }

    def stack_layers(n):
        layers = [layer_params() for _ in range(n)]
        return {k: jnp.stack([lp[k] for lp in layers], axis=0)
                for k in layers[0]}

    n_patches = (IMG // PATCH) ** 2
    vit = {
        "patch_w": W((C_IN * PATCH * PATCH, EMB)).astype(jnp.bfloat16),
        "patch_b": Z((1, EMB)),
        "cls": W((1, 1, EMB)), "pos": W((1, n_patches + 1, EMB)),
        "layers": stack_layers(VIT_LAYERS),
        "lnf_g": O((1, EMB)), "lnf_b": Z((1, EMB)),
    }
    bert = {
        "word_emb": W((VOCAB, EMB)), "pos_emb": W((MAX_POS, EMB)),
        "emb_ln_g": O((1, EMB)), "emb_ln_b": Z((1, EMB)),
        "layers": stack_layers(BERT_LAYERS),
    }
    return {
        "vit": vit,
        "bert": bert,
        "img_proj_w": W((EMB, PROJ)).astype(jnp.bfloat16), "img_proj_b": Z((1, PROJ)),
        "img_ln_g": O((1, PROJ)), "img_ln_b": Z((1, PROJ)),
        "txt_proj_w": W((EMB, PROJ)).astype(jnp.bfloat16), "txt_proj_b": Z((1, PROJ)),
        "txt_ln_g": O((1, PROJ)), "txt_ln_b": Z((1, PROJ)),
        "temperature": jnp.array(math.log(1.0 / 7.0), jnp.float32),
    }


# ------------------------------- main ----------------------------------------
if __name__ == "__main__":
    params = init_params()

    key = jax.random.PRNGKey(0)
    k_img, k_ids = jax.random.split(key)
    image = jax.random.normal(k_img, (B, C_IN, IMG, IMG), dtype=jnp.float32)
    input_ids = jax.random.randint(k_ids, (B, SEQ_TXT), 0, VOCAB, dtype=jnp.int32)
    mask = jnp.ones((B, SEQ_TXT), jnp.float32).at[1, 6:].set(0.0)  # padded tail

    @jax.jit
    def run(img, ids, m):
        return clip_forward(img, ids, m, params)

    loss, logits = run(image, input_ids, mask)
    jax.block_until_ready((loss, logits))
    assert logits.shape == (B, B) and loss.shape == ()
    assert bool(jnp.isfinite(loss)) and bool(jnp.all(jnp.isfinite(logits)))
    print("KERNEL_OK")
</pallas_src>

<mosaic_0001>
module attributes {stable_mosaic.version = 11 : i64} {
  func.func @_mm_bias_kernel(%arg0: memref<32x48xf32, #tpu.memory_space<vmem>>, %arg1: memref<48x128xbf16, #tpu.memory_space<vmem>>, %arg2: memref<1x128xf32, #tpu.memory_space<vmem>>, %arg3: memref<32x128xf32, #tpu.memory_space<vmem>>) attributes {dimension_semantics = [], scalar_prefetch = 0 : i64, scratch_operands = 0 : i64, tpu.core_type = #tpu.core_type<tc>} {
    %c0 = arith.constant 0 : index
    %c0_0 = arith.constant 0 : index
    %0 = vector.load %arg0[%c0, %c0_0] : memref<32x48xf32, #tpu.memory_space<vmem>>, vector<32x48xf32>
    %1 = arith.truncf %0 : vector<32x48xf32> to vector<32x48xbf16>
    %c0_1 = arith.constant 0 : index
    %c0_2 = arith.constant 0 : index
    %2 = vector.load %arg1[%c0_1, %c0_2] : memref<48x128xbf16, #tpu.memory_space<vmem>>, vector<48x128xbf16>
    %cst = arith.constant dense<0.000000e+00> : vector<32x128xf32>
    %3 = tpu.matmul %1, %2, %cst {dimension_numbers = #tpu.dot_dimension_numbers<[1], [0], [0], [1], [0, 0, 1, 1], [], []>} : vector<32x48xbf16>, vector<48x128xbf16>, vector<32x128xf32> -> vector<32x128xf32>
    %c0_3 = arith.constant 0 : index
    %c0_4 = arith.constant 0 : index
    %4 = vector.load %arg2[%c0_3, %c0_4] : memref<1x128xf32, #tpu.memory_space<vmem>>, vector<1x128xf32>
    %5 = vector.broadcast %4 : vector<1x128xf32> to vector<32x128xf32>
    %6 = arith.addf %3, %5 : vector<32x128xf32>
    %c0_5 = arith.constant 0 : index
    %c0_6 = arith.constant 0 : index
    %7 = vector.load %arg3[%c0_5, %c0_6] : memref<32x128xf32, #tpu.memory_space<vmem>>, vector<32x128xf32>
    tpu.vector_store %arg3[%c0_5, %c0_6], %6 {strides = array<i32>} : memref<32x128xf32, #tpu.memory_space<vmem>>, vector<32x128xf32>,
    return
  }
}

module attributes {stable_mosaic.version = 11 : i64} {
  func.func @_stack_kernel(%arg0: i32, %arg1: i32, %arg2: memref<2x17x128xf32, #tpu.memory_space<vmem>>, %arg3: memref<1x1x128xf32, #tpu.memory_space<vmem>>, %arg4: memref<1x1x128xf32, #tpu.memory_space<vmem>>, %arg5: memref<1x6x128x64xbf16, #tpu.memory_space<vmem>>, %arg6: memref<1x6x1x64xf32, #tpu.memory_space<vmem>>, %arg7: memref<1x2x64x128xbf16, #tpu.memory_space<vmem>>, %arg8: memref<1x1x128xf32, #tpu.memory_space<vmem>>, %arg9: memref<1x1x128xf32, #tpu.memory_space<vmem>>, %arg10: memref<1x1x128xf32, #tpu.memory_space<vmem>>, %arg11: memref<1x128x512xbf16, #tpu.memory_space<vmem>>, %arg12: memref<1x1x512xf32, #tpu.memory_space<vmem>>, %arg13: memref<1x512x128xbf16, #tpu.memory_space<vmem>>, %arg14: memref<1x1x128xf32, #tpu.memory_space<vmem>>, %arg15: memref<2x17x128xf32, #tpu.memory_space<vmem>>, %arg16: memref<2x17x128xf32, #tpu.memory_space<vmem>>) attributes {dimension_semantics = [#tpu.dimension_semantics<parallel>, #tpu.dimension_semantics<arbitrary>], iteration_bounds = array<i64: 1, 2>, scalar_prefetch = 0 : i64, scratch_operands = 1 : i64, tpu.core_type = #tpu.core_type<tc>, window_params = [{transform_indices = @transform_0, window_bounds = array<i64: 2, 17, 128>}, {transform_indices = @transform_1, window_bounds = array<i64: 1, 1, 128>}, {transform_indices = @transform_2, window_bounds = array<i64: 1, 1, 128>}, {transform_indices = @transform_3, window_bounds = array<i64: 1, 6, 128, 64>}, {transform_indices = @transform_4, window_bounds = array<i64: 1, 6, 1, 64>}, {transform_indices = @transform_5, window_bounds = array<i64: 1, 2, 64, 128>}, {transform_indices = @transform_6, window_bounds = array<i64: 1, 1, 128>}, {transform_indices = @transform_7, window_bounds = array<i64: 1, 1, 128>}, {transform_indices = @transform_8, window_bounds = array<i64: 1, 1, 128>}, {transform_indices = @transform_9, window_bounds = array<i64: 1, 128, 512>}, {transform_indices = @transform_10, window_bounds = array<i64: 1, 1, 512>}, {transform_indices = @transform_11, window_bounds = array<i64: 1, 512, 128>}, {transform_indices = @transform_12, window_bounds = array<i64: 1, 1, 128>}, {transform_indices = @transform_13, window_bounds = array<i64: 2, 17, 128>}]} {
    %c0_i32 = arith.constant 0 : i32
    %0 = arith.cmpi eq, %arg1, %c0_i32 : i32
    %1 = arith.extui %0 : i1 to i32
    %c0_i32_0 = arith.constant 0 : i32
    %2 = arith.cmpi ne, %1, %c0_i32_0 : i32
    scf.if %2 {
      %c0_216 = arith.constant 0 : index
      %c0_217 = arith.constant 0 : index
      %c0_218 = arith.constant 0 : index
      %344 = vector.load %arg2[%c0_216, %c0_217, %c0_218] : memref<2x17x128xf32, #tpu.memory_space<vmem>>, vector<2x17x128xf32>
      %c0_219 = arith.constant 0 : index
      %c0_220 = arith.constant 0 : index
      %c0_221 = arith.constant 0 : index
      %345 = vector.load %arg16[%c0_219, %c0_220, %c0_221] : memref<2x17x128xf32, #tpu.memory_space<vmem>>, vector<2x17x128xf32>
      tpu.vector_store %arg16[%c0_219, %c0_220, %c0_221], %344 {strides = array<i32>} : memref<2x17x128xf32, #tpu.memory_space<vmem>>, vector<2x17x128xf32>,
    } else {
    }
    %c0 = arith.constant 0 : index
    %c0_1 = arith.constant 0 : index
    %c0_2 = arith.constant 0 : index
    %3 = vector.load %arg3[%c0, %c0_1, %c0_2] : memref<1x1x128xf32, #tpu.memory_space<vmem>>, vector<1x1x128xf32>
    %4 = vector.shape_cast %3 : vector<1x1x128xf32> to vector<1x128xf32>
    %c0_3 = arith.constant 0 : index
    %c0_4 = arith.constant 0 : index
    %c0_5 = arith.constant 0 : index
    %5 = vector.load %arg4[%c0_3, %c0_4, %c0_5] : memref<1x1x128xf32, #tpu.memory_space<vmem>>, vector<1x1x128xf32>
    %6 = vector.shape_cast %5 : vector<1x1x128xf32> to vector<1x128xf32>
    %c0_6 = arith.constant 0 : index
    %c0_7 = arith.constant 0 : index
    %c0_8 = arith.constant 0 : index
    %7 = vector.load %arg9[%c0_6, %c0_7, %c0_8] : memref<1x1x128xf32, #tpu.memory_space<vmem>>, vector<1x1x128xf32>
    %8 = vector.shape_cast %7 : vector<1x1x128xf32> to vector<1x128xf32>
    %c0_9 = arith.constant 0 : index
    %c0_10 = arith.constant 0 : index
    %c0_11 = arith.constant 0 : index
    %9 = vector.load %arg10[%c0_9, %c0_10, %c0_11] : memref<1x1x128xf32, #tpu.memory_space<vmem>>, vector<1x1x128xf32>
    %10 = vector.shape_cast %9 : vector<1x1x128xf32> to vector<1x128xf32>
    %c0_12 = arith.constant 0 : index
    %c0_13 = arith.constant 0 : index
    %c0_14 = arith.constant 0 : index
    %11 = vector.load %arg8[%c0_12, %c0_13, %c0_14] : memref<1x1x128xf32, #tpu.memory_space<vmem>>, vector<1x1x128xf32>
    %12 = vector.shape_cast %11 : vector<1x1x128xf32> to vector<1x128xf32>
    %c0_15 = arith.constant 0 : index
    %c0_16 = arith.constant 0 : index
    %c0_17 = arith.constant 0 : index
    %13 = vector.load %arg12[%c0_15, %c0_16, %c0_17] : memref<1x1x512xf32, #tpu.memory_space<vmem>>, vector<1x1x512xf32>
    %14 = vector.shape_cast %13 : vector<1x1x512xf32> to vector<1x512xf32>
    %c0_18 = arith.constant 0 : index
    %c0_19 = arith.constant 0 : index
    %c0_20 = arith.constant 0 : index
    %15 = vector.load %arg14[%c0_18, %c0_19, %c0_20] : memref<1x1x128xf32, #tpu.memory_space<vmem>>, vector<1x1x128xf32>
    %16 = vector.shape_cast %15 : vector<1x1x128xf32> to vector<1x128xf32>
    %c0_21 = arith.constant 0 : index
    %c0_22 = arith.constant 0 : index
    %c0_23 = arith.constant 0 : index
    %17 = vector.load %arg16[%c0_21, %c0_22, %c0_23] : memref<2x17x128xf32, #tpu.memory_space<vmem>>, vector<1x17x128xf32>
    %18 = vector.shape_cast %17 : vector<1x17x128xf32> to vector<17x128xf32>
    %cst = arith.constant dense<0.000000e+00> : vector<17xf32>
    %19 = vector.multi_reduction <add>, %18, %cst [1] : vector<17x128xf32> to vector<17xf32>
    %20 = vector.shape_cast %19 : vector<17xf32> to vector<17x1xf32>
    %cst_24 = arith.constant 1.280000e+02 : f32
    %21 = vector.broadcast %cst_24 : f32 to vector<17x1xf32>
    %22 = arith.divf %20, %21 : vector<17x1xf32>
    %23 = vector.broadcast %22 : vector<17x1xf32> to vector<17x128xf32>
    %24 = arith.subf %18, %23 : vector<17x128xf32>
    %25 = arith.mulf %24, %24 : vector<17x128xf32>
    %cst_25 = arith.constant dense<0.000000e+00> : vector<17xf32>
    %26 = vector.multi_reduction <add>, %25, %cst_25 [1] : vector<17x128xf32> to vector<17xf32>
    %27 = vector.shape_cast %26 : vector<17xf32> to vector<17x1xf32>
    %cst_26 = arith.constant 1.280000e+02 : f32
    %28 = vector.broadcast %cst_26 : f32 to vector<17x1xf32>
    %29 = arith.divf %27, %28 : vector<17x1xf32>
    %30 = vector.broadcast %22 : vector<17x1xf32> to vector<17x128xf32>
    %31 = arith.subf %18, %30 : vector<17x128xf32>
    %cst_27 = arith.constant 9.99999974E-6 : f32
    %32 = vector.broadcast %cst_27 : f32 to vector<17x1xf32>
    %33 = arith.addf %29, %32 : vector<17x1xf32>
    %34 = math.rsqrt %33 : vector<17x1xf32>
    %35 = vector.broadcast %34 : vector<17x1xf32> to vector<17x128xf32>
    %36 = arith.mulf %31, %35 : vector<17x128xf32>
    %37 = vector.broadcast %4 : vector<1x128xf32> to vector<17x128xf32>
    %38 = arith.mulf %36, %37 : vector<17x128xf32>
    %39 = vector.broadcast %6 : vector<1x128xf32> to vector<17x128xf32>
    %40 = arith.addf %38, %39 : vector<17x128xf32>
    %41 = arith.truncf %40 : vector<17x128xf32> to vector<17x128xbf16>
    %c0_28 = arith.constant 0 : index
    %c0_29 = arith.constant 0 : index
    %c0_30 = arith.constant 0 : index
    %c0_31 = arith.constant 0 : index
    %42 = vector.load %arg5[%c0_28, %c0_29, %c0_30, %c0_31] : memref<1x6x128x64xbf16, #tpu.memory_space<vmem>>, vector<1x1x128x64xbf16>
    %43 = vector.shape_cast %42 : vector<1x1x128x64xbf16> to vector<128x64xbf16>
    %cst_32 = arith.constant dense<0.000000e+00> : vector<17x64xf32>
    %44 = tpu.matmul %41, %43, %cst_32 {dimension_numbers = #tpu.dot_dimension_numbers<[1], [0], [0], [1], [0, 0, 1, 1], [], []>} : vector<17x128xbf16>, vector<128x64xbf16>, vector<17x64xf32> -> vector<17x64xf32>
    %c0_33 = arith.constant 0 : index
    %c0_34 = arith.constant 0 : index
    %c0_35 = arith.constant 0 : index
    %c0_36 = arith.constant 0 : index
    %45 = vector.load %arg6[%c0_33, %c0_34, %c0_35, %c0_36] : memref<1x6x1x64xf32, #tpu.memory_space<vmem>>, vector<1x1x1x64xf32>
    %46 = vector.shape_cast %45 : vector<1x1x1x64xf32> to vector<1x64xf32>
    %47 = vector.broadcast %46 : vector<1x64xf32> to vector<17x64xf32>
    %48 = arith.addf %44, %47 : vector<17x64xf32>
    %c0_37 = arith.constant 0 : index
    %c2 = arith.constant 2 : index
    %c0_38 = arith.constant 0 : index
    %c0_39 = arith.constant 0 : index
    %49 = vector.load %arg5[%c0_37, %c2, %c0_38, %c0_39] : memref<1x6x128x64xbf16, #tpu.memory_space<vmem>>, vector<1x1x128x64xbf16>
    %50 = vector.shape_cast %49 : vector<1x1x128x64xbf16> to vector<128x64xbf16>
    %cst_40 = arith.constant dense<0.000000e+00> : vector<17x64xf32>
    %51 = tpu.matmul %41, %50, %cst_40 {dimension_numbers = #tpu.dot_dimension_numbers<[1], [0], [0], [1], [0, 0, 1, 1], [], []>} : vector<17x128xbf16>, vector<128x64xbf16>, vector<17x64xf32> -> vector<17x64xf32>
    %c0_41 = arith.constant 0 : index
    %c2_42 = arith.constant 2 : index
    %c0_43 = arith.constant 0 : index
    %c0_44 = arith.constant 0 : index
    %52 = vector.load %arg6[%c0_41, %c2_42, %c0_43, %c0_44] : memref<1x6x1x64xf32, #tpu.memory_space<vmem>>, vector<1x1x1x64xf32>
    %53 = vector.shape_cast %52 : vector<1x1x1x64xf32> to vector<1x64xf32>
    %54 = vector.broadcast %53 : vector<1x64xf32> to vector<17x64xf32>
    %55 = arith.addf %51, %54 : vector<17x64xf32>
    %c0_45 = arith.constant 0 : index
    %c4 = arith.constant 4 : index
    %c0_46 = arith.constant 0 : index
    %c0_47 = arith.constant 0 : index
    %56 = vector.load %arg5[%c0_45, %c4, %c0_46, %c0_47] : memref<1x6x128x64xbf16, #tpu.memory_space<vmem>>, vector<1x1x128x64xbf16>
    %57 = vector.shape_cast %56 : vector<1x1x128x64xbf16> to vector<128x64xbf16>
    %cst_48 = arith.constant dense<0.000000e+00> : vector<17x64xf32>
    %58 = tpu.matmul %41, %57, %cst_48 {dimension_numbers = #tpu.dot_dimension_numbers<[1], [0], [0], [1], [0, 0, 1, 1], [], []>} : vector<17x128xbf16>, vector<128x64xbf16>, vector<17x64xf32> -> vector<17x64xf32>
    %c0_49 = arith.constant 0 : index
    %c4_50 = arith.constant 4 : index
    %c0_51 = arith.constant 0 : index
    %c0_52 = arith.constant 0 : index
    %59 = vector.load %arg6[%c0_49, %c4_50, %c0_51, %c0_52] : memref<1x6x1x64xf32, #tpu.memory_space<vmem>>, vector<1x1x1x64xf32>
    %60 = vector.shape_cast %59 : vector<1x1x1x64xf32> to vector<1x64xf32>
    %61 = vector.broadcast %60 : vector<1x64xf32> to vector<17x64xf32>
    %62 = arith.addf %58, %61 : vector<17x64xf32>
    %63 = arith.truncf %48 : vector<17x64xf32> to vector<17x64xbf16>
    %64 = arith.truncf %55 : vector<17x64xf32> to vector<17x64xbf16>
    %cst_53 = arith.constant dense<0.000000e+00> : vector<17x17xf32>
    %65 = tpu.matmul %63, %64, %cst_53 {dimension_numbers = #tpu.dot_dimension_numbers<[1], [1], [0], [0], [0, 0, 1, 0], [], []>} : vector<17x64xbf16>, vector<17x64xbf16>, vector<17x17xf32> -> vector<17x17xf32>
    %cst_54 = arith.constant dense<0xFF800000> : vector<17xf32>
    %66 = vector.multi_reduction <maximumf>, %65, %cst_54 [1] : vector<17x17xf32> to vector<17xf32>
    %67 = vector.shape_cast %66 : vector<17xf32> to vector<17x1xf32>
    %68 = vector.broadcast %67 : vector<17x1xf32> to vector<17x17xf32>
    %69 = arith.subf %65, %68 : vector<17x17xf32>
    %70 = math.exp %69 : vector<17x17xf32>
    %cst_55 = arith.constant dense<0.000000e+00> : vector<17xf32>
    %71 = vector.multi_reduction <add>, %70, %cst_55 [1] : vector<17x17xf32> to vector<17xf32>
    %72 = vector.shape_cast %71 : vector<17xf32> to vector<17x1xf32>
    %73 = tpu.reciprocal %72 {approx = true} : vector<17x1xf32> -> vector<17x1xf32>
    %74 = vector.broadcast %73 : vector<17x1xf32> to vector<17x17xf32>
    %75 = arith.mulf %70, %74 : vector<17x17xf32>
    %76 = arith.truncf %75 : vector<17x17xf32> to vector<17x17xbf16>
    %77 = arith.truncf %62 : vector<17x64xf32> to vector<17x64xbf16>
    %cst_56 = arith.constant dense<0.000000e+00> : vector<17x64xf32>
    %78 = tpu.matmul %76, %77, %cst_56 {dimension_numbers = #tpu.dot_dimension_numbers<[1], [0], [0], [1], [0, 0, 1, 1], [], []>} : vector<17x17xbf16>, vector<17x64xbf16>, vector<17x64xf32> -> vector<17x64xf32>
    %79 = arith.truncf %78 : vector<17x64xf32> to vector<17x64xbf16>
    %c0_57 = arith.constant 0 : index
    %c0_58 = arith.constant 0 : index
    %c0_59 = arith.constant 0 : index
    %c0_60 = arith.constant 0 : index
    %80 = vector.load %arg7[%c0_57, %c0_58, %c0_59, %c0_60] : memref<1x2x64x128xbf16, #tpu.memory_space<vmem>>, vector<1x1x64x128xbf16>
    %81 = vector.shape_cast %80 : vector<1x1x64x128xbf16> to vector<64x128xbf16>
    %cst_61 = arith.constant dense<0.000000e+00> : vector<17x128xf32>
    %82 = tpu.matmul %79, %81, %cst_61 {dimension_numbers = #tpu.dot_dimension_numbers<[1], [0], [0], [1], [0, 0, 1, 1], [], []>} : vector<17x64xbf16>, vector<64x128xbf16>, vector<17x128xf32> -> vector<17x128xf32>
    %c0_62 = arith.constant 0 : index
    %c1 = arith.constant 1 : index
    %c0_63 = arith.constant 0 : index
    %c0_64 = arith.constant 0 : index
    %83 = vector.load %arg5[%c0_62, %c1, %c0_63, %c0_64] : memref<1x6x128x64xbf16, #tpu.memory_space<vmem>>, vector<1x1x128x64xbf16>
    %84 = vector.shape_cast %83 : vector<1x1x128x64xbf16> to vector<128x64xbf16>
    %cst_65 = arith.constant dense<0.000000e+00> : vector<17x64xf32>
    %85 = tpu.matmul %41, %84, %cst_65 {dimension_numbers = #tpu.dot_dimension_numbers<[1], [0], [0], [1], [0, 0, 1, 1], [], []>} : vector<17x128xbf16>, vector<128x64xbf16>, vector<17x64xf32> -> vector<17x64xf32>
    %c0_66 = arith.constant 0 : index
    %c1_67 = arith.constant 1 : index
    %c0_68 = arith.constant 0 : index
    %c0_69 = arith.constant 0 : index
    %86 = vector.load %arg6[%c0_66, %c1_67, %c0_68, %c0_69] : memref<1x6x1x64xf32, #tpu.memory_space<vmem>>, vector<1x1x1x64xf32>
    %87 = vector.shape_cast %86 : vector<1x1x1x64xf32> to vector<1x64xf32>
    %88 = vector.broadcast %87 : vector<1x64xf32> to vector<17x64xf32>
    %89 = arith.addf %85, %88 : vector<17x64xf32>
    %c0_70 = arith.constant 0 : index
    %c3 = arith.constant 3 : index
    %c0_71 = arith.constant 0 : index
    %c0_72 = arith.constant 0 : index
    %90 = vector.load %arg5[%c0_70, %c3, %c0_71, %c0_72] : memref<1x6x128x64xbf16, #tpu.memory_space<vmem>>, vector<1x1x128x64xbf16>
    %91 = vector.shape_cast %90 : vector<1x1x128x64xbf16> to vector<128x64xbf16>
    %cst_73 = arith.constant dense<0.000000e+00> : vector<17x64xf32>
    %92 = tpu.matmul %41, %91, %cst_73 {dimension_numbers = #tpu.dot_dimension_numbers<[1], [0], [0], [1], [0, 0, 1, 1], [], []>} : vector<17x128xbf16>, vector<128x64xbf16>, vector<17x64xf32> -> vector<17x64xf32>
    %c0_74 = arith.constant 0 : index
    %c3_75 = arith.constant 3 : index
    %c0_76 = arith.constant 0 : index
    %c0_77 = arith.constant 0 : index
    %93 = vector.load %arg6[%c0_74, %c3_75, %c0_76, %c0_77] : memref<1x6x1x64xf32, #tpu.memory_space<vmem>>, vector<1x1x1x64xf32>
    %94 = vector.shape_cast %93 : vector<1x1x1x64xf32> to vector<1x64xf32>
    %95 = vector.broadcast %94 : vector<1x64xf32> to vector<17x64xf32>
    %96 = arith.addf %92, %95 : vector<17x64xf32>
    %c0_78 = arith.constant 0 : index
    %c5 = arith.constant 5 : index
    %c0_79 = arith.constant 0 : index
    %c0_80 = arith.constant 0 : index
    %97 = vector.load %arg5[%c0_78, %c5, %c0_79, %c0_80] : memref<1x6x128x64xbf16, #tpu.memory_space<vmem>>, vector<1x1x128x64xbf16>
    %98 = vector.shape_cast %97 : vector<1x1x128x64xbf16> to vector<128x64xbf16>
    %cst_81 = arith.constant dense<0.000000e+00> : vector<17x64xf32>
    %99 = tpu.matmul %41, %98, %cst_81 {dimension_numbers = #tpu.dot_dimension_numbers<[1], [0], [0], [1], [0, 0, 1, 1], [], []>} : vector<17x128xbf16>, vector<128x64xbf16>, vector<17x64xf32> -> vector<17x64xf32>
    %c0_82 = arith.constant 0 : index
    %c5_83 = arith.constant 5 : index
    %c0_84 = arith.constant 0 : index
    %c0_85 = arith.constant 0 : index
    %100 = vector.load %arg6[%c0_82, %c5_83, %c0_84, %c0_85] : memref<1x6x1x64xf32, #tpu.memory_space<vmem>>, vector<1x1x1x64xf32>
    %101 = vector.shape_cast %100 : vector<1x1x1x64xf32> to vector<1x64xf32>
    %102 = vector.broadcast %101 : vector<1x64xf32> to vector<17x64xf32>
    %103 = arith.addf %99, %102 : vector<17x64xf32>
    %104 = arith.truncf %89 : vector<17x64xf32> to vector<17x64xbf16>
    %105 = arith.truncf %96 : vector<17x64xf32> to vector<17x64xbf16>
    %cst_86 = arith.constant dense<0.000000e+00> : vector<17x17xf32>
    %106 = tpu.matmul %104, %105, %cst_86 {dimension_numbers = #tpu.dot_dimension_numbers<[1], [1], [0], [0], [0, 0, 1, 0], [], []>} : vector<17x64xbf16>, vector<17x64xbf16>, vector<17x17xf32> -> vector<17x17xf32>
    %cst_87 = arith.constant dense<0xFF800000> : vector<17xf32>
    %107 = vector.multi_reduction <maximumf>, %106, %cst_87 [1] : vector<17x17xf32> to vector<17xf32>
    %108 = vector.shape_cast %107 : vector<17xf32> to vector<17x1xf32>
    %109 = vector.broadcast %108 : vector<17x1xf32> to vector<17x17xf32>
    %110 = arith.subf %106, %109 : vector<17x17xf32>
    %111 = math.exp %110 : vector<17x17xf32>
    %cst_88 = arith.constant dense<0.000000e+00> : vector<17xf32>
    %112 = vector.multi_reduction <add>, %111, %cst_88 [1] : vector<17x17xf32> to vector<17xf32>
    %113 = vector.shape_cast %112 : vector<17xf32> to vector<17x1xf32>
    %114 = tpu.reciprocal %113 {approx = true} : vector<17x1xf32> -> vector<17x1xf32>
    %115 = vector.broadcast %114 : vector<17x1xf32> to vector<17x17xf32>
    %116 = arith.mulf %111, %115 : vector<17x17xf32>
    %117 = arith.truncf %116 : vector<17x17xf32> to vector<17x17xbf16>
    %118 = arith.truncf %103 : vector<17x64xf32> to vector<17x64xbf16>
    %cst_89 = arith.constant dense<0.000000e+00> : vector<17x64xf32>
    %119 = tpu.matmul %117, %118, %cst_89 {dimension_numbers = #tpu.dot_dimension_numbers<[1], [0], [0], [1], [0, 0, 1, 1], [], []>} : vector<17x17xbf16>, vector<17x64xbf16>, vector<17x64xf32> -> vector<17x64xf32>
    %120 = arith.truncf %119 : vector<17x64xf32> to vector<17x64xbf16>
    %c0_90 = arith.constant 0 : index
    %c1_91 = arith.constant 1 : index
    %c0_92 = arith.constant 0 : index
    %c0_93 = arith.constant 0 : index
    %121 = vector.load %arg7[%c0_90, %c1_91, %c0_92, %c0_93] : memref<1x2x64x128xbf16, #tpu.memory_space<vmem>>, vector<1x1x64x128xbf16>
    %122 = vector.shape_cast %121 : vector<1x1x64x128xbf16> to vector<64x128xbf16>
    %cst_94 = arith.constant dense<0.000000e+00> : vector<17x128xf32>
    %123 = tpu.matmul %120, %122, %cst_94 {dimension_numbers = #tpu.dot_dimension_numbers<[1], [0], [0], [1], [0, 0, 1, 1], [], []>} : vector<17x64xbf16>, vector<64x128xbf16>, vector<17x128xf32> -> vector<17x128xf32>
    %124 = arith.addf %82, %123 : vector<17x128xf32>
    %125 = arith.addf %18, %124 : vector<17x128xf32>
    %126 = vector.broadcast %12 : vector<1x128xf32> to vector<17x128xf32>
    %127 = arith.addf %125, %126 : vector<17x128xf32>
    %cst_95 = arith.constant dense<0.000000e+00> : vector<17xf32>
    %128 = vector.multi_reduction <add>, %127, %cst_95 [1] : vector<17x128xf32> to vector<17xf32>
    %129 = vector.shape_cast %128 : vector<17xf32> to vector<17x1xf32>
    %cst_96 = arith.constant 1.280000e+02 : f32
    %130 = vector.broadcast %cst_96 : f32 to vector<17x1xf32>
    %131 = arith.divf %129, %130 : vector<17x1xf32>
    %132 = vector.broadcast %131 : vector<17x1xf32> to vector<17x128xf32>
    %133 = arith.subf %127, %132 : vector<17x128xf32>
    %134 = arith.mulf %133, %133 : vector<17x128xf32>
    %cst_97 = arith.constant dense<0.000000e+00> : vector<17xf32>
    %135 = vector.multi_reduction <add>, %134, %cst_97 [1] : vector<17x128xf32> to vector<17xf32>
    %136 = vector.shape_cast %135 : vector<17xf32> to vector<17x1xf32>
    %cst_98 = arith.constant 1.280000e+02 : f32
    %137 = vector.broadcast %cst_98 : f32 to vector<17x1xf32>
    %138 = arith.divf %136, %137 : vector<17x1xf32>
    %139 = vector.broadcast %131 : vector<17x1xf32> to vector<17x128xf32>
    %140 = arith.subf %127, %139 : vector<17x128xf32>
    %cst_99 = arith.constant 9.99999974E-6 : f32
    %141 = vector.broadcast %cst_99 : f32 to vector<17x1xf32>
    %142 = arith.addf %138, %141 : vector<17x1xf32>
    %143 = math.rsqrt %142 : vector<17x1xf32>
    %144 = vector.broadcast %143 : vector<17x1xf32> to vector<17x128xf32>
    %145 = arith.mulf %140, %144 : vector<17x128xf32>
    %146 = vector.broadcast %8 : vector<1x128xf32> to vector<17x128xf32>
    %147 = arith.mulf %145, %146 : vector<17x128xf32>
    %148 = vector.broadcast %10 : vector<1x128xf32> to vector<17x128xf32>
    %149 = arith.addf %147, %148 : vector<17x128xf32>
    %150 = arith.truncf %149 : vector<17x128xf32> to vector<17x128xbf16>
    %c0_100 = arith.constant 0 : index
    %c0_101 = arith.constant 0 : index
    %c0_102 = arith.constant 0 : index
    %151 = vector.load %arg11[%c0_100, %c0_101, %c0_102] : memref<1x128x512xbf16, #tpu.memory_space<vmem>>, vector<1x128x512xbf16>
    %152 = vector.shape_cast %151 : vector<1x128x512xbf16> to vector<128x512xbf16>
    %cst_103 = arith.constant dense<0.000000e+00> : vector<17x512xf32>
    %153 = tpu.matmul %150, %152, %cst_103 {dimension_numbers = #tpu.dot_dimension_numbers<[1], [0], [0], [1], [0, 0, 1, 1], [], []>} : vector<17x128xbf16>, vector<128x512xbf16>, vector<17x512xf32> -> vector<17x512xf32>
    %154 = vector.broadcast %14 : vector<1x512xf32> to vector<17x512xf32>
    %155 = arith.addf %153, %154 : vector<17x512xf32>
    %156 = arith.mulf %155, %155 : vector<17x512xf32>
    %157 = arith.mulf %155, %156 : vector<17x512xf32>
    %cst_104 = arith.constant 4.471500e-02 : f32
    %158 = vector.broadcast %cst_104 : f32 to vector<17x512xf32>
    %159 = arith.mulf %158, %157 : vector<17x512xf32>
    %160 = arith.addf %155, %159 : vector<17x512xf32>
    %cst_105 = arith.constant 0.797884583 : f32
    %161 = vector.broadcast %cst_105 : f32 to vector<17x512xf32>
    %162 = arith.mulf %161, %160 : vector<17x512xf32>
    %163 = math.tanh %162 : vector<17x512xf32>
    %cst_106 = arith.constant 1.000000e+00 : f32
    %164 = vector.broadcast %cst_106 : f32 to vector<17x512xf32>
    %165 = arith.addf %164, %163 : vector<17x512xf32>
    %cst_107 = arith.constant 5.000000e-01 : f32
    %166 = vector.broadcast %cst_107 : f32 to vector<17x512xf32>
    %167 = arith.mulf %166, %165 : vector<17x512xf32>
    %168 = arith.mulf %155, %167 : vector<17x512xf32>
    %169 = arith.truncf %168 : vector<17x512xf32> to vector<17x512xbf16>
    %c0_108 = arith.constant 0 : index
    %c0_109 = arith.constant 0 : index
    %c0_110 = arith.constant 0 : index
    %170 = vector.load %arg13[%c0_108, %c0_109, %c0_110] : memref<1x512x128xbf16, #tpu.memory_space<vmem>>, vector<1x512x128xbf16>
    %171 = vector.shape_cast %170 : vector<1x512x128xbf16> to vector<512x128xbf16>
    %cst_111 = arith.constant dense<0.000000e+00> : vector<17x128xf32>
    %172 = tpu.matmul %169, %171, %cst_111 {dimension_numbers = #tpu.dot_dimension_numbers<[1], [0], [0], [1], [0, 0, 1, 1], [], []>} : vector<17x512xbf16>, vector<512x128xbf16>, vector<17x128xf32> -> vector<17x128xf32>
    %173 = vector.broadcast %16 : vector<1x128xf32> to vector<17x128xf32>
    %174 = arith.addf %172, %173 : vector<17x128xf32>
    %175 = arith.addf %127, %174 : vector<17x128xf32>
    %c0_112 = arith.constant 0 : index
    %c0_113 = arith.constant 0 : index
    %c0_114 = arith.constant 0 : index
    %176 = vector.load %arg16[%c0_112, %c0_113, %c0_114] : memref<2x17x128xf32, #tpu.memory_space<vmem>>, vector<1x17x128xf32>
    %177 = vector.shape_cast %176 : vector<1x17x128xf32> to vector<17x128xf32>
    %178 = vector.shape_cast %175 : vector<17x128xf32> to vector<1x17x128xf32>
    tpu.vector_store %arg16[%c0_112, %c0_113, %c0_114], %178 {strides = array<i32>} : memref<2x17x128xf32, #tpu.memory_space<vmem>>, vector<1x17x128xf32>,
    %c1_115 = arith.constant 1 : index
    %c0_116 = arith.constant 0 : index
    %c0_117 = arith.constant 0 : index
    %179 = vector.load %arg16[%c1_115, %c0_116, %c0_117] : memref<2x17x128xf32, #tpu.memory_space<vmem>>, vector<1x17x128xf32>
    %180 = vector.shape_cast %179 : vector<1x17x128xf32> to vector<17x128xf32>
    %cst_118 = arith.constant dense<0.000000e+00> : vector<17xf32>
    %181 = vector.multi_reduction <add>, %180, %cst_118 [1] : vector<17x128xf32> to vector<17xf32>
    %182 = vector.shape_cast %181 : vector<17xf32> to vector<17x1xf32>
    %cst_119 = arith.constant 1.280000e+02 : f32
    %183 = vector.broadcast %cst_119 : f32 to vector<17x1xf32>
    %184 = arith.divf %182, %183 : vector<17x1xf32>
    %185 = vector.broadcast %184 : vector<17x1xf32> to vector<17x128xf32>
    %186 = arith.subf %180, %185 : vector<17x128xf32>
    %187 = arith.mulf %186, %186 : vector<17x128xf32>
    %cst_120 = arith.constant dense<0.000000e+00> : vector<17xf32>
    %188 = vector.multi_reduction <add>, %187, %cst_120 [1] : vector<17x128xf32> to vector<17xf32>
    %189 = vector.shape_cast %188 : vector<17xf32> to vector<17x1xf32>
    %cst_121 = arith.constant 1.280000e+02 : f32
    %190 = vector.broadcast %cst_121 : f32 to vector<17x1xf32>
    %191 = arith.divf %189, %190 : vector<17x1xf32>
    %192 = vector.broadcast %184 : vector<17x1xf32> to vector<17x128xf32>
    %193 = arith.subf %180, %192 : vector<17x128xf32>
    %cst_122 = arith.constant 9.99999974E-6 : f32
    %194 = vector.broadcast %cst_122 : f32 to vector<17x1xf32>
    %195 = arith.addf %191, %194 : vector<17x1xf32>
    %196 = math.rsqrt %195 : vector<17x1xf32>
    %197 = vector.broadcast %196 : vector<17x1xf32> to vector<17x128xf32>
    %198 = arith.mulf %193, %197 : vector<17x128xf32>
    %199 = vector.broadcast %4 : vector<1x128xf32> to vector<17x128xf32>
    %200 = arith.mulf %198, %199 : vector<17x128xf32>
    %201 = vector.broadcast %6 : vector<1x128xf32> to vector<17x128xf32>
    %202 = arith.addf %200, %201 : vector<17x128xf32>
    %203 = arith.truncf %202 : vector<17x128xf32> to vector<17x128xbf16>
    %c0_123 = arith.constant 0 : index
    %c0_124 = arith.constant 0 : index
    %c0_125 = arith.constant 0 : index
    %c0_126 = arith.constant 0 : index
    %204 = vector.load %arg5[%c0_123, %c0_124, %c0_125, %c0_126] : memref<1x6x128x64xbf16, #tpu.memory_space<vmem>>, vector<1x1x128x64xbf16>
    %205 = vector.shape_cast %204 : vector<1x1x128x64xbf16> to vector<128x64xbf16>
    %cst_127 = arith.constant dense<0.000000e+00> : vector<17x64xf32>
    %206 = tpu.matmul %203, %205, %cst_127 {dimension_numbers = #tpu.dot_dimension_numbers<[1], [0], [0], [1], [0, 0, 1, 1], [], []>} : vector<17x128xbf16>, vector<128x64xbf16>, vector<17x64xf32> -> vector<17x64xf32>
    %c0_128 = arith.constant 0 : index
    %c0_129 = arith.constant 0 : index
    %c0_130 = arith.constant 0 : index
    %c0_131 = arith.constant 0 : index
    %207 = vector.load %arg6[%c0_128, %c0_129, %c0_130, %c0_131] : memref<1x6x1x64xf32, #tpu.memory_space<vmem>>, vector<1x1x1x64xf32>
    %208 = vector.shape_cast %207 : vector<1x1x1x64xf32> to vector<1x64xf32>
    %209 = vector.broadcast %208 : vector<1x64xf32> to vector<17x64xf32>
    %210 = arith.addf %206, %209 : vector<17x64xf32>
    %c0_132 = arith.constant 0 : index
    %c2_133 = arith.constant 2 : index
    %c0_134 = arith.constant 0 : index
    %c0_135 = arith.constant 0 : index
    %211 = vector.load %arg5[%c0_132, %c2_133, %c0_134, %c0_135] : memref<1x6x128x64xbf16, #tpu.memory_space<vmem>>, vector<1x1x128x64xbf16>
    %212 = vector.shape_cast %211 : vector<1x1x128x64xbf16> to vector<128x64xbf16>
    %cst_136 = arith.constant dense<0.000000e+00> : vector<17x64xf32>
    %213 = tpu.matmul %203, %212, %cst_136 {dimension_numbers = #tpu.dot_dimension_numbers<[1], [0], [0], [1], [0, 0, 1, 1], [], []>} : vector<17x128xbf16>, vector<128x64xbf16>, vector<17x64xf32> -> vector<17x64xf32>
    %c0_137 = arith.constant 0 : index
    %c2_138 = arith.constant 2 : index
    %c0_139 = arith.constant 0 : index
    %c0_140 = arith.constant 0 : index
    %214 = vector.load %arg6[%c0_137, %c2_138, %c0_139, %c0_140] : memref<1x6x1x64xf32, #tpu.memory_space<vmem>>, vector<1x1x1x64xf32>
    %215 = vector.shape_cast %214 : vector<1x1x1x64xf32> to vector<1x64xf32>
    %216 = vector.broadcast %215 : vector<1x64xf32> to vector<17x64xf32>
    %217 = arith.addf %213, %216 : vector<17x64xf32>
    %c0_141 = arith.constant 0 : index
    %c4_142 = arith.constant 4 : index
    %c0_143 = arith.constant 0 : index
    %c0_144 = arith.constant 0 : index
    %218 = vector.load %arg5[%c0_141, %c4_142, %c0_143, %c0_144] : memref<1x6x128x64xbf16, #tpu.memory_space<vmem>>, vector<1x1x128x64xbf16>
    %219 = vector.shape_cast %218 : vector<1x1x128x64xbf16> to vector<128x64xbf16>
    %cst_145 = arith.constant dense<0.000000e+00> : vector<17x64xf32>
    %220 = tpu.matmul %203, %219, %cst_145 {dimension_numbers = #tpu.dot_dimension_numbers<[1], [0], [0], [1], [0, 0, 1, 1], [], []>} : vector<17x128xbf16>, vector<128x64xbf16>, vector<17x64xf32> -> vector<17x64xf32>
    %c0_146 = arith.constant 0 : index
    %c4_147 = arith.constant 4 : index
    %c0_148 = arith.constant 0 : index
    %c0_149 = arith.constant 0 : index
    %221 = vector.load %arg6[%c0_146, %c4_147, %c0_148, %c0_149] : memref<1x6x1x64xf32, #tpu.memory_space<vmem>>, vector<1x1x1x64xf32>
    %222 = vector.shape_cast %221 : vector<1x1x1x64xf32> to vector<1x64xf32>
    %223 = vector.broadcast %222 : vector<1x64xf32> to vector<17x64xf32>
    %224 = arith.addf %220, %223 : vector<17x64xf32>
    %225 = arith.truncf %210 : vector<17x64xf32> to vector<17x64xbf16>
    %226 = arith.truncf %217 : vector<17x64xf32> to vector<17x64xbf16>
    %cst_150 = arith.constant dense<0.000000e+00> : vector<17x17xf32>
    %227 = tpu.matmul %225, %226, %cst_150 {dimension_numbers = #tpu.dot_dimension_numbers<[1], [1], [0], [0], [0, 0, 1, 0], [], []>} : vector<17x64xbf16>, vector<17x64xbf16>, vector<17x17xf32> -> vector<17x17xf32>
    %cst_151 = arith.constant dense<0xFF800000> : vector<17xf32>
    %228 = vector.multi_reduction <maximumf>, %227, %cst_151 [1] : vector<17x17xf32> to vector<17xf32>
    %229 = vector.shape_cast %228 : vector<17xf32> to vector<17x1xf32>
    %230 = vector.broadcast %229 : vector<17x1xf32> to vector<17x17xf32>
    %231 = arith.subf %227, %230 : vector<17x17xf32>
    %232 = math.exp %231 : vector<17x17xf32>
    %cst_152 = arith.constant dense<0.000000e+00> : vector<17xf32>
    %233 = vector.multi_reduction <add>, %232, %cst_152 [1] : vector<17x17xf32> to vector<17xf32>
    %234 = vector.shape_cast %233 : vector<17xf32> to vector<17x1xf32>
    %235 = tpu.reciprocal %234 {approx = true} : vector<17x1xf32> -> vector<17x1xf32>
    %236 = vector.broadcast %235 : vector<17x1xf32> to vector<17x17xf32>
    %237 = arith.mulf %232, %236 : vector<17x17xf32>
    %238 = arith.truncf %237 : vector<17x17xf32> to vector<17x17xbf16>
    %239 = arith.truncf %224 : vector<17x64xf32> to vector<17x64xbf16>
    %cst_153 = arith.constant dense<0.000000e+00> : vector<17x64xf32>
    %240 = tpu.matmul %238, %239, %cst_153 {dimension_numbers = #tpu.dot_dimension_numbers<[1], [0], [0], [1], [0, 0, 1, 1], [], []>} : vector<17x17xbf16>, vector<17x64xbf16>, vector<17x64xf32> -> vector<17x64xf32>
    %241 = arith.truncf %240 : vector<17x64xf32> to vector<17x64xbf16>
    %c0_154 = arith.constant 0 : index
    %c0_155 = arith.constant 0 : index
    %c0_156 = arith.constant 0 : index
    %c0_157 = arith.constant 0 : index
    %242 = vector.load %arg7[%c0_154, %c0_155, %c0_156, %c0_157] : memref<1x2x64x128xbf16, #tpu.memory_space<vmem>>, vector<1x1x64x128xbf16>
    %243 = vector.shape_cast %242 : vector<1x1x64x128xbf16> to vector<64x128xbf16>
    %cst_158 = arith.constant dense<0.000000e+00> : vector<17x128xf32>
    %244 = tpu.matmul %241, %243, %cst_158 {dimension_numbers = #tpu.dot_dimension_numbers<[1], [0], [0], [1], [0, 0, 1, 1], [], []>} : vector<17x64xbf16>, vector<64x128xbf16>, vector<17x128xf32> -> vector<17x128xf32>
    %c0_159 = arith.constant 0 : index
    %c1_160 = arith.constant 1 : index
    %c0_161 = arith.constant 0 : index
    %c0_162 = arith.constant 0 : index
    %245 = vector.load %arg5[%c0_159, %c1_160, %c0_161, %c0_162] : memref<1x6x128x64xbf16, #tpu.memory_space<vmem>>, vector<1x1x128x64xbf16>
    %246 = vector.shape_cast %245 : vector<1x1x128x64xbf16> to vector<128x64xbf16>
    %cst_163 = arith.constant dense<0.000000e+00> : vector<17x64xf32>
    %247 = tpu.matmul %203, %246, %cst_163 {dimension_numbers = #tpu.dot_dimension_numbers<[1], [0], [0], [1], [0, 0, 1, 1], [], []>} : vector<17x128xbf16>, vector<128x64xbf16>, vector<17x64xf32> -> vector<17x64xf32>
    %c0_164 = arith.constant 0 : index
    %c1_165 = arith.constant 1 : index
    %c0_166 = arith.constant 0 : index
    %c0_167 = arith.constant 0 : index
    %248 = vector.load %arg6[%c0_164, %c1_165, %c0_166, %c0_167] : memref<1x6x1x64xf32, #tpu.memory_space<vmem>>, vector<1x1x1x64xf32>
    %249 = vector.shape_cast %248 : vector<1x1x1x64xf32> to vector<1x64xf32>
    %250 = vector.broadcast %249 : vector<1x64xf32> to vector<17x64xf32>
    %251 = arith.addf %247, %250 : vector<17x64xf32>
    %c0_168 = arith.constant 0 : index
    %c3_169 = arith.constant 3 : index
    %c0_170 = arith.constant 0 : index
    %c0_171 = arith.constant 0 : index
    %252 = vector.load %arg5[%c0_168, %c3_169, %c0_170, %c0_171] : memref<1x6x128x64xbf16, #tpu.memory_space<vmem>>, vector<1x1x128x64xbf16>
    %253 = vector.shape_cast %252 : vector<1x1x128x64xbf16> to vector<128x64xbf16>
    %cst_172 = arith.constant dense<0.000000e+00> : vector<17x64xf32>
    %254 = tpu.matmul %203, %253, %cst_172 {dimension_numbers = #tpu.dot_dimension_numbers<[1], [0], [0], [1], [0, 0, 1, 1], [], []>} : vector<17x128xbf16>, vector<128x64xbf16>, vector<17x64xf32> -> vector<17x64xf32>
    %c0_173 = arith.constant 0 : index
    %c3_174 = arith.constant 3 : index
    %c0_175 = arith.constant 0 : index
    %c0_176 = arith.constant 0 : index
    %255 = vector.load %arg6[%c0_173, %c3_174, %c0_175, %c0_176] : memref<1x6x1x64xf32, #tpu.memory_space<vmem>>, vector<1x1x1x64xf32>
    %256 = vector.shape_cast %255 : vector<1x1x1x64xf32> to vector<1x64xf32>
    %257 = vector.broadcast %256 : vector<1x64xf32> to vector<17x64xf32>
    %258 = arith.addf %254, %257 : vector<17x64xf32>
    %c0_177 = arith.constant 0 : index
    %c5_178 = arith.constant 5 : index
    %c0_179 = arith.constant 0 : index
    %c0_180 = arith.constant 0 : index
    %259 = vector.load %arg5[%c0_177, %c5_178, %c0_179, %c0_180] : memref<1x6x128x64xbf16, #tpu.memory_space<vmem>>, vector<1x1x128x64xbf16>
    %260 = vector.shape_cast %259 : vector<1x1x128x64xbf16> to vector<128x64xbf16>
    %cst_181 = arith.constant dense<0.000000e+00> : vector<17x64xf32>
    %261 = tpu.matmul %203, %260, %cst_181 {dimension_numbers = #tpu.dot_dimension_numbers<[1], [0], [0], [1], [0, 0, 1, 1], [], []>} : vector<17x128xbf16>, vector<128x64xbf16>, vector<17x64xf32> -> vector<17x64xf32>
    %c0_182 = arith.constant 0 : index
    %c5_183 = arith.constant 5 : index
    %c0_184 = arith.constant 0 : index
    %c0_185 = arith.constant 0 : index
    %262 = vector.load %arg6[%c0_182, %c5_183, %c0_184, %c0_185] : memref<1x6x1x64xf32, #tpu.memory_space<vmem>>, vector<1x1x1x64xf32>
    %263 = vector.shape_cast %262 : vector<1x1x1x64xf32> to vector<1x64xf32>
    %264 = vector.broadcast %263 : vector<1x64xf32> to vector<17x64xf32>
    %265 = arith.addf %261, %264 : vector<17x64xf32>
    %266 = arith.truncf %251 : vector<17x64xf32> to vector<17x64xbf16>
    %267 = arith.truncf %258 : vector<17x64xf32> to vector<17x64xbf16>
    %cst_186 = arith.constant dense<0.000000e+00> : vector<17x17xf32>
    %268 = tpu.matmul %266, %267, %cst_186 {dimension_numbers = #tpu.dot_dimension_numbers<[1], [1], [0], [0], [0, 0, 1, 0], [], []>} : vector<17x64xbf16>, vector<17x64xbf16>, vector<17x17xf32> -> vector<17x17xf32>
    %cst_187 = arith.constant dense<0xFF800000> : vector<17xf32>
    %269 = vector.multi_reduction <maximumf>, %268, %cst_187 [1] : vector<17x17xf32> to vector<17xf32>
    %270 = vector.shape_cast %269 : vector<17xf32> to vector<17x1xf32>
    %271 = vector.broadcast %270 : vector<17x1xf32> to vector<17x17xf32>
    %272 = arith.subf %268, %271 : vector<17x17xf32>
    %273 = math.exp %272 : vector<17x17xf32>
    %cst_188 = arith.constant dense<0.000000e+00> : vector<17xf32>
    %274 = vector.multi_reduction <add>, %273, %cst_188 [1] : vector<17x17xf32> to vector<17xf32>
    %275 = vector.shape_cast %274 : vector<17xf32> to vector<17x1xf32>
    %276 = tpu.reciprocal %275 {approx = true} : vector<17x1xf32> -> vector<17x1xf32>
    %277 = vector.broadcast %276 : vector<17x1xf32> to vector<17x17xf32>
    %278 = arith.mulf %273, %277 : vector<17x17xf32>
    %279 = arith.truncf %278 : vector<17x17xf32> to vector<17x17xbf16>
    %280 = arith.truncf %265 : vector<17x64xf32> to vector<17x64xbf16>
    %cst_189 = arith.constant dense<0.000000e+00> : vector<17x64xf32>
    %281 = tpu.matmul %279, %280, %cst_189 {dimension_numbers = #tpu.dot_dimension_numbers<[1], [0], [0], [1], [0, 0, 1, 1], [], []>} : vector<17x17xbf16>, vector<17x64xbf16>, vector<17x64xf32> -> vector<17x64xf32>
    %282 = arith.truncf %281 : vector<17x64xf32> to vector<17x64xbf16>
    %c0_190 = arith.constant 0 : index
    %c1_191 = arith.constant 1 : index
    %c0_192 = arith.constant 0 : index
    %c0_193 = arith.constant 0 : index
    %283 = vector.load %arg7[%c0_190, %c1_191, %c0_192, %c0_193] : memref<1x2x64x128xbf16, #tpu.memory_space<vmem>>, vector<1x1x64x128xbf16>
    %284 = vector.shape_cast %283 : vector<1x1x64x128xbf16> to vector<64x128xbf16>
    %cst_194 = arith.constant dense<0.000000e+00> : vector<17x128xf32>
    %285 = tpu.matmul %282, %284, %cst_194 {dimension_numbers = #tpu.dot_dimension_numbers<[1], [0], [0], [1], [0, 0, 1, 1], [], []>} : vector<17x64xbf16>, vector<64x128xbf16>, vector<17x128xf32> -> vector<17x128xf32>
    %286 = arith.addf %244, %285 : vector<17x128xf32>
    %287 = arith.addf %180, %286 : vector<17x128xf32>
    %288 = vector.broadcast %12 : vector<1x128xf32> to vector<17x128xf32>
    %289 = arith.addf %287, %288 : vector<17x128xf32>
    %cst_195 = arith.constant dense<0.000000e+00> : vector<17xf32>
    %290 = vector.multi_reduction <add>, %289, %cst_195 [1] : vector<17x128xf32> to vector<17xf32>
    %291 = vector.shape_cast %290 : vector<17xf32> to vector<17x1xf32>
    %cst_196 = arith.constant 1.280000e+02 : f32
    %292 = vector.broadcast %cst_196 : f32 to vector<17x1xf32>
    %293 = arith.divf %291, %292 : vector<17x1xf32>
    %294 = vector.broadcast %293 : vector<17x1xf32> to vector<17x128xf32>
    %295 = arith.subf %289, %294 : vector<17x128xf32>
    %296 = arith.mulf %295, %295 : vector<17x128xf32>
    %cst_197 = arith.constant dense<0.000000e+00> : vector<17xf32>
    %297 = vector.multi_reduction <add>, %296, %cst_197 [1] : vector<17x128xf32> to vector<17xf32>
    %298 = vector.shape_cast %297 : vector<17xf32> to vector<17x1xf32>
    %cst_198 = arith.constant 1.280000e+02 : f32
    %299 = vector.broadcast %cst_198 : f32 to vector<17x1xf32>
    %300 = arith.divf %298, %299 : vector<17x1xf32>
    %301 = vector.broadcast %293 : vector<17x1xf32> to vector<17x128xf32>
    %302 = arith.subf %289, %301 : vector<17x128xf32>
    %cst_199 = arith.constant 9.99999974E-6 : f32
    %303 = vector.broadcast %cst_199 : f32 to vector<17x1xf32>
    %304 = arith.addf %300, %303 : vector<17x1xf32>
    %305 = math.rsqrt %304 : vector<17x1xf32>
    %306 = vector.broadcast %305 : vector<17x1xf32> to vector<17x128xf32>
    %307 = arith.mulf %302, %306 : vector<17x128xf32>
    %308 = vector.broadcast %8 : vector<1x128xf32> to vector<17x128xf32>
    %309 = arith.mulf %307, %308 : vector<17x128xf32>
    %310 = vector.broadcast %10 : vector<1x128xf32> to vector<17x128xf32>
    %311 = arith.addf %309, %310 : vector<17x128xf32>
    %312 = arith.truncf %311 : vector<17x128xf32> to vector<17x128xbf16>
    %c0_200 = arith.constant 0 : index
    %c0_201 = arith.constant 0 : index
    %c0_202 = arith.constant 0 : index
    %313 = vector.load %arg11[%c0_200, %c0_201, %c0_202] : memref<1x128x512xbf16, #tpu.memory_space<vmem>>, vector<1x128x512xbf16>
    %314 = vector.shape_cast %313 : vector<1x128x512xbf16> to vector<128x512xbf16>
    %cst_203 = arith.constant dense<0.000000e+00> : vector<17x512xf32>
    %315 = tpu.matmul %312, %314, %cst_203 {dimension_numbers = #tpu.dot_dimension_numbers<[1], [0], [0], [1], [0, 0, 1, 1], [], []>} : vector<17x128xbf16>, vector<128x512xbf16>, vector<17x512xf32> -> vector<17x512xf32>
    %316 = vector.broadcast %14 : vector<1x512xf32> to vector<17x512xf32>
    %317 = arith.addf %315, %316 : vector<17x512xf32>
    %318 = arith.mulf %317, %317 : vector<17x512xf32>
    %319 = arith.mulf %317, %318 : vector<17x512xf32>
    %cst_204 = arith.constant 4.471500e-02 : f32
    %320 = vector.broadcast %cst_204 : f32 to vector<17x512xf32>
    %321 = arith.mulf %320, %319 : vector<17x512xf32>
    %322 = arith.addf %317, %321 : vector<17x512xf32>
    %cst_205 = arith.constant 0.797884583 : f32
    %323 = vector.broadcast %cst_205 : f32 to vector<17x512xf32>
    %324 = arith.mulf %323, %322 : vector<17x512xf32>
    %325 = math.tanh %324 : vector<17x512xf32>
    %cst_206 = arith.constant 1.000000e+00 : f32
    %326 = vector.broadcast %cst_206 : f32 to vector<17x512xf32>
    %327 = arith.addf %326, %325 : vector<17x512xf32>
    %cst_207 = arith.constant 5.000000e-01 : f32
    %328 = vector.broadcast %cst_207 : f32 to vector<17x512xf32>
    %329 = arith.mulf %328, %327 : vector<17x512xf32>
    %330 = arith.mulf %317, %329 : vector<17x512xf32>
    %331 = arith.truncf %330 : vector<17x512xf32> to vector<17x512xbf16>
    %c0_208 = arith.constant 0 : index
    %c0_209 = arith.constant 0 : index
    %c0_210 = arith.constant 0 : index
    %332 = vector.load %arg13[%c0_208, %c0_209, %c0_210] : memref<1x512x128xbf16, #tpu.memory_space<vmem>>, vector<1x512x128xbf16>
    %333 = vector.shape_cast %332 : vector<1x512x128xbf16> to vector<512x128xbf16>
    %cst_211 = arith.constant dense<0.000000e+00> : vector<17x128xf32>
    %334 = tpu.matmul %331, %333, %cst_211 {dimension_numbers = #tpu.dot_dimension_numbers<[1], [0], [0], [1], [0, 0, 1, 1], [], []>} : vector<17x512xbf16>, vector<512x128xbf16>, vector<17x128xf32> -> vector<17x128xf32>
    %335 = vector.broadcast %16 : vector<1x128xf32> to vector<17x128xf32>
    %336 = arith.addf %334, %335 : vector<17x128xf32>
    %337 = arith.addf %289, %336 : vector<17x128xf32>
    %c1_212 = arith.constant 1 : index
    %c0_213 = arith.constant 0 : index
    %c0_214 = arith.constant 0 : index
    %338 = vector.load %arg16[%c1_212, %c0_213, %c0_214] : memref<2x17x128xf32, #tpu.memory_space<vmem>>, vector<1x17x128xf32>
    %339 = vector.shape_cast %338 : vector<1x17x128xf32> to vector<17x128xf32>
    %340 = vector.shape_cast %337 : vector<17x128xf32> to vector<1x17x128xf32>
    tpu.vector_store %arg16[%c1_212, %c0_213, %c0_214], %340 {strides = array<i32>} : memref<2x17x128xf32, #tpu.memory_space<vmem>>, vector<1x17x128xf32>,
    %c1_i32 = arith.constant 1 : i32
    %341 = arith.cmpi eq, %arg1, %c1_i32 : i32
    %342 = arith.extui %341 : i1 to i32
    %c0_i32_215 = arith.constant 0 : i32
    %343 = arith.cmpi ne, %342, %c0_i32_215 : i32
    scf.if %343 {
      %c0_216 = arith.constant 0 : index
      %c0_217 = arith.constant 0 : index
      %c0_218 = arith.constant 0 : index
      %344 = vector.load %arg16[%c0_216, %c0_217, %c0_218] : memref<2x17x128xf32, #tpu.memory_space<vmem>>, vector<2x17x128xf32>
      %c0_219 = arith.constant 0 : index
      %c0_220 = arith.constant 0 : index
      %c0_221 = arith.constant 0 : index
      %345 = vector.load %arg15[%c0_219, %c0_220, %c0_221] : memref<2x17x128xf32, #tpu.memory_space<vmem>>, vector<2x17x128xf32>
      tpu.vector_store %arg15[%c0_219, %c0_220, %c0_221], %344 {strides = array<i32>} : memref<2x17x128xf32, #tpu.memory_space<vmem>>, vector<2x17x128xf32>,
    } else {
    }
    return
  }
  func.func @transform_0(%arg0: i32, %arg1: i32) -> (i32, i32, i32) {
    %c0_i32 = arith.constant 0 : i32
    %c0_i32_0 = arith.constant 0 : i32
    %c0_i32_1 = arith.constant 0 : i32
    return %arg0, %c0_i32, %c0_i32_0 : i32, i32, i32
  }
  func.func @transform_1(%arg0: i32, %arg1: i32) -> (i32, i32, i32) {
    %c0_i32 = arith.constant 0 : i32
    %c0_i32_0 = arith.constant 0 : i32
    %c0_i32_1 = arith.constant 0 : i32
    return %arg1, %c0_i32, %c0_i32_0 : i32, i32, i32
  }
  func.func @transform_2(%arg0: i32, %arg1: i32) -> (i32, i32, i32) {
    %c0_i32 = arith.constant 0 : i32
    %c0_i32_0 = arith.constant 0 : i32
    %c0_i32_1 = arith.constant 0 : i32
    return %arg1, %c0_i32, %c0_i32_0 : i32, i32, i32
  }
  func.func @transform_3(%arg0: i32, %arg1: i32) -> (i32, i32, i32, i32) {
    %c0_i32 = arith.constant 0 : i32
    %c0_i32_0 = arith.constant 0 : i32
    %c0_i32_1 = arith.constant 0 : i32
    %c0_i32_2 = arith.constant 0 : i32
    return %arg1, %c0_i32, %c0_i32_0, %c0_i32_1 : i32, i32, i32, i32
  }
  func.func @transform_4(%arg0: i32, %arg1: i32) -> (i32, i32, i32, i32) {
    %c0_i32 = arith.constant 0 : i32
    %c0_i32_0 = arith.constant 0 : i32
    %c0_i32_1 = arith.constant 0 : i32
    %c0_i32_2 = arith.constant 0 : i32
    return %arg1, %c0_i32, %c0_i32_0, %c0_i32_1 : i32, i32, i32, i32
  }
  func.func @transform_5(%arg0: i32, %arg1: i32) -> (i32, i32, i32, i32) {
    %c0_i32 = arith.constant 0 : i32
    %c0_i32_0 = arith.constant 0 : i32
    %c0_i32_1 = arith.constant 0 : i32
    %c0_i32_2 = arith.constant 0 : i32
    return %arg1, %c0_i32, %c0_i32_0, %c0_i32_1 : i32, i32, i32, i32
  }
  func.func @transform_6(%arg0: i32, %arg1: i32) -> (i32, i32, i32) {
    %c0_i32 = arith.constant 0 : i32
    %c0_i32_0 = arith.constant 0 : i32
    %c0_i32_1 = arith.constant 0 : i32
    return %arg1, %c0_i32, %c0_i32_0 : i32, i32, i32
  }
  func.func @transform_7(%arg0: i32, %arg1: i32) -> (i32, i32, i32) {
    %c0_i32 = arith.constant 0 : i32
    %c0_i32_0 = arith.constant 0 : i32
    %c0_i32_1 = arith.constant 0 : i32
    return %arg1, %c0_i32, %c0_i32_0 : i32, i32, i32
  }
  func.func @transform_8(%arg0: i32, %arg1: i32) -> (i32, i32, i32) {
    %c0_i32 = arith.constant 0 : i32
    %c0_i32_0 = arith.constant 0 : i32
    %c0_i32_1 = arith.constant 0 : i32
    return %arg1, %c0_i32, %c0_i32_0 : i32, i32, i32
  }
  func.func @transform_9(%arg0: i32, %arg1: i32) -> (i32, i32, i32) {
    %c0_i32 = arith.constant 0 : i32
    %c0_i32_0 = arith.constant 0 : i32
    %c0_i32_1 = arith.constant 0 : i32
    return %arg1, %c0_i32, %c0_i32_0 : i32, i32, i32
  }
  func.func @transform_10(%arg0: i32, %arg1: i32) -> (i32, i32, i32) {
    %c0_i32 = arith.constant 0 : i32
    %c0_i32_0 = arith.constant 0 : i32
    %c0_i32_1 = arith.constant 0 : i32
    return %arg1, %c0_i32, %c0_i32_0 : i32, i32, i32
  }
  func.func @transform_11(%arg0: i32, %arg1: i32) -> (i32, i32, i32) {
    %c0_i32 = arith.constant 0 : i32
    %c0_i32_0 = arith.constant 0 : i32
    %c0_i32_1 = arith.constant 0 : i32
    return %arg1, %c0_i32, %c0_i32_0 : i32, i32, i32
  }
  func.func @transform_12(%arg0: i32, %arg1: i32) -> (i32, i32, i32) {
    %c0_i32 = arith.constant 0 : i32
    %c0_i32_0 = arith.constant 0 : i32
    %c0_i32_1 = arith.constant 0 : i32
    return %arg1, %c0_i32, %c0_i32_0 : i32, i32, i32
  }
  func.func @transform_13(%arg0: i32, %arg1: i32) -> (i32, i32, i32) {
    %c0_i32 = arith.constant 0 : i32
    %c0_i32_0 = arith.constant 0 : i32
    %c0_i32_1 = arith.constant 0 : i32
    return %arg0, %c0_i32, %c0_i32_0 : i32, i32, i32
  }
}

module attributes {stable_mosaic.version = 11 : i64} {
  func.func @_stack_kernel(%arg0: i32, %arg1: i32, %arg2: memref<2x8x128xf32, #tpu.memory_space<vmem>>, %arg3: memref<2x1x8xf32, #tpu.memory_space<vmem>>, %arg4: memref<1x128xf32, #tpu.memory_space<vmem>>, %arg5: memref<1x128xf32, #tpu.memory_space<vmem>>, %arg6: memref<1x1x128xf32, #tpu.memory_space<vmem>>, %arg7: memref<1x1x128xf32, #tpu.memory_space<vmem>>, %arg8: memref<1x6x128x64xbf16, #tpu.memory_space<vmem>>, %arg9: memref<1x6x1x64xf32, #tpu.memory_space<vmem>>, %arg10: memref<1x2x64x128xbf16, #tpu.memory_space<vmem>>, %arg11: memref<1x1x128xf32, #tpu.memory_space<vmem>>, %arg12: memref<1x1x128xf32, #tpu.memory_space<vmem>>, %arg13: memref<1x1x128xf32, #tpu.memory_space<vmem>>, %arg14: memref<1x128x512xbf16, #tpu.memory_space<vmem>>, %arg15: memref<1x1x512xf32, #tpu.memory_space<vmem>>, %arg16: memref<1x512x128xbf16, #tpu.memory_space<vmem>>, %arg17: memref<1x1x128xf32, #tpu.memory_space<vmem>>, %arg18: memref<2x8x128xf32, #tpu.memory_space<vmem>>, %arg19: memref<2x8x128xf32, #tpu.memory_space<vmem>>) attributes {dimension_semantics = [#tpu.dimension_semantics<parallel>, #tpu.dimension_semantics<arbitrary>], iteration_bounds = array<i64: 1, 2>, scalar_prefetch = 0 : i64, scratch_operands = 1 : i64, tpu.core_type = #tpu.core_type<tc>, window_params = [{transform_indices = @transform_0, window_bounds = array<i64: 2, 8, 128>}, {transform_indices = @transform_1, window_bounds = array<i64: 2, 1, 8>}, {pipeline_mode = #tpu.pipeline_mode<synchronous>, transform_indices = @transform_2, window_bounds = array<i64: 1, 128>}, {pipeline_mode = #tpu.pipeline_mode<synchronous>, transform_indices = @transform_3, window_bounds = array<i64: 1, 128>}, {transform_indices = @transform_4, window_bounds = array<i64: 1, 1, 128>}, {transform_indices = @transform_5, window_bounds = array<i64: 1, 1, 128>}, {transform_indices = @transform_6, window_bounds = array<i64: 1, 6, 128, 64>}, {transform_indices = @transform_7, window_bounds = array<i64: 1, 6, 1, 64>}, {transform_indices = @transform_8, window_bounds = array<i64: 1, 2, 64, 128>}, {transform_indices = @transform_9, window_bounds = array<i64: 1, 1, 128>}, {transform_indices = @transform_10, window_bounds = array<i64: 1, 1, 128>}, {transform_indices = @transform_11, window_bounds = array<i64: 1, 1, 128>}, {transform_indices = @transform_12, window_bounds = array<i64: 1, 128, 512>}, {transform_indices = @transform_13, window_bounds = array<i64: 1, 1, 512>}, {transform_indices = @transform_14, window_bounds = array<i64: 1, 512, 128>}, {transform_indices = @transform_15, window_bounds = array<i64: 1, 1, 128>}, {transform_indices = @transform_16, window_bounds = array<i64: 2, 8, 128>}]} {
    %c0_i32 = arith.constant 0 : i32
    %0 = arith.cmpi eq, %arg1, %c0_i32 : i32
    %1 = arith.extui %0 : i1 to i32
    %c0_i32_0 = arith.constant 0 : i32
    %2 = arith.cmpi ne, %1, %c0_i32_0 : i32
    scf.if %2 {
      %c0_228 = arith.constant 0 : index
      %c0_229 = arith.constant 0 : index
      %c0_230 = arith.constant 0 : index
      %360 = vector.load %arg2[%c0_228, %c0_229, %c0_230] : memref<2x8x128xf32, #tpu.memory_space<vmem>>, vector<2x8x128xf32>
      %c0_231 = arith.constant 0 : index
      %c0_232 = arith.constant 0 : index
      %361 = vector.load %arg4[%c0_231, %c0_232] : memref<1x128xf32, #tpu.memory_space<vmem>>, vector<1x128xf32>
      %c0_233 = arith.constant 0 : index
      %c0_234 = arith.constant 0 : index
      %362 = vector.load %arg5[%c0_233, %c0_234] : memref<1x128xf32, #tpu.memory_space<vmem>>, vector<1x128xf32>
      %cst_235 = arith.constant dense<0.000000e+00> : vector<2x8xf32>
      %363 = vector.multi_reduction <add>, %360, %cst_235 [2] : vector<2x8x128xf32> to vector<2x8xf32>
      %364 = vector.shape_cast %363 : vector<2x8xf32> to vector<2x8x1xf32>
      %cst_236 = arith.constant 1.280000e+02 : f32
      %365 = vector.broadcast %cst_236 : f32 to vector<2x8x1xf32>
      %366 = arith.divf %364, %365 : vector<2x8x1xf32>
      %367 = vector.broadcast %366 : vector<2x8x1xf32> to vector<2x8x128xf32>
      %368 = arith.subf %360, %367 : vector<2x8x128xf32>
      %369 = arith.mulf %368, %368 : vector<2x8x128xf32>
      %cst_237 = arith.constant dense<0.000000e+00> : vector<2x8xf32>
      %370 = vector.multi_reduction <add>, %369, %cst_237 [2] : vector<2x8x128xf32> to vector<2x8xf32>
      %371 = vector.shape_cast %370 : vector<2x8xf32> to vector<2x8x1xf32>
      %cst_238 = arith.constant 1.280000e+02 : f32
      %372 = vector.broadcast %cst_238 : f32 to vector<2x8x1xf32>
      %373 = arith.divf %371, %372 : vector<2x8x1xf32>
      %374 = vector.broadcast %366 : vector<2x8x1xf32> to vector<2x8x128xf32>
      %375 = arith.subf %360, %374 : vector<2x8x128xf32>
      %cst_239 = arith.constant 9.99999996E-13 : f32
      %376 = vector.broadcast %cst_239 : f32 to vector<2x8x1xf32>
      %377 = arith.addf %373, %376 : vector<2x8x1xf32>
      %378 = math.rsqrt %377 : vector<2x8x1xf32>
      %379 = vector.broadcast %378 : vector<2x8x1xf32> to vector<2x8x128xf32>
      %380 = arith.mulf %375, %379 : vector<2x8x128xf32>
      %381 = vector.shape_cast %361 : vector<1x128xf32> to vector<1x1x128xf32>
      %382 = vector.broadcast %381 : vector<1x1x128xf32> to vector<2x8x128xf32>
      %383 = arith.mulf %380, %382 : vector<2x8x128xf32>
      %384 = vector.shape_cast %362 : vector<1x128xf32> to vector<1x1x128xf32>
      %385 = vector.broadcast %384 : vector<1x1x128xf32> to vector<2x8x128xf32>
      %386 = arith.addf %383, %385 : vector<2x8x128xf32>
      %c0_240 = arith.constant 0 : index
      %c0_241 = arith.constant 0 : index
      %c0_242 = arith.constant 0 : index
      %387 = vector.load %arg19[%c0_240, %c0_241, %c0_242] : memref<2x8x128xf32, #tpu.memory_space<vmem>>, vector<2x8x128xf32>
      tpu.vector_store %arg19[%c0_240, %c0_241, %c0_242], %386 {strides = array<i32>} : memref<2x8x128xf32, #tpu.memory_space<vmem>>, vector<2x8x128xf32>,
    } else {
    }
    %c0 = arith.constant 0 : index
    %c0_1 = arith.constant 0 : index
    %c0_2 = arith.constant 0 : index
    %3 = vector.load %arg6[%c0, %c0_1, %c0_2] : memref<1x1x128xf32, #tpu.memory_space<vmem>>, vector<1x1x128xf32>
    %4 = vector.shape_cast %3 : vector<1x1x128xf32> to vector<1x128xf32>
    %c0_3 = arith.constant 0 : index
    %c0_4 = arith.constant 0 : index
    %c0_5 = arith.constant 0 : index
    %5 = vector.load %arg7[%c0_3, %c0_4, %c0_5] : memref<1x1x128xf32, #tpu.memory_space<vmem>>, vector<1x1x128xf32>
    %6 = vector.shape_cast %5 : vector<1x1x128xf32> to vector<1x128xf32>
    %c0_6 = arith.constant 0 : index
    %c0_7 = arith.constant 0 : index
    %c0_8 = arith.constant 0 : index
    %7 = vector.load %arg12[%c0_6, %c0_7, %c0_8] : memref<1x1x128xf32, #tpu.memory_space<vmem>>, vector<1x1x128xf32>
    %8 = vector.shape_cast %7 : vector<1x1x128xf32> to vector<1x128xf32>
    %c0_9 = arith.constant 0 : index
    %c0_10 = arith.constant 0 : index
    %c0_11 = arith.constant 0 : index
    %9 = vector.load %arg13[%c0_9, %c0_10, %c0_11] : memref<1x1x128xf32, #tpu.memory_space<vmem>>, vector<1x1x128xf32>
    %10 = vector.shape_cast %9 : vector<1x1x128xf32> to vector<1x128xf32>
    %c0_12 = arith.constant 0 : index
    %c0_13 = arith.constant 0 : index
    %c0_14 = arith.constant 0 : index
    %11 = vector.load %arg11[%c0_12, %c0_13, %c0_14] : memref<1x1x128xf32, #tpu.memory_space<vmem>>, vector<1x1x128xf32>
    %12 = vector.shape_cast %11 : vector<1x1x128xf32> to vector<1x128xf32>
    %c0_15 = arith.constant 0 : index
    %c0_16 = arith.constant 0 : index
    %c0_17 = arith.constant 0 : index
    %13 = vector.load %arg15[%c0_15, %c0_16, %c0_17] : memref<1x1x512xf32, #tpu.memory_space<vmem>>, vector<1x1x512xf32>
    %14 = vector.shape_cast %13 : vector<1x1x512xf32> to vector<1x512xf32>
    %c0_18 = arith.constant 0 : index
    %c0_19 = arith.constant 0 : index
    %c0_20 = arith.constant 0 : index
    %15 = vector.load %arg17[%c0_18, %c0_19, %c0_20] : memref<1x1x128xf32, #tpu.memory_space<vmem>>, vector<1x1x128xf32>
    %16 = vector.shape_cast %15 : vector<1x1x128xf32> to vector<1x128xf32>
    %c0_21 = arith.constant 0 : index
    %c0_22 = arith.constant 0 : index
    %c0_23 = arith.constant 0 : index
    %17 = vector.load %arg19[%c0_21, %c0_22, %c0_23] : memref<2x8x128xf32, #tpu.memory_space<vmem>>, vector<1x8x128xf32>
    %18 = vector.shape_cast %17 : vector<1x8x128xf32> to vector<8x128xf32>
    %19 = arith.truncf %18 : vector<8x128xf32> to vector<8x128xbf16>
    %c0_24 = arith.constant 0 : index
    %c0_25 = arith.constant 0 : index
    %c0_26 = arith.constant 0 : index
    %c0_27 = arith.constant 0 : index
    %20 = vector.load %arg8[%c0_24, %c0_25, %c0_26, %c0_27] : memref<1x6x128x64xbf16, #tpu.memory_space<vmem>>, vector<1x1x128x64xbf16>
    %21 = vector.shape_cast %20 : vector<1x1x128x64xbf16> to vector<128x64xbf16>
    %cst = arith.constant dense<0.000000e+00> : vector<8x64xf32>
    %22 = tpu.matmul %19, %21, %cst {dimension_numbers = #tpu.dot_dimension_numbers<[1], [0], [0], [1], [0, 0, 1, 1], [], []>} : vector<8x128xbf16>, vector<128x64xbf16>, vector<8x64xf32> -> vector<8x64xf32>
    %c0_28 = arith.constant 0 : index
    %c0_29 = arith.constant 0 : index
    %c0_30 = arith.constant 0 : index
    %c0_31 = arith.constant 0 : index
    %23 = vector.load %arg9[%c0_28, %c0_29, %c0_30, %c0_31] : memref<1x6x1x64xf32, #tpu.memory_space<vmem>>, vector<1x1x1x64xf32>
    %24 = vector.shape_cast %23 : vector<1x1x1x64xf32> to vector<1x64xf32>
    %25 = vector.broadcast %24 : vector<1x64xf32> to vector<8x64xf32>
    %26 = arith.addf %22, %25 : vector<8x64xf32>
    %c0_32 = arith.constant 0 : index
    %c2 = arith.constant 2 : index
    %c0_33 = arith.constant 0 : index
    %c0_34 = arith.constant 0 : index
    %27 = vector.load %arg8[%c0_32, %c2, %c0_33, %c0_34] : memref<1x6x128x64xbf16, #tpu.memory_space<vmem>>, vector<1x1x128x64xbf16>
    %28 = vector.shape_cast %27 : vector<1x1x128x64xbf16> to vector<128x64xbf16>
    %cst_35 = arith.constant dense<0.000000e+00> : vector<8x64xf32>
    %29 = tpu.matmul %19, %28, %cst_35 {dimension_numbers = #tpu.dot_dimension_numbers<[1], [0], [0], [1], [0, 0, 1, 1], [], []>} : vector<8x128xbf16>, vector<128x64xbf16>, vector<8x64xf32> -> vector<8x64xf32>
    %c0_36 = arith.constant 0 : index
    %c2_37 = arith.constant 2 : index
    %c0_38 = arith.constant 0 : index
    %c0_39 = arith.constant 0 : index
    %30 = vector.load %arg9[%c0_36, %c2_37, %c0_38, %c0_39] : memref<1x6x1x64xf32, #tpu.memory_space<vmem>>, vector<1x1x1x64xf32>
    %31 = vector.shape_cast %30 : vector<1x1x1x64xf32> to vector<1x64xf32>
    %32 = vector.broadcast %31 : vector<1x64xf32> to vector<8x64xf32>
    %33 = arith.addf %29, %32 : vector<8x64xf32>
    %c0_40 = arith.constant 0 : index
    %c4 = arith.constant 4 : index
    %c0_41 = arith.constant 0 : index
    %c0_42 = arith.constant 0 : index
    %34 = vector.load %arg8[%c0_40, %c4, %c0_41, %c0_42] : memref<1x6x128x64xbf16, #tpu.memory_space<vmem>>, vector<1x1x128x64xbf16>
    %35 = vector.shape_cast %34 : vector<1x1x128x64xbf16> to vector<128x64xbf16>
    %cst_43 = arith.constant dense<0.000000e+00> : vector<8x64xf32>
    %36 = tpu.matmul %19, %35, %cst_43 {dimension_numbers = #tpu.dot_dimension_numbers<[1], [0], [0], [1], [0, 0, 1, 1], [], []>} : vector<8x128xbf16>, vector<128x64xbf16>, vector<8x64xf32> -> vector<8x64xf32>
    %c0_44 = arith.constant 0 : index
    %c4_45 = arith.constant 4 : index
    %c0_46 = arith.constant 0 : index
    %c0_47 = arith.constant 0 : index
    %37 = vector.load %arg9[%c0_44, %c4_45, %c0_46, %c0_47] : memref<1x6x1x64xf32, #tpu.memory_space<vmem>>, vector<1x1x1x64xf32>
    %38 = vector.shape_cast %37 : vector<1x1x1x64xf32> to vector<1x64xf32>
    %39 = vector.broadcast %38 : vector<1x64xf32> to vector<8x64xf32>
    %40 = arith.addf %36, %39 : vector<8x64xf32>
    %41 = arith.truncf %26 : vector<8x64xf32> to vector<8x64xbf16>
    %42 = arith.truncf %33 : vector<8x64xf32> to vector<8x64xbf16>
    %cst_48 = arith.constant dense<0.000000e+00> : vector<8x8xf32>
    %43 = tpu.matmul %41, %42, %cst_48 {dimension_numbers = #tpu.dot_dimension_numbers<[1], [1], [0], [0], [0, 0, 1, 0], [], []>} : vector<8x64xbf16>, vector<8x64xbf16>, vector<8x8xf32> -> vector<8x8xf32>
    %c0_49 = arith.constant 0 : index
    %c0_50 = arith.constant 0 : index
    %c0_51 = arith.constant 0 : index
    %44 = vector.load %arg3[%c0_49, %c0_50, %c0_51] : memref<2x1x8xf32, #tpu.memory_space<vmem>>, vector<1x1x8xf32>
    %45 = vector.shape_cast %44 : vector<1x1x8xf32> to vector<1x8xf32>
    %46 = vector.broadcast %45 : vector<1x8xf32> to vector<8x8xf32>
    %47 = arith.addf %43, %46 : vector<8x8xf32>
    %cst_52 = arith.constant dense<0xFF800000> : vector<8xf32>
    %48 = vector.multi_reduction <maximumf>, %47, %cst_52 [1] : vector<8x8xf32> to vector<8xf32>
    %49 = vector.shape_cast %48 : vector<8xf32> to vector<8x1xf32>
    %50 = vector.broadcast %49 : vector<8x1xf32> to vector<8x8xf32>
    %51 = arith.subf %47, %50 : vector<8x8xf32>
    %52 = math.exp %51 : vector<8x8xf32>
    %cst_53 = arith.constant dense<0.000000e+00> : vector<8xf32>
    %53 = vector.multi_reduction <add>, %52, %cst_53 [1] : vector<8x8xf32> to vector<8xf32>
    %54 = vector.shape_cast %53 : vector<8xf32> to vector<8x1xf32>
    %55 = tpu.reciprocal %54 {approx = true} : vector<8x1xf32> -> vector<8x1xf32>
    %56 = vector.broadcast %55 : vector<8x1xf32> to vector<8x8xf32>
    %57 = arith.mulf %52, %56 : vector<8x8xf32>
    %58 = arith.truncf %57 : vector<8x8xf32> to vector<8x8xbf16>
    %59 = arith.truncf %40 : vector<8x64xf32> to vector<8x64xbf16>
    %cst_54 = arith.constant dense<0.000000e+00> : vector<8x64xf32>
    %60 = tpu.matmul %58, %59, %cst_54 {dimension_numbers = #tpu.dot_dimension_numbers<[1], [0], [0], [1], [0, 0, 1, 1], [], []>} : vector<8x8xbf16>, vector<8x64xbf16>, vector<8x64xf32> -> vector<8x64xf32>
    %61 = arith.truncf %60 : vector<8x64xf32> to vector<8x64xbf16>
    %c0_55 = arith.constant 0 : index
    %c0_56 = arith.constant 0 : index
    %c0_57 = arith.constant 0 : index
    %c0_58 = arith.constant 0 : index
    %62 = vector.load %arg10[%c0_55, %c0_56, %c0_57, %c0_58] : memref<1x2x64x128xbf16, #tpu.memory_space<vmem>>, vector<1x1x64x128xbf16>
    %63 = vector.shape_cast %62 : vector<1x1x64x128xbf16> to vector<64x128xbf16>
    %cst_59 = arith.constant dense<0.000000e+00> : vector<8x128xf32>
    %64 = tpu.matmul %61, %63, %cst_59 {dimension_numbers = #tpu.dot_dimension_numbers<[1], [0], [0], [1], [0, 0, 1, 1], [], []>} : vector<8x64xbf16>, vector<64x128xbf16>, vector<8x128xf32> -> vector<8x128xf32>
    %c0_60 = arith.constant 0 : index
    %c1 = arith.constant 1 : index
    %c0_61 = arith.constant 0 : index
    %c0_62 = arith.constant 0 : index
    %65 = vector.load %arg8[%c0_60, %c1, %c0_61, %c0_62] : memref<1x6x128x64xbf16, #tpu.memory_space<vmem>>, vector<1x1x128x64xbf16>
    %66 = vector.shape_cast %65 : vector<1x1x128x64xbf16> to vector<128x64xbf16>
    %cst_63 = arith.constant dense<0.000000e+00> : vector<8x64xf32>
    %67 = tpu.matmul %19, %66, %cst_63 {dimension_numbers = #tpu.dot_dimension_numbers<[1], [0], [0], [1], [0, 0, 1, 1], [], []>} : vector<8x128xbf16>, vector<128x64xbf16>, vector<8x64xf32> -> vector<8x64xf32>
    %c0_64 = arith.constant 0 : index
    %c1_65 = arith.constant 1 : index
    %c0_66 = arith.constant 0 : index
    %c0_67 = arith.constant 0 : index
    %68 = vector.load %arg9[%c0_64, %c1_65, %c0_66, %c0_67] : memref<1x6x1x64xf32, #tpu.memory_space<vmem>>, vector<1x1x1x64xf32>
    %69 = vector.shape_cast %68 : vector<1x1x1x64xf32> to vector<1x64xf32>
    %70 = vector.broadcast %69 : vector<1x64xf32> to vector<8x64xf32>
    %71 = arith.addf %67, %70 : vector<8x64xf32>
    %c0_68 = arith.constant 0 : index
    %c3 = arith.constant 3 : index
    %c0_69 = arith.constant 0 : index
    %c0_70 = arith.constant 0 : index
    %72 = vector.load %arg8[%c0_68, %c3, %c0_69, %c0_70] : memref<1x6x128x64xbf16, #tpu.memory_space<vmem>>, vector<1x1x128x64xbf16>
    %73 = vector.shape_cast %72 : vector<1x1x128x64xbf16> to vector<128x64xbf16>
    %cst_71 = arith.constant dense<0.000000e+00> : vector<8x64xf32>
    %74 = tpu.matmul %19, %73, %cst_71 {dimension_numbers = #tpu.dot_dimension_numbers<[1], [0], [0], [1], [0, 0, 1, 1], [], []>} : vector<8x128xbf16>, vector<128x64xbf16>, vector<8x64xf32> -> vector<8x64xf32>
    %c0_72 = arith.constant 0 : index
    %c3_73 = arith.constant 3 : index
    %c0_74 = arith.constant 0 : index
    %c0_75 = arith.constant 0 : index
    %75 = vector.load %arg9[%c0_72, %c3_73, %c0_74, %c0_75] : memref<1x6x1x64xf32, #tpu.memory_space<vmem>>, vector<1x1x1x64xf32>
    %76 = vector.shape_cast %75 : vector<1x1x1x64xf32> to vector<1x64xf32>
    %77 = vector.broadcast %76 : vector<1x64xf32> to vector<8x64xf32>
    %78 = arith.addf %74, %77 : vector<8x64xf32>
    %c0_76 = arith.constant 0 : index
    %c5 = arith.constant 5 : index
    %c0_77 = arith.constant 0 : index
    %c0_78 = arith.constant 0 : index
    %79 = vector.load %arg8[%c0_76, %c5, %c0_77, %c0_78] : memref<1x6x128x64xbf16, #tpu.memory_space<vmem>>, vector<1x1x128x64xbf16>
    %80 = vector.shape_cast %79 : vector<1x1x128x64xbf16> to vector<128x64xbf16>
    %cst_79 = arith.constant dense<0.000000e+00> : vector<8x64xf32>
    %81 = tpu.matmul %19, %80, %cst_79 {dimension_numbers = #tpu.dot_dimension_numbers<[1], [0], [0], [1], [0, 0, 1, 1], [], []>} : vector<8x128xbf16>, vector<128x64xbf16>, vector<8x64xf32> -> vector<8x64xf32>
    %c0_80 = arith.constant 0 : index
    %c5_81 = arith.constant 5 : index
    %c0_82 = arith.constant 0 : index
    %c0_83 = arith.constant 0 : index
    %82 = vector.load %arg9[%c0_80, %c5_81, %c0_82, %c0_83] : memref<1x6x1x64xf32, #tpu.memory_space<vmem>>, vector<1x1x1x64xf32>
    %83 = vector.shape_cast %82 : vector<1x1x1x64xf32> to vector<1x64xf32>
    %84 = vector.broadcast %83 : vector<1x64xf32> to vector<8x64xf32>
    %85 = arith.addf %81, %84 : vector<8x64xf32>
    %86 = arith.truncf %71 : vector<8x64xf32> to vector<8x64xbf16>
    %87 = arith.truncf %78 : vector<8x64xf32> to vector<8x64xbf16>
    %cst_84 = arith.constant dense<0.000000e+00> : vector<8x8xf32>
    %88 = tpu.matmul %86, %87, %cst_84 {dimension_numbers = #tpu.dot_dimension_numbers<[1], [1], [0], [0], [0, 0, 1, 0], [], []>} : vector<8x64xbf16>, vector<8x64xbf16>, vector<8x8xf32> -> vector<8x8xf32>
    %c0_85 = arith.constant 0 : index
    %c0_86 = arith.constant 0 : index
    %c0_87 = arith.constant 0 : index
    %89 = vector.load %arg3[%c0_85, %c0_86, %c0_87] : memref<2x1x8xf32, #tpu.memory_space<vmem>>, vector<1x1x8xf32>
    %90 = vector.shape_cast %89 : vector<1x1x8xf32> to vector<1x8xf32>
    %91 = vector.broadcast %90 : vector<1x8xf32> to vector<8x8xf32>
    %92 = arith.addf %88, %91 : vector<8x8xf32>
    %cst_88 = arith.constant dense<0xFF800000> : vector<8xf32>
    %93 = vector.multi_reduction <maximumf>, %92, %cst_88 [1] : vector<8x8xf32> to vector<8xf32>
    %94 = vector.shape_cast %93 : vector<8xf32> to vector<8x1xf32>
    %95 = vector.broadcast %94 : vector<8x1xf32> to vector<8x8xf32>
    %96 = arith.subf %92, %95 : vector<8x8xf32>
    %97 = math.exp %96 : vector<8x8xf32>
    %cst_89 = arith.constant dense<0.000000e+00> : vector<8xf32>
    %98 = vector.multi_reduction <add>, %97, %cst_89 [1] : vector<8x8xf32> to vector<8xf32>
    %99 = vector.shape_cast %98 : vector<8xf32> to vector<8x1xf32>
    %100 = tpu.reciprocal %99 {approx = true} : vector<8x1xf32> -> vector<8x1xf32>
    %101 = vector.broadcast %100 : vector<8x1xf32> to vector<8x8xf32>
    %102 = arith.mulf %97, %101 : vector<8x8xf32>
    %103 = arith.truncf %102 : vector<8x8xf32> to vector<8x8xbf16>
    %104 = arith.truncf %85 : vector<8x64xf32> to vector<8x64xbf16>
    %cst_90 = arith.constant dense<0.000000e+00> : vector<8x64xf32>
    %105 = tpu.matmul %103, %104, %cst_90 {dimension_numbers = #tpu.dot_dimension_numbers<[1], [0], [0], [1], [0, 0, 1, 1], [], []>} : vector<8x8xbf16>, vector<8x64xbf16>, vector<8x64xf32> -> vector<8x64xf32>
    %106 = arith.truncf %105 : vector<8x64xf32> to vector<8x64xbf16>
    %c0_91 = arith.constant 0 : index
    %c1_92 = arith.constant 1 : index
    %c0_93 = arith.constant 0 : index
    %c0_94 = arith.constant 0 : index
    %107 = vector.load %arg10[%c0_91, %c1_92, %c0_93, %c0_94] : memref<1x2x64x128xbf16, #tpu.memory_space<vmem>>, vector<1x1x64x128xbf16>
    %108 = vector.shape_cast %107 : vector<1x1x64x128xbf16> to vector<64x128xbf16>
    %cst_95 = arith.constant dense<0.000000e+00> : vector<8x128xf32>
    %109 = tpu.matmul %106, %108, %cst_95 {dimension_numbers = #tpu.dot_dimension_numbers<[1], [0], [0], [1], [0, 0, 1, 1], [], []>} : vector<8x64xbf16>, vector<64x128xbf16>, vector<8x128xf32> -> vector<8x128xf32>
    %110 = arith.addf %64, %109 : vector<8x128xf32>
    %111 = arith.addf %18, %110 : vector<8x128xf32>
    %112 = vector.broadcast %12 : vector<1x128xf32> to vector<8x128xf32>
    %113 = arith.addf %111, %112 : vector<8x128xf32>
    %cst_96 = arith.constant dense<0.000000e+00> : vector<8xf32>
    %114 = vector.multi_reduction <add>, %113, %cst_96 [1] : vector<8x128xf32> to vector<8xf32>
    %115 = vector.shape_cast %114 : vector<8xf32> to vector<8x1xf32>
    %cst_97 = arith.constant 1.280000e+02 : f32
    %116 = vector.broadcast %cst_97 : f32 to vector<8x1xf32>
    %117 = arith.divf %115, %116 : vector<8x1xf32>
    %118 = vector.broadcast %117 : vector<8x1xf32> to vector<8x128xf32>
    %119 = arith.subf %113, %118 : vector<8x128xf32>
    %120 = arith.mulf %119, %119 : vector<8x128xf32>
    %cst_98 = arith.constant dense<0.000000e+00> : vector<8xf32>
    %121 = vector.multi_reduction <add>, %120, %cst_98 [1] : vector<8x128xf32> to vector<8xf32>
    %122 = vector.shape_cast %121 : vector<8xf32> to vector<8x1xf32>
    %cst_99 = arith.constant 1.280000e+02 : f32
    %123 = vector.broadcast %cst_99 : f32 to vector<8x1xf32>
    %124 = arith.divf %122, %123 : vector<8x1xf32>
    %125 = vector.broadcast %117 : vector<8x1xf32> to vector<8x128xf32>
    %126 = arith.subf %113, %125 : vector<8x128xf32>
    %cst_100 = arith.constant 9.99999996E-13 : f32
    %127 = vector.broadcast %cst_100 : f32 to vector<8x1xf32>
    %128 = arith.addf %124, %127 : vector<8x1xf32>
    %129 = math.rsqrt %128 : vector<8x1xf32>
    %130 = vector.broadcast %129 : vector<8x1xf32> to vector<8x128xf32>
    %131 = arith.mulf %126, %130 : vector<8x128xf32>
    %132 = vector.broadcast %4 : vector<1x128xf32> to vector<8x128xf32>
    %133 = arith.mulf %131, %132 : vector<8x128xf32>
    %134 = vector.broadcast %6 : vector<1x128xf32> to vector<8x128xf32>
    %135 = arith.addf %133, %134 : vector<8x128xf32>
    %136 = arith.truncf %135 : vector<8x128xf32> to vector<8x128xbf16>
    %c0_101 = arith.constant 0 : index
    %c0_102 = arith.constant 0 : index
    %c0_103 = arith.constant 0 : index
    %137 = vector.load %arg14[%c0_101, %c0_102, %c0_103] : memref<1x128x512xbf16, #tpu.memory_space<vmem>>, vector<1x128x512xbf16>
    %138 = vector.shape_cast %137 : vector<1x128x512xbf16> to vector<128x512xbf16>
    %cst_104 = arith.constant dense<0.000000e+00> : vector<8x512xf32>
    %139 = tpu.matmul %136, %138, %cst_104 {dimension_numbers = #tpu.dot_dimension_numbers<[1], [0], [0], [1], [0, 0, 1, 1], [], []>} : vector<8x128xbf16>, vector<128x512xbf16>, vector<8x512xf32> -> vector<8x512xf32>
    %140 = vector.broadcast %14 : vector<1x512xf32> to vector<8x512xf32>
    %141 = arith.addf %139, %140 : vector<8x512xf32>
    %142 = arith.mulf %141, %141 : vector<8x512xf32>
    %143 = arith.mulf %141, %142 : vector<8x512xf32>
    %cst_105 = arith.constant 4.471500e-02 : f32
    %144 = vector.broadcast %cst_105 : f32 to vector<8x512xf32>
    %145 = arith.mulf %144, %143 : vector<8x512xf32>
    %146 = arith.addf %141, %145 : vector<8x512xf32>
    %cst_106 = arith.constant 0.797884583 : f32
    %147 = vector.broadcast %cst_106 : f32 to vector<8x512xf32>
    %148 = arith.mulf %147, %146 : vector<8x512xf32>
    %149 = math.tanh %148 : vector<8x512xf32>
    %cst_107 = arith.constant 1.000000e+00 : f32
    %150 = vector.broadcast %cst_107 : f32 to vector<8x512xf32>
    %151 = arith.addf %150, %149 : vector<8x512xf32>
    %cst_108 = arith.constant 5.000000e-01 : f32
    %152 = vector.broadcast %cst_108 : f32 to vector<8x512xf32>
    %153 = arith.mulf %152, %151 : vector<8x512xf32>
    %154 = arith.mulf %141, %153 : vector<8x512xf32>
    %155 = arith.truncf %154 : vector<8x512xf32> to vector<8x512xbf16>
    %c0_109 = arith.constant 0 : index
    %c0_110 = arith.constant 0 : index
    %c0_111 = arith.constant 0 : index
    %156 = vector.load %arg16[%c0_109, %c0_110, %c0_111] : memref<1x512x128xbf16, #tpu.memory_space<vmem>>, vector<1x512x128xbf16>
    %157 = vector.shape_cast %156 : vector<1x512x128xbf16> to vector<512x128xbf16>
    %cst_112 = arith.constant dense<0.000000e+00> : vector<8x128xf32>
    %158 = tpu.matmul %155, %157, %cst_112 {dimension_numbers = #tpu.dot_dimension_numbers<[1], [0], [0], [1], [0, 0, 1, 1], [], []>} : vector<8x512xbf16>, vector<512x128xbf16>, vector<8x128xf32> -> vector<8x128xf32>
    %159 = vector.broadcast %16 : vector<1x128xf32> to vector<8x128xf32>
    %160 = arith.addf %158, %159 : vector<8x128xf32>
    %161 = arith.addf %135, %160 : vector<8x128xf32>
    %cst_113 = arith.constant dense<0.000000e+00> : vector<8xf32>
    %162 = vector.multi_reduction <add>, %161, %cst_113 [1] : vector<8x128xf32> to vector<8xf32>
    %163 = vector.shape_cast %162 : vector<8xf32> to vector<8x1xf32>
    %cst_114 = arith.constant 1.280000e+02 : f32
    %164 = vector.broadcast %cst_114 : f32 to vector<8x1xf32>
    %165 = arith.divf %163, %164 : vector<8x1xf32>
    %166 = vector.broadcast %165 : vector<8x1xf32> to vector<8x128xf32>
    %167 = arith.subf %161, %166 : vector<8x128xf32>
    %168 = arith.mulf %167, %167 : vector<8x128xf32>
    %cst_115 = arith.constant dense<0.000000e+00> : vector<8xf32>
    %169 = vector.multi_reduction <add>, %168, %cst_115 [1] : vector<8x128xf32> to vector<8xf32>
    %170 = vector.shape_cast %169 : vector<8xf32> to vector<8x1xf32>
    %cst_116 = arith.constant 1.280000e+02 : f32
    %171 = vector.broadcast %cst_116 : f32 to vector<8x1xf32>
    %172 = arith.divf %170, %171 : vector<8x1xf32>
    %173 = vector.broadcast %165 : vector<8x1xf32> to vector<8x128xf32>
    %174 = arith.subf %161, %173 : vector<8x128xf32>
    %cst_117 = arith.constant 9.99999996E-13 : f32
    %175 = vector.broadcast %cst_117 : f32 to vector<8x1xf32>
    %176 = arith.addf %172, %175 : vector<8x1xf32>
    %177 = math.rsqrt %176 : vector<8x1xf32>
    %178 = vector.broadcast %177 : vector<8x1xf32> to vector<8x128xf32>
    %179 = arith.mulf %174, %178 : vector<8x128xf32>
    %180 = vector.broadcast %8 : vector<1x128xf32> to vector<8x128xf32>
    %181 = arith.mulf %179, %180 : vector<8x128xf32>
    %182 = vector.broadcast %10 : vector<1x128xf32> to vector<8x128xf32>
    %183 = arith.addf %181, %182 : vector<8x128xf32>
    %c0_118 = arith.constant 0 : index
    %c0_119 = arith.constant 0 : index
    %c0_120 = arith.constant 0 : index
    %184 = vector.load %arg19[%c0_118, %c0_119, %c0_120] : memref<2x8x128xf32, #tpu.memory_space<vmem>>, vector<1x8x128xf32>
    %185 = vector.shape_cast %184 : vector<1x8x128xf32> to vector<8x128xf32>
    %186 = vector.shape_cast %183 : vector<8x128xf32> to vector<1x8x128xf32>
    tpu.vector_store %arg19[%c0_118, %c0_119, %c0_120], %186 {strides = array<i32>} : memref<2x8x128xf32, #tpu.memory_space<vmem>>, vector<1x8x128xf32>,
    %c1_121 = arith.constant 1 : index
    %c0_122 = arith.constant 0 : index
    %c0_123 = arith.constant 0 : index
    %187 = vector.load %arg19[%c1_121, %c0_122, %c0_123] : memref<2x8x128xf32, #tpu.memory_space<vmem>>, vector<1x8x128xf32>
    %188 = vector.shape_cast %187 : vector<1x8x128xf32> to vector<8x128xf32>
    %189 = arith.truncf %188 : vector<8x128xf32> to vector<8x128xbf16>
    %c0_124 = arith.constant 0 : index
    %c0_125 = arith.constant 0 : index
    %c0_126 = arith.constant 0 : index
    %c0_127 = arith.constant 0 : index
    %190 = vector.load %arg8[%c0_124, %c0_125, %c0_126, %c0_127] : memref<1x6x128x64xbf16, #tpu.memory_space<vmem>>, vector<1x1x128x64xbf16>
    %191 = vector.shape_cast %190 : vector<1x1x128x64xbf16> to vector<128x64xbf16>
    %cst_128 = arith.constant dense<0.000000e+00> : vector<8x64xf32>
    %192 = tpu.matmul %189, %191, %cst_128 {dimension_numbers = #tpu.dot_dimension_numbers<[1], [0], [0], [1], [0, 0, 1, 1], [], []>} : vector<8x128xbf16>, vector<128x64xbf16>, vector<8x64xf32> -> vector<8x64xf32>
    %c0_129 = arith.constant 0 : index
    %c0_130 = arith.constant 0 : index
    %c0_131 = arith.constant 0 : index
    %c0_132 = arith.constant 0 : index
    %193 = vector.load %arg9[%c0_129, %c0_130, %c0_131, %c0_132] : memref<1x6x1x64xf32, #tpu.memory_space<vmem>>, vector<1x1x1x64xf32>
    %194 = vector.shape_cast %193 : vector<1x1x1x64xf32> to vector<1x64xf32>
    %195 = vector.broadcast %194 : vector<1x64xf32> to vector<8x64xf32>
    %196 = arith.addf %192, %195 : vector<8x64xf32>
    %c0_133 = arith.constant 0 : index
    %c2_134 = arith.constant 2 : index
    %c0_135 = arith.constant 0 : index
    %c0_136 = arith.constant 0 : index
    %197 = vector.load %arg8[%c0_133, %c2_134, %c0_135, %c0_136] : memref<1x6x128x64xbf16, #tpu.memory_space<vmem>>, vector<1x1x128x64xbf16>
    %198 = vector.shape_cast %197 : vector<1x1x128x64xbf16> to vector<128x64xbf16>
    %cst_137 = arith.constant dense<0.000000e+00> : vector<8x64xf32>
    %199 = tpu.matmul %189, %198, %cst_137 {dimension_numbers = #tpu.dot_dimension_numbers<[1], [0], [0], [1], [0, 0, 1, 1], [], []>} : vector<8x128xbf16>, vector<128x64xbf16>, vector<8x64xf32> -> vector<8x64xf32>
    %c0_138 = arith.constant 0 : index
    %c2_139 = arith.constant 2 : index
    %c0_140 = arith.constant 0 : index
    %c0_141 = arith.constant 0 : index
    %200 = vector.load %arg9[%c0_138, %c2_139, %c0_140, %c0_141] : memref<1x6x1x64xf32, #tpu.memory_space<vmem>>, vector<1x1x1x64xf32>
    %201 = vector.shape_cast %200 : vector<1x1x1x64xf32> to vector<1x64xf32>
    %202 = vector.broadcast %201 : vector<1x64xf32> to vector<8x64xf32>
    %203 = arith.addf %199, %202 : vector<8x64xf32>
    %c0_142 = arith.constant 0 : index
    %c4_143 = arith.constant 4 : index
    %c0_144 = arith.constant 0 : index
    %c0_145 = arith.constant 0 : index
    %204 = vector.load %arg8[%c0_142, %c4_143, %c0_144, %c0_145] : memref<1x6x128x64xbf16, #tpu.memory_space<vmem>>, vector<1x1x128x64xbf16>
    %205 = vector.shape_cast %204 : vector<1x1x128x64xbf16> to vector<128x64xbf16>
    %cst_146 = arith.constant dense<0.000000e+00> : vector<8x64xf32>
    %206 = tpu.matmul %189, %205, %cst_146 {dimension_numbers = #tpu.dot_dimension_numbers<[1], [0], [0], [1], [0, 0, 1, 1], [], []>} : vector<8x128xbf16>, vector<128x64xbf16>, vector<8x64xf32> -> vector<8x64xf32>
    %c0_147 = arith.constant 0 : index
    %c4_148 = arith.constant 4 : index
    %c0_149 = arith.constant 0 : index
    %c0_150 = arith.constant 0 : index
    %207 = vector.load %arg9[%c0_147, %c4_148, %c0_149, %c0_150] : memref<1x6x1x64xf32, #tpu.memory_space<vmem>>, vector<1x1x1x64xf32>
    %208 = vector.shape_cast %207 : vector<1x1x1x64xf32> to vector<1x64xf32>
    %209 = vector.broadcast %208 : vector<1x64xf32> to vector<8x64xf32>
    %210 = arith.addf %206, %209 : vector<8x64xf32>
    %211 = arith.truncf %196 : vector<8x64xf32> to vector<8x64xbf16>
    %212 = arith.truncf %203 : vector<8x64xf32> to vector<8x64xbf16>
    %cst_151 = arith.constant dense<0.000000e+00> : vector<8x8xf32>
    %213 = tpu.matmul %211, %212, %cst_151 {dimension_numbers = #tpu.dot_dimension_numbers<[1], [1], [0], [0], [0, 0, 1, 0], [], []>} : vector<8x64xbf16>, vector<8x64xbf16>, vector<8x8xf32> -> vector<8x8xf32>
    %c1_152 = arith.constant 1 : index
    %c0_153 = arith.constant 0 : index
    %c0_154 = arith.constant 0 : index
    %214 = vector.load %arg3[%c1_152, %c0_153, %c0_154] : memref<2x1x8xf32, #tpu.memory_space<vmem>>, vector<1x1x8xf32>
    %215 = vector.shape_cast %214 : vector<1x1x8xf32> to vector<1x8xf32>
    %216 = vector.broadcast %215 : vector<1x8xf32> to vector<8x8xf32>
    %217 = arith.addf %213, %216 : vector<8x8xf32>
    %cst_155 = arith.constant dense<0xFF800000> : vector<8xf32>
    %218 = vector.multi_reduction <maximumf>, %217, %cst_155 [1] : vector<8x8xf32> to vector<8xf32>
    %219 = vector.shape_cast %218 : vector<8xf32> to vector<8x1xf32>
    %220 = vector.broadcast %219 : vector<8x1xf32> to vector<8x8xf32>
    %221 = arith.subf %217, %220 : vector<8x8xf32>
    %222 = math.exp %221 : vector<8x8xf32>
    %cst_156 = arith.constant dense<0.000000e+00> : vector<8xf32>
    %223 = vector.multi_reduction <add>, %222, %cst_156 [1] : vector<8x8xf32> to vector<8xf32>
    %224 = vector.shape_cast %223 : vector<8xf32> to vector<8x1xf32>
    %225 = tpu.reciprocal %224 {approx = true} : vector<8x1xf32> -> vector<8x1xf32>
    %226 = vector.broadcast %225 : vector<8x1xf32> to vector<8x8xf32>
    %227 = arith.mulf %222, %226 : vector<8x8xf32>
    %228 = arith.truncf %227 : vector<8x8xf32> to vector<8x8xbf16>
    %229 = arith.truncf %210 : vector<8x64xf32> to vector<8x64xbf16>
    %cst_157 = arith.constant dense<0.000000e+00> : vector<8x64xf32>
    %230 = tpu.matmul %228, %229, %cst_157 {dimension_numbers = #tpu.dot_dimension_numbers<[1], [0], [0], [1], [0, 0, 1, 1], [], []>} : vector<8x8xbf16>, vector<8x64xbf16>, vector<8x64xf32> -> vector<8x64xf32>
    %231 = arith.truncf %230 : vector<8x64xf32> to vector<8x64xbf16>
    %c0_158 = arith.constant 0 : index
    %c0_159 = arith.constant 0 : index
    %c0_160 = arith.constant 0 : index
    %c0_161 = arith.constant 0 : index
    %232 = vector.load %arg10[%c0_158, %c0_159, %c0_160, %c0_161] : memref<1x2x64x128xbf16, #tpu.memory_space<vmem>>, vector<1x1x64x128xbf16>
    %233 = vector.shape_cast %232 : vector<1x1x64x128xbf16> to vector<64x128xbf16>
    %cst_162 = arith.constant dense<0.000000e+00> : vector<8x128xf32>
    %234 = tpu.matmul %231, %233, %cst_162 {dimension_numbers = #tpu.dot_dimension_numbers<[1], [0], [0], [1], [0, 0, 1, 1], [], []>} : vector<8x64xbf16>, vector<64x128xbf16>, vector<8x128xf32> -> vector<8x128xf32>
    %c0_163 = arith.constant 0 : index
    %c1_164 = arith.constant 1 : index
    %c0_165 = arith.constant 0 : index
    %c0_166 = arith.constant 0 : index
    %235 = vector.load %arg8[%c0_163, %c1_164, %c0_165, %c0_166] : memref<1x6x128x64xbf16, #tpu.memory_space<vmem>>, vector<1x1x128x64xbf16>
    %236 = vector.shape_cast %235 : vector<1x1x128x64xbf16> to vector<128x64xbf16>
    %cst_167 = arith.constant dense<0.000000e+00> : vector<8x64xf32>
    %237 = tpu.matmul %189, %236, %cst_167 {dimension_numbers = #tpu.dot_dimension_numbers<[1], [0], [0], [1], [0, 0, 1, 1], [], []>} : vector<8x128xbf16>, vector<128x64xbf16>, vector<8x64xf32> -> vector<8x64xf32>
    %c0_168 = arith.constant 0 : index
    %c1_169 = arith.constant 1 : index
    %c0_170 = arith.constant 0 : index
    %c0_171 = arith.constant 0 : index
    %238 = vector.load %arg9[%c0_168, %c1_169, %c0_170, %c0_171] : memref<1x6x1x64xf32, #tpu.memory_space<vmem>>, vector<1x1x1x64xf32>
    %239 = vector.shape_cast %238 : vector<1x1x1x64xf32> to vector<1x64xf32>
    %240 = vector.broadcast %239 : vector<1x64xf32> to vector<8x64xf32>
    %241 = arith.addf %237, %240 : vector<8x64xf32>
    %c0_172 = arith.constant 0 : index
    %c3_173 = arith.constant 3 : index
    %c0_174 = arith.constant 0 : index
    %c0_175 = arith.constant 0 : index
    %242 = vector.load %arg8[%c0_172, %c3_173, %c0_174, %c0_175] : memref<1x6x128x64xbf16, #tpu.memory_space<vmem>>, vector<1x1x128x64xbf16>
    %243 = vector.shape_cast %242 : vector<1x1x128x64xbf16> to vector<128x64xbf16>
    %cst_176 = arith.constant dense<0.000000e+00> : vector<8x64xf32>
    %244 = tpu.matmul %189, %243, %cst_176 {dimension_numbers = #tpu.dot_dimension_numbers<[1], [0], [0], [1], [0, 0, 1, 1], [], []>} : vector<8x128xbf16>, vector<128x64xbf16>, vector<8x64xf32> -> vector<8x64xf32>
    %c0_177 = arith.constant 0 : index
    %c3_178 = arith.constant 3 : index
    %c0_179 = arith.constant 0 : index
    %c0_180 = arith.constant 0 : index
    %245 = vector.load %arg9[%c0_177, %c3_178, %c0_179, %c0_180] : memref<1x6x1x64xf32, #tpu.memory_space<vmem>>, vector<1x1x1x64xf32>
    %246 = vector.shape_cast %245 : vector<1x1x1x64xf32> to vector<1x64xf32>
    %247 = vector.broadcast %246 : vector<1x64xf32> to vector<8x64xf32>
    %248 = arith.addf %244, %247 : vector<8x64xf32>
    %c0_181 = arith.constant 0 : index
    %c5_182 = arith.constant 5 : index
    %c0_183 = arith.constant 0 : index
    %c0_184 = arith.constant 0 : index
    %249 = vector.load %arg8[%c0_181, %c5_182, %c0_183, %c0_184] : memref<1x6x128x64xbf16, #tpu.memory_space<vmem>>, vector<1x1x128x64xbf16>
    %250 = vector.shape_cast %249 : vector<1x1x128x64xbf16> to vector<128x64xbf16>
    %cst_185 = arith.constant dense<0.000000e+00> : vector<8x64xf32>
    %251 = tpu.matmul %189, %250, %cst_185 {dimension_numbers = #tpu.dot_dimension_numbers<[1], [0], [0], [1], [0, 0, 1, 1], [], []>} : vector<8x128xbf16>, vector<128x64xbf16>, vector<8x64xf32> -> vector<8x64xf32>
    %c0_186 = arith.constant 0 : index
    %c5_187 = arith.constant 5 : index
    %c0_188 = arith.constant 0 : index
    %c0_189 = arith.constant 0 : index
    %252 = vector.load %arg9[%c0_186, %c5_187, %c0_188, %c0_189] : memref<1x6x1x64xf32, #tpu.memory_space<vmem>>, vector<1x1x1x64xf32>
    %253 = vector.shape_cast %252 : vector<1x1x1x64xf32> to vector<1x64xf32>
    %254 = vector.broadcast %253 : vector<1x64xf32> to vector<8x64xf32>
    %255 = arith.addf %251, %254 : vector<8x64xf32>
    %256 = arith.truncf %241 : vector<8x64xf32> to vector<8x64xbf16>
    %257 = arith.truncf %248 : vector<8x64xf32> to vector<8x64xbf16>
    %cst_190 = arith.constant dense<0.000000e+00> : vector<8x8xf32>
    %258 = tpu.matmul %256, %257, %cst_190 {dimension_numbers = #tpu.dot_dimension_numbers<[1], [1], [0], [0], [0, 0, 1, 0], [], []>} : vector<8x64xbf16>, vector<8x64xbf16>, vector<8x8xf32> -> vector<8x8xf32>
    %c1_191 = arith.constant 1 : index
    %c0_192 = arith.constant 0 : index
    %c0_193 = arith.constant 0 : index
    %259 = vector.load %arg3[%c1_191, %c0_192, %c0_193] : memref<2x1x8xf32, #tpu.memory_space<vmem>>, vector<1x1x8xf32>
    %260 = vector.shape_cast %259 : vector<1x1x8xf32> to vector<1x8xf32>
    %261 = vector.broadcast %260 : vector<1x8xf32> to vector<8x8xf32>
    %262 = arith.addf %258, %261 : vector<8x8xf32>
    %cst_194 = arith.constant dense<0xFF800000> : vector<8xf32>
    %263 = vector.multi_reduction <maximumf>, %262, %cst_194 [1] : vector<8x8xf32> to vector<8xf32>
    %264 = vector.shape_cast %263 : vector<8xf32> to vector<8x1xf32>
    %265 = vector.broadcast %264 : vector<8x1xf32> to vector<8x8xf32>
    %266 = arith.subf %262, %265 : vector<8x8xf32>
    %267 = math.exp %266 : vector<8x8xf32>
    %cst_195 = arith.constant dense<0.000000e+00> : vector<8xf32>
    %268 = vector.multi_reduction <add>, %267, %cst_195 [1] : vector<8x8xf32> to vector<8xf32>
    %269 = vector.shape_cast %268 : vector<8xf32> to vector<8x1xf32>
    %270 = tpu.reciprocal %269 {approx = true} : vector<8x1xf32> -> vector<8x1xf32>
    %271 = vector.broadcast %270 : vector<8x1xf32> to vector<8x8xf32>
    %272 = arith.mulf %267, %271 : vector<8x8xf32>
    %273 = arith.truncf %272 : vector<8x8xf32> to vector<8x8xbf16>
    %274 = arith.truncf %255 : vector<8x64xf32> to vector<8x64xbf16>
    %cst_196 = arith.constant dense<0.000000e+00> : vector<8x64xf32>
    %275 = tpu.matmul %273, %274, %cst_196 {dimension_numbers = #tpu.dot_dimension_numbers<[1], [0], [0], [1], [0, 0, 1, 1], [], []>} : vector<8x8xbf16>, vector<8x64xbf16>, vector<8x64xf32> -> vector<8x64xf32>
    %276 = arith.truncf %275 : vector<8x64xf32> to vector<8x64xbf16>
    %c0_197 = arith.constant 0 : index
    %c1_198 = arith.constant 1 : index
    %c0_199 = arith.constant 0 : index
    %c0_200 = arith.constant 0 : index
    %277 = vector.load %arg10[%c0_197, %c1_198, %c0_199, %c0_200] : memref<1x2x64x128xbf16, #tpu.memory_space<vmem>>, vector<1x1x64x128xbf16>
    %278 = vector.shape_cast %277 : vector<1x1x64x128xbf16> to vector<64x128xbf16>
    %cst_201 = arith.constant dense<0.000000e+00> : vector<8x128xf32>
    %279 = tpu.matmul %276, %278, %cst_201 {dimension_numbers = #tpu.dot_dimension_numbers<[1], [0], [0], [1], [0, 0, 1, 1], [], []>} : vector<8x64xbf16>, vector<64x128xbf16>, vector<8x128xf32> -> vector<8x128xf32>
    %280 = arith.addf %234, %279 : vector<8x128xf32>
    %281 = arith.addf %188, %280 : vector<8x128xf32>
    %282 = vector.broadcast %12 : vector<1x128xf32> to vector<8x128xf32>
    %283 = arith.addf %281, %282 : vector<8x128xf32>
    %cst_202 = arith.constant dense<0.000000e+00> : vector<8xf32>
    %284 = vector.multi_reduction <add>, %283, %cst_202 [1] : vector<8x128xf32> to vector<8xf32>
    %285 = vector.shape_cast %284 : vector<8xf32> to vector<8x1xf32>
    %cst_203 = arith.constant 1.280000e+02 : f32
    %286 = vector.broadcast %cst_203 : f32 to vector<8x1xf32>
    %287 = arith.divf %285, %286 : vector<8x1xf32>
    %288 = vector.broadcast %287 : vector<8x1xf32> to vector<8x128xf32>
    %289 = arith.subf %283, %288 : vector<8x128xf32>
    %290 = arith.mulf %289, %289 : vector<8x128xf32>
    %cst_204 = arith.constant dense<0.000000e+00> : vector<8xf32>
    %291 = vector.multi_reduction <add>, %290, %cst_204 [1] : vector<8x128xf32> to vector<8xf32>
    %292 = vector.shape_cast %291 : vector<8xf32> to vector<8x1xf32>
    %cst_205 = arith.constant 1.280000e+02 : f32
    %293 = vector.broadcast %cst_205 : f32 to vector<8x1xf32>
    %294 = arith.divf %292, %293 : vector<8x1xf32>
    %295 = vector.broadcast %287 : vector<8x1xf32> to vector<8x128xf32>
    %296 = arith.subf %283, %295 : vector<8x128xf32>
    %cst_206 = arith.constant 9.99999996E-13 : f32
    %297 = vector.broadcast %cst_206 : f32 to vector<8x1xf32>
    %298 = arith.addf %294, %297 : vector<8x1xf32>
    %299 = math.rsqrt %298 : vector<8x1xf32>
    %300 = vector.broadcast %299 : vector<8x1xf32> to vector<8x128xf32>
    %301 = arith.mulf %296, %300 : vector<8x128xf32>
    %302 = vector.broadcast %4 : vector<1x128xf32> to vector<8x128xf32>
    %303 = arith.mulf %301, %302 : vector<8x128xf32>
    %304 = vector.broadcast %6 : vector<1x128xf32> to vector<8x128xf32>
    %305 = arith.addf %303, %304 : vector<8x128xf32>
    %306 = arith.truncf %305 : vector<8x128xf32> to vector<8x128xbf16>
    %c0_207 = arith.constant 0 : index
    %c0_208 = arith.constant 0 : index
    %c0_209 = arith.constant 0 : index
    %307 = vector.load %arg14[%c0_207, %c0_208, %c0_209] : memref<1x128x512xbf16, #tpu.memory_space<vmem>>, vector<1x128x512xbf16>
    %308 = vector.shape_cast %307 : vector<1x128x512xbf16> to vector<128x512xbf16>
    %cst_210 = arith.constant dense<0.000000e+00> : vector<8x512xf32>
    %309 = tpu.matmul %306, %308, %cst_210 {dimension_numbers = #tpu.dot_dimension_numbers<[1], [0], [0], [1], [0, 0, 1, 1], [], []>} : vector<8x128xbf16>, vector<128x512xbf16>, vector<8x512xf32> -> vector<8x512xf32>
    %310 = vector.broadcast %14 : vector<1x512xf32> to vector<8x512xf32>
    %311 = arith.addf %309, %310 : vector<8x512xf32>
    %312 = arith.mulf %311, %311 : vector<8x512xf32>
    %313 = arith.mulf %311, %312 : vector<8x512xf32>
    %cst_211 = arith.constant 4.471500e-02 : f32
    %314 = vector.broadcast %cst_211 : f32 to vector<8x512xf32>
    %315 = arith.mulf %314, %313 : vector<8x512xf32>
    %316 = arith.addf %311, %315 : vector<8x512xf32>
    %cst_212 = arith.constant 0.797884583 : f32
    %317 = vector.broadcast %cst_212 : f32 to vector<8x512xf32>
    %318 = arith.mulf %317, %316 : vector<8x512xf32>
    %319 = math.tanh %318 : vector<8x512xf32>
    %cst_213 = arith.constant 1.000000e+00 : f32
    %320 = vector.broadcast %cst_213 : f32 to vector<8x512xf32>
    %321 = arith.addf %320, %319 : vector<8x512xf32>
    %cst_214 = arith.constant 5.000000e-01 : f32
    %322 = vector.broadcast %cst_214 : f32 to vector<8x512xf32>
    %323 = arith.mulf %322, %321 : vector<8x512xf32>
    %324 = arith.mulf %311, %323 : vector<8x512xf32>
    %325 = arith.truncf %324 : vector<8x512xf32> to vector<8x512xbf16>
    %c0_215 = arith.constant 0 : index
    %c0_216 = arith.constant 0 : index
    %c0_217 = arith.constant 0 : index
    %326 = vector.load %arg16[%c0_215, %c0_216, %c0_217] : memref<1x512x128xbf16, #tpu.memory_space<vmem>>, vector<1x512x128xbf16>
    %327 = vector.shape_cast %326 : vector<1x512x128xbf16> to vector<512x128xbf16>
    %cst_218 = arith.constant dense<0.000000e+00> : vector<8x128xf32>
    %328 = tpu.matmul %325, %327, %cst_218 {dimension_numbers = #tpu.dot_dimension_numbers<[1], [0], [0], [1], [0, 0, 1, 1], [], []>} : vector<8x512xbf16>, vector<512x128xbf16>, vector<8x128xf32> -> vector<8x128xf32>
    %329 = vector.broadcast %16 : vector<1x128xf32> to vector<8x128xf32>
    %330 = arith.addf %328, %329 : vector<8x128xf32>
    %331 = arith.addf %305, %330 : vector<8x128xf32>
    %cst_219 = arith.constant dense<0.000000e+00> : vector<8xf32>
    %332 = vector.multi_reduction <add>, %331, %cst_219 [1] : vector<8x128xf32> to vector<8xf32>
    %333 = vector.shape_cast %332 : vector<8xf32> to vector<8x1xf32>
    %cst_220 = arith.constant 1.280000e+02 : f32
    %334 = vector.broadcast %cst_220 : f32 to vector<8x1xf32>
    %335 = arith.divf %333, %334 : vector<8x1xf32>
    %336 = vector.broadcast %335 : vector<8x1xf32> to vector<8x128xf32>
    %337 = arith.subf %331, %336 : vector<8x128xf32>
    %338 = arith.mulf %337, %337 : vector<8x128xf32>
    %cst_221 = arith.constant dense<0.000000e+00> : vector<8xf32>
    %339 = vector.multi_reduction <add>, %338, %cst_221 [1] : vector<8x128xf32> to vector<8xf32>
    %340 = vector.shape_cast %339 : vector<8xf32> to vector<8x1xf32>
    %cst_222 = arith.constant 1.280000e+02 : f32
    %341 = vector.broadcast %cst_222 : f32 to vector<8x1xf32>
    %342 = arith.divf %340, %341 : vector<8x1xf32>
    %343 = vector.broadcast %335 : vector<8x1xf32> to vector<8x128xf32>
    %344 = arith.subf %331, %343 : vector<8x128xf32>
    %cst_223 = arith.constant 9.99999996E-13 : f32
    %345 = vector.broadcast %cst_223 : f32 to vector<8x1xf32>
    %346 = arith.addf %342, %345 : vector<8x1xf32>
    %347 = math.rsqrt %346 : vector<8x1xf32>
    %348 = vector.broadcast %347 : vector<8x1xf32> to vector<8x128xf32>
    %349 = arith.mulf %344, %348 : vector<8x128xf32>
    %350 = vector.broadcast %8 : vector<1x128xf32> to vector<8x128xf32>
    %351 = arith.mulf %349, %350 : vector<8x128xf32>
    %352 = vector.broadcast %10 : vector<1x128xf32> to vector<8x128xf32>
    %353 = arith.addf %351, %352 : vector<8x128xf32>
    %c1_224 = arith.constant 1 : index
    %c0_225 = arith.constant 0 : index
    %c0_226 = arith.constant 0 : index
    %354 = vector.load %arg19[%c1_224, %c0_225, %c0_226] : memref<2x8x128xf32, #tpu.memory_space<vmem>>, vector<1x8x128xf32>
    %355 = vector.shape_cast %354 : vector<1x8x128xf32> to vector<8x128xf32>
    %356 = vector.shape_cast %353 : vector<8x128xf32> to vector<1x8x128xf32>
    tpu.vector_store %arg19[%c1_224, %c0_225, %c0_226], %356 {strides = array<i32>} : memref<2x8x128xf32, #tpu.memory_space<vmem>>, vector<1x8x128xf32>,
    %c1_i32 = arith.constant 1 : i32
    %357 = arith.cmpi eq, %arg1, %c1_i32 : i32
    %358 = arith.extui %357 : i1 to i32
    %c0_i32_227 = arith.constant 0 : i32
    %359 = arith.cmpi ne, %358, %c0_i32_227 : i32
    scf.if %359 {
      %c0_228 = arith.constant 0 : index
      %c0_229 = arith.constant 0 : index
      %c0_230 = arith.constant 0 : index
      %360 = vector.load %arg19[%c0_228, %c0_229, %c0_230] : memref<2x8x128xf32, #tpu.memory_space<vmem>>, vector<2x8x128xf32>
      %c0_231 = arith.constant 0 : index
      %c0_232 = arith.constant 0 : index
      %c0_233 = arith.constant 0 : index
      %361 = vector.load %arg18[%c0_231, %c0_232, %c0_233] : memref<2x8x128xf32, #tpu.memory_space<vmem>>, vector<2x8x128xf32>
      tpu.vector_store %arg18[%c0_231, %c0_232, %c0_233], %360 {strides = array<i32>} : memref<2x8x128xf32, #tpu.memory_space<vmem>>, vector<2x8x128xf32>,
    } else {
    }
    return
  }
  func.func @transform_0(%arg0: i32, %arg1: i32) -> (i32, i32, i32) {
    %c0_i32 = arith.constant 0 : i32
    %c0_i32_0 = arith.constant 0 : i32
    %c0_i32_1 = arith.constant 0 : i32
    return %arg0, %c0_i32, %c0_i32_0 : i32, i32, i32
  }
  func.func @transform_1(%arg0: i32, %arg1: i32) -> (i32, i32, i32) {
    %c0_i32 = arith.constant 0 : i32
    %c0_i32_0 = arith.constant 0 : i32
    %c0_i32_1 = arith.constant 0 : i32
    return %arg0, %c0_i32, %c0_i32_0 : i32, i32, i32
  }
  func.func @transform_2(%arg0: i32, %arg1: i32) -> (i32, i32) {
    %c0_i32 = arith.constant 0 : i32
    %c0_i32_0 = arith.constant 0 : i32
    %c0_i32_1 = arith.constant 0 : i32
    return %c0_i32, %c0_i32_0 : i32, i32
  }
  func.func @transform_3(%arg0: i32, %arg1: i32) -> (i32, i32) {
    %c0_i32 = arith.constant 0 : i32
    %c0_i32_0 = arith.constant 0 : i32
    %c0_i32_1 = arith.constant 0 : i32
    return %c0_i32, %c0_i32_0 : i32, i32
  }
  func.func @transform_4(%arg0: i32, %arg1: i32) -> (i32, i32, i32) {
    %c0_i32 = arith.constant 0 : i32
    %c0_i32_0 = arith.constant 0 : i32
    %c0_i32_1 = arith.constant 0 : i32
    return %arg1, %c0_i32, %c0_i32_0 : i32, i32, i32
  }
  func.func @transform_5(%arg0: i32, %arg1: i32) -> (i32, i32, i32) {
    %c0_i32 = arith.constant 0 : i32
    %c0_i32_0 = arith.constant 0 : i32
    %c0_i32_1 = arith.constant 0 : i32
    return %arg1, %c0_i32, %c0_i32_0 : i32, i32, i32
  }
  func.func @transform_6(%arg0: i32, %arg1: i32) -> (i32, i32, i32, i32) {
    %c0_i32 = arith.constant 0 : i32
    %c0_i32_0 = arith.constant 0 : i32
    %c0_i32_1 = arith.constant 0 : i32
    %c0_i32_2 = arith.constant 0 : i32
    return %arg1, %c0_i32, %c0_i32_0, %c0_i32_1 : i32, i32, i32, i32
  }
  func.func @transform_7(%arg0: i32, %arg1: i32) -> (i32, i32, i32, i32) {
    %c0_i32 = arith.constant 0 : i32
    %c0_i32_0 = arith.constant 0 : i32
    %c0_i32_1 = arith.constant 0 : i32
    %c0_i32_2 = arith.constant 0 : i32
    return %arg1, %c0_i32, %c0_i32_0, %c0_i32_1 : i32, i32, i32, i32
  }
  func.func @transform_8(%arg0: i32, %arg1: i32) -> (i32, i32, i32, i32) {
    %c0_i32 = arith.constant 0 : i32
    %c0_i32_0 = arith.constant 0 : i32
    %c0_i32_1 = arith.constant 0 : i32
    %c0_i32_2 = arith.constant 0 : i32
    return %arg1, %c0_i32, %c0_i32_0, %c0_i32_1 : i32, i32, i32, i32
  }
  func.func @transform_9(%arg0: i32, %arg1: i32) -> (i32, i32, i32) {
    %c0_i32 = arith.constant 0 : i32
    %c0_i32_0 = arith.constant 0 : i32
    %c0_i32_1 = arith.constant 0 : i32
    return %arg1, %c0_i32, %c0_i32_0 : i32, i32, i32
  }
  func.func @transform_10(%arg0: i32, %arg1: i32) -> (i32, i32, i32) {
    %c0_i32 = arith.constant 0 : i32
    %c0_i32_0 = arith.constant 0 : i32
    %c0_i32_1 = arith.constant 0 : i32
    return %arg1, %c0_i32, %c0_i32_0 : i32, i32, i32
  }
  func.func @transform_11(%arg0: i32, %arg1: i32) -> (i32, i32, i32) {
    %c0_i32 = arith.constant 0 : i32
    %c0_i32_0 = arith.constant 0 : i32
    %c0_i32_1 = arith.constant 0 : i32
    return %arg1, %c0_i32, %c0_i32_0 : i32, i32, i32
  }
  func.func @transform_12(%arg0: i32, %arg1: i32) -> (i32, i32, i32) {
    %c0_i32 = arith.constant 0 : i32
    %c0_i32_0 = arith.constant 0 : i32
    %c0_i32_1 = arith.constant 0 : i32
    return %arg1, %c0_i32, %c0_i32_0 : i32, i32, i32
  }
  func.func @transform_13(%arg0: i32, %arg1: i32) -> (i32, i32, i32) {
    %c0_i32 = arith.constant 0 : i32
    %c0_i32_0 = arith.constant 0 : i32
    %c0_i32_1 = arith.constant 0 : i32
    return %arg1, %c0_i32, %c0_i32_0 : i32, i32, i32
  }
  func.func @transform_14(%arg0: i32, %arg1: i32) -> (i32, i32, i32) {
    %c0_i32 = arith.constant 0 : i32
    %c0_i32_0 = arith.constant 0 : i32
    %c0_i32_1 = arith.constant 0 : i32
    return %arg1, %c0_i32, %c0_i32_0 : i32, i32, i32
  }
  func.func @transform_15(%arg0: i32, %arg1: i32) -> (i32, i32, i32) {
    %c0_i32 = arith.constant 0 : i32
    %c0_i32_0 = arith.constant 0 : i32
    %c0_i32_1 = arith.constant 0 : i32
    return %arg1, %c0_i32, %c0_i32_0 : i32, i32, i32
  }
  func.func @transform_16(%arg0: i32, %arg1: i32) -> (i32, i32, i32) {
    %c0_i32 = arith.constant 0 : i32
    %c0_i32_0 = arith.constant 0 : i32
    %c0_i32_1 = arith.constant 0 : i32
    return %arg0, %c0_i32, %c0_i32_0 : i32, i32, i32
  }
}

module attributes {stable_mosaic.version = 11 : i64} {
  func.func @_head_kernel(%arg0: memref<2x128xf32, #tpu.memory_space<vmem>>, %arg1: memref<2x128xf32, #tpu.memory_space<vmem>>, %arg2: memref<1x128xf32, #tpu.memory_space<vmem>>, %arg3: memref<1x128xf32, #tpu.memory_space<vmem>>, %arg4: memref<128x64xbf16, #tpu.memory_space<vmem>>, %arg5: memref<1x64xf32, #tpu.memory_space<vmem>>, %arg6: memref<1x64xf32, #tpu.memory_space<vmem>>, %arg7: memref<1x64xf32, #tpu.memory_space<vmem>>, %arg8: memref<128x64xbf16, #tpu.memory_space<vmem>>, %arg9: memref<1x64xf32, #tpu.memory_space<vmem>>, %arg10: memref<1x64xf32, #tpu.memory_space<vmem>>, %arg11: memref<1x64xf32, #tpu.memory_space<vmem>>, %arg12: memref<1x1xf32, #tpu.memory_space<smem>>, %arg13: memref<2x2xf32, #tpu.memory_space<vmem>>, %arg14: memref<1x1xf32, #tpu.memory_space<vmem>>) attributes {dimension_semantics = [], scalar_prefetch = 0 : i64, scratch_operands = 0 : i64, tpu.core_type = #tpu.core_type<tc>} {
    %c0 = arith.constant 0 : index
    %c0_0 = arith.constant 0 : index
    %0 = vector.load %arg0[%c0, %c0_0] : memref<2x128xf32, #tpu.memory_space<vmem>>, vector<2x128xf32>
    %c0_1 = arith.constant 0 : index
    %c0_2 = arith.constant 0 : index
    %1 = vector.load %arg2[%c0_1, %c0_2] : memref<1x128xf32, #tpu.memory_space<vmem>>, vector<1x128xf32>
    %c0_3 = arith.constant 0 : index
    %c0_4 = arith.constant 0 : index
    %2 = vector.load %arg3[%c0_3, %c0_4] : memref<1x128xf32, #tpu.memory_space<vmem>>, vector<1x128xf32>
    %cst = arith.constant dense<0.000000e+00> : vector<2xf32>
    %3 = vector.multi_reduction <add>, %0, %cst [1] : vector<2x128xf32> to vector<2xf32>
    %4 = vector.shape_cast %3 : vector<2xf32> to vector<2x1xf32>
    %cst_5 = arith.constant 1.280000e+02 : f32
    %5 = vector.broadcast %cst_5 : f32 to vector<2x1xf32>
    %6 = arith.divf %4, %5 : vector<2x1xf32>
    %7 = vector.broadcast %6 : vector<2x1xf32> to vector<2x128xf32>
    %8 = arith.subf %0, %7 : vector<2x128xf32>
    %9 = arith.mulf %8, %8 : vector<2x128xf32>
    %cst_6 = arith.constant dense<0.000000e+00> : vector<2xf32>
    %10 = vector.multi_reduction <add>, %9, %cst_6 [1] : vector<2x128xf32> to vector<2xf32>
    %11 = vector.shape_cast %10 : vector<2xf32> to vector<2x1xf32>
    %cst_7 = arith.constant 1.280000e+02 : f32
    %12 = vector.broadcast %cst_7 : f32 to vector<2x1xf32>
    %13 = arith.divf %11, %12 : vector<2x1xf32>
    %14 = vector.broadcast %6 : vector<2x1xf32> to vector<2x128xf32>
    %15 = arith.subf %0, %14 : vector<2x128xf32>
    %cst_8 = arith.constant 9.99999974E-6 : f32
    %16 = vector.broadcast %cst_8 : f32 to vector<2x1xf32>
    %17 = arith.addf %13, %16 : vector<2x1xf32>
    %18 = math.rsqrt %17 : vector<2x1xf32>
    %19 = vector.broadcast %18 : vector<2x1xf32> to vector<2x128xf32>
    %20 = arith.mulf %15, %19 : vector<2x128xf32>
    %21 = vector.broadcast %1 : vector<1x128xf32> to vector<2x128xf32>
    %22 = arith.mulf %20, %21 : vector<2x128xf32>
    %23 = vector.broadcast %2 : vector<1x128xf32> to vector<2x128xf32>
    %24 = arith.addf %22, %23 : vector<2x128xf32>
    %25 = arith.truncf %24 : vector<2x128xf32> to vector<2x128xbf16>
    %c0_9 = arith.constant 0 : index
    %c0_10 = arith.constant 0 : index
    %26 = vector.load %arg4[%c0_9, %c0_10] : memref<128x64xbf16, #tpu.memory_space<vmem>>, vector<128x64xbf16>
    %cst_11 = arith.constant dense<0.000000e+00> : vector<2x64xf32>
    %27 = tpu.matmul %25, %26, %cst_11 {dimension_numbers = #tpu.dot_dimension_numbers<[1], [0], [0], [1], [0, 0, 1, 1], [], []>} : vector<2x128xbf16>, vector<128x64xbf16>, vector<2x64xf32> -> vector<2x64xf32>
    %c0_12 = arith.constant 0 : index
    %c0_13 = arith.constant 0 : index
    %28 = vector.load %arg5[%c0_12, %c0_13] : memref<1x64xf32, #tpu.memory_space<vmem>>, vector<1x64xf32>
    %29 = vector.broadcast %28 : vector<1x64xf32> to vector<2x64xf32>
    %30 = arith.addf %27, %29 : vector<2x64xf32>
    %c0_14 = arith.constant 0 : index
    %c0_15 = arith.constant 0 : index
    %31 = vector.load %arg6[%c0_14, %c0_15] : memref<1x64xf32, #tpu.memory_space<vmem>>, vector<1x64xf32>
    %c0_16 = arith.constant 0 : index
    %c0_17 = arith.constant 0 : index
    %32 = vector.load %arg7[%c0_16, %c0_17] : memref<1x64xf32, #tpu.memory_space<vmem>>, vector<1x64xf32>
    %cst_18 = arith.constant dense<0.000000e+00> : vector<2xf32>
    %33 = vector.multi_reduction <add>, %30, %cst_18 [1] : vector<2x64xf32> to vector<2xf32>
    %34 = vector.shape_cast %33 : vector<2xf32> to vector<2x1xf32>
    %cst_19 = arith.constant 6.400000e+01 : f32
    %35 = vector.broadcast %cst_19 : f32 to vector<2x1xf32>
    %36 = arith.divf %34, %35 : vector<2x1xf32>
    %37 = vector.broadcast %36 : vector<2x1xf32> to vector<2x64xf32>
    %38 = arith.subf %30, %37 : vector<2x64xf32>
    %39 = arith.mulf %38, %38 : vector<2x64xf32>
    %cst_20 = arith.constant dense<0.000000e+00> : vector<2xf32>
    %40 = vector.multi_reduction <add>, %39, %cst_20 [1] : vector<2x64xf32> to vector<2xf32>
    %41 = vector.shape_cast %40 : vector<2xf32> to vector<2x1xf32>
    %cst_21 = arith.constant 6.400000e+01 : f32
    %42 = vector.broadcast %cst_21 : f32 to vector<2x1xf32>
    %43 = arith.divf %41, %42 : vector<2x1xf32>
    %44 = vector.broadcast %36 : vector<2x1xf32> to vector<2x64xf32>
    %45 = arith.subf %30, %44 : vector<2x64xf32>
    %cst_22 = arith.constant 9.99999974E-6 : f32
    %46 = vector.broadcast %cst_22 : f32 to vector<2x1xf32>
    %47 = arith.addf %43, %46 : vector<2x1xf32>
    %48 = math.rsqrt %47 : vector<2x1xf32>
    %49 = vector.broadcast %48 : vector<2x1xf32> to vector<2x64xf32>
    %50 = arith.mulf %45, %49 : vector<2x64xf32>
    %51 = vector.broadcast %31 : vector<1x64xf32> to vector<2x64xf32>
    %52 = arith.mulf %50, %51 : vector<2x64xf32>
    %53 = vector.broadcast %32 : vector<1x64xf32> to vector<2x64xf32>
    %54 = arith.addf %52, %53 : vector<2x64xf32>
    %c0_23 = arith.constant 0 : index
    %c0_24 = arith.constant 0 : index
    %55 = vector.load %arg1[%c0_23, %c0_24] : memref<2x128xf32, #tpu.memory_space<vmem>>, vector<2x128xf32>
    %56 = arith.truncf %55 : vector<2x128xf32> to vector<2x128xbf16>
    %c0_25 = arith.constant 0 : index
    %c0_26 = arith.constant 0 : index
    %57 = vector.load %arg8[%c0_25, %c0_26] : memref<128x64xbf16, #tpu.memory_space<vmem>>, vector<128x64xbf16>
    %cst_27 = arith.constant dense<0.000000e+00> : vector<2x64xf32>
    %58 = tpu.matmul %56, %57, %cst_27 {dimension_numbers = #tpu.dot_dimension_numbers<[1], [0], [0], [1], [0, 0, 1, 1], [], []>} : vector<2x128xbf16>, vector<128x64xbf16>, vector<2x64xf32> -> vector<2x64xf32>
    %c0_28 = arith.constant 0 : index
    %c0_29 = arith.constant 0 : index
    %59 = vector.load %arg9[%c0_28, %c0_29] : memref<1x64xf32, #tpu.memory_space<vmem>>, vector<1x64xf32>
    %60 = vector.broadcast %59 : vector<1x64xf32> to vector<2x64xf32>
    %61 = arith.addf %58, %60 : vector<2x64xf32>
    %c0_30 = arith.constant 0 : index
    %c0_31 = arith.constant 0 : index
    %62 = vector.load %arg10[%c0_30, %c0_31] : memref<1x64xf32, #tpu.memory_space<vmem>>, vector<1x64xf32>
    %c0_32 = arith.constant 0 : index
    %c0_33 = arith.constant 0 : index
    %63 = vector.load %arg11[%c0_32, %c0_33] : memref<1x64xf32, #tpu.memory_space<vmem>>, vector<1x64xf32>
    %cst_34 = arith.constant dense<0.000000e+00> : vector<2xf32>
    %64 = vector.multi_reduction <add>, %61, %cst_34 [1] : vector<2x64xf32> to vector<2xf32>
    %65 = vector.shape_cast %64 : vector<2xf32> to vector<2x1xf32>
    %cst_35 = arith.constant 6.400000e+01 : f32
    %66 = vector.broadcast %cst_35 : f32 to vector<2x1xf32>
    %67 = arith.divf %65, %66 : vector<2x1xf32>
    %68 = vector.broadcast %67 : vector<2x1xf32> to vector<2x64xf32>
    %69 = arith.subf %61, %68 : vector<2x64xf32>
    %70 = arith.mulf %69, %69 : vector<2x64xf32>
    %cst_36 = arith.constant dense<0.000000e+00> : vector<2xf32>
    %71 = vector.multi_reduction <add>, %70, %cst_36 [1] : vector<2x64xf32> to vector<2xf32>
    %72 = vector.shape_cast %71 : vector<2xf32> to vector<2x1xf32>
    %cst_37 = arith.constant 6.400000e+01 : f32
    %73 = vector.broadcast %cst_37 : f32 to vector<2x1xf32>
    %74 = arith.divf %72, %73 : vector<2x1xf32>
    %75 = vector.broadcast %67 : vector<2x1xf32> to vector<2x64xf32>
    %76 = arith.subf %61, %75 : vector<2x64xf32>
    %cst_38 = arith.constant 9.99999974E-6 : f32
    %77 = vector.broadcast %cst_38 : f32 to vector<2x1xf32>
    %78 = arith.addf %74, %77 : vector<2x1xf32>
    %79 = math.rsqrt %78 : vector<2x1xf32>
    %80 = vector.broadcast %79 : vector<2x1xf32> to vector<2x64xf32>
    %81 = arith.mulf %76, %80 : vector<2x64xf32>
    %82 = vector.broadcast %62 : vector<1x64xf32> to vector<2x64xf32>
    %83 = arith.mulf %81, %82 : vector<2x64xf32>
    %84 = vector.broadcast %63 : vector<1x64xf32> to vector<2x64xf32>
    %85 = arith.addf %83, %84 : vector<2x64xf32>
    %c0_39 = arith.constant 0 : index
    %c0_40 = arith.constant 0 : index
    %86 = memref.load %arg12[%c0_39, %c0_40] : memref<1x1xf32, #tpu.memory_space<smem>>
    %cst_41 = arith.constant dense<0.000000e+00> : vector<2x2xf32>
    %87 = tpu.matmul %54, %85, %cst_41 {dimension_numbers = #tpu.dot_dimension_numbers<[1], [1], [0], [0], [0, 0, 1, 0], [], []>} : vector<2x64xf32>, vector<2x64xf32>, vector<2x2xf32> -> vector<2x2xf32>
    %88 = vector.broadcast %86 : f32 to vector<2x2xf32>
    %89 = arith.mulf %87, %88 : vector<2x2xf32>
    %c0_42 = arith.constant 0 : index
    %c0_43 = arith.constant 0 : index
    %90 = vector.load %arg13[%c0_42, %c0_43] : memref<2x2xf32, #tpu.memory_space<vmem>>, vector<2x2xf32>
    tpu.vector_store %arg13[%c0_42, %c0_43], %89 {strides = array<i32>} : memref<2x2xf32, #tpu.memory_space<vmem>>, vector<2x2xf32>,
    %91 = tpu.iota {dimensions = array<i32: 0>} : vector<2x2xi32>
    %92 = tpu.iota {dimensions = array<i32: 1>} : vector<2x2xi32>
    %93 = arith.cmpi eq, %91, %92 : vector<2x2xi32>
    %cst_44 = arith.constant 0.000000e+00 : f32
    %94 = vector.broadcast %cst_44 : f32 to vector<2x2xf32>
    %95 = arith.select %93, %89, %94 : vector<2x2xi1>, vector<2x2xf32>
    %cst_45 = arith.constant dense<0.000000e+00> : vector<2xf32>
    %96 = vector.multi_reduction <add>, %95, %cst_45 [1] : vector<2x2xf32> to vector<2xf32>
    %97 = vector.shape_cast %96 : vector<2xf32> to vector<2x1xf32>
    %cst_46 = arith.constant dense<0.000000e+00> : vector<2xf32>
    %98 = vector.multi_reduction <add>, %95, %cst_46 [0] : vector<2x2xf32> to vector<2xf32>
    %99 = vector.shape_cast %98 : vector<2xf32> to vector<1x2xf32>
    %cst_47 = arith.constant dense<0xFF800000> : vector<2xf32>
    %100 = vector.multi_reduction <maximumf>, %89, %cst_47 [1] : vector<2x2xf32> to vector<2xf32>
    %101 = vector.shape_cast %100 : vector<2xf32> to vector<2x1xf32>
    %102 = vector.broadcast %101 : vector<2x1xf32> to vector<2x2xf32>
    %103 = arith.subf %89, %102 : vector<2x2xf32>
    %104 = math.exp %103 : vector<2x2xf32>
    %cst_48 = arith.constant dense<0.000000e+00> : vector<2xf32>
    %105 = vector.multi_reduction <add>, %104, %cst_48 [1] : vector<2x2xf32> to vector<2xf32>
    %106 = vector.shape_cast %105 : vector<2xf32> to vector<2x1xf32>
    %107 = math.log %106 : vector<2x1xf32>
    %108 = arith.addf %101, %107 : vector<2x1xf32>
    %cst_49 = arith.constant dense<0xFF800000> : vector<2xf32>
    %109 = vector.multi_reduction <maximumf>, %89, %cst_49 [0] : vector<2x2xf32> to vector<2xf32>
    %110 = vector.shape_cast %109 : vector<2xf32> to vector<1x2xf32>
    %111 = vector.broadcast %110 : vector<1x2xf32> to vector<2x2xf32>
    %112 = arith.subf %89, %111 : vector<2x2xf32>
    %113 = math.exp %112 : vector<2x2xf32>
    %cst_50 = arith.constant dense<0.000000e+00> : vector<2xf32>
    %114 = vector.multi_reduction <add>, %113, %cst_50 [0] : vector<2x2xf32> to vector<2xf32>
    %115 = vector.shape_cast %114 : vector<2xf32> to vector<1x2xf32>
    %116 = math.log %115 : vector<1x2xf32>
    %117 = arith.addf %110, %116 : vector<1x2xf32>
    %118 = arith.subf %108, %97 : vector<2x1xf32>
    %119 = vector.shape_cast %118 : vector<2x1xf32> to vector<1x2x1xf32>
    %cst_51 = arith.constant dense<0.000000e+00> : vector<1xf32>
    %120 = vector.multi_reduction <add>, %119, %cst_51 [1, 2] : vector<1x2x1xf32> to vector<1xf32>
    %121 = vector.shape_cast %120 : vector<1xf32> to vector<1x1x1xf32>
    %122 = vector.extract %121[0, 0, 0] : f32 from vector<1x1x1xf32>
    %123 = vector.broadcast %122 : f32 to vector<1x1xf32>
    %cst_52 = arith.constant 2.000000e+00 : f32
    %124 = vector.broadcast %cst_52 : f32 to vector<1x1xf32>
    %125 = arith.divf %123, %124 : vector<1x1xf32>
    %126 = arith.subf %117, %99 : vector<1x2xf32>
    %127 = vector.shape_cast %126 : vector<1x2xf32> to vector<1x1x2xf32>
    %cst_53 = arith.constant dense<0.000000e+00> : vector<1xf32>
    %128 = vector.multi_reduction <add>, %127, %cst_53 [1, 2] : vector<1x1x2xf32> to vector<1xf32>
    %129 = vector.shape_cast %128 : vector<1xf32> to vector<1x1x1xf32>
    %130 = vector.extract %129[0, 0, 0] : f32 from vector<1x1x1xf32>
    %131 = vector.broadcast %130 : f32 to vector<1x1xf32>
    %cst_54 = arith.constant 2.000000e+00 : f32
    %132 = vector.broadcast %cst_54 : f32 to vector<1x1xf32>
    %133 = arith.divf %131, %132 : vector<1x1xf32>
    %134 = arith.addf %133, %125 : vector<1x1xf32>
    %cst_55 = arith.constant 5.000000e-01 : f32
    %135 = vector.broadcast %cst_55 : f32 to vector<1x1xf32>
    %136 = arith.mulf %134, %135 : vector<1x1xf32>
    %c0_56 = arith.constant 0 : index
    %c0_57 = arith.constant 0 : index
    %137 = vector.load %arg14[%c0_56, %c0_57] : memref<1x1xf32, #tpu.memory_space<vmem>>, vector<1x1xf32>
    tpu.vector_store %arg14[%c0_56, %c0_57], %136 {strides = array<i32>} : memref<1x1xf32, #tpu.memory_space<vmem>>, vector<1x1xf32>,
    return
  }
}

</mosaic_0001>

<bundles_post_ra>
// kernel: run.4
= control target key start
LH: loop header
LB: loop body
LE: loop exit
PB: predicated region body
PF: predicated region fallthrough
CT: control target
= control target key end

     0   :  { %vm52_vm0 = vcmask 392192   ;;  %s196_s1 = inlined_call_operand.vmem [shape: bf16[48,128], index: 1, kind: input, shape index: {}]   ;;  %s197_s0 = inlined_call_operand.vmem [shape: f32[32,48], index: 0, kind: input, shape index: {}]   ;;  %s198_s2 = inlined_call_operand.vmem [shape: f32[1,128], index: 2, kind: input, shape index: {}]   ;;  %s199_s3 = inlined_call_operand.vmem [shape: f32[32,128], index: 3, kind: output, shape index: {}]  }
   0x1   :  { %v137_v0 = vld [vmem:[%s196_s1 + $0x10] sm:$0xff]   ;;  %v138_v1 = vld [vmem:[%s196_s1 + $0x8] sm:$0xff]   ;;  %v15_v2 = vld [vmem:[%s197_s0] sm:$0xff] }
   0x2   :  { %127 = vmatprep.subr.bf16.mxu0 %v137_v0  ;;  %v16_v3 = vld [vmem:[%s197_s0 + $0x8] sm:$0xff]  ;;  %v139_v4 = vld [vmem:[%s196_s1] sm:$0xff]   ;;  %v17_v6 = vld [vmem:[%s197_s0 + $0x10] sm:$0xff] }
   0x3   :  { %128 = vmatpush3.bf16.msra.mxu0 %v137_v0  ;;  %v19_v5 = vpack.c.bf16 %v16_v3, %v15_v2  ;;  %v18_v7 = vld [vmem:[%s197_s0 + $0x18] sm:$0xff]  ;;  %v116_v9 = vld [vmem:[%s198_s2] ss:$0 sm:$0xff] }
   0x4   :  { %129 = vmatprep.subr.bf16.mxu0 %v138_v1  ;;  %v20_v8 = vpack.c.bf16 %v18_v7, %v17_v6 }
   0x5   :  { %133 = vmatprep.mubr.msk.bf16.mxu0 %vm52_vm0, %v19_v5 }
   0x7   :  { %130 = vmatpush3.bf16.msra.mxu0 %v138_v1 }
   0x8   :  { %131 = vmatprep.subr.bf16.mxu0 %v139_v4 }
   0xb   :  { %132 = vmatpush3.bf16.msra.mxu0 %v139_v4 }
   0xe   :  { %134 = vmatmul.mubr.msk.bf16.vlgmr.msra.gmra.mxu0 %vm52_vm0, %v20_v8 }
  0xce   :  { %v135_v10 = vpop.f32.mrf.mxu0 }
  0xcf   :  { %v102_v11 = vadd.f32 %v135_v10, %v116_v9 }
  0xd0   :  { %v93_v12 = vpop.f32.mrf.mxu0 }
  0xd1   :  { %110 = vst [vmem:[%s199_s3 + $0x10] sm:$0xff] %v102_v11  ;;  %v94_v13 = vadd.f32 %v116_v9, %v93_v12 }
  0xd2   :  { %v136_v14 = vpop.f32.mrf.mxu0 }
  0xd3   :  { %108 = vst [vmem:[%s199_s3] sm:$0xff] %v94_v13  ;;  %v105_v15 = vadd.f32 %v136_v14, %v116_v9 }
  0xd4   :  { %v96_v16 = vpop.f32.mrf.mxu0 }
  0xd5   :  { %111 = vst [vmem:[%s199_s3 + $0x18] sm:$0xff] %v105_v15  ;;  %v97_v17 = vadd.f32 %v116_v9, %v96_v16 }
  0xd7   :  { %109 = vst [vmem:[%s199_s3 + $0x8] sm:$0xff] %v97_v17 }

// kernel: run.7
= control target key start
LH: loop header
LB: loop body
LE: loop exit
PB: predicated region body
PF: predicated region fallthrough
CT: control target
= control target key end

     0   :  { %21 = vsyncpa [#allocation4], 0  ;;  %vm53_vm0 = vcmask 1041408   ;;  %v729_v1 = vmov 0.0   ;;  %vm730_vm1 = vmmov 0   ;;  %s931_s0 = inlined_call_operand.vmem [shape: f32[2,128], index: 0, kind: input, shape index: {}]   ;;  %s932_s1 = inlined_call_operand.vmem [shape: f32[2,128], index: 1, kind: input, shape index: {}]   ;;  %s933_s2 = inlined_call_operand.vmem [shape: f32[1,128], index: 2, kind: input, shape index: {}]   ;;  %s934_s3 = inlined_call_operand.vmem [shape: f32[1,128], index: 3, kind: input, shape index: {}]   ;;  %s935_s4 = inlined_call_operand.vmem [shape: bf16[128,64], index: 4, kind: input, shape index: {}]   ;;  %s936_s5 = inlined_call_operand.vmem [shape: f32[1,64], index: 5, kind: input, shape index: {}, may-alias: {5,7,9,11}]   ;;  %s937_s6 = inlined_call_operand.vmem [shape: f32[1,64], index: 6, kind: input, shape index: {}, may-alias: {6,10}]   ;;  %s938_s7 = inlined_call_operand.vmem [shape: f32[1,64], index: 7, kind: input, shape index: {}, may-alias: {5,7,9,11}]   ;;  %s939_s8 = inlined_call_operand.vmem [shape: bf16[128,64], index: 8, kind: input, shape index: {}]   ;;  %s940_s9 = inlined_call_operand.vmem [shape: f32[1,64], index: 9, kind: input, shape index: {}, may-alias: {5,7,9,11}]   ;;  %s941_s10 = inlined_call_operand.vmem [shape: f32[1,64], index: 10, kind: input, shape index: {}, may-alias: {6,10}]   ;;  %s942_s11 = inlined_call_operand.vmem [shape: f32[1,64], index: 11, kind: input, shape index: {}, may-alias: {5,7,9,11}]   ;;  %s943_s12 = inlined_call_operand.<no memory space> [shape: f32[1,1], index: 12, kind: input, shape index: {}]   ;;  %s944_s13 = inlined_call_operand.hbm [shape: f32[2,2], index: 13, kind: output, shape index: {0}]   ;;  %s945_s14 = inlined_call_operand.hbm [shape: f32[1,1], index: 14, kind: output, shape index: {1}]  }
   0x1   :  { %v50_v0 = vld [vmem:[%s931_s0] sm:$0x3]  ;;  %622 = vmatprep.subr.bf16.mxu1 %v729_v1  ;;  %v655_v3 = vld [vmem:[%s939_s8 + $0x38] sm:$0xff]   ;;  %602 = vmatprep.subr.bf16.mxu0 %v729_v1  ;;  %v656_v4 = vld [vmem:[%s939_s8 + $0x30] sm:$0xff]  }
   0x2   :  { %v54_v2 = vsel %vm53_vm0, %v50_v0, 0.0  ;;  %623 = vmatpush3.bf16.msra.mxu1 %v655_v3  ;;  %638 = vmatprep.mubr.msk.bf16.mxu1 %vm730_vm1, %v729_v1  ;;  %v657_v5 = vld [vmem:[%s939_s8 + $0x28] sm:$0xff]   ;;  %v658_v6 = vld [vmem:[%s939_s8 + $0x20] sm:$0xff]  }
   0x3   :  { %55 = vadd.xlane.f32.xlu0 %v54_v2  ;;  %624 = vmatprep.subr.bf16.mxu1 %v729_v1 }
   0x4   :  { %618 = vmatprep.mubr.msk.bf16.mxu0 %vm730_vm1, %v729_v1 }
   0x6   :  { %625 = vmatpush3.bf16.msra.mxu1 %v656_v4 }
   0x7   :  { %626 = vmatprep.subr.bf16.mxu1 %v729_v1 }
   0xa   :  { %627 = vmatpush3.bf16.msra.mxu1 %v657_v5 }
   0xb   :  { %628 = vmatprep.subr.bf16.mxu1 %v729_v1 }
   0xc   :  { %22 = vsyncpa [#allocation6], 0  ;;  %v659_v7 = vld [vmem:[%s939_s8 + $0x18] sm:$0xff]   ;;  %v660_v8 = vld [vmem:[%s939_s8 + $0x10] sm:$0xff]   ;;  %vm196_vm2 = vcmask 517120   ;;  %vm368_vm3 = vcmask 523264  }
   0xd   :  { %v661_v9 = vld [vmem:[%s939_s8 + $0x8] sm:$0xff]   ;;  %v662_v10 = vld [vmem:[%s939_s8] sm:$0xff]   ;;  %v663_v13 = vld [vmem:[%s935_s4 + $0x38] sm:$0xff]   ;;  %vm447_vm4 = vcmask 9216   ;;  %vm511_vm6 = vcmask 8192   ;;  %vm496_vm7 = vcmask 1024  }
   0xe   :  { %629 = vmatpush3.bf16.msra.mxu1 %v658_v6  ;;  %v225_v11 = vld [vmem:[%s932_s1] sm:$0x3]  ;;  %603 = vmatpush3.bf16.msra.mxu0 %v663_v13  ;;  %v664_v14 = vld [vmem:[%s935_s4 + $0x30] sm:$0xff]   ;;  %v665_v20 = vld [vmem:[%s935_s4 + $0x28] sm:$0xff]  }
   0xf   :  { %630 = vmatprep.subr.bf16.mxu1 %v729_v1  ;;  %v226_v12 = vpack.c.bf16 %v225_v11, %v225_v11  ;;  %604 = vmatprep.subr.bf16.mxu0 %v729_v1  ;;  %v666_v21 = vld [vmem:[%s935_s4 + $0x20] sm:$0xff]   ;;  %v667_v22 = vld [vmem:[%s935_s4 + $0x18] sm:$0xff]   ;;  %v668_v23 = vld [vmem:[%s935_s4 + $0x10] sm:$0xff]  }
  0x10   :  { %v669_v24 = vld [vmem:[%s935_s4 + $0x8] sm:$0xff]   ;;  %v670_v25 = vld [vmem:[%s935_s4] sm:$0xff]  }
  0x11   :  { %v569_v26 = vld [vmem:[%s940_s9] ss:$0 sm:$0xff] }
  0x12   :  { %631 = vmatpush3.bf16.msra.mxu1 %v659_v7  ;;  %605 = vmatpush3.bf16.msra.mxu0 %v664_v14  ;;  %v556_v37 = vld [vmem:[%s933_s2] ss:$0 sm:$0xff]  ;;  %v449_v14 = vlaneseq }
  0x13   :  { %632 = vmatprep.subr.bf16.mxu1 %v729_v1  ;;  %606 = vmatprep.subr.bf16.mxu0 %v729_v1  ;;  %v557_v39 = vld [vmem:[%s934_s3] ss:$0 sm:$0xff] }
  0x14   :  { %v558_v48 = vld [vmem:[%s936_s5] ss:$0 sm:$0xff] }
  0x15   :  { %v578_v59 = vld [vmem:[%s941_s10] ss:$0 sm:$0xff] }
  0x16   :  { %633 = vmatpush3.bf16.msra.mxu1 %v660_v8  ;;  %607 = vmatpush3.bf16.msra.mxu0 %v665_v20  ;;  %v579_v61 = vld [vmem:[%s942_s11] ss:$0 sm:$0xff] }
  0x17   :  { %634 = vmatprep.subr.bf16.mxu1 %v729_v1  ;;  %608 = vmatprep.subr.bf16.mxu0 %v729_v1  ;;  %v568_v11 = vld [vmem:[%s938_s7] ss:$0 sm:$0xff] }
  0x1a   :  { %635 = vmatpush3.bf16.msra.mxu1 %v661_v9  ;;  %609 = vmatpush3.bf16.msra.mxu0 %v666_v21  ;;  %v567_v9 = vld [vmem:[%s937_s6] ss:$0 sm:$0xff]  ;;  %s731_s6 = smov [#allocation3]  }
  0x1b   :  { %636 = vmatprep.subr.bf16.mxu1 %v729_v1  ;;  %610 = vmatprep.subr.bf16.mxu0 %v729_v1  ;;  %s534_s7 = sshll.u32 %s731_s6, 4  ;;  %s535_s7 = int_to_ptr.vmem [resolvable:$true] %s534_s7 }
  0x1c   :  { %p690_p1 = scmp.lt.s32.totalorder %s535_s7, %s535_s7 }
  0x1e   :  { %637 = vmatpush3.bf16.msra.mxu1 %v662_v10  ;;  %611 = vmatpush3.bf16.msra.mxu0 %v667_v22 }
  0x1f   :  { %612 = vmatprep.subr.bf16.mxu0 %v729_v1 }
  0x21   :  { %639 = vmatmul.mubr.bf16.vlgmr.msra.gmra.mxu1 %v226_v12 }
  0x22   :  { %613 = vmatpush3.bf16.msra.mxu0 %v668_v23 }
  0x23   :  { %614 = vmatprep.subr.bf16.mxu0 %v729_v1 }
  0x26   :  { %615 = vmatpush3.bf16.msra.mxu0 %v669_v24 }
  0x27   :  { %616 = vmatprep.subr.bf16.mxu0 %v729_v1 }
  0x2a   :  { %617 = vmatpush3.bf16.msra.mxu0 %v670_v25 }
  0x2b   :  { %642 = vmatprep.subr.mxu0 %v729_v1 }
  0x8c   :  { %v56_v15 = vpop.xlane.xlu0 %55 }
  0x8d   :  { %v58_v16 = vmul.f32 0.0078125, %v56_v15  ;;  %v450_v15 = vshrl.u32 %v449_v14, 7 }
  0x8f   :  { %v59_v17 = vsub.f32 %v50_v0, %v58_v16  ;;  %v452_v16 = vand.u32 127, %v449_v14 }
  0x91   :  { %v60_v18 = vmul.f32 %v59_v17, %v59_v17  ;;  %vm453_vm5 = vcmp.eq.s32.totalorder %v450_v15, %v452_v16 }
  0x93   :  { %v61_v19 = vsel %vm53_vm0, %v60_v18, 0.0 }
  0x94   :  { %62 = vadd.xlane.f32.xlu0 %v61_v19 }
  0xe1   :  { %v332_v27 = vpop.f32.mrf.mxu1 }
  0xe2   :  { %v333_v28 = vadd.f32 %v569_v26, %v332_v27 }
  0xe3   :  { %v640_v29 = vpop.f32.mrf.mxu1 }
  0xe4   :  { %v340_v30 = vsel %vm196_vm2, %v333_v28, 0.0 }
  0xe5   :  { %341 = vadd.xlane.f32.xlu1 %v340_v30  ;;  %v335_v31 = vpop.f32.mrf.mxu1 }
  0xe7   :  { %v641_v32 = vpop.f32.mrf.mxu1 }
 0x11d   :  { %v63_v33 = vpop.xlane.xlu0 %62 }
 0x11e   :  { %v64_v34 = vmul.f32 0.0078125, %v63_v33 }
 0x120   :  { %v65_v35 = vadd.f32 1e-05, %v64_v34 }
 0x122   :  { %671 = vrsqrt.f32 %v65_v35 }
 0x12f   :  { %v672_v36 = vpop.eup %671 }
 0x130   :  { %v67_v38 = vmul.f32 %v672_v36, %v59_v17  ;;  %v445_v17 = vstv %s943_s12  ;;  %s685_s12 = scalar_lea.vmem %s535_s7, 32 }
 0x131   :  { %p686_p0 = scmp.ne.s32.totalorder %s535_s7, %s685_s12  ;;  %p691_p2 = scmp.lt.s32.totalorder %s685_s12, %s685_s12 }
 0x132   :  { %v74_v40 = vmul.f32 %v556_v37, %v67_v38 }
 0x133   :  { %p692_p3 = por %p691_p2, %p690_p1 }
 0x134   :  { %v81_v41 = vadd.f32 %v557_v39, %v74_v40 }
 0x135   :  { %p693_p4 = pnand %p692_p3, %p686_p0 }
 0x136   :  { %v82_v42 = vpack.c.bf16 %v81_v41, %v81_v41 }
 0x138   :  { %619 = vmatmul.mubr.bf16.vlgmr.msra.gmra.mxu0 %v82_v42 }
 0x139   :  { %644 = vmatprep.mubr.msk.f32.mxu0 %vm730_vm1, %v729_v1 }
 0x16e   :  { %v342_v43 = vpop.xlane.xlu1 %341 }
 0x16f   :  { %v343_v44 = vmul.f32 0.015625, %v342_v43 }
 0x171   :  { %v344_v45 = vsub.f32 %v333_v28, %v343_v44 }
 0x173   :  { %v345_v46 = vmul.f32 %v344_v45, %v344_v45 }
 0x175   :  { %v346_v47 = vsel %vm196_vm2, %v345_v46, 0.0 }
 0x176   :  { %347 = vadd.xlane.f32.xlu0 %v346_v47 }
 0x1f8   :  { %v188_v49 = vpop.f32.mrf.mxu0 }
 0x1f9   :  { %v189_v50 = vadd.f32 %v558_v48, %v188_v49 }
 0x1fa   :  { %v620_v51 = vpop.f32.mrf.mxu0 }
 0x1fb   :  { %v197_v52 = vsel %vm196_vm2, %v189_v50, 0.0 }
 0x1fc   :  { %198 = vadd.xlane.f32.xlu1 %v197_v52  ;;  %v191_v53 = vpop.f32.mrf.mxu0 }
 0x1fe   :  { %v621_v54 = vpop.f32.mrf.mxu0 }
 0x1ff   :  { %v348_v55 = vpop.xlane.xlu0 %347 }
 0x200   :  { %v349_v56 = vmul.f32 0.015625, %v348_v55 }
 0x202   :  { %v350_v57 = vadd.f32 1e-05, %v349_v56 }
 0x204   :  { %673 = vrsqrt.f32 %v350_v57 }
 0x211   :  { %v674_v58 = vpop.eup %673 }
 0x212   :  { %v352_v60 = vmul.f32 %v674_v58, %v344_v45 }
 0x214   :  { %v359_v62 = vmul.f32 %v578_v59, %v352_v60 }
 0x216   :  { %v366_v63 = vadd.f32 %v579_v61, %v359_v62 }
 0x218   :  { %643 = vmatpush3.xpose.msk.msra.mxu0 %vm368_vm3, %v366_v63 }
 0x285   :  { %v199_v0 = vpop.xlane.xlu1 %198 }
 0x286   :  { %v201_v1 = vmul.f32 0.015625, %v199_v0 }
 0x288   :  { %v202_v2 = vsub.f32 %v189_v50, %v201_v1 }
 0x28a   :  { %v203_v3 = vmul.f32 %v202_v2, %v202_v2 }
 0x28c   :  { %v204_v4 = vsel %vm196_vm2, %v203_v3, 0.0 }
 0x28d   :  { %205 = vadd.xlane.f32.xlu1 %v204_v4 }
 0x316   :  { %v206_v5 = vpop.xlane.xlu1 %205 }
 0x317   :  { %v207_v6 = vmul.f32 0.015625, %v206_v5 }
 0x319   :  { %v208_v7 = vadd.f32 1e-05, %v207_v6 }
 0x31b   :  { %675 = vrsqrt.f32 %v208_v7 }
 0x328   :  { %v676_v8 = vpop.eup %675 }
 0x329   :  { %v210_v10 = vmul.f32 %v676_v8, %v202_v2 }
 0x32b   :  { %v217_v12 = vmul.f32 %v567_v9, %v210_v10 }
 0x32d   :  { %v224_v13 = vadd.f32 %v568_v11, %v217_v12 }
 0x32f   :  { %645 = vmatmul.mubr.msk.f32.vlgmr.msra.gmra.mxu0 %vm368_vm3, %v224_v13 }
 0x3ef   :  { %v441_v18 = vpop.f32.mrf.mxu0 }
 0x3f0   :  { %v446_v19 = vmul.f32 %v445_v17, %v441_v18 }
 0x3f1   :  { %v646_v20 = vpop.f32.mrf.mxu0 }
 0x3f2   :  { %v464_v21 = vsel %vm447_vm4, %v446_v19, -inf  ;;  %448 = vst.msk [vmem:[#allocation3] sm:$0x3] %vm447_vm4, %v446_v19  ;;  %v454_v23 = vsel %vm453_vm5, %v446_v19, 0.0 }
 0x3f3   :  { %465 = vmax.xlane.f32.xlu0 %v464_v21  ;;  %v476_v22 = vrot.slane %v464_v21, 4  ;;  %v455_v25 = vsel %vm447_vm4, %v454_v23, 0.0 }
 0x3f4   :  { %v458_v38 = vrot.slane %v455_v25, 4 }
 0x3f5   :  { %v477_v24 = vmax.f32 %v464_v21, %v476_v22 }
 0x3f6   :  { %v459_v41 = vadd.f32 %v458_v38, %v455_v25 }
 0x3f7   :  { %v478_v26 = vrot.slane %v477_v24, 2  ;;  %456 = vadd.xlane.f32.xlu0 %v455_v25 }
 0x3f8   :  { %v460_v42 = vrot.slane %v459_v41, 2 }
 0x3f9   :  { %v479_v27 = vmax.f32 %v477_v24, %v478_v26 }
 0x3fa   :  { %v461_v43 = vadd.f32 %v460_v42, %v459_v41 }
 0x3fb   :  { %v480_v28 = vrot.slane %v479_v27, 1 }
 0x3fc   :  { %v462_v44 = vrot.slane %v461_v43, 1 }
 0x3fd   :  { %v481_v29 = vmax.f32 %v479_v27, %v480_v28 }
 0x3fe   :  { %v463_v47 = vadd.f32 %v462_v44, %v461_v43 }
 0x3ff   :  { %v482_v30 = vsub.f32 %v446_v19, %v481_v29 }
 0x401   :  { %v483_v31 = vmul.f32 1.442695, %v482_v30 }
 0x403   :  { %677 = vpow2.f32 %v483_v31 }
 0x410   :  { %v678_v32 = vpop.eup %677 }
 0x411   :  { %v485_v33 = vsel %vm447_vm4, %v678_v32, 0.0 }
 0x412   :  { %v486_v34 = vrot.slane %v485_v33, 4 }
 0x414   :  { %v487_v35 = vadd.f32 %v486_v34, %v485_v33 }
 0x416   :  { %v488_v36 = vrot.slane %v487_v35, 2 }
 0x418   :  { %v489_v37 = vadd.f32 %v488_v36, %v487_v35 }
 0x41a   :  { %v490_v39 = vrot.slane %v489_v37, 1 }
 0x41c   :  { %v491_v40 = vadd.f32 %v490_v39, %v489_v37 }
 0x41e   :  { %679 = vlog2.f32 %v491_v40 }
 0x42b   :  { %v680_v45 = vpop.eup %679 }
 0x42c   :  { %v493_v46 = vmul.f32 0.6931472, %v680_v45 }
 0x42e   :  { %v494_v48 = vadd.f32 %v493_v46, %v481_v29 }
 0x430   :  { %v510_v49 = vsub.f32 %v494_v48, %v463_v47 }
 0x432   :  { %v512_v50 = vsel %vm511_vm6, %v510_v49, 0.0 }
 0x433   :  { %513 = vadd.xlane.f32.xlu0 %v512_v50 }
 0x47c   :  { %v466_v51 = vpop.xlane.xlu0 %465 }
 0x47d   :  { %v467_v52 = vsub.f32 %v446_v19, %v466_v51 }
 0x47f   :  { %v468_v53 = vmul.f32 1.442695, %v467_v52 }
 0x480   :  { %v457_v60 = vpop.xlane.xlu0 %456 }
 0x481   :  { %681 = vpow2.f32 %v468_v53 }
 0x48e   :  { %v682_v54 = vpop.eup %681 }
 0x48f   :  { %v470_v55 = vsel %vm447_vm4, %v682_v54, 0.0 }
 0x490   :  { %471 = vadd.xlane.f32.xlu1 %v470_v55 }
 0x519   :  { %v472_v56 = vpop.xlane.xlu1 %471 }
 0x51a   :  { %683 = vlog2.f32 %v472_v56 }
 0x527   :  { %v684_v57 = vpop.eup %683 }
 0x528   :  { %v474_v58 = vmul.f32 0.6931472, %v684_v57 }
 0x52a   :  { %v475_v59 = vadd.f32 %v474_v58, %v466_v51 }
 0x52c   :  { %v495_v61 = vsub.f32 %v475_v59, %v457_v60 }
 0x52e   :  { %v497_v62 = vsel %vm496_vm7, %v495_v61, 0.0 }
 0x52f   :  { %498 = vadd.xlane.f32.xlu1 %v497_v62 }
 0x530   :  { %696 = shalt.err (!%p693_p4)
}
 0x531   :  { %537 = dma.vmem_to_hbm [thread:$0]  %s535_s7, 32, %s944_s13, [#allocation4]   ;;  %v514_v63 = vpop.xlane.xlu0 %513  ;;  %vm526_vm8 = vcmask 0  }
 0x532   :  { %v515_v0 = vrot.slane %v514_v63, 4  ;;  %s732_s13 = smov [#allocation5]  }
 0x533   :  { %s544_s25 = sshll.u32 %s732_s13, 4  ;;  %s545_s25 = int_to_ptr.vmem [resolvable:$true] %s544_s25 }
 0x534   :  { %v516_v1 = vadd.f32 %v515_v0, %v514_v63  ;;  %s705_s26 = scalar_lea.vmem %s545_s25, 16  ;;  %s709_s27 = scalar_lea.vmem %s545_s25, 32 }
 0x535   :  { %p706_p5 = scmp.ne.s32.totalorder %s545_s25, %s705_s26  ;;  %p710_p6 = scmp.lt.s32.totalorder %s545_s25, %s545_s25 }
 0x536   :  { %v517_v2 = vrot.slane %v516_v1, 2  ;;  %p711_p7 = scmp.lt.s32.totalorder %s709_s27, %s705_s26 }
 0x538   :  { %v518_v6 = vadd.f32 %v517_v2, %v516_v1  ;;  %p712_p8 = por %p711_p7, %p710_p6 }
 0x53a   :  { %v519_v9 = vrot.slane %v518_v6, 1  ;;  %p713_p9 = pnand %p712_p8, %p706_p5 }
 0x53c   :  { %v520_v12 = vadd.f32 %v519_v9, %v518_v6 }
 0x5b8   :  { %v499_v3 = vpop.xlane.xlu1 %498 }
 0x5b9   :  { %v500_v4 = vrot.slane %v499_v3, 4 }
 0x5bb   :  { %v501_v5 = vadd.f32 %v500_v4, %v499_v3 }
 0x5bd   :  { %v502_v7 = vrot.slane %v501_v5, 2 }
 0x5bf   :  { %v503_v8 = vadd.f32 %v502_v7, %v501_v5 }
 0x5c1   :  { %v504_v10 = vrot.slane %v503_v8, 1 }
 0x5c3   :  { %v505_v11 = vadd.f32 %v504_v10, %v503_v8 }
 0x5c5   :  { %647 = vpush %v505_v11 }
 0x5c6   :  { %649 = vpush %v520_v12 }
 0x5f6   :  { %s648_s23 = spop %647 }
 0x5f7   :  { %v507_v13 = vstv %s648_s23  ;;  %s650_s24 = spop %649 }
 0x5f8   :  { %v509_v14 = vmul.f32 0.5, %v507_v13  ;;  %v522_v15 = vstv %s650_s24 }
 0x5f9   :  { %v523_v16 = vmul.f32 0.5, %v522_v15 }
 0x5fb   :  { %v524_v17 = vadd.f32 %v523_v16, %v509_v14 }
 0x5fd   :  { %v525_v18 = vmul.f32 0.5, %v524_v17 }
 0x5ff   :  { %527 = vst.msk [vmem:[#allocation5] sm:$0x1] %vm526_vm8, %v525_v18 }
 0x600   :  { %716 = shalt.err (!%p713_p9)
}
 0x601   :  { %547 = dma.vmem_to_hbm [thread:$0]  %s545_s25, 16, %s945_s14, [#allocation6]  }
 0x602   :  { %725 = dma.done.wait [#allocation4], 32  }
 0x603   :  { %726 = vsyncadd [#allocation4], 4294967264 }
 0x604   :  { %727 = dma.done.wait [#allocation6], 16  }
 0x605   :  { %728 = vsyncadd [#allocation6], 4294967280 }
 0x606   :  { %554 = vsyncpa [#allocation4], 1 }
 0x607   :  { %555 = vsyncpa [#allocation6], 1 }

// kernel: run.6
= control target key start
LH: loop header
LB: loop body
LE: loop exit
PB: predicated region body
PF: predicated region fallthrough
CT: control target
= control target key end

     0   :  { %s6053_s21 = smov 0   ;;  %s6055_s22 = smov 0   ;;  %s6731_s0 = inlined_call_operand.vmem [shape: f32[2,8,128], index: 0, kind: input, shape index: {}]   ;;  %s6732_s1 = inlined_call_operand.vmem [shape: f32[2,1,8], index: 1, kind: input, shape index: {}]   ;;  %s6733_s2 = inlined_call_operand.vmem [shape: f32[1,128], index: 2, kind: input, shape index: {}]   ;;  %s6734_s3 = inlined_call_operand.vmem [shape: f32[1,128], index: 3, kind: input, shape index: {}]   ;;  %s6735_s4 = inlined_call_operand.vmem [shape: f32[2,1,128], index: 4, kind: input, shape index: {}, may-alias: {4,10}]   ;;  %s6736_s5 = inlined_call_operand.vmem [shape: f32[2,1,128], index: 5, kind: input, shape index: {}, may-alias: {5,9,11,15}]   ;;  %s6737_s6 = inlined_call_operand.vmem [shape: bf16[2,6,128,64], index: 6, kind: input, shape index: {}]   ;;  %s6738_s7 = inlined_call_operand.vmem [shape: f32[2,6,1,64], index: 7, kind: input, shape index: {}]   ;;  %s6739_s8 = inlined_call_operand.vmem [shape: bf16[2,2,64,128], index: 8, kind: input, shape index: {}]   ;;  %s6740_s9 = inlined_call_operand.vmem [shape: f32[2,1,128], index: 9, kind: input, shape index: {}, may-alias: {5,9,11,15}]   ;;  %s6741_s10 = inlined_call_operand.vmem [shape: f32[2,1,128], index: 10, kind: input, shape index: {}, may-alias: {4,10}]   ;;  %s6742_s11 = inlined_call_operand.vmem [shape: f32[2,1,128], index: 11, kind: input, shape index: {}, may-alias: {5,9,11,15}]   ;;  %s6743_s12 = inlined_call_operand.vmem [shape: bf16[2,128,512], index: 12, kind: input, shape index: {}]   ;;  %s6744_s13 = inlined_call_operand.vmem [shape: f32[2,1,512], index: 13, kind: input, shape index: {}]   ;;  %s6745_s14 = inlined_call_operand.vmem [shape: bf16[2,512,128], index: 14, kind: input, shape index: {}]   ;;  %s6746_s15 = inlined_call_operand.vmem [shape: f32[2,1,128], index: 15, kind: input, shape index: {}, may-alias: {5,9,11,15}]   ;;  %s6747_s16 = inlined_call_operand.vmem [shape: f32[2,8,128], index: 16, kind: output, shape index: {}]  }
   0x1   :  { %6755 = sst [smem:[#allocation8_spill]] %s6731_s0  ;;  %s6057_s23 = smov 0  }
   0x2   :  { %6756 = sst [smem:[#allocation9_spill]] %s6732_s1 }
   0x3   :  { %6757 = sst [smem:[#allocation10_spill]] %s6735_s4 }
   0x4   :  { %6758 = sst [smem:[#allocation11_spill]] %s6736_s5 }
   0x5   :  { %6759 = sst [smem:[#allocation12_spill]] %s6737_s6 }
   0x6   :  { %6760 = sst [smem:[#allocation13_spill]] %s6739_s8 }
   0x7   :  { %6761 = sst [smem:[#allocation14_spill]] %s6740_s9 }
   0x8   :  { %6762 = sst [smem:[#allocation15_spill]] %s6747_s16 }
   0x9 LB: > { %6763 = sst [smem:[#allocation3_spill]] %s5959_s22  ;;  %s35_s24 = sadd.s32 1, %s5959_s22  ;;  %s5963_s23 = sphi %s6057_s23, %s26_s23   ;;  %s5959_s22 = sphi %s6055_s22, %s6783_s22   ;;  %s5955_s21 = sphi %s6053_s21, %s6782_s21  }
   0xa   : > { %6764 = sst [smem:[#allocation4_spill]] %s5963_s23  ;;  %p4545_p0 = scmp.ge.s32.totalorder %s5963_s23, 1 }
   0xb   : > { %p36_p1 = scmp.ge.s32.totalorder %s35_s24, 2  ;;  %p591_p2 = scmp.lt.s32.totalorder %s5963_s23, 3 }
   0xd   : > { %s6785_s24 = smov (%p36_p1, %s35_s24), 0  ;;  %p592_p3 = pnand %p4545_p0, %p591_p2 }
   0xe   : > { %6765 = sst [smem:[#allocation5_spill]] %s6785_s24 }
   0xf   : > { %595 = sbr.rel (%p592_p3) target bundleno = 5704 (0x1648), region = 84 }
  0x14   : > { %p702_p4 = scmp.lt.s32.totalorder %s5955_s21, 1  ;;  %s6766_s4 = sld [smem:[#allocation10_spill]] }
  0x15   : > { %s6768_s5 = sld [smem:[#allocation11_spill]]  ;;  %p4554_p5 = scmp.ne.s32.totalorder %s5955_s21, 0 }
  0x16   : > { %s6075_s25 = scalar_select %p702_p4, %s5955_s21, 1 }
  0x17   : > { %s6770_s8 = sld [smem:[#allocation13_spill]] }
  0x18   : > { %s5592_s17 = smul.u32 384, %s6075_s25  ;;  %s5021_s18 = sshll.u32 %s6075_s25, 6 }
  0x19   : > { %s5593_s19 = smul.u32 6, %s6075_s25  ;;  %s6771_s6 = sld [smem:[#allocation12_spill]] }
  0x1a   : > { %s6081_s28 = scalar_lea.vmem %s6766_s4, %s6075_s25  ;;  %s6772_s9 = sld [smem:[#allocation14_spill]] }
  0x1b   : > { %6767 = sst [smem:[#allocation6_spill]] %s6081_s28  ;;  %s6087_s0 = scalar_lea.vmem %s6768_s5, %s6075_s25 }
  0x1c   : > { %6769 = sst [smem:[#allocation7_spill]] %s6087_s0  ;;  %s6111_s0 = scalar_lea.vmem %s6738_s7, %s5593_s19 }
  0x1d   : > { %s6095_s27 = scalar_lea.vmem %s6770_s8, %s5021_s18  ;;  %s5022_s24 = sshll.u32 %s6075_s25, 8 }
  0x1e   : > { %s6125_s4 = scalar_lea.vmem %s6743_s12, %s5022_s24  ;;  %s4551_s16 = sshll.u32 %s6075_s25, 2 }
  0x1f   : > { %s6100_s23 = scalar_lea.vmem %s6771_s6, %s5592_s17  ;;  %s6131_s5 = scalar_lea.vmem %s6744_s13, %s4551_s16 }
  0x20   : > { %s6106_s29 = scalar_lea.vmem %s6772_s9, %s6075_s25  ;;  %s6136_s1 = scalar_lea.vmem %s6745_s14, %s5022_s24 }
  0x21   : > { %s747_s26 = scalar_lea.vmem %s6746_s15, %s6075_s25  ;;  %758 = sbr.rel (%p4554_p5) target bundleno = 352 (0x160), region = 88 }
  0x22   : > { %s6773_s22 = sld [smem:[#allocation8_spill]] (!%p4554_p5) }
  0x26   : > { %v4555_v17 = vld [vmem:[%s6733_s2] ss:$0 sm:$0xff] }
  0x27   : > { %v4556_v19 = vld [vmem:[%s6734_s3] ss:$0 sm:$0xff] }
  0x28   : > { %s6774_s18 = smov %s6773_s22  ;;  %v759_v0 = vld [vmem:[%s6773_s22] sm:$0xff] }
  0x29   : > { %763 = vadd.xlane.f32.xlu0 %v759_v0  ;;  %v760_v1 = vld [vmem:[%s6774_s18 + $0x8] sm:$0xff] }
  0x2d   : > { %765 = vadd.xlane.f32.xlu0 %v760_v1 }
  0xb2   : > { %v764_v2 = vpop.xlane.xlu0 %763 }
  0xb3   : > { %v768_v3 = vmul.f32 0.0078125, %v764_v2 }
  0xb5   : > { %v770_v4 = vsub.f32 %v759_v0, %v768_v3 }
  0xb6   : > { %v766_v5 = vpop.xlane.xlu0 %765 }
  0xb7   : > { %v769_v6 = vmul.f32 0.0078125, %v766_v5  ;;  %v772_v7 = vmul.f32 %v770_v4, %v770_v4 }
  0xb9   : > { %v771_v8 = vsub.f32 %v760_v1, %v769_v6  ;;  %774 = vadd.xlane.f32.xlu1 %v772_v7 }
  0xbb   : > { %v773_v9 = vmul.f32 %v771_v8, %v771_v8 }
  0xbd   : > { %776 = vadd.xlane.f32.xlu1 %v773_v9 }
 0x142   : > { %v775_v10 = vpop.xlane.xlu1 %774 }
 0x143   : > { %v778_v11 = vmul.f32 0.0078125, %v775_v10 }
 0x145   : > { %v780_v12 = vadd.f32 1e-12, %v778_v11 }
 0x146   : > { %v777_v13 = vpop.xlane.xlu1 %776 }
 0x147   : > { %5621 = vrsqrt.f32 %v780_v12  ;;  %v779_v14 = vmul.f32 0.0078125, %v777_v13 }
 0x149   : > { %v781_v15 = vadd.f32 1e-12, %v779_v14 }
 0x14b   : > { %5623 = vrsqrt.f32 %v781_v15 }
 0x154   : > { %v5622_v16 = vpop.eup %5621 }
 0x155   : > { %v784_v18 = vmul.f32 %v5622_v16, %v770_v4 }
 0x157   : > { %v792_v20 = vmul.f32 %v4555_v17, %v784_v18 }
 0x158   : > { %v5624_v21 = vpop.eup %5623 }
 0x159   : > { %v800_v22 = vadd.f32 %v4556_v19, %v792_v20  ;;  %v785_v23 = vmul.f32 %v5624_v21, %v771_v8 }
 0x15b   : > { %802 = vst [vmem:[#allocation2] sm:$0xff] %v800_v22  ;;  %v793_v24 = vmul.f32 %v4555_v17, %v785_v23 }
 0x15d   : > { %v801_v25 = vadd.f32 %v4556_v19, %v793_v24 }
 0x15f   : > { %803 = vst [vmem:[#allocation2 + $0x8] sm:$0xff] %v801_v25 }
 0x160 PF: > { %v5625_v26 = vld [vmem:[%s6100_s23 + $0xb8] sm:$0xff]   ;;  %v5965_v27 = vmov 0.0   ;;  %v5627_v29 = vld [vmem:[%s6100_s23 + $0xb0] sm:$0xff]   ;;  %vm5966_vm0 = vmmov 0   ;;  %v5629_v31 = vld [vmem:[%s6100_s23 + $0xa8] sm:$0xff]   ;;  %vm1159_vm1 = vcmask 523264   ;;  %s6779_s22 = scalar_lea.vmem %s6742_s11, %s6075_s25 }
 0x161   : > { %5276 = vmatprep.subr.bf16.mxu1 %v5965_v27  ;;  %5256 = vmatprep.subr.bf16.mxu0 %v5965_v27  ;;  %v5626_v28 = vld [vmem:[%s6100_s23 + $0x38] sm:$0xff]   ;;  %v5628_v30 = vld [vmem:[%s6100_s23 + $0x30] sm:$0xff]   ;;  %v5630_v32 = vld [vmem:[%s6100_s23 + $0x28] sm:$0xff]   ;;  %s6775_s20 = sld [smem:[#allocation9_spill]]  ;;  %vm1206_vm2 = vcmask 64512   ;;  %vm1223_vm3 = vcmask 1043456  }
 0x162   : > { %5277 = vmatpush3.bf16.msra.mxu1 %v5625_v26  ;;  %5292 = vmatprep.mubr.msk.bf16.mxu1 %vm5966_vm0, %v5965_v27  ;;  %v5631_v33 = vld [vmem:[%s6100_s23 + $0xa0] sm:$0xff]   ;;  %v5633_v35 = vld [vmem:[%s6100_s23 + $0x98] sm:$0xff]   ;;  %v5635_v37 = vld [vmem:[%s6100_s23 + $0x90] sm:$0xff]   ;;  %s6776_s6 = sld [smem:[#allocation6_spill]]  ;;  %p5016_p6 = scmp.ne.s32.totalorder %s5955_s21, 1 }
 0x163   : > { %5257 = vmatpush3.bf16.msra.mxu0 %v5626_v28  ;;  %5278 = vmatprep.subr.bf16.mxu1 %v5965_v27  ;;  %v5632_v34 = vld [vmem:[%s6100_s23 + $0x20] sm:$0xff]   ;;  %v5634_v36 = vld [vmem:[%s6100_s23 + $0x18] sm:$0xff]   ;;  %v5636_v38 = vld [vmem:[%s6100_s23 + $0x10] sm:$0xff]   ;;  %s6777_s17 = sld [smem:[#allocation7_spill]] }
 0x164   : > { %5258 = vmatprep.subr.bf16.mxu0 %v5965_v27  ;;  %5272 = vmatprep.mubr.msk.bf16.mxu0 %vm5966_vm0, %v5965_v27  ;;  %v5637_v39 = vld [vmem:[%s6100_s23 + $0x88] sm:$0xff]   ;;  %v5639_v41 = vld [vmem:[%s6100_s23 + $0x80] sm:$0xff]   ;;  %v5641_v60 = vld [vmem:[%s6100_s23 + $0x138] sm:$0xff]   ;;  %s6780_s24 = sld [smem:[#allocation15_spill]] (!%p5016_p6) }
 0x165   : > { %v5638_v40 = vld [vmem:[%s6100_s23 + $0x8] sm:$0xff]   ;;  %v811_v42 = vld [vmem:[#allocation2] sm:$0xff]  ;;  %v5642_v61 = vld [vmem:[%s6100_s23 + $0x130] sm:$0xff]  }
 0x166   : > { %5279 = vmatpush3.bf16.msra.mxu1 %v5627_v29  ;;  %v5640_v43 = vld [vmem:[%s6100_s23] sm:$0xff]   ;;  %v6191_v44 = vpack.c.bf16 %v811_v42, %v811_v42  ;;  %v5643_v62 = vld [vmem:[%s6100_s23 + $0x128] sm:$0xff]   ;;  %v5645_v0 = vld [vmem:[%s6100_s23 + $0x118] sm:$0xff]  }
 0x167   : > { %5259 = vmatpush3.bf16.msra.mxu0 %v5628_v30  ;;  %5280 = vmatprep.subr.bf16.mxu1 %v5965_v27  ;;  %v4583_v45 = vld [vmem:[%s6111_s0 + $0x2] ss:$0 sm:$0xff]  ;;  %v4557_v49 = vld [vmem:[%s6111_s0] ss:$0 sm:$0xff]  ;;  %v5646_v1 = vld [vmem:[%s6100_s23 + $0x110] sm:$0xff]  }
 0x168   : > { %5260 = vmatprep.subr.bf16.mxu0 %v5965_v27  ;;  %v5644_v63 = vld [vmem:[%s6100_s23 + $0x120] sm:$0xff]   ;;  %v5647_v2 = vld [vmem:[%s6100_s23 + $0x108] sm:$0xff]   ;;  %v5649_v18 = vld [vmem:[%s6100_s23 + $0xf8] sm:$0xff]  }
 0x169   : > { %v5648_v3 = vld [vmem:[%s6100_s23 + $0x100] sm:$0xff]   ;;  %v5650_v21 = vld [vmem:[%s6100_s23 + $0xf0] sm:$0xff]   ;;  %v5651_v26 = vld [vmem:[%s6100_s23 + $0xe8] sm:$0xff]  }
 0x16a   : > { %5281 = vmatpush3.bf16.msra.mxu1 %v5629_v31  ;;  %v6230_v4 = vld [vmem:[%s6775_s20] ss:$0 sm:$0xff]  ;;  %v4609_v16 = vld [vmem:[%s6111_s0 + $0x4] ss:$0 sm:$0xff]  ;;  %v5654_v29 = vld [vmem:[%s6100_s23 + $0xd8] sm:$0xff]  }
 0x16b   : > { %5261 = vmatpush3.bf16.msra.mxu0 %v5630_v32  ;;  %5282 = vmatprep.subr.bf16.mxu1 %v5965_v27  ;;  %v5652_v28 = vld [vmem:[%s6100_s23 + $0xe0] sm:$0xff]   ;;  %v5656_v30 = vld [vmem:[%s6100_s23 + $0xd0] sm:$0xff]   ;;  %v5658_v31 = vld [vmem:[%s6100_s23 + $0xc8] sm:$0xff]  }
 0x16c   : > { %5262 = vmatprep.subr.bf16.mxu0 %v5965_v27  ;;  %v5660_v32 = vld [vmem:[%s6100_s23 + $0xc0] sm:$0xff]   ;;  %v5662_v42 = vld [vmem:[%s6100_s23 + $0x50] sm:$0xff]  }
 0x16e   : > { %5283 = vmatpush3.bf16.msra.mxu1 %v5631_v33 }
 0x16f   : > { %5263 = vmatpush3.bf16.msra.mxu0 %v5632_v34  ;;  %5284 = vmatprep.subr.bf16.mxu1 %v5965_v27 }
 0x170   : > { %5264 = vmatprep.subr.bf16.mxu0 %v5965_v27 }
 0x172   : > { %5285 = vmatpush3.bf16.msra.mxu1 %v5633_v35 }
 0x173   : > { %5265 = vmatpush3.bf16.msra.mxu0 %v5634_v36  ;;  %5286 = vmatprep.subr.bf16.mxu1 %v5965_v27  ;;  %v5653_v36 = vld [vmem:[%s6100_s23 + $0x78] sm:$0xff]  }
 0x174   : > { %5266 = vmatprep.subr.bf16.mxu0 %v5965_v27 }
 0x176   : > { %5287 = vmatpush3.bf16.msra.mxu1 %v5635_v37 }
 0x177   : > { %5267 = vmatpush3.bf16.msra.mxu0 %v5636_v38  ;;  %5288 = vmatprep.subr.bf16.mxu1 %v5965_v27  ;;  %v5655_v38 = vld [vmem:[%s6100_s23 + $0x70] sm:$0xff]  }
 0x178   : > { %5268 = vmatprep.subr.bf16.mxu0 %v5965_v27 }
 0x17a   : > { %5289 = vmatpush3.bf16.msra.mxu1 %v5637_v39  ;;  %v5657_v39 = vld [vmem:[%s6100_s23 + $0x68] sm:$0xff]  }
 0x17b   : > { %5269 = vmatpush3.bf16.msra.mxu0 %v5638_v40  ;;  %5290 = vmatprep.subr.bf16.mxu1 %v5965_v27  ;;  %v5659_v40 = vld [vmem:[%s6100_s23 + $0x60] sm:$0xff]  }
 0x17c   : > { %5270 = vmatprep.subr.bf16.mxu0 %v5965_v27 }
 0x17e   : > { %5291 = vmatpush3.bf16.msra.mxu1 %v5639_v41  ;;  %v5661_v41 = vld [vmem:[%s6100_s23 + $0x58] sm:$0xff]  }
 0x17f   : > { %5271 = vmatpush3.bf16.msra.mxu0 %v5640_v43  ;;  %5316 = vmatprep.subr.bf16.mxu1 %v5965_v27  ;;  %v5663_v43 = vld [vmem:[%s6100_s23 + $0x48] sm:$0xff]  }
 0x180   : > { %5296 = vmatprep.subr.bf16.mxu0 %v5965_v27 }
 0x181   : > { %5293 = vmatmul.mubr.bf16.vlgmr.msra.gmra.mxu1 %v6191_v44 }
 0x182   : > { %5273 = vmatmul.mubr.bf16.vlgmr.msra.gmra.mxu0 %v6191_v44  ;;  %5318 = vmatprep.mubr.msk.bf16.mxu1 %vm5966_vm0, %v5965_v27 }
 0x183   : > { %5312 = vmatprep.mubr.msk.bf16.mxu0 %vm5966_vm0, %v5965_v27  ;;  %5297 = vmatpush3.bf16.msra.mxu0 %v5641_v60 }
 0x184   : > { %5298 = vmatprep.subr.bf16.mxu0 %v5965_v27 }
 0x187   : > { %5299 = vmatpush3.bf16.msra.mxu0 %v5642_v61 }
 0x188   : > { %5300 = vmatprep.subr.bf16.mxu0 %v5965_v27 }
 0x18b   : > { %5301 = vmatpush3.bf16.msra.mxu0 %v5643_v62 }
 0x18c   : > { %5302 = vmatprep.subr.bf16.mxu0 %v5965_v27 }
 0x18f   : > { %5303 = vmatpush3.bf16.msra.mxu0 %v5644_v63 }
 0x190   : > { %5304 = vmatprep.subr.bf16.mxu0 %v5965_v27 }
 0x193   : > { %5305 = vmatpush3.bf16.msra.mxu0 %v5645_v0 }
 0x194   : > { %5306 = vmatprep.subr.bf16.mxu0 %v5965_v27 }
 0x197   : > { %5307 = vmatpush3.bf16.msra.mxu0 %v5646_v1 }
 0x198   : > { %5308 = vmatprep.subr.bf16.mxu0 %v5965_v27 }
 0x19b   : > { %5309 = vmatpush3.bf16.msra.mxu0 %v5647_v2 }
 0x19c   : > { %5310 = vmatprep.subr.bf16.mxu0 %v5965_v27 }
 0x19f   : > { %5311 = vmatpush3.bf16.msra.mxu0 %v5648_v3 }
 0x1a0   : > { %5348 = vmatprep.subr.bf16.mxu0 %v5965_v27 }
 0x1a2   : > { %5313 = vmatmul.mubr.bf16.vlgmr.msra.gmra.mxu0 %v6191_v44 }
 0x1a3   : > { %5364 = vmatprep.mubr.msk.bf16.mxu0 %vm5966_vm0, %v5965_v27  ;;  %5349 = vmatpush3.bf16.msra.mxu0 %v5649_v18 }
 0x1a4   : > { %5350 = vmatprep.subr.bf16.mxu0 %v5965_v27 }
 0x1a7   : > { %5351 = vmatpush3.bf16.msra.mxu0 %v5650_v21 }
 0x1a8   : > { %5352 = vmatprep.subr.bf16.mxu0 %v5965_v27 }
 0x1ab   : > { %5353 = vmatpush3.bf16.msra.mxu0 %v5651_v26 }
 0x1ac   : > { %5354 = vmatprep.subr.bf16.mxu0 %v5965_v27 }
 0x1af   : > { %5355 = vmatpush3.bf16.msra.mxu0 %v5652_v28 }
 0x1b0   : > { %5356 = vmatprep.subr.bf16.mxu0 %v5965_v27 }
 0x1b3   : > { %5357 = vmatpush3.bf16.msra.mxu0 %v5654_v29 }
 0x1b4   : > { %5358 = vmatprep.subr.bf16.mxu0 %v5965_v27 }
 0x1b7   : > { %5359 = vmatpush3.bf16.msra.mxu0 %v5656_v30 }
 0x1b8   : > { %5360 = vmatprep.subr.bf16.mxu0 %v5965_v27 }
 0x1bb   : > { %5361 = vmatpush3.bf16.msra.mxu0 %v5658_v31 }
 0x1bc   : > { %5362 = vmatprep.subr.bf16.mxu0 %v5965_v27 }
 0x1bf   : > { %5363 = vmatpush3.bf16.msra.mxu0 %v5660_v32 }
 0x1c0   : > { %5388 = vmatprep.subr.bf16.mxu0 %v5965_v27 }
 0x1c2   : > { %5365 = vmatmul.mubr.bf16.vlgmr.msra.gmra.mxu0 %v6191_v44 }
 0x1c3   : > { %5390 = vmatprep.mubr.msk.bf16.mxu0 %vm5966_vm0, %v5965_v27 }
 0x241   : > { %v1031_v46 = vpop.f32.mrf.mxu1 }
 0x242   : > { %v1032_v47 = vadd.f32 %v4583_v45, %v1031_v46  ;;  %v918_v48 = vpop.f32.mrf.mxu0  ;;  %v5664_v45 = vld [vmem:[%s6100_s23 + $0x40] sm:$0xff]   ;;  %v5665_v46 = vld [vmem:[%s6100_s23 + $0x178] sm:$0xff]  }
 0x243   : > { %v5294_v50 = vpop.f32.mrf.mxu1  ;;  %v919_v55 = vadd.f32 %v4557_v49, %v918_v48  ;;  %v5667_v48 = vld [vmem:[%s6100_s23 + $0x168] sm:$0xff]   ;;  %v5668_v49 = vld [vmem:[%s6100_s23 + $0x160] sm:$0xff]  }
 0x244   : > { %v1151_v51 = vpack.c.bf16 %v1032_v47, %v1032_v47  ;;  %v5274_v52 = vpop.f32.mrf.mxu0  ;;  %v5666_v47 = vld [vmem:[%s6100_s23 + $0x170] sm:$0xff]   ;;  %v5669_v50 = vld [vmem:[%s6100_s23 + $0x158] sm:$0xff]  }
 0x245   : > { %v1034_v53 = vpop.f32.mrf.mxu1  ;;  %v1150_v59 = vpack.c.bf16 %v919_v55, %v919_v55  ;;  %v5671_v52 = vld [vmem:[%s6100_s23 + $0x148] sm:$0xff]   ;;  %v5674_v55 = vld [vmem:[%s6095_s27 + $0x10] sm:$0xff]  }
 0x246   : > { %v1164_v54 = vsel %vm1159_vm1, %v1151_v51, 0  ;;  %v921_v56 = vpop.f32.mrf.mxu0  ;;  %v5670_v51 = vld [vmem:[%s6100_s23 + $0x150] sm:$0xff]   ;;  %v5672_v53 = vld [vmem:[%s6100_s23 + $0x140] sm:$0xff]  }
 0x247   : > { %v5295_v57 = vpop.f32.mrf.mxu1  ;;  %5317 = vmatpush3.bf16.xpose.msra.mxu1 %v1164_v54  ;;  %v5673_v54 = vld [vmem:[%s6095_s27 + $0x18] sm:$0xff]   ;;  %v5675_v56 = vld [vmem:[%s6095_s27 + $0x8] sm:$0xff]  }
 0x248   : > { %v5275_v58 = vpop.f32.mrf.mxu0  ;;  %5322 = vmatprep.subr.bf16.mxu1 %v5965_v27  ;;  %v5676_v57 = vld [vmem:[%s6095_s27] sm:$0xff]  }
 0x249   : > { %v4664_v58 = vld [vmem:[%s6111_s0 + $0x3] ss:$0 sm:$0xff] }
 0x24e   : > { %5319 = vmatmul.mubr.msk.bf16.vlgmr.msra.gmra.mxu1 %vm1159_vm1, %v1150_v59 }
 0x24f   : > { %5324 = vmatprep.mubr.msk.bf16.mxu1 %vm5966_vm0, %v5965_v27 }
 0x262   : > { %v1144_v17 = vpop.f32.mrf.mxu0 }
 0x263   : > { %v1145_v19 = vadd.f32 %v4609_v16, %v1144_v17 }
 0x264   : > { %v5314_v20 = vpop.f32.mrf.mxu0 }
 0x265   : > { %v1219_v22 = vpack.c.bf16 %v1145_v19, %v1145_v19 }
 0x266   : > { %v1147_v23 = vpop.f32.mrf.mxu0 }
 0x267   : > { %v1225_v24 = vsel %vm1223_vm3, %v1219_v22, 0 }
 0x268   : > { %v5315_v25 = vpop.f32.mrf.mxu0  ;;  %5323 = vmatpush3.bf16.msra.mxu1 %v1225_v24 }
 0x269   : > { %5328 = vmatprep.subr.bf16.mxu1 %v5965_v27 }
 0x282   : > { %v1496_v59 = vpop.f32.mrf.mxu0 }
 0x284   : > { %v5366_v60 = vpop.f32.mrf.mxu0 }
 0x285   : > { %v5683_v60 = vld [vmem:[%s6125_s4 + $0xe4] ss:$16 sps:$4 sm:$0xff]  }
 0x286   : > { %v1499_v62 = vpop.f32.mrf.mxu0 }
 0x287   : > { %v5686_v62 = vld [vmem:[%s6125_s4 + $0xec] ss:$16 sps:$4 sm:$0xff]  }
 0x288   : > { %v5367_v0 = vpop.f32.mrf.mxu0 }
 0x289   : > { %v5692_v0 = vld [vmem:[%s6125_s4 + $0xcc] ss:$16 sps:$4 sm:$0xff]  }
 0x30e   : > { %v1200_v5 = vpop.f32.mrf.mxu1 }
 0x30f   : > { %v1201_v6 = vadd.f32 %v6230_v4, %v1200_v5 }
 0x310   : > { %v5320_v7 = vpop.f32.mrf.mxu1 }
 0x311   : > { %v1207_v8 = vsel %vm1206_vm2, %v1201_v6, -inf  ;;  %v4638_v7 = vld [vmem:[%s6111_s0 + $0x1] ss:$0 sm:$0xff] }
 0x312   : > { %1208 = vmax.xlane.f32.xlu0 %v1207_v8  ;;  %v1203_v9 = vpop.f32.mrf.mxu1 }
 0x314   : > { %v5321_v10 = vpop.f32.mrf.mxu1 }
 0x39b   : > { %v1209_v11 = vpop.xlane.xlu0 %1208 }
 0x39c   : > { %v1210_v12 = vsub.f32 %v1201_v6, %v1209_v11 }
 0x39e   : > { %v1211_v13 = vmul.f32 1.442695, %v1210_v12 }
 0x3a0   : > { %5897 = vpow2.f32 %v1211_v13 }
 0x3ad   : > { %v5898_v14 = vpop.eup %5897 }
 0x3ae   : > { %v1213_v15 = vsel %vm1206_vm2, %v5898_v14, 0.0 }
 0x3af   : > { %1214 = vadd.xlane.f32.xlu0 %v1213_v15 }
 0x438   : > { %v1215_v33 = vpop.xlane.xlu0 %1214 }
 0x439   : > { %5899 = vrcp.f32 %v1215_v33 }
 0x446   : > { %v5900_v34 = vpop.eup %5899 }
 0x447   : > { %v1217_v35 = vmul.f32 %v5900_v34, %v5898_v14  ;;  %v4690_v14 = vld [vmem:[%s6111_s0 + $0x5] ss:$0 sm:$0xff] }
 0x449   : > { %v1218_v37 = vpack.c.bf16 %v1217_v35, %v1217_v35 }
 0x44b   : > { %5325 = vmatmul.mubr.msk.bf16.vlgmr.msra.gmra.mxu1 %vm1206_vm2, %v1218_v37 }
 0x44c   : > { %5329 = vmatpush3.bf16.msra.mxu1 %v5653_v36  ;;  %5344 = vmatprep.mubr.msk.bf16.mxu1 %vm5966_vm0, %v5965_v27 }
 0x44d   : > { %5330 = vmatprep.subr.bf16.mxu1 %v5965_v27 }
 0x450   : > { %5331 = vmatpush3.bf16.msra.mxu1 %v5655_v38 }
 0x451   : > { %5332 = vmatprep.subr.bf16.mxu1 %v5965_v27 }
 0x454   : > { %5333 = vmatpush3.bf16.msra.mxu1 %v5657_v39 }
 0x455   : > { %5334 = vmatprep.subr.bf16.mxu1 %v5965_v27 }
 0x458   : > { %5335 = vmatpush3.bf16.msra.mxu1 %v5659_v40  ;;  %v5677_v40 = vld [vmem:[%s6095_s27 + $0x38] sm:$0xff]  }
 0x459   : > { %5336 = vmatprep.subr.bf16.mxu1 %v5965_v27 }
 0x45c   : > { %5337 = vmatpush3.bf16.msra.mxu1 %v5661_v41 }
 0x45d   : > { %5338 = vmatprep.subr.bf16.mxu1 %v5965_v27 }
 0x460   : > { %5339 = vmatpush3.bf16.msra.mxu1 %v5662_v42  ;;  %v5678_v42 = vld [vmem:[%s6095_s27 + $0x30] sm:$0xff]  }
 0x461   : > { %5340 = vmatprep.subr.bf16.mxu1 %v5965_v27 }
 0x464   : > { %5341 = vmatpush3.bf16.msra.mxu1 %v5663_v43  ;;  %v5679_v43 = vld [vmem:[%s6095_s27 + $0x28] sm:$0xff]  }
 0x465   : > { %5342 = vmatprep.subr.bf16.mxu1 %v5965_v27 }
 0x468   : > { %5343 = vmatpush3.bf16.msra.mxu1 %v5664_v45  ;;  %v5680_v45 = vld [vmem:[%s6095_s27 + $0x20] sm:$0xff]  }
 0x469   : > { %5368 = vmatprep.subr.bf16.mxu1 %v5965_v27 }
 0x46b   : > { %5345 = vmatmul.mubr.bf16.vlgmr.msra.gmra.mxu1 %v6191_v44 }
 0x46c   : > { %5369 = vmatpush3.bf16.msra.mxu1 %v5665_v46  ;;  %5384 = vmatprep.mubr.msk.bf16.mxu1 %vm5966_vm0, %v5965_v27 }
 0x46d   : > { %5370 = vmatprep.subr.bf16.mxu1 %v5965_v27 }
 0x470   : > { %5371 = vmatpush3.bf16.msra.mxu1 %v5666_v47 }
 0x471   : > { %5372 = vmatprep.subr.bf16.mxu1 %v5965_v27 }
 0x474   : > { %5373 = vmatpush3.bf16.msra.mxu1 %v5667_v48 }
 0x475   : > { %5374 = vmatprep.subr.bf16.mxu1 %v5965_v27 }
 0x478   : > { %5375 = vmatpush3.bf16.msra.mxu1 %v5668_v49 }
 0x479   : > { %5376 = vmatprep.subr.bf16.mxu1 %v5965_v27 }
 0x47c   : > { %5377 = vmatpush3.bf16.msra.mxu1 %v5669_v50 }
 0x47d   : > { %5378 = vmatprep.subr.bf16.mxu1 %v5965_v27 }
 0x480   : > { %5379 = vmatpush3.bf16.msra.mxu1 %v5670_v51 }
 0x481   : > { %5380 = vmatprep.subr.bf16.mxu1 %v5965_v27 }
 0x484   : > { %5381 = vmatpush3.bf16.msra.mxu1 %v5671_v52 }
 0x485   : > { %5382 = vmatprep.subr.bf16.mxu1 %v5965_v27 }
 0x488   : > { %5383 = vmatpush3.bf16.msra.mxu1 %v5672_v53 }
 0x489   : > { %5412 = vmatprep.subr.bf16.mxu1 %v5965_v27 }
 0x48b   : > { %5385 = vmatmul.mubr.bf16.vlgmr.msra.gmra.mxu1 %v6191_v44  ;;  %v1497_v44 = vadd.f32 %v4664_v58, %v1496_v59 }
 0x48c   : > { %5413 = vmatpush3.bf16.msra.mxu1 %v5673_v54  ;;  %5420 = vmatprep.mubr.msk.bf16.mxu1 %vm5966_vm0, %v5965_v27  ;;  %v4719_v54 = vld [vmem:[%s6106_s29] ss:$0 sm:$0xff] }
 0x48d   : > { %5414 = vmatprep.subr.bf16.mxu1 %v5965_v27  ;;  %v1616_v61 = vpack.c.bf16 %v1497_v44, %v1497_v44  ;;  %v5681_v44 = vld [vmem:[%s6125_s4 + $0xe0] ss:$16 sps:$4 sm:$0xff]  }
 0x48f   : > { %v1621_v63 = vsel %vm1159_vm1, %v1616_v61, 0  ;;  %v5684_v61 = vld [vmem:[%s6125_s4 + $0xe8] ss:$16 sps:$4 sm:$0xff]  }
 0x490   : > { %5415 = vmatpush3.bf16.msra.mxu1 %v5674_v55  ;;  %5389 = vmatpush3.bf16.xpose.msra.mxu0 %v1621_v63  ;;  %v5937_v55 = vld [vmem:[#allocation2] sm:$0xff] }
 0x491   : > { %5416 = vmatprep.subr.bf16.mxu1 %v5965_v27  ;;  %5394 = vmatprep.subr.bf16.mxu0 %v5965_v27  ;;  %v5689_v63 = vld [vmem:[%s6125_s4 + $0xc4] ss:$16 sps:$4 sm:$0xff]  }
 0x494   : > { %5417 = vmatpush3.bf16.msra.mxu1 %v5675_v56 }
 0x495   : > { %5418 = vmatprep.subr.bf16.mxu1 %v5965_v27 }
 0x498   : > { %5419 = vmatpush3.bf16.msra.mxu1 %v5676_v57 }
 0x499   : > { %2155 = vmatprep.subr.bf16.mxu1 %v5686_v62  ;;  %v5748_v62 = vld [vmem:[%s6136_s1 + $0x18] sm:$0xff]  }
 0x50b   : > { %v1261_v1 = vpop.f32.mrf.mxu1 }
 0x50c   : > { %v1267_v2 = vpack.c.bf16 %v1261_v1, %v1261_v1  ;;  %v5687_v1 = vld [vmem:[%s6125_s4 + $0xc0] ss:$16 sps:$4 sm:$0xff]  }
 0x50d   : > { %v5326_v3 = vpop.f32.mrf.mxu1 }
 0x50e   : > { %5421 = vmatmul.mubr.msk.bf16.vlgmr.msra.gmra.mxu1 %vm1159_vm1, %v1267_v2  ;;  %v5690_v2 = vld [vmem:[%s6125_s4 + $0xc8] ss:$16 sps:$4 sm:$0xff]  }
 0x50f   : > { %v1264_v5 = vpop.f32.mrf.mxu1  ;;  %2156 = vmatpush1.bf16.msra.mxu1 %v5684_v61  ;;  %v5747_v61 = vld [vmem:[%s6136_s1 + $0x98] sm:$0xff]  }
 0x510   : > { %2157 = vmatprep.subr.bf16.mxu1 %v5692_v0  ;;  %v5750_v0 = vld [vmem:[%s6136_s1 + $0x50] sm:$0xff]  }
 0x511   : > { %v5327_v6 = vpop.f32.mrf.mxu1 }
 0x513   : > { %2158 = vmatpush1.bf16.msra.mxu1 %v5690_v2  ;;  %v5752_v2 = vld [vmem:[%s6136_s1 + $0x10] sm:$0xff]  }
 0x52b   : > { %v1383_v8 = vpop.f32.mrf.mxu1 }
 0x52c   : > { %v1384_v9 = vadd.f32 %v4638_v7, %v1383_v8  ;;  %v5695_v8 = vld [vmem:[%s6125_s4 + $0xa4] ss:$16 sps:$4 sm:$0xff]  }
 0x52d   : > { %v5346_v10 = vpop.f32.mrf.mxu1 }
 0x52e   : > { %v1615_v11 = vpack.c.bf16 %v1384_v9, %v1384_v9  ;;  %v5698_v9 = vld [vmem:[%s6125_s4 + $0xac] ss:$16 sps:$4 sm:$0xff]   ;;  %v5693_v10 = vld [vmem:[%s6125_s4 + $0xa0] ss:$16 sps:$4 sm:$0xff]  }
 0x52f   : > { %v1386_v12 = vpop.f32.mrf.mxu1  ;;  %2159 = vmatprep.subr.bf16.mxu1 %v5698_v9  ;;  %v5758_v9 = vld [vmem:[%s6136_s1 + $0x40] sm:$0xff]  }
 0x530   : > { %5391 = vmatmul.mubr.msk.bf16.vlgmr.msra.gmra.mxu0 %vm1159_vm1, %v1615_v11  ;;  %v5696_v11 = vld [vmem:[%s6125_s4 + $0xa8] ss:$16 sps:$4 sm:$0xff]   ;;  %v5699_v12 = vld [vmem:[%s6125_s4 + $0x80] ss:$16 sps:$4 sm:$0xff]  }
 0x531   : > { %v5347_v13 = vpop.f32.mrf.mxu1  ;;  %5396 = vmatprep.mubr.msk.bf16.mxu0 %vm5966_vm0, %v5965_v27  ;;  %2160 = vmatpush1.bf16.msra.mxu1 %v5696_v11  ;;  %v5760_v11 = vld [vmem:[%s6136_s1] sm:$0xff]  }
 0x532   : > { %v5701_v13 = vld [vmem:[%s6125_s4 + $0x84] ss:$16 sps:$4 sm:$0xff]  }
 0x54b   : > { %v1609_v15 = vpop.f32.mrf.mxu1 }
 0x54c   : > { %v1610_v16 = vadd.f32 %v4690_v14, %v1609_v15  ;;  %v5702_v14 = vld [vmem:[%s6125_s4 + $0x88] ss:$16 sps:$4 sm:$0xff]   ;;  %v5704_v15 = vld [vmem:[%s6125_s4 + $0x8c] ss:$16 sps:$4 sm:$0xff]  }
 0x54d   : > { %v5386_v17 = vpop.f32.mrf.mxu1  ;;  %2161 = vmatprep.subr.bf16.mxu1 %v5704_v15 }
 0x54e   : > { %v1675_v18 = vpack.c.bf16 %v1610_v16, %v1610_v16  ;;  %v5707_v16 = vld [vmem:[%s6125_s4 + $0x64] ss:$16 sps:$4 sm:$0xff]   ;;  %v5710_v17 = vld [vmem:[%s6125_s4 + $0x6c] ss:$16 sps:$4 sm:$0xff]   ;;  %2162 = vmatpush1.bf16.msra.mxu1 %v5702_v14 }
 0x54f   : > { %v1612_v19 = vpop.f32.mrf.mxu1  ;;  %2163 = vmatprep.subr.bf16.mxu1 %v5710_v17 }
 0x550   : > { %v1680_v20 = vsel %vm1223_vm3, %v1675_v18, 0  ;;  %v5705_v18 = vld [vmem:[%s6125_s4 + $0x60] ss:$16 sps:$4 sm:$0xff]   ;;  %v5708_v19 = vld [vmem:[%s6125_s4 + $0x68] ss:$16 sps:$4 sm:$0xff]  }
 0x551   : > { %v5387_v21 = vpop.f32.mrf.mxu1  ;;  %5395 = vmatpush3.bf16.msra.mxu0 %v1680_v20  ;;  %v5713_v20 = vld [vmem:[%s6125_s4 + $0x44] ss:$16 sps:$4 sm:$0xff]  }
 0x552   : > { %5400 = vmatprep.subr.bf16.mxu0 %v5965_v27  ;;  %v5716_v21 = vld [vmem:[%s6125_s4 + $0x4c] ss:$16 sps:$4 sm:$0xff]   ;;  %2164 = vmatpush1.bf16.msra.mxu1 %v5708_v19 }
 0x553   : > { %2165 = vmatprep.subr.bf16.mxu1 %v5716_v21 }
 0x5ce   : > { %v1860_v22 = vpop.f32.mrf.mxu1 }
 0x5d0   : > { %v5422_v23 = vpop.f32.mrf.mxu1 }
 0x5d1   : > { %v5967_v23 = vmov 0  }
 0x5d2   : > { %v1863_v24 = vpop.f32.mrf.mxu1  ;;  %2187 = vmatprep.mubr.bf16.mxu1 %v5967_v23 }
 0x5d3   : > { %v5714_v24 = vld [vmem:[%s6125_s4 + $0x48] ss:$16 sps:$4 sm:$0xff]  }
 0x5d4   : > { %v5423_v25 = vpop.f32.mrf.mxu1  ;;  %2166 = vmatpush1.bf16.msra.mxu1 %v5714_v24 }
 0x5d5   : > { %v5719_v25 = vld [vmem:[%s6125_s4 + $0x24] ss:$16 sps:$4 sm:$0xff]  }
 0x5f0   : > { %v1657_v26 = vpop.f32.mrf.mxu0 }
 0x5f1   : > { %v1658_v28 = vadd.f32 %v6230_v4, %v1657_v26  ;;  %v5722_v26 = vld [vmem:[%s6125_s4 + $0x2c] ss:$16 sps:$4 sm:$0xff]  }
 0x5f2   : > { %v5392_v29 = vpop.f32.mrf.mxu0  ;;  %2167 = vmatprep.subr.bf16.mxu1 %v5722_v26 }
 0x5f3   : > { %v1663_v30 = vsel %vm1206_vm2, %v1658_v28, -inf  ;;  %v5720_v29 = vld [vmem:[%s6125_s4 + $0x28] ss:$16 sps:$4 sm:$0xff]  }
 0x5f4   : > { %1664 = vmax.xlane.f32.xlu1 %v1663_v30  ;;  %v1660_v31 = vpop.f32.mrf.mxu0  ;;  %v5725_v30 = vld [vmem:[%s6125_s4 + $0x4] ss:$16 sps:$4 sm:$0xff]   ;;  %2168 = vmatpush1.bf16.msra.mxu1 %v5720_v29 }
 0x5f5   : > { %v5728_v31 = vld [vmem:[%s6125_s4 + $0xc] ss:$16 sps:$4 sm:$0xff]  }
 0x5f6   : > { %v5393_v32 = vpop.f32.mrf.mxu0  ;;  %2169 = vmatprep.subr.bf16.mxu1 %v5728_v31 }
 0x5f7   : > { %v5723_v32 = vld [vmem:[%s6125_s4] ss:$16 sps:$4 sm:$0xff]  }
 0x67d   : > { %v1665_v33 = vpop.xlane.xlu1 %1664 }
 0x67e   : > { %v1666_v34 = vsub.f32 %v1658_v28, %v1665_v33  ;;  %v5717_v28 = vld [vmem:[%s6125_s4 + $0x20] ss:$16 sps:$4 sm:$0xff]   ;;  %v5726_v33 = vld [vmem:[%s6125_s4 + $0x8] ss:$16 sps:$4 sm:$0xff]  }
 0x67f   : > { %2170 = vmatpush1.bf16.msra.mxu1 %v5726_v33 }
 0x680   : > { %v1667_v35 = vmul.f32 1.442695, %v1666_v34 }
 0x682   : > { %5901 = vpow2.f32 %v1667_v35 }
 0x68f   : > { %v5902_v36 = vpop.eup %5901 }
 0x690   : > { %v1669_v37 = vsel %vm1206_vm2, %v5902_v36, 0.0 }
 0x691   : > { %1670 = vadd.xlane.f32.xlu1 %v1669_v37 }
 0x71a   : > { %v1671_v38 = vpop.xlane.xlu1 %1670 }
 0x71b   : > { %5903 = vrcp.f32 %v1671_v38  ;;  %v4720_v38 = vld [vmem:[%s6776_s6] ss:$0 sm:$0xff] }
 0x728   : > { %v5904_v4 = vpop.eup %5903 }
 0x729   : > { %v1673_v39 = vmul.f32 %v5904_v4, %v5902_v36 }
 0x72b   : > { %v1674_v41 = vpack.c.bf16 %v1673_v39, %v1673_v39  ;;  %v4721_v39 = vld [vmem:[%s6777_s17] ss:$0 sm:$0xff] }
 0x72d   : > { %5397 = vmatmul.mubr.msk.bf16.vlgmr.msra.gmra.mxu0 %vm1206_vm2, %v1674_v41 }
 0x72e   : > { %5401 = vmatpush3.bf16.msra.mxu0 %v5677_v40  ;;  %5408 = vmatprep.mubr.msk.bf16.mxu0 %vm5966_vm0, %v5965_v27 }
 0x72f   : > { %5402 = vmatprep.subr.bf16.mxu0 %v5965_v27 }
 0x732   : > { %5403 = vmatpush3.bf16.msra.mxu0 %v5678_v42 }
 0x733   : > { %5404 = vmatprep.subr.bf16.mxu0 %v5965_v27 }
 0x736   : > { %5405 = vmatpush3.bf16.msra.mxu0 %v5679_v43  ;;  %v5729_v43 = vld [vmem:[%s6136_s1 + $0xf8] sm:$0xff]  }
 0x737   : > { %5406 = vmatprep.subr.bf16.mxu0 %v5965_v27  ;;  %5118 = vmatprep.subr.bf16.mxu1 %v5729_v43 }
 0x73a   : > { %5407 = vmatpush3.bf16.msra.mxu0 %v5680_v45  ;;  %v5730_v45 = vld [vmem:[%s6136_s1 + $0x78] sm:$0xff]  }
 0x73b   : > { %2114 = vmatprep.subr.bf16.mxu0 %v5683_v60  ;;  %v5746_v60 = vld [vmem:[%s6136_s1 + $0x58] sm:$0xff]  }
 0x7ed   : > { %v1716_v46 = vpop.f32.mrf.mxu0 }
 0x7ee   : > { %v1722_v47 = vpack.c.bf16 %v1716_v46, %v1716_v46  ;;  %v5731_v46 = vld [vmem:[%s6136_s1 + $0xb8] sm:$0xff]  }
 0x7ef   : > { %v5398_v48 = vpop.f32.mrf.mxu0 }
 0x7f0   : > { %5409 = vmatmul.mubr.msk.bf16.vlgmr.msra.gmra.mxu0 %vm1159_vm1, %v1722_v47  ;;  %v5732_v47 = vld [vmem:[%s6136_s1 + $0x38] sm:$0xff]   ;;  %v5733_v48 = vld [vmem:[%s6136_s1 + $0xf0] sm:$0xff]  }
 0x7f1   : > { %v1719_v49 = vpop.f32.mrf.mxu0  ;;  %2115 = vmatpush1.bf16.msra.mxu0 %v5681_v44  ;;  %2146 = vmatprep.mubr.bf16.mxu0 %v5967_v23  ;;  %v5745_v44 = vld [vmem:[%s6136_s1 + $0xd8] sm:$0xff]  }
 0x7f2   : > { %2116 = vmatprep.subr.bf16.mxu0 %v5689_v63  ;;  %v5734_v49 = vld [vmem:[%s6136_s1 + $0x70] sm:$0xff]  }
 0x7f3   : > { %v5399_v50 = vpop.f32.mrf.mxu0  ;;  %v5749_v63 = vld [vmem:[%s6136_s1 + $0xd0] sm:$0xff]  }
 0x7f4   : > { %v5735_v50 = vld [vmem:[%s6136_s1 + $0xb0] sm:$0xff]  }
 0x7f5   : > { %2117 = vmatpush1.bf16.msra.mxu0 %v5687_v1  ;;  %v5751_v1 = vld [vmem:[%s6136_s1 + $0x90] sm:$0xff]  }
 0x7f6   : > { %2118 = vmatprep.subr.bf16.mxu0 %v5695_v8  ;;  %v5757_v8 = vld [vmem:[%s6136_s1 + $0xc0] sm:$0xff]  }
 0x7f9   : > { %2119 = vmatpush1.bf16.msra.mxu0 %v5693_v10  ;;  %v5759_v10 = vld [vmem:[%s6136_s1 + $0x80] sm:$0xff]  }
 0x7fa   : > { %2120 = vmatprep.subr.bf16.mxu0 %v5701_v13 }
 0x7fd   : > { %2121 = vmatpush1.bf16.msra.mxu0 %v5699_v12  ;;  %v1934_v12 = vlaneseq }
 0x7fe   : > { %2122 = vmatprep.subr.bf16.mxu0 %v5707_v16  ;;  %v809_v16 = vld [vmem:[%s6131_s5] sm:$0xf] }
 0x7ff   : > { %v1935_v13 = vshrl.u32 %v1934_v12, 7 }
 0x801   : > { %2123 = vmatpush1.bf16.msra.mxu0 %v5705_v18  ;;  %v1936_v14 = vsub.s32 0, %v1935_v13  ;;  %v1944_v15 = vsub.s32 2, %v1935_v13  ;;  %v1940_v17 = vsub.s32 1, %v1935_v13  ;;  %v1948_v18 = vsub.s32 3, %v1935_v13 }
 0x802   : > { %2124 = vmatprep.subr.bf16.mxu0 %v5713_v20 }
 0x803   : > { %v6406_v19 = vrot.slane %v809_v16, %v1936_v14  ;;  %v6408_v20 = vrot.slane %v809_v16, %v1944_v15  ;;  %v6410_v21 = vrot.slane %v809_v16, %v1940_v17  ;;  %v5761_v14 = vld [vmem:[%s6100_s23 + $0xb8] sm:$0xff]   ;;  %v5763_v17 = vld [vmem:[%s6100_s23 + $0xb0] sm:$0xff]  }
 0x8b0   : > { %v1793_v51 = vpop.f32.mrf.mxu0 }
 0x8b1   : > { %v1861_v52 = vadd.f32 %v1860_v22, %v1793_v51  ;;  %v5711_v22 = vld [vmem:[%s6125_s4 + $0x40] ss:$16 sps:$4 sm:$0xff]  }
 0x8b2   : > { %v5410_v53 = vpop.f32.mrf.mxu0  ;;  %2125 = vmatpush1.bf16.msra.mxu0 %v5711_v22  ;;  %v5736_v51 = vld [vmem:[%s6136_s1 + $0x30] sm:$0xff]   ;;  %v6412_v22 = vrot.slane %v809_v16, %v1948_v18  ;;  %v5766_v18 = vld [vmem:[%s6100_s23 + $0x28] sm:$0xff]  }
 0x8b3   : > { %v1866_v56 = vadd.f32 %v5937_v55, %v1861_v52  ;;  %2126 = vmatprep.subr.bf16.mxu0 %v5719_v25  ;;  %v5737_v52 = vld [vmem:[%s6136_s1 + $0xe8] sm:$0xff]   ;;  %v5764_v16 = vld [vmem:[%s6100_s23 + $0x30] sm:$0xff]  }
 0x8b4   : > { %v1796_v57 = vpop.f32.mrf.mxu0  ;;  %v5738_v53 = vld [vmem:[%s6136_s1 + $0x68] sm:$0xff]  }
 0x8b5   : > { %v1873_v58 = vadd.f32 %v4719_v54, %v1866_v56  ;;  %v5739_v54 = vld [vmem:[%s6136_s1 + $0xa8] sm:$0xff]   ;;  %v5741_v56 = vld [vmem:[%s6136_s1 + $0xe0] sm:$0xff]  }
 0x8b6   : > { %v5411_v59 = vpop.f32.mrf.mxu0  ;;  %2127 = vmatpush1.bf16.msra.mxu0 %v5717_v28  ;;  %v5740_v55 = vld [vmem:[%s6136_s1 + $0x28] sm:$0xff]   ;;  %v5742_v57 = vld [vmem:[%s6136_s1 + $0x60] sm:$0xff]  }
 0x8b7   : > { %1874 = vadd.xlane.f32.xlu0 %v1873_v58  ;;  %2128 = vmatprep.subr.bf16.mxu0 %v5725_v30  ;;  %v5744_v59 = vld [vmem:[%s6136_s1 + $0x20] sm:$0xff]  }
 0x8ba   : > { %2129 = vmatpush1.bf16.msra.mxu0 %v5723_v32 }
 0x8bb   : > { %5096 = vmatprep.subr.bf16.mxu0 %v5730_v45 }
 0x940   : > { %v1875_v3 = vpop.xlane.xlu0 %1874 }
 0x941   : > { %v1877_v5 = vmul.f32 0.0078125, %v1875_v3  ;;  %v5753_v3 = vld [vmem:[%s6136_s1 + $0xc8] sm:$0xff]  }
 0x943   : > { %v1878_v6 = vsub.f32 %v1873_v58, %v1877_v5  ;;  %v5743_v58 = vld [vmem:[%s6136_s1 + $0xa0] sm:$0xff]   ;;  %v5754_v5 = vld [vmem:[%s6136_s1 + $0x48] sm:$0xff]  }
 0x945   : > { %v1879_v7 = vmul.f32 %v1878_v6, %v1878_v6 }
 0x947   : > { %1880 = vadd.xlane.f32.xlu1 %v1879_v7  ;;  %v5756_v7 = vld [vmem:[%s6136_s1 + $0x8] sm:$0xff]  }
 0x9d0   : > { %v1881_v34 = vpop.xlane.xlu1 %1880 }
 0x9d1   : > { %v1882_v35 = vmul.f32 0.0078125, %v1881_v34 }
 0x9d3   : > { %v1883_v36 = vadd.f32 1e-12, %v1882_v35 }
 0x9d5   : > { %5905 = vrsqrt.f32 %v1883_v36 }
 0x9e2   : > { %v5906_v37 = vpop.eup %5905 }
 0x9e3   : > { %v1885_v4 = vmul.f32 %v5906_v37, %v1878_v6  ;;  %v5755_v6 = vld [vmem:[%s6136_s1 + $0x88] sm:$0xff]  }
 0x9e5   : > { %v1892_v40 = vmul.f32 %v4720_v38, %v1885_v4 }
 0x9e7   : > { %v6367_v41 = vadd.f32 %v4721_v39, %v1892_v40 }
 0x9e9   : > { %v1900_v42 = vpack.c.bf16 %v6367_v41, %v6367_v41 }
 0x9eb   : > { %2147 = vmatmul.mubr.bf16.vlgmr.msra.gmra.mxu0 %v1900_v42  ;;  %2188 = vmatmul.mubr.bf16.vlgmr.msra.gmra.mxu1 %v1900_v42 }
 0x9ec   : > { %5119 = vmatpush3.bf16.msra.mxu1 %v5731_v46  ;;  %5097 = vmatpush3.bf16.msra.mxu0 %v5732_v47 }
 0x9ed   : > { %5120 = vmatprep.subr.bf16.mxu1 %v5733_v48  ;;  %5098 = vmatprep.subr.bf16.mxu0 %v5734_v49 }
 0x9f0   : > { %5121 = vmatpush3.bf16.msra.mxu1 %v5735_v50  ;;  %5099 = vmatpush3.bf16.msra.mxu0 %v5736_v51 }
 0x9f1   : > { %5122 = vmatprep.subr.bf16.mxu1 %v5737_v52  ;;  %5100 = vmatprep.subr.bf16.mxu0 %v5738_v53 }
 0x9f4   : > { %5123 = vmatpush3.bf16.msra.mxu1 %v5739_v54  ;;  %5101 = vmatpush3.bf16.msra.mxu0 %v5740_v55 }
 0x9f5   : > { %5124 = vmatprep.subr.bf16.mxu1 %v5741_v56  ;;  %5102 = vmatprep.subr.bf16.mxu0 %v5742_v57 }
 0x9f8   : > { %5125 = vmatpush3.bf16.msra.mxu1 %v5743_v58  ;;  %5103 = vmatpush3.bf16.msra.mxu0 %v5744_v59 }
 0x9f9   : > { %5126 = vmatprep.subr.bf16.mxu1 %v5745_v44  ;;  %5104 = vmatprep.subr.bf16.mxu0 %v5746_v60 }
 0x9fc   : > { %5127 = vmatpush3.bf16.msra.mxu1 %v5747_v61  ;;  %5105 = vmatpush3.bf16.msra.mxu0 %v5748_v62 }
 0x9fd   : > { %5128 = vmatprep.subr.bf16.mxu1 %v5749_v63  ;;  %5106 = vmatprep.subr.bf16.mxu0 %v5750_v0 }
 0xa00   : > { %5129 = vmatpush3.bf16.msra.mxu1 %v5751_v1  ;;  %5107 = vmatpush3.bf16.msra.mxu0 %v5752_v2 }
 0xa01   : > { %5130 = vmatprep.subr.bf16.mxu1 %v5753_v3  ;;  %5108 = vmatprep.subr.bf16.mxu0 %v5754_v5 }
 0xa04   : > { %5131 = vmatpush3.bf16.msra.mxu1 %v5755_v6  ;;  %5109 = vmatpush3.bf16.msra.mxu0 %v5756_v7 }
 0xa05   : > { %5132 = vmatprep.subr.bf16.mxu1 %v5757_v8  ;;  %5110 = vmatprep.subr.bf16.mxu0 %v5758_v9 }
 0xa08   : > { %5133 = vmatpush3.bf16.msra.mxu1 %v5759_v10  ;;  %5111 = vmatpush3.bf16.msra.mxu0 %v5760_v11  ;;  %v5762_v11 = vld [vmem:[%s6100_s23 + $0x38] sm:$0xff]  }
 0xa09   : > { %5444 = vmatprep.subr.bf16.mxu1 %v5965_v27  ;;  %5424 = vmatprep.subr.bf16.mxu0 %v5965_v27 }
 0xaab   : > { %v2148_v24 = vpop.f32.mrf.mxu0  ;;  %v2189_v25 = vpop.f32.mrf.mxu1 }
 0xaac   : > { %v2149_v26 = vadd.f32 %v2148_v24, %v6406_v19  ;;  %v2190_v28 = vadd.f32 %v2189_v25, %v6408_v20  ;;  %v5765_v24 = vld [vmem:[%s6100_s23 + $0xa8] sm:$0xff]   ;;  %v5768_v25 = vld [vmem:[%s6100_s23 + $0x20] sm:$0xff]  }
 0xaad   : > { %v2150_v29 = vpop.f32.mrf.mxu0  ;;  %v2191_v30 = vpop.f32.mrf.mxu1 }
 0xaae   : > { %v2196_v31 = vmul.f32 %v2149_v26, %v2149_v26  ;;  %v2198_v32 = vmul.f32 %v2190_v28, %v2190_v28  ;;  %v2151_v33 = vadd.f32 %v2150_v29, %v6410_v21  ;;  %v2192_v34 = vadd.f32 %v2191_v30, %v6412_v22  ;;  %v5769_v29 = vld [vmem:[%s6100_s23 + $0x98] sm:$0xff]   ;;  %v5772_v30 = vld [vmem:[%s6100_s23 + $0x10] sm:$0xff]  }
 0xaaf   : > { %v2152_v35 = vpop.f32.mrf.mxu0  ;;  %v2193_v36 = vpop.f32.mrf.mxu1 }
 0xab0   : > { %v2200_v37 = vmul.f32 %v2196_v31, %v2149_v26  ;;  %v2202_v38 = vmul.f32 %v2198_v32, %v2190_v28  ;;  %v2197_v4 = vmul.f32 %v2151_v33, %v2151_v33  ;;  %v2199_v39 = vmul.f32 %v2192_v34, %v2192_v34  ;;  %v5771_v31 = vld [vmem:[%s6100_s23 + $0x90] sm:$0xff]   ;;  %v5774_v32 = vld [vmem:[%s6100_s23 + $0x8] sm:$0xff]   ;;  %v5775_v35 = vld [vmem:[%s6100_s23 + $0x80] sm:$0xff]  }
 0xab1   : > { %v2153_v40 = vpop.f32.mrf.mxu0  ;;  %v2194_v42 = vpop.f32.mrf.mxu1  ;;  %v6451_v36 = vld [vmem:[#allocation2 + $0x8] sm:$0xff] }
 0xab2   : > { %v2204_v43 = vmul.f32 0.044715, %v2200_v37  ;;  %v2206_v45 = vmul.f32 0.044715, %v2202_v38  ;;  %v2201_v46 = vmul.f32 %v2197_v4, %v2151_v33  ;;  %v2203_v47 = vmul.f32 %v2199_v39, %v2192_v34  ;;  %v6471_v39 = vld [vmem:[%s747_s26] ss:$0 sm:$0xff] }
 0xab3   : > { %v6456_v37 = vpack.c.bf16 %v6451_v36, %v6451_v36 }
 0xab4   : > { %v2208_v48 = vadd.f32 %v2204_v43, %v2149_v26  ;;  %v2210_v49 = vadd.f32 %v2206_v45, %v2190_v28  ;;  %v2205_v50 = vmul.f32 0.044715, %v2201_v46  ;;  %v2207_v51 = vmul.f32 0.044715, %v2203_v47 }
 0xab6   : > { %v2212_v52 = vmul.f32 0.7978846, %v2208_v48  ;;  %v2214_v53 = vmul.f32 0.7978846, %v2210_v49  ;;  %v2209_v54 = vadd.f32 %v2205_v50, %v2151_v33  ;;  %v2211_v55 = vadd.f32 %v2207_v51, %v2192_v34 }
 0xab8   : > { %5907 = vtanh.f32 %v2212_v52  ;;  %v2213_v56 = vmul.f32 0.7978846, %v2209_v54  ;;  %v2215_v57 = vmul.f32 0.7978846, %v2211_v55  ;;  %v4815_v52 = vld [vmem:[%s6111_s0 + $0x2] ss:$0 sm:$0xff] }
 0xab9   : > { %5909 = vtanh.f32 %v2214_v53 }
 0xaba   : > { %5911 = vtanh.f32 %v2213_v56 }
 0xabb   : > { %5913 = vtanh.f32 %v2215_v57 }
 0xac5   : > { %v5908_v58 = vpop.eup %5907 }
 0xac6   : > { %v5910_v59 = vpop.eup %5909  ;;  %v2220_v44 = vadd.f32 1.0, %v5908_v58  ;;  %v4789_v58 = vld [vmem:[%s6111_s0] ss:$0 sm:$0xff] }
 0xac7   : > { %v5912_v60 = vpop.eup %5911  ;;  %v2222_v61 = vadd.f32 1.0, %v5910_v59 }
 0xac8   : > { %v5914_v62 = vpop.eup %5913  ;;  %v2221_v63 = vadd.f32 1.0, %v5912_v60  ;;  %v2224_v0 = vmul.f32 0.5, %v2220_v44 }
 0xac9   : > { %v2223_v1 = vadd.f32 1.0, %v5914_v62  ;;  %v2226_v2 = vmul.f32 0.5, %v2222_v61 }
 0xaca   : > { %v2225_v3 = vmul.f32 0.5, %v2221_v63  ;;  %v2228_v6 = vmul.f32 %v2224_v0, %v2149_v26  ;;  %v5767_v26 = vld [vmem:[%s6100_s23 + $0xa0] sm:$0xff]  }
 0xacb   : > { %v2227_v5 = vmul.f32 0.5, %v2223_v1  ;;  %v2230_v8 = vmul.f32 %v2226_v2, %v2190_v28  ;;  %v5770_v28 = vld [vmem:[%s6100_s23 + $0x18] sm:$0xff]  }
 0xacc   : > { %v2229_v7 = vmul.f32 %v2225_v3, %v2151_v33  ;;  %v2232_v13 = vpack.c.bf16 %v2228_v6, %v2228_v6  ;;  %v5773_v33 = vld [vmem:[%s6100_s23 + $0x88] sm:$0xff]   ;;  %v5777_v2 = vld [vmem:[%s6100_s23 + $0x138] sm:$0xff]   ;;  %v5778_v3 = vld [vmem:[%s6100_s23 + $0x130] sm:$0xff]  }
 0xacd   : > { %v2231_v9 = vmul.f32 %v2227_v5, %v2192_v34  ;;  %v2234_v15 = vpack.c.bf16 %v2230_v8, %v2230_v8  ;;  %v5776_v34 = vld [vmem:[%s6100_s23] sm:$0xff]   ;;  %v5779_v5 = vld [vmem:[%s6100_s23 + $0x128] sm:$0xff]   ;;  %v5782_v8 = vld [vmem:[%s6100_s23 + $0x110] sm:$0xff]  }
 0xace   : > { %v2233_v10 = vpack.c.bf16 %v2229_v7, %v2229_v7  ;;  %v5780_v6 = vld [vmem:[%s6100_s23 + $0x120] sm:$0xff]   ;;  %v5781_v7 = vld [vmem:[%s6100_s23 + $0x118] sm:$0xff]  }
 0xacf   : > { %v2235_v12 = vpack.c.bf16 %v2231_v9, %v2231_v9  ;;  %v5783_v9 = vld [vmem:[%s6100_s23 + $0x108] sm:$0xff]  }
 0xad0   : > { %2530 = vmatprep.mubr.bf16.mxu0 %v2233_v10  ;;  %v5784_v10 = vld [vmem:[%s6100_s23 + $0x100] sm:$0xff]  }
 0xad1   : > { %2570 = vmatprep.mubr.bf16.mxu1 %v2235_v12  ;;  %2531 = vmatmul.mubr.bf16.vlgmr.msra.gmra.mxu0 %v2232_v13 }
 0xad2   : > { %2571 = vmatmul.mubr.bf16.vlgmr.msra.gmra.mxu1 %v2234_v15  ;;  %5425 = vmatpush3.bf16.msra.mxu0 %v5762_v11  ;;  %v6505_v11 = vld [vmem:[%s6775_s20 + $0x1] ss:$0 sm:$0xff] }
 0xad3   : > { %5445 = vmatpush3.bf16.msra.mxu1 %v5761_v14  ;;  %5426 = vmatprep.subr.bf16.mxu0 %v5965_v27 }
 0xad4   : > { %5446 = vmatprep.subr.bf16.mxu1 %v5965_v27  ;;  %5460 = vmatprep.mubr.msk.bf16.mxu1 %vm5966_vm0, %v5965_v27 }
 0xad5   : > { %5440 = vmatprep.mubr.msk.bf16.mxu0 %vm5966_vm0, %v5965_v27 }
 0xad6   : > { %5427 = vmatpush3.bf16.msra.mxu0 %v5764_v16 }
 0xad7   : > { %5447 = vmatpush3.bf16.msra.mxu1 %v5763_v17  ;;  %5428 = vmatprep.subr.bf16.mxu0 %v5965_v27 }
 0xad8   : > { %5448 = vmatprep.subr.bf16.mxu1 %v5965_v27 }
 0xada   : > { %5429 = vmatpush3.bf16.msra.mxu0 %v5766_v18 }
 0xadb   : > { %5449 = vmatpush3.bf16.msra.mxu1 %v5765_v24  ;;  %5430 = vmatprep.subr.bf16.mxu0 %v5965_v27 }
 0xadc   : > { %5450 = vmatprep.subr.bf16.mxu1 %v5965_v27 }
 0xade   : > { %5431 = vmatpush3.bf16.msra.mxu0 %v5768_v25 }
 0xadf   : > { %5451 = vmatpush3.bf16.msra.mxu1 %v5767_v26  ;;  %5432 = vmatprep.subr.bf16.mxu0 %v5965_v27 }
 0xae0   : > { %5452 = vmatprep.subr.bf16.mxu1 %v5965_v27 }
 0xae2   : > { %5433 = vmatpush3.bf16.msra.mxu0 %v5770_v28 }
 0xae3   : > { %5453 = vmatpush3.bf16.msra.mxu1 %v5769_v29  ;;  %5434 = vmatprep.subr.bf16.mxu0 %v5965_v27  ;;  %v4841_v29 = vld [vmem:[%s6111_s0 + $0x4] ss:$0 sm:$0xff] }
 0xae4   : > { %5454 = vmatprep.subr.bf16.mxu1 %v5965_v27 }
 0xae6   : > { %5435 = vmatpush3.bf16.msra.mxu0 %v5772_v30 }
 0xae7   : > { %5455 = vmatpush3.bf16.msra.mxu1 %v5771_v31  ;;  %5436 = vmatprep.subr.bf16.mxu0 %v5965_v27  ;;  %v5785_v31 = vld [vmem:[%s6100_s23 + $0xf8] sm:$0xff]  }
 0xae8   : > { %5456 = vmatprep.subr.bf16.mxu1 %v5965_v27 }
 0xaea   : > { %5437 = vmatpush3.bf16.msra.mxu0 %v5774_v32 }
 0xaeb   : > { %5457 = vmatpush3.bf16.msra.mxu1 %v5773_v33  ;;  %5438 = vmatprep.subr.bf16.mxu0 %v5965_v27 }
 0xaec   : > { %5458 = vmatprep.subr.bf16.mxu1 %v5965_v27 }
 0xaee   : > { %5439 = vmatpush3.bf16.msra.mxu0 %v5776_v34  ;;  %v5786_v34 = vld [vmem:[%s6100_s23 + $0xf0] sm:$0xff]  }
 0xaef   : > { %5459 = vmatpush3.bf16.msra.mxu1 %v5775_v35  ;;  %5464 = vmatprep.subr.bf16.mxu0 %v5965_v27 }
 0xaf0   : > { %5484 = vmatprep.subr.bf16.mxu1 %v5965_v27 }
 0xaf1   : > { %5441 = vmatmul.mubr.bf16.vlgmr.msra.gmra.mxu0 %v6456_v37 }
 0xaf2   : > { %5461 = vmatmul.mubr.bf16.vlgmr.msra.gmra.mxu1 %v6456_v37  ;;  %5480 = vmatprep.mubr.msk.bf16.mxu0 %vm5966_vm0, %v5965_v27 }
 0xaf3   : > { %5486 = vmatprep.mubr.msk.bf16.mxu1 %vm5966_vm0, %v5965_v27  ;;  %5465 = vmatpush3.bf16.msra.mxu0 %v5777_v2  ;;  %v5806_v2 = vld [vmem:[%s6100_s23 + $0x150] sm:$0xff]  }
 0xaf4   : > { %5466 = vmatprep.subr.bf16.mxu0 %v5965_v27 }
 0xaf7   : > { %5467 = vmatpush3.bf16.msra.mxu0 %v5778_v3  ;;  %v5807_v3 = vld [vmem:[%s6100_s23 + $0x148] sm:$0xff]  }
 0xaf8   : > { %5468 = vmatprep.subr.bf16.mxu0 %v5965_v27 }
 0xafb   : > { %5469 = vmatpush3.bf16.msra.mxu0 %v5779_v5  ;;  %v5808_v5 = vld [vmem:[%s6100_s23 + $0x140] sm:$0xff]  }
 0xafc   : > { %5470 = vmatprep.subr.bf16.mxu0 %v5965_v27 }
 0xaff   : > { %5471 = vmatpush3.bf16.msra.mxu0 %v5780_v6  ;;  %v5809_v6 = vld [vmem:[%s6095_s27 + $0x18] sm:$0xff]  }
 0xb00   : > { %5472 = vmatprep.subr.bf16.mxu0 %v5965_v27 }
 0xb03   : > { %5473 = vmatpush3.bf16.msra.mxu0 %v5781_v7  ;;  %v5810_v7 = vld [vmem:[%s6095_s27 + $0x10] sm:$0xff]  }
 0xb04   : > { %5474 = vmatprep.subr.bf16.mxu0 %v5965_v27 }
 0xb07   : > { %5475 = vmatpush3.bf16.msra.mxu0 %v5782_v8  ;;  %v5811_v8 = vld [vmem:[%s6095_s27 + $0x8] sm:$0xff]  }
 0xb08   : > { %5476 = vmatprep.subr.bf16.mxu0 %v5965_v27 }
 0xb0b   : > { %5477 = vmatpush3.bf16.msra.mxu0 %v5783_v9  ;;  %v5812_v9 = vld [vmem:[%s6095_s27] sm:$0xff]  }
 0xb0c   : > { %5478 = vmatprep.subr.bf16.mxu0 %v5965_v27 }
 0xb0f   : > { %5479 = vmatpush3.bf16.msra.mxu0 %v5784_v10  ;;  %v4897_v10 = vld [vmem:[%s6111_s0 + $0x3] ss:$0 sm:$0xff] }
 0xb10   : > { %5516 = vmatprep.subr.bf16.mxu0 %v5965_v27 }
 0xb12   : > { %5481 = vmatmul.mubr.bf16.vlgmr.msra.gmra.mxu0 %v6456_v37 }
 0xb13   : > { %5532 = vmatprep.mubr.msk.bf16.mxu0 %vm5966_vm0, %v5965_v27  ;;  %5517 = vmatpush3.bf16.msra.mxu0 %v5785_v31 }
 0xb14   : > { %5518 = vmatprep.subr.bf16.mxu0 %v5965_v27 }
 0xb17   : > { %5519 = vmatpush3.bf16.msra.mxu0 %v5786_v34 }
 0xb18   : > { %5520 = vmatprep.subr.bf16.mxu0 %v5965_v27 }
 0xb91   : > { %v5112_v38 = vpop.f32.mrf.mxu0 }
 0xb92   : > { %v5134_v4 = vpop.f32.mrf.mxu1 }
 0xb93   : > { %v5113_v40 = vpop.f32.mrf.mxu0 }
 0xb94   : > { %v5114_v42 = vadd.f32 %v5113_v40, %v5112_v38  ;;  %v5135_v43 = vpop.f32.mrf.mxu1 }
 0xb95   : > { %v5136_v45 = vadd.f32 %v5135_v43, %v5134_v4  ;;  %v5115_v46 = vpop.f32.mrf.mxu0  ;;  %v5788_v43 = vld [vmem:[%s6100_s23 + $0xe0] sm:$0xff]  }
 0xb96   : > { %v2533_v47 = vadd.f32 %v5114_v42, %v6471_v39  ;;  %v5137_v48 = vpop.f32.mrf.mxu1  ;;  %v5787_v42 = vld [vmem:[%s6100_s23 + $0xe8] sm:$0xff]   ;;  %v5792_v46 = vld [vmem:[%s6100_s23 + $0xd0] sm:$0xff]  }
 0xb97   : > { %v5116_v49 = vpop.f32.mrf.mxu0  ;;  %5521 = vmatpush3.bf16.msra.mxu0 %v5787_v42  ;;  %v5796_v48 = vld [vmem:[%s6100_s23 + $0xc0] sm:$0xff]  }
 0xb98   : > { %v6474_v50 = vadd.f32 %v5136_v45, %v2533_v47  ;;  %v5138_v51 = vpop.f32.mrf.mxu1  ;;  %5522 = vmatprep.subr.bf16.mxu0 %v5965_v27  ;;  %v5790_v45 = vld [vmem:[%s6100_s23 + $0xd8] sm:$0xff]   ;;  %v5794_v47 = vld [vmem:[%s6100_s23 + $0xc8] sm:$0xff]  }
 0xb9b   : > { %5523 = vmatpush3.bf16.msra.mxu0 %v5788_v43 }
 0xb9c   : > { %5524 = vmatprep.subr.bf16.mxu0 %v5965_v27 }
 0xb9f   : > { %5525 = vmatpush3.bf16.msra.mxu0 %v5790_v45 }
 0xba0   : > { %5526 = vmatprep.subr.bf16.mxu0 %v5965_v27 }
 0xba3   : > { %5527 = vmatpush3.bf16.msra.mxu0 %v5792_v46 }
 0xba4   : > { %5528 = vmatprep.subr.bf16.mxu0 %v5965_v27 }
 0xba7   : > { %5529 = vmatpush3.bf16.msra.mxu0 %v5794_v47 }
 0xba8   : > { %5530 = vmatprep.subr.bf16.mxu0 %v5965_v27 }
 0xbab   : > { %5531 = vmatpush3.bf16.msra.mxu0 %v5796_v48 }
 0xbac   : > { %5556 = vmatprep.subr.bf16.mxu0 %v5965_v27 }
 0xbae   : > { %5533 = vmatmul.mubr.bf16.vlgmr.msra.gmra.mxu0 %v6456_v37 }
 0xbaf   : > { %5558 = vmatprep.mubr.msk.bf16.mxu0 %vm5966_vm0, %v5965_v27 }
 0xbb1   : > { %v2713_v53 = vpop.f32.mrf.mxu0 }
 0xbb2   : > { %v2824_v54 = vpop.f32.mrf.mxu1  ;;  %v2714_v62 = vadd.f32 %v4789_v58, %v2713_v53  ;;  %v5789_v53 = vld [vmem:[%s6100_s23 + $0x78] sm:$0xff]  }
 0xbb3   : > { %v2825_v55 = vadd.f32 %v4815_v52, %v2824_v54  ;;  %v5442_v56 = vpop.f32.mrf.mxu0  ;;  %v5797_v58 = vld [vmem:[%s6100_s23 + $0x58] sm:$0xff]  }
 0xbb4   : > { %v5462_v57 = vpop.f32.mrf.mxu1  ;;  %v2941_v1 = vpack.c.bf16 %v2714_v62, %v2714_v62  ;;  %v5793_v56 = vld [vmem:[%s6100_s23 + $0x68] sm:$0xff]   ;;  %v5802_v62 = vld [vmem:[%s6100_s23 + $0x170] sm:$0xff]  }
 0xbb5   : > { %v2942_v59 = vpack.c.bf16 %v2825_v55, %v2825_v55  ;;  %v2716_v44 = vpop.f32.mrf.mxu0  ;;  %v5791_v55 = vld [vmem:[%s6100_s23 + $0x70] sm:$0xff]   ;;  %v5795_v57 = vld [vmem:[%s6100_s23 + $0x60] sm:$0xff]  }
 0xbb6   : > { %v2827_v60 = vpop.f32.mrf.mxu1  ;;  %v5799_v44 = vld [vmem:[%s6100_s23 + $0x48] sm:$0xff]  }
 0xbb7   : > { %v2955_v61 = vsel %vm1159_vm1, %v2942_v59, 0  ;;  %v5443_v63 = vpop.f32.mrf.mxu0  ;;  %v5798_v59 = vld [vmem:[%s6100_s23 + $0x50] sm:$0xff]   ;;  %v5800_v60 = vld [vmem:[%s6100_s23 + $0x40] sm:$0xff]  }
 0xbb8   : > { %v5463_v0 = vpop.f32.mrf.mxu1  ;;  %5485 = vmatpush3.bf16.xpose.msra.mxu1 %v2955_v61  ;;  %v5801_v61 = vld [vmem:[%s6100_s23 + $0x178] sm:$0xff]   ;;  %v5803_v63 = vld [vmem:[%s6100_s23 + $0x168] sm:$0xff]  }
 0xbb9   : > { %5490 = vmatprep.subr.bf16.mxu1 %v5965_v27  ;;  %v5804_v0 = vld [vmem:[%s6100_s23 + $0x160] sm:$0xff]  }
 0xbbf   : > { %5487 = vmatmul.mubr.msk.bf16.vlgmr.msra.gmra.mxu1 %vm1159_vm1, %v2941_v1  ;;  %v5805_v1 = vld [vmem:[%s6100_s23 + $0x158] sm:$0xff]  }
 0xbc0   : > { %5492 = vmatprep.mubr.msk.bf16.mxu1 %vm5966_vm0, %v5965_v27 }
 0xbd2   : > { %v2935_v30 = vpop.f32.mrf.mxu0 }
 0xbd3   : > { %v2936_v32 = vadd.f32 %v4841_v29, %v2935_v30  ;;  %v4871_v29 = vld [vmem:[%s6111_s0 + $0x1] ss:$0 sm:$0xff] }
 0xbd4   : > { %v5482_v33 = vpop.f32.mrf.mxu0 }
 0xbd5   : > { %v3009_v35 = vpack.c.bf16 %v2936_v32, %v2936_v32 }
 0xbd6   : > { %v2938_v38 = vpop.f32.mrf.mxu0 }
 0xbd7   : > { %v3014_v4 = vsel %vm1223_vm3, %v3009_v35, 0  ;;  %v4923_v38 = vld [vmem:[%s6111_s0 + $0x5] ss:$0 sm:$0xff] }
 0xbd8   : > { %v5483_v40 = vpop.f32.mrf.mxu0  ;;  %5491 = vmatpush3.bf16.msra.mxu1 %v3014_v4 }
 0xbd9   : > { %5496 = vmatprep.subr.bf16.mxu1 %v5965_v27 }
 0xc7f   : > { %v2991_v12 = vpop.f32.mrf.mxu1 }
 0xc80   : > { %v2992_v13 = vadd.f32 %v6505_v11, %v2991_v12  ;;  %v3281_v12 = vpop.f32.mrf.mxu0 }
 0xc81   : > { %v5488_v14 = vpop.f32.mrf.mxu1 }
 0xc82   : > { %v2997_v15 = vsel %vm1206_vm2, %v2992_v13, -inf }
 0xc83   : > { %2998 = vmax.xlane.f32.xlu0 %v2997_v15  ;;  %v2994_v16 = vpop.f32.mrf.mxu1 }
 0xc85   : > { %v5489_v17 = vpop.f32.mrf.mxu1 }
 0xd0c   : > { %v2999_v18 = vpop.xlane.xlu0 %2998 }
 0xd0d   : > { %v3000_v24 = vsub.f32 %v2992_v13, %v2999_v18  ;;  %v5534_v13 = vpop.f32.mrf.mxu0 }
 0xd0f   : > { %v3001_v25 = vmul.f32 1.442695, %v3000_v24  ;;  %v3284_v15 = vpop.f32.mrf.mxu0 }
 0xd11   : > { %5915 = vpow2.f32 %v3001_v25  ;;  %v5535_v17 = vpop.f32.mrf.mxu0 }
 0xd1e   : > { %v5916_v26 = vpop.eup %5915 }
 0xd1f   : > { %v3003_v28 = vsel %vm1206_vm2, %v5916_v26, 0.0 }
 0xd20   : > { %3004 = vadd.xlane.f32.xlu1 %v3003_v28 }
 0xda9   : > { %v3005_v49 = vpop.xlane.xlu1 %3004 }
 0xdaa   : > { %5917 = vrcp.f32 %v3005_v49 }
 0xdb7   : > { %v5918_v51 = vpop.eup %5917 }
 0xdb8   : > { %v3007_v52 = vmul.f32 %v5918_v51, %v5916_v26 }
 0xdba   : > { %v3008_v54 = vpack.c.bf16 %v3007_v52, %v3007_v52 }
 0xdbc   : > { %5493 = vmatmul.mubr.msk.bf16.vlgmr.msra.gmra.mxu1 %vm1206_vm2, %v3008_v54 }
 0xdbd   : > { %5497 = vmatpush3.bf16.msra.mxu1 %v5789_v53  ;;  %5512 = vmatprep.mubr.msk.bf16.mxu1 %vm5966_vm0, %v5965_v27 }
 0xdbe   : > { %5498 = vmatprep.subr.bf16.mxu1 %v5965_v27 }
 0xdc1   : > { %5499 = vmatpush3.bf16.msra.mxu1 %v5791_v55 }
 0xdc2   : > { %5500 = vmatprep.subr.bf16.mxu1 %v5965_v27 }
 0xdc5   : > { %5501 = vmatpush3.bf16.msra.mxu1 %v5793_v56 }
 0xdc6   : > { %5502 = vmatprep.subr.bf16.mxu1 %v5965_v27 }
 0xdc9   : > { %5503 = vmatpush3.bf16.msra.mxu1 %v5795_v57 }
 0xdca   : > { %5504 = vmatprep.subr.bf16.mxu1 %v5965_v27 }
 0xdcd   : > { %5505 = vmatpush3.bf16.msra.mxu1 %v5797_v58 }
 0xdce   : > { %5506 = vmatprep.subr.bf16.mxu1 %v5965_v27 }
 0xdd1   : > { %5507 = vmatpush3.bf16.msra.mxu1 %v5798_v59 }
 0xdd2   : > { %5508 = vmatprep.subr.bf16.mxu1 %v5965_v27 }
 0xdd5   : > { %5509 = vmatpush3.bf16.msra.mxu1 %v5799_v44 }
 0xdd6   : > { %5510 = vmatprep.subr.bf16.mxu1 %v5965_v27 }
 0xdd9   : > { %5511 = vmatpush3.bf16.msra.mxu1 %v5800_v60 }
 0xdda   : > { %5536 = vmatprep.subr.bf16.mxu1 %v5965_v27 }
 0xddc   : > { %5513 = vmatmul.mubr.bf16.vlgmr.msra.gmra.mxu1 %v6456_v37 }
 0xddd   : > { %5537 = vmatpush3.bf16.msra.mxu1 %v5801_v61  ;;  %5552 = vmatprep.mubr.msk.bf16.mxu1 %vm5966_vm0, %v5965_v27 }
 0xdde   : > { %5538 = vmatprep.subr.bf16.mxu1 %v5965_v27 }
 0xde1   : > { %5539 = vmatpush3.bf16.msra.mxu1 %v5802_v62 }
 0xde2   : > { %5540 = vmatprep.subr.bf16.mxu1 %v5965_v27 }
 0xde5   : > { %5541 = vmatpush3.bf16.msra.mxu1 %v5803_v63 }
 0xde6   : > { %5542 = vmatprep.subr.bf16.mxu1 %v5965_v27 }
 0xde9   : > { %5543 = vmatpush3.bf16.msra.mxu1 %v5804_v0 }
 0xdea   : > { %5544 = vmatprep.subr.bf16.mxu1 %v5965_v27 }
 0xded   : > { %5545 = vmatpush3.bf16.msra.mxu1 %v5805_v1  ;;  %v5813_v1 = vld [vmem:[%s6095_s27 + $0x38] sm:$0xff]  }
 0xdee   : > { %5546 = vmatprep.subr.bf16.mxu1 %v5965_v27 }
 0xdf1   : > { %5547 = vmatpush3.bf16.msra.mxu1 %v5806_v2 }
 0xdf2   : > { %5548 = vmatprep.subr.bf16.mxu1 %v5965_v27 }
 0xdf5   : > { %5549 = vmatpush3.bf16.msra.mxu1 %v5807_v3  ;;  %v5814_v3 = vld [vmem:[%s6095_s27 + $0x30] sm:$0xff]  }
 0xdf6   : > { %5550 = vmatprep.subr.bf16.mxu1 %v5965_v27 }
 0xdf9   : > { %5551 = vmatpush3.bf16.msra.mxu1 %v5808_v5  ;;  %v5815_v5 = vld [vmem:[%s6095_s27 + $0x28] sm:$0xff]  }
 0xdfa   : > { %5580 = vmatprep.subr.bf16.mxu1 %v5965_v27 }
 0xdfc   : > { %5553 = vmatmul.mubr.bf16.vlgmr.msra.gmra.mxu1 %v6456_v37  ;;  %v3282_v37 = vadd.f32 %v4897_v10, %v3281_v12 }
 0xdfd   : > { %5581 = vmatpush3.bf16.msra.mxu1 %v5809_v6  ;;  %5588 = vmatprep.mubr.msk.bf16.mxu1 %vm5966_vm0, %v5965_v27  ;;  %v5816_v6 = vld [vmem:[%s6095_s27 + $0x20] sm:$0xff]   ;;  %s6778_s27 = scalar_lea.vmem %s6741_s10, %s6075_s25 }
 0xdfe   : > { %5582 = vmatprep.subr.bf16.mxu1 %v5965_v27  ;;  %v3399_v14 = vpack.c.bf16 %v3282_v37, %v3282_v37 }
 0xe00   : > { %v3404_v16 = vsel %vm1159_vm1, %v3399_v14, 0 }
 0xe01   : > { %5583 = vmatpush3.bf16.msra.mxu1 %v5810_v7  ;;  %5557 = vmatpush3.bf16.xpose.msra.mxu0 %v3404_v16  ;;  %v5938_v16 = vld [vmem:[%s6106_s29] ss:$0 sm:$0xff] }
 0xe02   : > { %5584 = vmatprep.subr.bf16.mxu1 %v5965_v27  ;;  %5562 = vmatprep.subr.bf16.mxu0 %v5965_v27 }
 0xe05   : > { %5585 = vmatpush3.bf16.msra.mxu1 %v5811_v8 }
 0xe06   : > { %5586 = vmatprep.subr.bf16.mxu1 %v5965_v27 }
 0xe09   : > { %5587 = vmatpush3.bf16.msra.mxu1 %v5812_v9 }
 0xe7c   : > { %v3050_v18 = vpop.f32.mrf.mxu1 }
 0xe7d   : > { %v3056_v24 = vpack.c.bf16 %v3050_v18, %v3050_v18 }
 0xe7e   : > { %v5494_v25 = vpop.f32.mrf.mxu1 }
 0xe7f   : > { %5589 = vmatmul.mubr.msk.bf16.vlgmr.msra.gmra.mxu1 %vm1159_vm1, %v3056_v24  ;;  %v2578_v24 = vadd.f32 %v6474_v50, %v6367_v41  ;;  %v5819_v25 = vld [vmem:[%s6125_s4 + $0xe4] ss:$16 sps:$4 sm:$0xff]  }
 0xe80   : > { %v3053_v26 = vpop.f32.mrf.mxu1  ;;  %3929 = vmatprep.mubr.bf16.mxu1 %v5967_v23 }
 0xe81   : > { %v5820_v26 = vld [vmem:[%s6125_s4 + $0xe8] ss:$16 sps:$4 sm:$0xff]  }
 0xe82   : > { %v5495_v28 = vpop.f32.mrf.mxu1 }
 0xe83   : > { %v5822_v28 = vld [vmem:[%s6125_s4 + $0xec] ss:$16 sps:$4 sm:$0xff]  }
 0xe84   : > { %3897 = vmatprep.subr.bf16.mxu1 %v5822_v28  ;;  %v5868_v28 = vld [vmem:[%s6136_s1 + $0xb8] sm:$0xff]  }
 0xe85   : > { %3898 = vmatpush1.bf16.msra.mxu1 %v5820_v26  ;;  %v5867_v26 = vld [vmem:[%s6136_s1 + $0x38] sm:$0xff]  }
 0xe9c   : > { %v3170_v30 = vpop.f32.mrf.mxu1 }
 0xe9d   : > { %v3171_v31 = vadd.f32 %v4871_v29, %v3170_v30  ;;  %v5825_v29 = vld [vmem:[%s6125_s4 + $0xc4] ss:$16 sps:$4 sm:$0xff]   ;;  %v5828_v30 = vld [vmem:[%s6125_s4 + $0xcc] ss:$16 sps:$4 sm:$0xff]  }
 0xe9e   : > { %v5514_v32 = vpop.f32.mrf.mxu1  ;;  %3899 = vmatprep.subr.bf16.mxu1 %v5828_v30  ;;  %v5870_v30 = vld [vmem:[%s6136_s1 + $0xf0] sm:$0xff]  }
 0xe9f   : > { %v3398_v33 = vpack.c.bf16 %v3171_v31, %v3171_v31  ;;  %v5826_v31 = vld [vmem:[%s6125_s4 + $0xc8] ss:$16 sps:$4 sm:$0xff]  }
 0xea0   : > { %v3173_v34 = vpop.f32.mrf.mxu1  ;;  %3900 = vmatpush1.bf16.msra.mxu1 %v5826_v31  ;;  %v5872_v31 = vld [vmem:[%s6136_s1 + $0xb0] sm:$0xff]  }
 0xea1   : > { %5559 = vmatmul.mubr.msk.bf16.vlgmr.msra.gmra.mxu0 %vm1159_vm1, %v3398_v33 }
 0xea2   : > { %v5515_v35 = vpop.f32.mrf.mxu1  ;;  %5564 = vmatprep.mubr.msk.bf16.mxu0 %vm5966_vm0, %v5965_v27 }
 0xebc   : > { %v3392_v4 = vpop.f32.mrf.mxu1 }
 0xebd   : > { %v3393_v40 = vadd.f32 %v4923_v38, %v3392_v4 }
 0xebe   : > { %v5554_v42 = vpop.f32.mrf.mxu1 }
 0xebf   : > { %v3458_v43 = vpack.c.bf16 %v3393_v40, %v3393_v40  ;;  %v5831_v40 = vld [vmem:[%s6125_s4 + $0xa4] ss:$16 sps:$4 sm:$0xff]   ;;  %v5834_v42 = vld [vmem:[%s6125_s4 + $0xac] ss:$16 sps:$4 sm:$0xff]  }
 0xec0   : > { %v3395_v45 = vpop.f32.mrf.mxu1  ;;  %3901 = vmatprep.subr.bf16.mxu1 %v5834_v42  ;;  %v5882_v42 = vld [vmem:[%s6136_s1 + $0xd8] sm:$0xff]  }
 0xec1   : > { %v3463_v46 = vsel %vm1223_vm3, %v3458_v43, 0  ;;  %v5829_v43 = vld [vmem:[%s6125_s4 + $0xa0] ss:$16 sps:$4 sm:$0xff]   ;;  %v5832_v45 = vld [vmem:[%s6125_s4 + $0xa8] ss:$16 sps:$4 sm:$0xff]  }
 0xec2   : > { %v5555_v47 = vpop.f32.mrf.mxu1  ;;  %5563 = vmatpush3.bf16.msra.mxu0 %v3463_v46  ;;  %3902 = vmatpush1.bf16.msra.mxu1 %v5832_v45  ;;  %v5837_v46 = vld [vmem:[%s6125_s4 + $0x84] ss:$16 sps:$4 sm:$0xff]   ;;  %v5884_v45 = vld [vmem:[%s6136_s1 + $0x98] sm:$0xff]  }
 0xec3   : > { %5568 = vmatprep.subr.bf16.mxu0 %v5965_v27  ;;  %v5835_v47 = vld [vmem:[%s6125_s4 + $0x80] ss:$16 sps:$4 sm:$0xff]  }
 0xf3f   : > { %v3642_v48 = vpop.f32.mrf.mxu1 }
 0xf41   : > { %v5590_v49 = vpop.f32.mrf.mxu1 }
 0xf42   : > { %v5840_v49 = vld [vmem:[%s6125_s4 + $0x8c] ss:$16 sps:$4 sm:$0xff]  }
 0xf43   : > { %v3645_v51 = vpop.f32.mrf.mxu1  ;;  %3903 = vmatprep.subr.bf16.mxu1 %v5840_v49  ;;  %v5888_v49 = vld [vmem:[%s6136_s1 + $0x90] sm:$0xff]  }
 0xf44   : > { %v5843_v51 = vld [vmem:[%s6125_s4 + $0x64] ss:$16 sps:$4 sm:$0xff]  }
 0xf45   : > { %v5591_v52 = vpop.f32.mrf.mxu1 }
 0xf46   : > { %v5846_v52 = vld [vmem:[%s6125_s4 + $0x6c] ss:$16 sps:$4 sm:$0xff]  }
 0xf61   : > { %v3440_v53 = vpop.f32.mrf.mxu0 }
 0xf62   : > { %v3441_v54 = vadd.f32 %v6505_v11, %v3440_v53  ;;  %v5841_v53 = vld [vmem:[%s6125_s4 + $0x60] ss:$16 sps:$4 sm:$0xff]  }
 0xf63   : > { %v5560_v55 = vpop.f32.mrf.mxu0 }
 0xf64   : > { %v3446_v56 = vsel %vm1206_vm2, %v3441_v54, -inf  ;;  %v5849_v55 = vld [vmem:[%s6125_s4 + $0x44] ss:$16 sps:$4 sm:$0xff]  }
 0xf65   : > { %3447 = vmax.xlane.f32.xlu0 %v3446_v56  ;;  %v3443_v57 = vpop.f32.mrf.mxu0  ;;  %v5852_v56 = vld [vmem:[%s6125_s4 + $0x4c] ss:$16 sps:$4 sm:$0xff]  }
 0xf66   : > { %v5847_v57 = vld [vmem:[%s6125_s4 + $0x40] ss:$16 sps:$4 sm:$0xff]  }
 0xf67   : > { %v5561_v58 = vpop.f32.mrf.mxu0 }
 0xf68   : > { %v5850_v58 = vld [vmem:[%s6125_s4 + $0x48] ss:$16 sps:$4 sm:$0xff]  }
 0xfee   : > { %v3448_v59 = vpop.xlane.xlu0 %3447 }
 0xfef   : > { %v3449_v44 = vsub.f32 %v3441_v54, %v3448_v59  ;;  %v5844_v54 = vld [vmem:[%s6125_s4 + $0x68] ss:$16 sps:$4 sm:$0xff]   ;;  %v5855_v59 = vld [vmem:[%s6125_s4 + $0x24] ss:$16 sps:$4 sm:$0xff]  }
 0xff1   : > { %v3450_v60 = vmul.f32 1.442695, %v3449_v44  ;;  %v5858_v44 = vld [vmem:[%s6125_s4 + $0x2c] ss:$16 sps:$4 sm:$0xff]  }
 0xff3   : > { %5919 = vpow2.f32 %v3450_v60  ;;  %v5853_v60 = vld [vmem:[%s6125_s4 + $0x20] ss:$16 sps:$4 sm:$0xff]  }
0x1000   : > { %v5920_v61 = vpop.eup %5919 }
0x1001   : > { %v3452_v62 = vsel %vm1206_vm2, %v5920_v61, 0.0 }
0x1002   : > { %3453 = vadd.xlane.f32.xlu1 %v3452_v62  ;;  %v5861_v62 = vld [vmem:[%s6125_s4 + $0x4] ss:$16 sps:$4 sm:$0xff]  }
0x108b   : > { %v3454_v63 = vpop.xlane.xlu1 %3453 }
0x108c   : > { %5921 = vrcp.f32 %v3454_v63  ;;  %v5864_v63 = vld [vmem:[%s6125_s4 + $0xc] ss:$16 sps:$4 sm:$0xff]  }
0x1099   : > { %v5922_v11 = vpop.eup %5921 }
0x109a   : > { %v3456_v0 = vmul.f32 %v5922_v11, %v5920_v61  ;;  %v5856_v61 = vld [vmem:[%s6125_s4 + $0x28] ss:$16 sps:$4 sm:$0xff]   ;;  %v5859_v11 = vld [vmem:[%s6125_s4] ss:$16 sps:$4 sm:$0xff]  }
0x109c   : > { %v3457_v2 = vpack.c.bf16 %v3456_v0, %v3456_v0  ;;  %v5862_v0 = vld [vmem:[%s6125_s4 + $0x8] ss:$16 sps:$4 sm:$0xff]  }
0x109e   : > { %5565 = vmatmul.mubr.msk.bf16.vlgmr.msra.gmra.mxu0 %vm1206_vm2, %v3457_v2 }
0x109f   : > { %5569 = vmatpush3.bf16.msra.mxu0 %v5813_v1  ;;  %5576 = vmatprep.mubr.msk.bf16.mxu0 %vm5966_vm0, %v5965_v27 }
0x10a0   : > { %5570 = vmatprep.subr.bf16.mxu0 %v5965_v27 }
0x10a3   : > { %5571 = vmatpush3.bf16.msra.mxu0 %v5814_v3 }
0x10a4   : > { %5572 = vmatprep.subr.bf16.mxu0 %v5965_v27 }
0x10a7   : > { %5573 = vmatpush3.bf16.msra.mxu0 %v5815_v5 }
0x10a8   : > { %5574 = vmatprep.subr.bf16.mxu0 %v5965_v27 }
0x10ab   : > { %5575 = vmatpush3.bf16.msra.mxu0 %v5816_v6 }
0x10ac   : > { %3856 = vmatprep.subr.bf16.mxu0 %v5819_v25  ;;  %v5866_v25 = vld [vmem:[%s6136_s1 + $0xf8] sm:$0xff]  }
0x115e   : > { %v3499_v7 = vpop.f32.mrf.mxu0 }
0x115f   : > { %v3505_v8 = vpack.c.bf16 %v3499_v7, %v3499_v7 }
0x1160   : > { %v5566_v9 = vpop.f32.mrf.mxu0 }
0x1161   : > { %5577 = vmatmul.mubr.msk.bf16.vlgmr.msra.gmra.mxu0 %vm1159_vm1, %v3505_v8 }
0x1162   : > { %v3502_v10 = vpop.f32.mrf.mxu0  ;;  %3888 = vmatprep.mubr.bf16.mxu0 %v5967_v23  ;;  %v5817_v23 = vld [vmem:[%s6125_s4 + $0xe0] ss:$16 sps:$4 sm:$0xff]  }
0x1163   : > { %3857 = vmatpush1.bf16.msra.mxu0 %v5817_v23  ;;  %v5939_v10 = vld [vmem:[%s6776_s6] ss:$0 sm:$0xff]  ;;  %v5865_v23 = vld [vmem:[%s6136_s1 + $0x78] sm:$0xff]  }
0x1164   : > { %v5567_v12 = vpop.f32.mrf.mxu0  ;;  %3858 = vmatprep.subr.bf16.mxu0 %v5825_v29  ;;  %v5869_v29 = vld [vmem:[%s6136_s1 + $0x70] sm:$0xff]  }
0x1221   : > { %v3575_v37 = vpop.f32.mrf.mxu0 }
0x1222   : > { %v3643_v13 = vadd.f32 %v3642_v48, %v3575_v37  ;;  %v5838_v48 = vld [vmem:[%s6125_s4 + $0x88] ss:$16 sps:$4 sm:$0xff]  }
0x1223   : > { %v5578_v27 = vpop.f32.mrf.mxu0  ;;  %3904 = vmatpush1.bf16.msra.mxu1 %v5838_v48  ;;  %v5887_v48 = vld [vmem:[%s6136_s1 + $0x10] sm:$0xff]  }
0x1224   : > { %v3648_v14 = vadd.f32 %v3643_v13, %v6451_v36  ;;  %v5823_v36 = vld [vmem:[%s6125_s4 + $0xc0] ss:$16 sps:$4 sm:$0xff]   ;;  %3905 = vmatprep.subr.bf16.mxu1 %v5846_v52  ;;  %v5890_v52 = vld [vmem:[%s6136_s1 + $0xc8] sm:$0xff]  }
0x1225   : > { %v3578_v15 = vpop.f32.mrf.mxu0  ;;  %3859 = vmatpush1.bf16.msra.mxu0 %v5823_v36  ;;  %v6658_v13 = vld [vmem:[%s6778_s27] ss:$0 sm:$0xff]  ;;  %v5871_v36 = vld [vmem:[%s6136_s1 + $0x30] sm:$0xff]  }
0x1226   : > { %v3649_v17 = vadd.f32 %v5938_v16, %v3648_v14  ;;  %3860 = vmatprep.subr.bf16.mxu0 %v5831_v40  ;;  %v5940_v14 = vld [vmem:[%s6777_s17] ss:$0 sm:$0xff]  ;;  %v5881_v40 = vld [vmem:[%s6136_s1 + $0x58] sm:$0xff]  }
0x1227   : > { %v5579_v18 = vpop.f32.mrf.mxu0  ;;  %3906 = vmatpush1.bf16.msra.mxu1 %v5844_v54  ;;  %v6669_v16 = vld [vmem:[%s6779_s22] ss:$0 sm:$0xff]  ;;  %v5892_v54 = vld [vmem:[%s6136_s1 + $0x88] sm:$0xff]  }
0x1228   : > { %3650 = vadd.xlane.f32.xlu0 %v3649_v17  ;;  %3907 = vmatprep.subr.bf16.mxu1 %v5852_v56  ;;  %v5894_v56 = vld [vmem:[%s6136_s1 + $0xc0] sm:$0xff]  }
0x1229   : > { %3861 = vmatpush1.bf16.msra.mxu0 %v5829_v43  ;;  %v5883_v43 = vld [vmem:[%s6136_s1 + $0x18] sm:$0xff]  }
0x122a   : > { %3862 = vmatprep.subr.bf16.mxu0 %v5837_v46  ;;  %v5885_v46 = vld [vmem:[%s6136_s1 + $0x50] sm:$0xff]  }
0x122b   : > { %3908 = vmatpush1.bf16.msra.mxu1 %v5850_v58  ;;  %v5896_v58 = vld [vmem:[%s6136_s1 + $0x80] sm:$0xff]  }
0x122c   : > { %2579 = vadd.xlane.f32.xlu0 %v2578_v24  ;;  %3909 = vmatprep.subr.bf16.mxu1 %v5858_v44 }
0x122d   : > { %3863 = vmatpush1.bf16.msra.mxu0 %v5835_v47  ;;  %v5886_v47 = vld [vmem:[%s6136_s1 + $0xd0] sm:$0xff]  }
0x122e   : > { %3864 = vmatprep.subr.bf16.mxu0 %v5843_v51  ;;  %v5889_v51 = vld [vmem:[%s6136_s1 + $0x48] sm:$0xff]  }
0x122f   : > { %3910 = vmatpush1.bf16.msra.mxu1 %v5856_v61 }
0x1230   : > { %3911 = vmatprep.subr.bf16.mxu1 %v5864_v63 }
0x1231   : > { %3865 = vmatpush1.bf16.msra.mxu0 %v5841_v53  ;;  %v5891_v53 = vld [vmem:[%s6136_s1 + $0x8] sm:$0xff]  }
0x1232   : > { %3866 = vmatprep.subr.bf16.mxu0 %v5849_v55  ;;  %v5893_v55 = vld [vmem:[%s6136_s1 + $0x40] sm:$0xff]  }
0x1233   : > { %3912 = vmatpush1.bf16.msra.mxu1 %v5862_v0 }
0x1234   : > { %5234 = vmatprep.subr.bf16.mxu1 %v5866_v25 }
0x1235   : > { %3867 = vmatpush1.bf16.msra.mxu0 %v5847_v57  ;;  %v5895_v57 = vld [vmem:[%s6136_s1] sm:$0xff]  }
0x1236   : > { %3868 = vmatprep.subr.bf16.mxu0 %v5855_v59 }
0x1239   : > { %3869 = vmatpush1.bf16.msra.mxu0 %v5853_v60 }
0x123a   : > { %3870 = vmatprep.subr.bf16.mxu0 %v5861_v62 }
0x123d   : > { %3871 = vmatpush1.bf16.msra.mxu0 %v5859_v11 }
0x123e   : > { %5212 = vmatprep.subr.bf16.mxu0 %v5865_v23 }
0x12b1   : > { %v3651_v41 = vpop.xlane.xlu0 %3650 }
0x12b2   : > { %v3652_v50 = vmul.f32 0.0078125, %v3651_v41  ;;  %v5873_v41 = vld [vmem:[%s6136_s1 + $0x68] sm:$0xff]  }
0x12b4   : > { %v6619_v32 = vsub.f32 %v3649_v17, %v3652_v50  ;;  %v5874_v50 = vld [vmem:[%s6136_s1 + $0xe8] sm:$0xff]  }
0x12b5   : > { %v2580_v33 = vpop.xlane.xlu0 %2579 }
0x12b6   : > { %v2581_v34 = vmul.f32 0.0078125, %v2580_v33  ;;  %v3654_v35 = vmul.f32 %v6619_v32, %v6619_v32  ;;  %v5876_v33 = vld [vmem:[%s6136_s1 + $0xa8] sm:$0xff]  }
0x12b8   : > { %v6623_v38 = vsub.f32 %v2578_v24, %v2581_v34  ;;  %3655 = vadd.xlane.f32.xlu1 %v3654_v35  ;;  %v5877_v34 = vld [vmem:[%s6136_s1 + $0x60] sm:$0xff]  }
0x12b9   : > { %v5878_v35 = vld [vmem:[%s6136_s1 + $0xe0] sm:$0xff]  }
0x12ba   : > { %v2583_v4 = vmul.f32 %v6623_v38, %v6623_v38 }
0x12bc   : > { %2584 = vadd.xlane.f32.xlu0 %v2583_v4  ;;  %v5880_v4 = vld [vmem:[%s6136_s1 + $0xa0] sm:$0xff]  }
0x1341   : > { %v3656_v1 = vpop.xlane.xlu1 %3655 }
0x1342   : > { %v3657_v2 = vmul.f32 0.0078125, %v3656_v1 }
0x1344   : > { %v3658_v3 = vadd.f32 1e-12, %v3657_v2 }
0x1345   : > { %v2585_v5 = vpop.xlane.xlu0 %2584 }
0x1346   : > { %5923 = vrsqrt.f32 %v3658_v3  ;;  %v2586_v6 = vmul.f32 0.0078125, %v2585_v5 }
0x1348   : > { %v2587_v7 = vadd.f32 1e-12, %v2586_v6 }
0x134a   : > { %5925 = vrsqrt.f32 %v2587_v7 }
0x1353   : > { %v5924_v8 = vpop.eup %5923 }
0x1354   : > { %v3660_v9 = vmul.f32 %v5924_v8, %v6619_v32  ;;  %v5875_v32 = vld [vmem:[%s6136_s1 + $0x28] sm:$0xff]  }
0x1356   : > { %v3661_v12 = vmul.f32 %v5939_v10, %v3660_v9 }
0x1357   : > { %v5926_v37 = vpop.eup %5925 }
0x1358   : > { %v2589_v27 = vmul.f32 %v5926_v37, %v6623_v38  ;;  %v6662_v15 = vadd.f32 %v5940_v14, %v3661_v12  ;;  %v5879_v38 = vld [vmem:[%s6136_s1 + $0x20] sm:$0xff]  }
0x135a   : > { %v2596_v17 = vmul.f32 %v6658_v13, %v2589_v27  ;;  %v3663_v18 = vpack.c.bf16 %v6662_v15, %v6662_v15 }
0x135c   : > { %v2603_v24 = vadd.f32 %v6669_v16, %v2596_v17  ;;  %3889 = vmatmul.mubr.bf16.vlgmr.msra.gmra.mxu0 %v3663_v18  ;;  %3930 = vmatmul.mubr.bf16.vlgmr.msra.gmra.mxu1 %v3663_v18 }
0x135d   : > { %5213 = vmatpush3.bf16.msra.mxu0 %v5867_v26  ;;  %5235 = vmatpush3.bf16.msra.mxu1 %v5868_v28 }
0x135e   : > { %2604 = vst [vmem:[#allocation2] sm:$0xff] %v2603_v24  ;;  %5214 = vmatprep.subr.bf16.mxu0 %v5869_v29  ;;  %5236 = vmatprep.subr.bf16.mxu1 %v5870_v30 }
0x1361   : > { %5215 = vmatpush3.bf16.msra.mxu0 %v5871_v36  ;;  %5237 = vmatpush3.bf16.msra.mxu1 %v5872_v31 }
0x1362   : > { %5216 = vmatprep.subr.bf16.mxu0 %v5873_v41  ;;  %5238 = vmatprep.subr.bf16.mxu1 %v5874_v50 }
0x1365   : > { %5217 = vmatpush3.bf16.msra.mxu0 %v5875_v32  ;;  %5239 = vmatpush3.bf16.msra.mxu1 %v5876_v33 }
0x1366   : > { %5218 = vmatprep.subr.bf16.mxu0 %v5877_v34  ;;  %5240 = vmatprep.subr.bf16.mxu1 %v5878_v35 }
0x1369   : > { %5219 = vmatpush3.bf16.msra.mxu0 %v5879_v38  ;;  %5241 = vmatpush3.bf16.msra.mxu1 %v5880_v4 }
0x136a   : > { %5220 = vmatprep.subr.bf16.mxu0 %v5881_v40  ;;  %5242 = vmatprep.subr.bf16.mxu1 %v5882_v42 }
0x136d   : > { %5221 = vmatpush3.bf16.msra.mxu0 %v5883_v43  ;;  %5243 = vmatpush3.bf16.msra.mxu1 %v5884_v45 }
0x136e   : > { %5222 = vmatprep.subr.bf16.mxu0 %v5885_v46  ;;  %5244 = vmatprep.subr.bf16.mxu1 %v5886_v47 }
0x1371   : > { %5223 = vmatpush3.bf16.msra.mxu0 %v5887_v48  ;;  %5245 = vmatpush3.bf16.msra.mxu1 %v5888_v49 }
0x1372   : > { %5224 = vmatprep.subr.bf16.mxu0 %v5889_v51  ;;  %5246 = vmatprep.subr.bf16.mxu1 %v5890_v52 }
0x1375   : > { %5225 = vmatpush3.bf16.msra.mxu0 %v5891_v53  ;;  %5247 = vmatpush3.bf16.msra.mxu1 %v5892_v54 }
0x1376   : > { %5226 = vmatprep.subr.bf16.mxu0 %v5893_v55  ;;  %5248 = vmatprep.subr.bf16.mxu1 %v5894_v56 }
0x1379   : > { %5227 = vmatpush3.bf16.msra.mxu0 %v5895_v57  ;;  %5249 = vmatpush3.bf16.msra.mxu1 %v5896_v58 }
0x141c   : > { %v3890_v59 = vpop.f32.mrf.mxu0  ;;  %v3931_v44 = vpop.f32.mrf.mxu1 }
0x141d   : > { %v3891_v60 = vadd.f32 %v3890_v59, %v6406_v19  ;;  %v3932_v61 = vadd.f32 %v3931_v44, %v6408_v20 }
0x141e   : > { %v3892_v62 = vpop.f32.mrf.mxu0  ;;  %v3933_v63 = vpop.f32.mrf.mxu1 }
0x141f   : > { %v3938_v11 = vmul.f32 %v3891_v60, %v3891_v60  ;;  %v3940_v0 = vmul.f32 %v3932_v61, %v3932_v61  ;;  %v3893_v1 = vadd.f32 %v3892_v62, %v6410_v21  ;;  %v3934_v2 = vadd.f32 %v3933_v63, %v6412_v22 }
0x1420   : > { %v3894_v3 = vpop.f32.mrf.mxu0  ;;  %v3935_v5 = vpop.f32.mrf.mxu1 }
0x1421   : > { %v3942_v6 = vmul.f32 %v3938_v11, %v3891_v60  ;;  %v3944_v7 = vmul.f32 %v3940_v0, %v3932_v61  ;;  %v3939_v8 = vmul.f32 %v3893_v1, %v3893_v1  ;;  %v3941_v9 = vmul.f32 %v3934_v2, %v3934_v2 }
0x1422   : > { %v3895_v10 = vpop.f32.mrf.mxu0  ;;  %v3936_v12 = vpop.f32.mrf.mxu1 }
0x1423   : > { %v3946_v37 = vmul.f32 0.044715, %v3942_v6  ;;  %v3948_v19 = vmul.f32 0.044715, %v3944_v7  ;;  %v3943_v27 = vmul.f32 %v3939_v8, %v3893_v1  ;;  %v3945_v20 = vmul.f32 %v3941_v9, %v3934_v2 }
0x1425   : > { %v3950_v14 = vadd.f32 %v3946_v37, %v3891_v60  ;;  %v3952_v17 = vadd.f32 %v3948_v19, %v3932_v61  ;;  %v3947_v18 = vmul.f32 0.044715, %v3943_v27  ;;  %v3949_v24 = vmul.f32 0.044715, %v3945_v20 }
0x1427   : > { %v3954_v23 = vmul.f32 0.7978846, %v3950_v14  ;;  %v3956_v21 = vmul.f32 0.7978846, %v3952_v17  ;;  %v3951_v25 = vadd.f32 %v3947_v18, %v3893_v1  ;;  %v3953_v22 = vadd.f32 %v3949_v24, %v3934_v2 }
0x1429   : > { %5927 = vtanh.f32 %v3954_v23  ;;  %v3955_v26 = vmul.f32 0.7978846, %v3951_v25  ;;  %v3957_v28 = vmul.f32 0.7978846, %v3953_v22 }
0x142a   : > { %5929 = vtanh.f32 %v3956_v21 }
0x142b   : > { %5931 = vtanh.f32 %v3955_v26 }
0x142c   : > { %5933 = vtanh.f32 %v3957_v28 }
0x1436   : > { %v5928_v29 = vpop.eup %5927 }
0x1437   : > { %v5930_v30 = vpop.eup %5929  ;;  %v3962_v36 = vadd.f32 1.0, %v5928_v29 }
0x1438   : > { %v5932_v31 = vpop.eup %5931  ;;  %v3964_v41 = vadd.f32 1.0, %v5930_v30 }
0x1439   : > { %v5934_v50 = vpop.eup %5933  ;;  %v3963_v32 = vadd.f32 1.0, %v5932_v31  ;;  %v3966_v33 = vmul.f32 0.5, %v3962_v36 }
0x143a   : > { %v3965_v34 = vadd.f32 1.0, %v5934_v50  ;;  %v3968_v35 = vmul.f32 0.5, %v3964_v41 }
0x143b   : > { %v3967_v38 = vmul.f32 0.5, %v3963_v32  ;;  %v3970_v40 = vmul.f32 %v3966_v33, %v3891_v60 }
0x143c   : > { %v3969_v4 = vmul.f32 0.5, %v3965_v34  ;;  %v3972_v43 = vmul.f32 %v3968_v35, %v3932_v61 }
0x143d   : > { %v3971_v42 = vmul.f32 %v3967_v38, %v3893_v1  ;;  %v3974_v48 = vpack.c.bf16 %v3970_v40, %v3970_v40 }
0x143e   : > { %v3973_v45 = vmul.f32 %v3969_v4, %v3934_v2  ;;  %v3976_v49 = vpack.c.bf16 %v3972_v43, %v3972_v43 }
0x143f   : > { %v3975_v46 = vpack.c.bf16 %v3971_v42, %v3971_v42 }
0x1440   : > { %v3977_v47 = vpack.c.bf16 %v3973_v45, %v3973_v45 }
0x1441   : > { %4266 = vmatprep.mubr.bf16.mxu0 %v3975_v46 }
0x1442   : > { %4306 = vmatprep.mubr.bf16.mxu1 %v3977_v47  ;;  %4267 = vmatmul.mubr.bf16.vlgmr.msra.gmra.mxu0 %v3974_v48 }
0x1443   : > { %4307 = vmatmul.mubr.bf16.vlgmr.msra.gmra.mxu1 %v3976_v49 }
0x1502   : > { %v5228_v51 = vpop.f32.mrf.mxu0 }
0x1503   : > { %v5250_v52 = vpop.f32.mrf.mxu1 }
0x1504   : > { %v5229_v53 = vpop.f32.mrf.mxu0 }
0x1505   : > { %v5230_v54 = vadd.f32 %v5229_v53, %v5228_v51  ;;  %v5251_v55 = vpop.f32.mrf.mxu1 }
0x1506   : > { %v5231_v56 = vpop.f32.mrf.mxu0  ;;  %v5252_v58 = vadd.f32 %v5251_v55, %v5250_v52 }
0x1507   : > { %v4269_v57 = vadd.f32 %v5230_v54, %v6471_v39  ;;  %v5253_v59 = vpop.f32.mrf.mxu1 }
0x1508   : > { %v5232_v44 = vpop.f32.mrf.mxu0 }
0x1509   : > { %v4309_v60 = vadd.f32 %v5252_v58, %v4269_v57  ;;  %v5254_v61 = vpop.f32.mrf.mxu1 }
0x150b   : > { %v4314_v62 = vadd.f32 %v4309_v60, %v6662_v15 }
0x150d   : > { %4315 = vadd.xlane.f32.xlu1 %v4314_v62 }
0x1596   : > { %v4316_v63 = vpop.xlane.xlu1 %4315 }
0x1597   : > { %v4317_v11 = vmul.f32 0.0078125, %v4316_v63 }
0x1599   : > { %v4318_v0 = vsub.f32 %v4314_v62, %v4317_v11 }
0x159b   : > { %v4319_v1 = vmul.f32 %v4318_v0, %v4318_v0 }
0x159d   : > { %4320 = vadd.xlane.f32.xlu1 %v4319_v1 }
0x1626   : > { %v4321_v2 = vpop.xlane.xlu1 %4320 }
0x1627   : > { %v4322_v3 = vmul.f32 0.0078125, %v4321_v2 }
0x1629   : > { %v4323_v5 = vadd.f32 1e-12, %v4322_v3 }
0x162b   : > { %5935 = vrsqrt.f32 %v4323_v5 }
0x1638   : > { %v5936_v6 = vpop.eup %5935 }
0x1639   : > { %v4325_v7 = vmul.f32 %v5936_v6, %v4318_v0 }
0x163b   : > { %v4326_v39 = vmul.f32 %v6658_v13, %v4325_v7  ;;  %4332 = sbr.rel (%p5016_p6) target bundleno = 5704 (0x1648), region = 92 }
0x163d   : > { %v4327_v8 = vadd.f32 %v6669_v16, %v4326_v39 }
0x163f   : > { %4328 = vst [vmem:[#allocation2 + $0x8] sm:$0xff] %v4327_v8 }
0x1640   : > { %v4333_v15 = vld [vmem:[#allocation2] sm:$0xff] }
0x1641   : > { %4335 = vst [vmem:[%s6780_s24] sm:$0xff] %v4333_v15 }
0x1646   : > { %v4334_v9 = vld [vmem:[#allocation2 + $0x8] sm:$0xff] }
0x1647   : > { %4336 = vst [vmem:[%s6780_s24 + $0x8] sm:$0xff] %v4334_v9 }
0x1648 PF: > { %s6781_s30 = sld [smem:[#allocation4_spill]] }
0x1649   : > { %s6782_s21 = sld [smem:[#allocation3_spill]] }
0x164a   : > { %s6783_s22 = sld [smem:[#allocation5_spill]] }
0x164e   : > { %s26_s23 = sadd.s32 1, %s6781_s30  }
0x164f   : > { %p23_p7 = scmp.ge.s32.totalorder %s26_s23, 4  }
0x1651   :  { %25 = sbr.rel (!%p23_p7) target bundleno = 9 (0x9), region = 174 }

// kernel: run.5
= control target key start
LH: loop header
LB: loop body
LE: loop exit
PB: predicated region body
PF: predicated region fallthrough
CT: control target
= control target key end

     0   :  { %s7793_s0 = inlined_call_operand.vmem [shape: f32[2,17,128], index: 0, kind: input, shape index: {}]   ;;  %s7794_s1 = inlined_call_operand.vmem [shape: f32[2,1,128], index: 1, kind: input, shape index: {}, may-alias: {1,7}]   ;;  %s7795_s2 = inlined_call_operand.vmem [shape: f32[2,1,128], index: 2, kind: input, shape index: {}, may-alias: {2,6,8,12}]   ;;  %s7796_s3 = inlined_call_operand.vmem [shape: bf16[2,6,128,64], index: 3, kind: input, shape index: {}]   ;;  %s7797_s4 = inlined_call_operand.vmem [shape: f32[2,6,1,64], index: 4, kind: input, shape index: {}]   ;;  %s7798_s5 = inlined_call_operand.hbm [shape: bf16[2,2,64,128], index: 5, kind: input, shape index: {}]   ;;  %s7799_s6 = inlined_call_operand.vmem [shape: f32[2,1,128], index: 6, kind: input, shape index: {}, may-alias: {2,6,8,12}]   ;;  %s7800_s7 = inlined_call_operand.vmem [shape: f32[2,1,128], index: 7, kind: input, shape index: {}, may-alias: {1,7}]   ;;  %s7801_s8 = inlined_call_operand.vmem [shape: f32[2,1,128], index: 8, kind: input, shape index: {}, may-alias: {2,6,8,12}]   ;;  %s7802_s9 = inlined_call_operand.vmem [shape: bf16[2,128,512], index: 9, kind: input, shape index: {}]   ;;  %s7803_s10 = inlined_call_operand.vmem [shape: f32[2,1,512], index: 10, kind: input, shape index: {}]   ;;  %s7804_s11 = inlined_call_operand.vmem [shape: bf16[2,512,128], index: 11, kind: input, shape index: {}]   ;;  %s7805_s12 = inlined_call_operand.vmem [shape: f32[2,1,128], index: 12, kind: input, shape index: {}, may-alias: {2,6,8,12}]   ;;  %s7806_s13 = inlined_call_operand.vmem [shape: f32[2,17,128], index: 13, kind: output, shape index: {}]  }
   0x1   :  { %7811 = sst [smem:[#allocation9_spill]] %s7793_s0 }
   0x2   :  { %7812 = sst [smem:[#allocation10_spill]] %s7794_s1 }
   0x3   :  { %7813 = sst [smem:[#allocation11_spill]] %s7795_s2 }
   0x4   :  { %7814 = sst [smem:[#allocation12_spill]] %s7796_s3 }
   0x5   :  { %7815 = sst [smem:[#allocation13_spill]] %s7797_s4 }
   0x6   :  { %7816 = sst [smem:[#allocation14_spill]] %s7798_s5 }
   0x7   :  { %7817 = sst [smem:[#allocation15_spill]] %s7799_s6 }
   0x8   :  { %7818 = sst [smem:[#allocation16_spill]] %s7800_s7 }
   0x9   :  { %7819 = sst [smem:[#allocation17_spill]] %s7801_s8 }
   0xa   :  { %7820 = sst [smem:[#allocation18_spill]] %s7802_s9 }
   0xb   :  { %7821 = sst [smem:[#allocation19_spill]] %s7804_s11 }
   0xc   :  { %7822 = sst [smem:[#allocation20_spill]] %s7805_s12 }
   0xd   :  { %7823 = sst [smem:[#allocation21_spill]] %s7806_s13 }
   0xe   :  { %18 = vsyncpa [#allocation4], 0 }
   0xf   :  { %20 = vsyncpa [#allocation4 + $0x1], 0  ;;  %s6895_s25 = smov 0   ;;  %s6897_s26 = smov 0  }
  0x10   :  { %s6899_s27 = smov 0   ;;  %s6901_s28 = smov 0  }
  0x11   :  { %s6903_s29 = smov 0   ;;  %s6905_s30 = smov 0  }
  0x12 LB: > { %7824 = sst [smem:[#allocation6_spill]] %s6815_s29  ;;  %s5137_s14 = sadd.s32 4294967295, %s6819_s30   ;;  %s6819_s30 = sphi %s6905_s30, %s26_s30   ;;  %s6815_s29 = sphi %s6903_s29, %s7845_s29   ;;  %s6811_s28 = sphi %s6901_s28, %s7844_s28   ;;  %s6807_s27 = sphi %s6899_s27, %s7848_s27   ;;  %s6803_s26 = sphi %s6897_s26, %s7847_s26   ;;  %s6799_s25 = sphi %s6895_s25, %s7846_s25  }
  0x13   : > { %s35_s15 = sadd.s32 1, %s6815_s29  ;;  %s175_s16 = sadd.s32 1, %s6807_s27 }
  0x14   : > { %p36_p0 = scmp.ge.s32.totalorder %s35_s15, 2  ;;  %p182_p1 = scmp.ne.s32.totalorder %s6807_s27, %s6803_s26 }
  0x15   : > { %p183_p2 = scmp.eq.s32.totalorder %s6819_s30, 0  ;;  %p188_p4 = scmp.ne.s32.totalorder %s6803_s26, %s6799_s25 }
  0x16   : > { %s7850_s15 = smov (%p36_p0, %s35_s15), 0  ;;  %p189_p5 = scmp.eq.s32.totalorder %s5137_s14, 0 }
  0x17   : > { %7825 = sst [smem:[#allocation7_spill]] %s7850_s15  ;;  %p6931_p3 = por %p183_p2, %p182_p1 }
  0x18   : > { %s172_s18 = ssub.s32 %s6815_s29, %s7850_s15  ;;  %p6938_p7 = por %p189_p5, %p188_p4 }
  0x19   : > { %p173_p6 = scmp.eq.s32.totalorder %s172_s18, 0  ;;  %p6285_p8 = scmp.lt.s32.totalorder %s6819_s30, 2 }
  0x1a   : > { %s457_s21 = sand.u32 1, %s6807_s27   ;;  %s5626_s22 = sshll.u32 %s6815_s29, 10 }
  0x1b   : > { %s6944_s20 = scalar_select %p173_p6, %s6807_s27, %s175_s16  }
  0x1c   : > { %s5141_s23 = sshll.u32 %s457_s21, 6  ;;  %s7829_s5 = sld [smem:[#allocation14_spill]] }
  0x1d   : > { %7828 = sst [smem:[#allocation8_spill]] %s6944_s20  ;;  %s461_s12 = scalar_lea.vmem [#allocation3], %s5141_s23 }
  0x1e   : > { %s468_s11 = sshll.u32 %s461_s12, 4  ;;  %p6953_p9 = pnand %p6285_p8, %p6931_p3  ;;  %s469_s11 = int_to_ptr.vmem [resolvable:$true] %s468_s11 }
  0x1f   : > { %s458_s14 = scalar_lea.sflag [#allocation4], %s457_s21  ;;  %s6754_s16 = scalar_lea.vmem %s469_s11, 1024 }
  0x20   : > { %p6743_p10 = pneg %p6953_p9  ;;  %p6755_p11 = scmp.ne.s32.totalorder %s469_s11, %s6754_s16 }
  0x21   : > { %s6821_s18 = smov [#allocation3]  }
  0x22   : > { %s467_s0 = scalar_lea.hbm %s7829_s5, %s5626_s22  ;;  %p6757_p12 = pnand %p6755_p11, %p6743_p10 }
  0x23   : > { %s6759_s15 = sshll.u32 %s6821_s18, 4  ;;  %s6760_s15 = int_to_ptr.vmem [resolvable:$false] %s6759_s15 }
  0x24   : > { %p6758_p13 = pneg %p6757_p12  ;;  %s6761_s13 = scalar_lea.vmem %s6760_s15, 2048 }
  0x25   : > { %p6762_p0 = scmp.lt.s32.totalorder %s469_s11, %s6760_s15  ;;  %p6763_p1 = scmp.lt.s32.totalorder %s6761_s13, %s6754_s16 }
  0x27   : > { %p6764_p2 = por %p6763_p1, %p6762_p0 }
  0x29   : > { %p6765_p3 = pnand %p6764_p2, %p6758_p13 }
  0x2b   : > { %6768 = shalt.err (!%p6765_p3)
}
  0x2c   : > { %s6822_s12 = smov 64   ;;  %s6823_s17 = smov 4  }
  0x2d   : > { %6284 = dma.hbm_to_vmem [thread:$0]  (!%p6953_p9), %s467_s0, 1024, %s469_s11, %s458_s14, %s6822_s12, %s6822_s12, %s6823_s17  }
  0x2e   : > { %p5144_p4 = scmp.ge.s32.totalorder %s6819_s30, 1  ;;  %p523_p5 = scmp.lt.s32.totalorder %s6819_s30, 3 }
  0x30   : > { %p524_p6 = pnand %p5144_p4, %p523_p5 }
  0x31   : > { %s529_s21 = sand.u32 (!%p524_p6), 1, %s6803_s26  }
  0x32   : > { %527 = sbr.rel (%p524_p6) target bundleno = 5514 (0x158a), region = 72  ;;  %s5145_s22 = sshll.u32 (!%p524_p6), %s529_s21, 6 }
  0x33   : > { %s530_s15 = scalar_lea.sflag (!%p524_p6), [#allocation4], %s529_s21  ;;  %s6964_s23 = scalar_lea.vmem (!%p524_p6), [#allocation3], %s5145_s22 }
  0x37   : > { %6794 = dma.done.wait (%p6938_p7), %s530_s15, 1024  }
  0x38   : > { %6796 = vsyncadd (%p6938_p7), %s530_s15, 4294966272  ;;  %p631_p8 = scmp.lt.s32.totalorder %s6811_s28, 1  ;;  %s7831_s1 = sld [smem:[#allocation10_spill]] }
  0x39   : > { %s7832_s2 = sld [smem:[#allocation11_spill]]  ;;  %p5152_p7 = scmp.ne.s32.totalorder %s6811_s28, 0 }
  0x3a   : > { %s632_s0 = scalar_select %p631_p8, %s6811_s28, 1 }
  0x3b   : > { %s7833_s6 = sld [smem:[#allocation15_spill]] }
  0x3c   : > { %s6277_s13 = smul.u32 384, %s632_s0  ;;  %s7834_s7 = sld [smem:[#allocation16_spill]] }
  0x3d   : > { %s6278_s21 = smul.u32 6, %s632_s0  ;;  %s7835_s3 = sld [smem:[#allocation12_spill]] }
  0x3e   : > { %s6975_s25 = scalar_lea.vmem %s7831_s1, %s632_s0  ;;  %s7836_s8 = sld [smem:[#allocation17_spill]] }
  0x3f   : > { %s6980_s18 = scalar_lea.vmem %s7832_s2, %s632_s0  ;;  %s7837_s4 = sld [smem:[#allocation13_spill]] }
  0x40   : > { %s7838_s9 = sld [smem:[#allocation18_spill]] }
  0x41   : > { %s6985_s19 = scalar_lea.vmem %s7833_s6, %s632_s0  ;;  %s5627_s6 = sshll.u32 %s632_s0, 8 }
  0x42   : > { %s6990_s5 = scalar_lea.vmem %s7834_s7, %s632_s0  ;;  %s5149_s7 = sshll.u32 %s632_s0, 2 }
  0x43   : > { %s6995_s1 = scalar_lea.vmem %s7835_s3, %s6277_s13  ;;  %s7015_s24 = scalar_lea.vmem %s7803_s10, %s5149_s7 }
  0x44   : > { %s7000_s2 = scalar_lea.vmem %s7836_s8, %s632_s0  ;;  %s7839_s3 = sld [smem:[#allocation19_spill]] }
  0x45   : > { %s7005_s17 = scalar_lea.vmem %s7837_s4, %s6278_s21  ;;  %s7840_s12 = sld [smem:[#allocation20_spill]] }
  0x46   : > { %s7010_s15 = scalar_lea.vmem %s7838_s9, %s5627_s6  ;;  %s7841_s9 = sld [smem:[#allocation9_spill]] (!%p5152_p7) }
  0x47   : > { %683 = sbr.rel (%p5152_p7) target bundleno = 80 (0x50), region = 80 }
  0x4a   : > { %s7020_s8 = scalar_lea.vmem %s7839_s3, %s5627_s6 }
  0x4b   : > { %s7025_s4 = scalar_lea.vmem %s7840_s12, %s632_s0 }
  0x4c   : > { %v684_v0 = vld [vmem:[%s7841_s9] sm:$0xff]  ;;  %v685_v1 = vld [vmem:[%s7841_s9 + $0x8] sm:$0xff]  ;;  %v686_v2 = vld [vmem:[%s7841_s9 + $0x10] sm:$0x1] }
  0x4d   : > { %690 = vst [vmem:[#allocation2 + $0x28] sm:$0xff] %v684_v0  ;;  %691 = vst [vmem:[#allocation2 + $0x10] sm:$0xff] %v685_v1  ;;  %v687_v3 = vld [vmem:[%s7841_s9 + $0x18] sm:$0xff]  ;;  %v688_v4 = vld [vmem:[%s7841_s9 + $0x20] sm:$0xff] }
  0x4e   : > { %692 = vst [vmem:[#allocation2 + $0x8] sm:$0x1] %v686_v2  ;;  %v689_v5 = vld [vmem:[%s7841_s9 + $0x28] sm:$0x1]  ;;  %693 = vst [vmem:[#allocation2] sm:$0xff] %v687_v3 }
  0x4f   : > { %694 = vst [vmem:[#allocation2 + $0x18] sm:$0xff] %v688_v4  ;;  %695 = vst [vmem:[#allocation2 + $0x20] sm:$0x1] %v689_v5 }
  0x50 PF: > { %vm710_vm0 = vcmask 1040384   ;;  %v6337_v10 = vld [vmem:[%s6995_s1 + $0x38] sm:$0xff]   ;;  %v6339_v25 = vld [vmem:[%s6995_s1 + $0x30] sm:$0xff]   ;;  %v6341_v27 = vld [vmem:[%s6995_s1 + $0x28] sm:$0xff]   ;;  %vm1128_vm1 = vcmask 523264   ;;  %vm1189_vm2 = vcmask 138240  }
  0x51   : > { %v6338_v11 = vld [vmem:[%s6995_s1 + $0xb8] sm:$0xff]   ;;  %5917 = vmatprep.subr.bf16.mxu0 %v6337_v10  ;;  %v6340_v26 = vld [vmem:[%s6995_s1 + $0xb0] sm:$0xff]   ;;  %v6342_v28 = vld [vmem:[%s6995_s1 + $0xa8] sm:$0xff]   ;;  %vm1196_vm3 = vcmask 131072   ;;  %p5621_p9 = scmp.ne.s32.totalorder %s6811_s28, 1 }
  0x52   : > { %5937 = vmatprep.subr.bf16.mxu1 %v6338_v11  ;;  %5918 = vmatpush3.bf16.msra.mxu0 %v6337_v10  ;;  %v6343_v29 = vld [vmem:[%s6995_s1 + $0x20] sm:$0xff]   ;;  %v6345_v31 = vld [vmem:[%s6995_s1 + $0x18] sm:$0xff]   ;;  %v6347_v33 = vld [vmem:[%s6995_s1 + $0x10] sm:$0xff]  }
  0x53   : > { %5938 = vmatpush3.bf16.msra.mxu1 %v6338_v11  ;;  %5919 = vmatprep.subr.bf16.mxu0 %v6339_v25  ;;  %v6344_v30 = vld [vmem:[%s6995_s1 + $0xa0] sm:$0xff]   ;;  %v6346_v32 = vld [vmem:[%s6995_s1 + $0x98] sm:$0xff]   ;;  %v6348_v34 = vld [vmem:[%s6995_s1 + $0x90] sm:$0xff]  }
  0x54   : > { %v703_v6 = vld [vmem:[#allocation2 + $0x28] sm:$0xff]  ;;  %v704_v8 = vld [vmem:[#allocation2 + $0x10] sm:$0xff]  ;;  %5939 = vmatprep.subr.bf16.mxu1 %v6340_v26  ;;  %v6351_v37 = vld [vmem:[%s6995_s1] sm:$0xff]  }
  0x55   : > { %v705_v7 = vld [vmem:[#allocation2 + $0x8] sm:$0x1]  ;;  %706 = vadd.xlane.f32.xlu0 %v703_v6  ;;  %v6352_v38 = vld [vmem:[%s6995_s1 + $0x80] sm:$0xff]   ;;  %v6353_v39 = vld [vmem:[%s6995_s1 + $0x138] sm:$0xff]  }
  0x56   : > { %v711_v9 = vsel %vm710_vm0, %v705_v7, 0.0  ;;  %5920 = vmatpush3.bf16.msra.mxu0 %v6339_v25  ;;  %v6349_v35 = vld [vmem:[%s6995_s1 + $0x8] sm:$0xff]   ;;  %v5153_v51 = vld [vmem:[%s6975_s25] ss:$0 sm:$0xff]  ;;  %v6354_v1 = vld [vmem:[%s6995_s1 + $0x130] sm:$0xff]  }
  0x57   : > { %712 = vadd.xlane.f32.xlu1 %v711_v9  ;;  %5940 = vmatpush3.bf16.msra.mxu1 %v6340_v26  ;;  %v6350_v36 = vld [vmem:[%s6995_s1 + $0x88] sm:$0xff]   ;;  %v5154_v58 = vld [vmem:[%s6980_s18] ss:$0 sm:$0xff]  ;;  %v6357_v4 = vld [vmem:[%s6995_s1 + $0x118] sm:$0xff]  }
  0x58   : > { %5921 = vmatprep.subr.bf16.mxu0 %v6341_v27  ;;  %5941 = vmatprep.subr.bf16.mxu1 %v6342_v28  ;;  %v6355_v2 = vld [vmem:[%s6995_s1 + $0x128] sm:$0xff]   ;;  %v6356_v3 = vld [vmem:[%s6995_s1 + $0x120] sm:$0xff]   ;;  %v6358_v5 = vld [vmem:[%s6995_s1 + $0x110] sm:$0xff]  }
  0x59   : > { %708 = vadd.xlane.f32.xlu0 %v704_v8  ;;  %v6362_v9 = vld [vmem:[%s6995_s1 + $0xf0] sm:$0xff]   ;;  %v6363_v10 = vld [vmem:[%s6995_s1 + $0xe8] sm:$0xff]   ;;  %v6364_v11 = vld [vmem:[%s6995_s1 + $0xe0] sm:$0xff]  }
  0x5a   : > { %5922 = vmatpush3.bf16.msra.mxu0 %v6341_v27  ;;  %v5155_v26 = vld [vmem:[%s7005_s17] ss:$0 sm:$0xff] }
  0x5b   : > { %5942 = vmatpush3.bf16.msra.mxu1 %v6342_v28  ;;  %5923 = vmatprep.subr.bf16.mxu0 %v6343_v29 }
  0x5c   : > { %5943 = vmatprep.subr.bf16.mxu1 %v6344_v30 }
  0x5e   : > { %5924 = vmatpush3.bf16.msra.mxu0 %v6343_v29 }
  0x5f   : > { %5944 = vmatpush3.bf16.msra.mxu1 %v6344_v30  ;;  %5925 = vmatprep.subr.bf16.mxu0 %v6345_v31 }
  0x60   : > { %5945 = vmatprep.subr.bf16.mxu1 %v6346_v32 }
  0x62   : > { %5926 = vmatpush3.bf16.msra.mxu0 %v6345_v31 }
  0x63   : > { %5946 = vmatpush3.bf16.msra.mxu1 %v6346_v32  ;;  %5927 = vmatprep.subr.bf16.mxu0 %v6347_v33 }
  0x64   : > { %5947 = vmatprep.subr.bf16.mxu1 %v6348_v34 }
  0x66   : > { %5928 = vmatpush3.bf16.msra.mxu0 %v6347_v33 }
  0x67   : > { %5948 = vmatpush3.bf16.msra.mxu1 %v6348_v34  ;;  %5929 = vmatprep.subr.bf16.mxu0 %v6349_v35 }
  0x68   : > { %5949 = vmatprep.subr.bf16.mxu1 %v6350_v36 }
  0x6a   : > { %5930 = vmatpush3.bf16.msra.mxu0 %v6349_v35 }
  0x6b   : > { %5950 = vmatpush3.bf16.msra.mxu1 %v6350_v36  ;;  %5931 = vmatprep.subr.bf16.mxu0 %v6351_v37 }
  0x6c   : > { %5951 = vmatprep.subr.bf16.mxu1 %v6352_v38 }
  0x6e   : > { %5932 = vmatpush3.bf16.msra.mxu0 %v6351_v37 }
  0x6f   : > { %5952 = vmatpush3.bf16.msra.mxu1 %v6352_v38  ;;  %5957 = vmatprep.subr.bf16.mxu0 %v6353_v39  ;;  %v5207_v38 = vld [vmem:[%s7005_s17 + $0x4] ss:$0 sm:$0xff] }
  0xde   : > { %v707_v12 = vpop.xlane.xlu0 %706 }
  0xdf   : > { %v715_v13 = vmul.f32 0.0078125, %v707_v12  ;;  %v6365_v12 = vld [vmem:[%s6995_s1 + $0xd8] sm:$0xff]  }
  0xe0   : > { %v713_v14 = vpop.xlane.xlu1 %712 }
  0xe1   : > { %v717_v15 = vmul.f32 0.0078125, %v713_v14  ;;  %v7049_v16 = vsub.f32 %v703_v6, %v715_v13  ;;  %v6359_v6 = vld [vmem:[%s6995_s1 + $0x108] sm:$0xff]   ;;  %v6366_v13 = vld [vmem:[%s6995_s1 + $0xd0] sm:$0xff]  }
  0xe2   : > { %v709_v18 = vpop.xlane.xlu0 %708  ;;  %v6367_v14 = vld [vmem:[%s6995_s1 + $0xc8] sm:$0xff]  }
  0xe3   : > { %v7051_v17 = vsub.f32 %v705_v7, %v717_v15  ;;  %v716_v19 = vmul.f32 0.0078125, %v709_v18  ;;  %v721_v20 = vmul.f32 %v7049_v16, %v7049_v16  ;;  %v6360_v7 = vld [vmem:[%s6995_s1 + $0x100] sm:$0xff]  }
  0xe4   : > { %v6368_v15 = vld [vmem:[%s6995_s1 + $0xc0] sm:$0xff]  }
  0xe5   : > { %v723_v21 = vmul.f32 %v7051_v17, %v7051_v17  ;;  %v7057_v22 = vsub.f32 %v704_v8, %v716_v19  ;;  %724 = vadd.xlane.f32.xlu1 %v721_v20  ;;  %v6361_v8 = vld [vmem:[%s6995_s1 + $0xf8] sm:$0xff]  }
  0xe7   : > { %v728_v23 = vsel %vm710_vm0, %v723_v21, 0.0  ;;  %v722_v24 = vmul.f32 %v7057_v22, %v7057_v22 }
  0xe9   : > { %729 = vadd.xlane.f32.xlu1 %v728_v23  ;;  %726 = vadd.xlane.f32.xlu0 %v722_v24 }
 0x16e   : > { %v725_v40 = vpop.xlane.xlu1 %724 }
 0x16f   : > { %v731_v41 = vmul.f32 0.0078125, %v725_v40 }
 0x171   : > { %v734_v42 = vadd.f32 1e-05, %v731_v41  ;;  %v6824_v41 = vmov 0  }
 0x172   : > { %v730_v43 = vpop.xlane.xlu1 %729  ;;  %v727_v44 = vpop.xlane.xlu0 %726 }
 0x173   : > { %6609 = vrsqrt.f32 %v734_v42  ;;  %v733_v45 = vmul.f32 0.0078125, %v730_v43  ;;  %v732_v46 = vmul.f32 0.0078125, %v727_v44  ;;  %v7120_v42 = vsel %vm710_vm0, 65535, %v6824_v41 }
 0x175   : > { %v736_v47 = vadd.f32 1e-05, %v733_v45  ;;  %v735_v48 = vadd.f32 1e-05, %v732_v46 }
 0x177   : > { %6611 = vrsqrt.f32 %v736_v47 }
 0x178   : > { %6613 = vrsqrt.f32 %v735_v48 }
 0x180   : > { %v6610_v49 = vpop.eup %6609 }
 0x181   : > { %v740_v50 = vmul.f32 %v6610_v49, %v7049_v16  ;;  %v5181_v16 = vld [vmem:[%s7005_s17 + $0x2] ss:$0 sm:$0xff] }
 0x183   : > { %v749_v55 = vmul.f32 %v5153_v51, %v740_v50 }
 0x184   : > { %v6612_v52 = vpop.eup %6611 }
 0x185   : > { %v6614_v53 = vpop.eup %6613  ;;  %v742_v54 = vmul.f32 %v6612_v52, %v7051_v17  ;;  %v758_v61 = vadd.f32 %v5154_v58, %v749_v55 }
 0x186   : > { %v741_v56 = vmul.f32 %v6614_v53, %v7057_v22 }
 0x187   : > { %v751_v57 = vmul.f32 %v5153_v51, %v742_v54 }
 0x188   : > { %v750_v59 = vmul.f32 %v5153_v51, %v741_v56  ;;  %v5263_v51 = vld [vmem:[%s7005_s17 + $0x3] ss:$0 sm:$0xff] }
 0x189   : > { %v760_v60 = vadd.f32 %v5154_v58, %v751_v57 }
 0x18a   : > { %v759_v62 = vadd.f32 %v5154_v58, %v750_v59 }
 0x18b   : > { %v7082_v63 = vpack.c.bf16 %v760_v60, %v760_v60 }
 0x18c   : > { %v7084_v0 = vpack.c.bf16 %v759_v62, %v758_v61 }
 0x18e   : > { %5933 = vmatprep.mubr.bf16.mxu0 %v7084_v0  ;;  %5953 = vmatprep.mubr.bf16.mxu1 %v7084_v0 }
 0x18f   : > { %5934 = vmatmul.mubr.bf16.vlgmr.msra.gmra.mxu0 %v7082_v63  ;;  %5954 = vmatmul.mubr.bf16.vlgmr.msra.gmra.mxu1 %v7082_v63 }
 0x190   : > { %5958 = vmatpush3.bf16.msra.mxu0 %v6353_v39  ;;  %5973 = vmatprep.mubr.bf16.mxu0 %v7084_v0 }
 0x191   : > { %5959 = vmatprep.subr.bf16.mxu0 %v6354_v1 }
 0x194   : > { %5960 = vmatpush3.bf16.msra.mxu0 %v6354_v1 }
 0x195   : > { %5961 = vmatprep.subr.bf16.mxu0 %v6355_v2 }
 0x198   : > { %5962 = vmatpush3.bf16.msra.mxu0 %v6355_v2 }
 0x199   : > { %5963 = vmatprep.subr.bf16.mxu0 %v6356_v3 }
 0x19c   : > { %5964 = vmatpush3.bf16.msra.mxu0 %v6356_v3 }
 0x19d   : > { %5965 = vmatprep.subr.bf16.mxu0 %v6357_v4 }
 0x1a0   : > { %5966 = vmatpush3.bf16.msra.mxu0 %v6357_v4 }
 0x1a1   : > { %5967 = vmatprep.subr.bf16.mxu0 %v6358_v5 }
 0x1a4   : > { %5968 = vmatpush3.bf16.msra.mxu0 %v6358_v5 }
 0x1a5   : > { %5969 = vmatprep.subr.bf16.mxu0 %v6359_v6 }
 0x1a8   : > { %5970 = vmatpush3.bf16.msra.mxu0 %v6359_v6 }
 0x1a9   : > { %5971 = vmatprep.subr.bf16.mxu0 %v6360_v7 }
 0x1ac   : > { %5972 = vmatpush3.bf16.msra.mxu0 %v6360_v7 }
 0x1ad   : > { %6013 = vmatprep.subr.bf16.mxu0 %v6361_v8 }
 0x1af   : > { %5974 = vmatmul.mubr.bf16.vlgmr.msra.gmra.mxu0 %v7082_v63 }
 0x1b0   : > { %6014 = vmatpush3.bf16.msra.mxu0 %v6361_v8  ;;  %6029 = vmatprep.mubr.bf16.mxu0 %v7084_v0 }
 0x1b1   : > { %6015 = vmatprep.subr.bf16.mxu0 %v6362_v9 }
 0x1b4   : > { %6016 = vmatpush3.bf16.msra.mxu0 %v6362_v9 }
 0x1b5   : > { %6017 = vmatprep.subr.bf16.mxu0 %v6363_v10 }
 0x1b8   : > { %6018 = vmatpush3.bf16.msra.mxu0 %v6363_v10 }
 0x1b9   : > { %6019 = vmatprep.subr.bf16.mxu0 %v6364_v11 }
 0x1bc   : > { %6020 = vmatpush3.bf16.msra.mxu0 %v6364_v11 }
 0x1bd   : > { %6021 = vmatprep.subr.bf16.mxu0 %v6365_v12 }
 0x1c0   : > { %6022 = vmatpush3.bf16.msra.mxu0 %v6365_v12 }
 0x1c1   : > { %6023 = vmatprep.subr.bf16.mxu0 %v6366_v13 }
 0x1c4   : > { %6024 = vmatpush3.bf16.msra.mxu0 %v6366_v13 }
 0x1c5   : > { %6025 = vmatprep.subr.bf16.mxu0 %v6367_v14 }
 0x1c8   : > { %6026 = vmatpush3.bf16.msra.mxu0 %v6367_v14 }
 0x1c9   : > { %6027 = vmatprep.subr.bf16.mxu0 %v6368_v15 }
 0x1cc   : > { %6028 = vmatpush3.bf16.msra.mxu0 %v6368_v15 }
 0x1cf   : > { %6030 = vmatmul.mubr.bf16.vlgmr.msra.gmra.mxu0 %v7082_v63 }
 0x24f   : > { %v5935_v17 = vpop.f32.mrf.mxu0  ;;  %v5955_v18 = vpop.f32.mrf.mxu1 }
 0x250   : > { %v998_v19 = vadd.f32 %v5955_v18, %v5181_v16  ;;  %v877_v36 = vadd.f32 %v5935_v17, %v5155_v26 }
 0x251   : > { %v868_v20 = vpop.f32.mrf.mxu0  ;;  %v989_v21 = vpop.f32.mrf.mxu1 }
 0x252   : > { %v1127_v22 = vpack.c.bf16 %v998_v19, %v998_v19  ;;  %v869_v29 = vadd.f32 %v5155_v26, %v868_v20  ;;  %v990_v30 = vadd.f32 %v5181_v16, %v989_v21  ;;  %v1125_v37 = vpack.c.bf16 %v877_v36, %v877_v36  ;;  %v6371_v36 = vld [vmem:[%s6995_s1 + $0x68] sm:$0xff]  }
 0x253   : > { %v5936_v23 = vpop.f32.mrf.mxu0  ;;  %v5956_v24 = vpop.f32.mrf.mxu1 }
 0x254   : > { %v1139_v25 = vsel %vm1128_vm1, %v1127_v22, 0  ;;  %6269 = vmatprep.subr.msk.bf16.mxu1 %vm1128_vm1, %v1127_v22  ;;  %v6369_v23 = vld [vmem:[%s6995_s1 + $0x78] sm:$0xff]  }
 0x255   : > { %v871_v27 = vpop.f32.mrf.mxu0  ;;  %v992_v28 = vpop.f32.mrf.mxu1  ;;  %5978 = vmatpush3.bf16.xpose.msra.mxu1 %v1139_v25 }
 0x256   : > { %v872_v31 = vadd.f32 %v5155_v26, %v871_v27  ;;  %v993_v32 = vadd.f32 %v5181_v16, %v992_v28 }
 0x258   : > { %v1124_v33 = vpack.c.bf16 %v872_v31, %v869_v29  ;;  %v1126_v34 = vpack.c.bf16 %v993_v32, %v990_v30 }
 0x25a   : > { %6270 = vmatprep.subr.msk.bf16.mxu1 %vm1128_vm1, %v1126_v34  ;;  %5981 = vmatprep.mubr.msk.bf16.mxu1 %vm1128_vm1, %v1124_v33  ;;  %v1136_v35 = vsel %vm1128_vm1, %v1126_v34, 0 }
 0x25d   : > { %5980 = vmatpush3.bf16.xpose.msra.mxu1 %v1136_v35  ;;  %v6370_v35 = vld [vmem:[%s6995_s1 + $0x70] sm:$0xff]  }
 0x264   : > { %5982 = vmatmul.mubr.msk.bf16.vlgmr.msra.gmra.mxu1 %vm1128_vm1, %v1125_v37  ;;  %v6372_v37 = vld [vmem:[%s6995_s1 + $0x60] sm:$0xff]  }
 0x26f   : > { %v5975_v39 = vpop.f32.mrf.mxu0 }
 0x270   : > { %v1119_v40 = vadd.f32 %v5975_v39, %v5207_v38  ;;  %v6374_v39 = vld [vmem:[%s6995_s1 + $0x50] sm:$0xff]  }
 0x271   : > { %v1110_v43 = vpop.f32.mrf.mxu0 }
 0x272   : > { %v1227_v44 = vpack.c.bf16 %v1119_v40, %v1119_v40  ;;  %v1111_v48 = vadd.f32 %v5207_v38, %v1110_v43  ;;  %v6375_v40 = vld [vmem:[%s6995_s1 + $0x48] sm:$0xff]   ;;  %v6376_v43 = vld [vmem:[%s6995_s1 + $0x40] sm:$0xff]  }
 0x273   : > { %v5976_v45 = vpop.f32.mrf.mxu0 }
 0x274   : > { %v1237_v46 = vand.u32 %v7120_v42, %v1227_v44  ;;  %v6377_v44 = vld [vmem:[%s6995_s1 + $0x178] sm:$0xff]   ;;  %v6378_v45 = vld [vmem:[%s6995_s1 + $0x170] sm:$0xff]  }
 0x275   : > { %v1113_v47 = vpop.f32.mrf.mxu0 }
 0x276   : > { %v1114_v49 = vadd.f32 %v5207_v38, %v1113_v47  ;;  %5985 = vmatprep.subr.bf16.mxu1 %v1237_v46  ;;  %v6373_v38 = vld [vmem:[%s6995_s1 + $0x58] sm:$0xff]   ;;  %v6380_v47 = vld [vmem:[%s6995_s1 + $0x160] sm:$0xff]  }
 0x277   : > { %5986 = vmatpush3.bf16.msra.mxu1 %v1237_v46  ;;  %v6379_v46 = vld [vmem:[%s6995_s1 + $0x168] sm:$0xff]  }
 0x278   : > { %v1226_v50 = vpack.c.bf16 %v1114_v49, %v1111_v48  ;;  %v6381_v48 = vld [vmem:[%s6995_s1 + $0x158] sm:$0xff]   ;;  %v6382_v49 = vld [vmem:[%s6995_s1 + $0x150] sm:$0xff]  }
 0x27a   : > { %5987 = vmatprep.subr.bf16.mxu1 %v1226_v50 }
 0x27b   : > { %5988 = vmatpush3.bf16.msra.mxu1 %v1226_v50  ;;  %v6383_v50 = vld [vmem:[%s6995_s1 + $0x148] sm:$0xff]  }
 0x27c   : > { %5993 = vmatprep.subr.bf16.mxu1 %v6369_v23 }
 0x28f   : > { %v6031_v52 = vpop.f32.mrf.mxu0 }
 0x290   : > { %v1534_v53 = vadd.f32 %v6031_v52, %v5263_v51  ;;  %v6386_v52 = vld [vmem:[%s6964_s23 + $0x10] sm:$0xff]  }
 0x291   : > { %v1525_v54 = vpop.f32.mrf.mxu0 }
 0x292   : > { %v1663_v55 = vpack.c.bf16 %v1534_v53, %v1534_v53  ;;  %v1526_v59 = vadd.f32 %v5263_v51, %v1525_v54  ;;  %v6387_v53 = vld [vmem:[%s6964_s23 + $0x8] sm:$0xff]   ;;  %v6388_v54 = vld [vmem:[%s6964_s23] sm:$0xff]  }
 0x293   : > { %v6032_v56 = vpop.f32.mrf.mxu0 }
 0x294   : > { %v1674_v57 = vsel %vm1128_vm1, %v1663_v55, 0  ;;  %6271 = vmatprep.subr.msk.bf16.mxu0 %vm1128_vm1, %v1663_v55 }
 0x295   : > { %v1528_v58 = vpop.f32.mrf.mxu0  ;;  %6054 = vmatpush3.bf16.xpose.msra.mxu0 %v1674_v57 }
 0x296   : > { %v1529_v60 = vadd.f32 %v5263_v51, %v1528_v58  ;;  %v6385_v51 = vld [vmem:[%s6964_s23 + $0x18] sm:$0xff]  }
 0x298   : > { %v1662_v61 = vpack.c.bf16 %v1529_v60, %v1526_v59 }
 0x29a   : > { %6272 = vmatprep.subr.msk.bf16.mxu0 %vm1128_vm1, %v1662_v61  ;;  %v1671_v62 = vsel %vm1128_vm1, %v1662_v61, 0 }
 0x29d   : > { %6056 = vmatpush3.bf16.xpose.msra.mxu0 %v1671_v62  ;;  %v5237_v62 = vld [vmem:[%s7005_s17 + $0x1] ss:$0 sm:$0xff] }
 0x324   : > { %v5983_v1 = vpop.f32.mrf.mxu1 }
 0x325   : > { %v1197_v6 = vsel %vm1196_vm3, %v5983_v1, -inf }
 0x326   : > { %v1175_v2 = vpop.f32.mrf.mxu1 }
 0x327   : > { %v1190_v3 = vsel %vm1189_vm2, %v1175_v2, -inf }
 0x328   : > { %1191 = vmax.xlane.f32.xlu0 %v1190_v3  ;;  %v5984_v4 = vpop.f32.mrf.mxu1 }
 0x32a   : > { %v1178_v5 = vpop.f32.mrf.mxu1 }
 0x32b   : > { %v1193_v7 = vsel %vm1189_vm2, %v1178_v5, -inf }
 0x32c   : > { %1198 = vmax.xlane.f32.xlu0 %v1197_v6  ;;  %1194 = vmax.xlane.f32.xlu1 %v1193_v7 }
 0x3b1   : > { %v1192_v8 = vpop.xlane.xlu0 %1191 }
 0x3b2   : > { %v1200_v9 = vsub.f32 %v1175_v2, %v1192_v8  ;;  %v5289_v8 = vld [vmem:[%s7005_s17 + $0x5] ss:$0 sm:$0xff] }
 0x3b4   : > { %v1203_v10 = vmul.f32 1.442695, %v1200_v9 }
 0x3b5   : > { %v1199_v11 = vpop.xlane.xlu0 %1198  ;;  %v1195_v12 = vpop.xlane.xlu1 %1194 }
 0x3b6   : > { %6615 = vpow2.f32 %v1203_v10  ;;  %v1202_v13 = vsub.f32 %v5983_v1, %v1199_v11  ;;  %v1201_v14 = vsub.f32 %v1178_v5, %v1195_v12 }
 0x3b8   : > { %v1207_v15 = vmul.f32 1.442695, %v1202_v13  ;;  %v1205_v16 = vmul.f32 1.442695, %v1201_v14 }
 0x3ba   : > { %6617 = vpow2.f32 %v1207_v15 }
 0x3bb   : > { %6619 = vpow2.f32 %v1205_v16 }
 0x3c3   : > { %v6616_v17 = vpop.eup %6615 }
 0x3c4   : > { %v1209_v18 = vsel %vm1189_vm2, %v6616_v17, 0.0 }
 0x3c5   : > { %1210 = vadd.xlane.f32.xlu1 %v1209_v18 }
 0x3c7   : > { %v6618_v19 = vpop.eup %6617 }
 0x3c8   : > { %v6620_v20 = vpop.eup %6619  ;;  %v1215_v21 = vsel %vm1196_vm3, %v6618_v19, 0.0 }
 0x3c9   : > { %1216 = vadd.xlane.f32.xlu1 %v1215_v21  ;;  %v1212_v22 = vsel %vm1189_vm2, %v6620_v20, 0.0 }
 0x3ca   : > { %1213 = vadd.xlane.f32.xlu0 %v1212_v22 }
 0x44e   : > { %v1211_v24 = vpop.xlane.xlu1 %1210 }
 0x44f   : > { %6621 = vrcp.f32 %v1211_v24 }
 0x452   : > { %v1217_v25 = vpop.xlane.xlu1 %1216 }
 0x453   : > { %v1214_v26 = vpop.xlane.xlu0 %1213  ;;  %6623 = vrcp.f32 %v1217_v25 }
 0x454   : > { %6625 = vrcp.f32 %v1214_v26 }
 0x45c   : > { %v6622_v27 = vpop.eup %6621 }
 0x45d   : > { %v1221_v31 = vmul.f32 %v6622_v27, %v6616_v17 }
 0x460   : > { %v6624_v28 = vpop.eup %6623 }
 0x461   : > { %v6626_v29 = vpop.eup %6625  ;;  %v1223_v30 = vmul.f32 %v6624_v28, %v6618_v19 }
 0x462   : > { %v1222_v32 = vmul.f32 %v6626_v29, %v6620_v20 }
 0x463   : > { %v1225_v33 = vpack.c.bf16 %v1223_v30, %v1223_v30 }
 0x464   : > { %v1224_v34 = vpack.c.bf16 %v1222_v32, %v1221_v31 }
 0x466   : > { %5989 = vmatprep.mubr.msk.bf16.mxu1 %vm1189_vm2, %v1224_v34 }
 0x467   : > { %5990 = vmatmul.mubr.msk.bf16.vlgmr.msra.gmra.mxu1 %vm1189_vm2, %v1225_v33 }
 0x468   : > { %5994 = vmatpush3.bf16.msra.mxu1 %v6369_v23  ;;  %6009 = vmatprep.mubr.bf16.mxu1 %v7084_v0 }
 0x469   : > { %5995 = vmatprep.subr.bf16.mxu1 %v6370_v35 }
 0x46c   : > { %5996 = vmatpush3.bf16.msra.mxu1 %v6370_v35 }
 0x46d   : > { %5997 = vmatprep.subr.bf16.mxu1 %v6371_v36 }
 0x470   : > { %5998 = vmatpush3.bf16.msra.mxu1 %v6371_v36 }
 0x471   : > { %5999 = vmatprep.subr.bf16.mxu1 %v6372_v37 }
 0x474   : > { %6000 = vmatpush3.bf16.msra.mxu1 %v6372_v37 }
 0x475   : > { %6001 = vmatprep.subr.bf16.mxu1 %v6373_v38 }
 0x478   : > { %6002 = vmatpush3.bf16.msra.mxu1 %v6373_v38 }
 0x479   : > { %6003 = vmatprep.subr.bf16.mxu1 %v6374_v39 }
 0x47c   : > { %6004 = vmatpush3.bf16.msra.mxu1 %v6374_v39 }
 0x47d   : > { %6005 = vmatprep.subr.bf16.mxu1 %v6375_v40 }
 0x480   : > { %6006 = vmatpush3.bf16.msra.mxu1 %v6375_v40 }
 0x481   : > { %6007 = vmatprep.subr.bf16.mxu1 %v6376_v43 }
 0x484   : > { %6008 = vmatpush3.bf16.msra.mxu1 %v6376_v43 }
 0x485   : > { %6033 = vmatprep.subr.bf16.mxu1 %v6377_v44 }
 0x487   : > { %6010 = vmatmul.mubr.bf16.vlgmr.msra.gmra.mxu1 %v7082_v63 }
 0x488   : > { %6034 = vmatpush3.bf16.msra.mxu1 %v6377_v44  ;;  %6049 = vmatprep.mubr.bf16.mxu1 %v7084_v0  ;;  %v6384_v0 = vld [vmem:[%s6995_s1 + $0x140] sm:$0xff]  }
 0x489   : > { %6035 = vmatprep.subr.bf16.mxu1 %v6378_v45 }
 0x48c   : > { %6036 = vmatpush3.bf16.msra.mxu1 %v6378_v45 }
 0x48d   : > { %6037 = vmatprep.subr.bf16.mxu1 %v6379_v46 }
 0x490   : > { %6038 = vmatpush3.bf16.msra.mxu1 %v6379_v46  ;;  %v6389_v46 = vld [vmem:[%s6964_s23 + $0x38] sm:$0xff]  }
 0x491   : > { %6039 = vmatprep.subr.bf16.mxu1 %v6380_v47 }
 0x494   : > { %6040 = vmatpush3.bf16.msra.mxu1 %v6380_v47 }
 0x495   : > { %6041 = vmatprep.subr.bf16.mxu1 %v6381_v48 }
 0x498   : > { %6042 = vmatpush3.bf16.msra.mxu1 %v6381_v48 }
 0x499   : > { %6043 = vmatprep.subr.bf16.mxu1 %v6382_v49 }
 0x49c   : > { %6044 = vmatpush3.bf16.msra.mxu1 %v6382_v49 }
 0x49d   : > { %6045 = vmatprep.subr.bf16.mxu1 %v6383_v50 }
 0x4a0   : > { %6046 = vmatpush3.bf16.msra.mxu1 %v6383_v50 }
 0x4a1   : > { %6047 = vmatprep.subr.bf16.mxu1 %v6384_v0 }
 0x4a4   : > { %6048 = vmatpush3.bf16.msra.mxu1 %v6384_v0 }
 0x4a5   : > { %6081 = vmatprep.subr.bf16.mxu1 %v6385_v51 }
 0x4a7   : > { %6050 = vmatmul.mubr.bf16.vlgmr.msra.gmra.mxu1 %v7082_v63 }
 0x4a8   : > { %6082 = vmatpush3.bf16.msra.mxu1 %v6385_v51 }
 0x4a9   : > { %6083 = vmatprep.subr.bf16.mxu1 %v6386_v52 }
 0x4ac   : > { %6084 = vmatpush3.bf16.msra.mxu1 %v6386_v52 }
 0x4ad   : > { %6085 = vmatprep.subr.bf16.mxu1 %v6387_v53 }
 0x4b0   : > { %6086 = vmatpush3.bf16.msra.mxu1 %v6387_v53 }
 0x4b1   : > { %6087 = vmatprep.subr.bf16.mxu1 %v6388_v54 }
 0x4b4   : > { %6088 = vmatpush3.bf16.msra.mxu1 %v6388_v54 }
 0x527   : > { %v5991_v55 = vpop.f32.mrf.mxu1 }
 0x528   : > { %v1288_v60 = vpack.c.bf16 %v5991_v55, %v5991_v55 }
 0x529   : > { %v1273_v56 = vpop.f32.mrf.mxu1 }
 0x52b   : > { %v5992_v57 = vpop.f32.mrf.mxu1 }
 0x52c   : > { %v6390_v57 = vld [vmem:[%s6964_s23 + $0x30] sm:$0xff]  }
 0x52d   : > { %v1276_v58 = vpop.f32.mrf.mxu1 }
 0x52e   : > { %v1287_v59 = vpack.c.bf16 %v1276_v58, %v1273_v56  ;;  %v6391_v58 = vld [vmem:[%s6964_s23 + $0x28] sm:$0xff]  }
 0x530   : > { %6089 = vmatprep.mubr.msk.bf16.mxu1 %vm1128_vm1, %v1287_v59  ;;  %v6392_v59 = vld [vmem:[%s6964_s23 + $0x20] sm:$0xff]  }
 0x531   : > { %6090 = vmatmul.mubr.msk.bf16.vlgmr.msra.gmra.mxu1 %vm1128_vm1, %v1288_v60 }
 0x532   : > { %2348 = vmatprep.mubr.bf16.mxu1 %v6824_v41 }
 0x547   : > { %v6011_v63 = vpop.f32.mrf.mxu1 }
 0x548   : > { %v1413_v2 = vadd.f32 %v6011_v63, %v5237_v62 }
 0x549   : > { %v1404_v61 = vpop.f32.mrf.mxu1 }
 0x54a   : > { %v1405_v4 = vadd.f32 %v5237_v62, %v1404_v61  ;;  %v1661_v7 = vpack.c.bf16 %v1413_v2, %v1413_v2 }
 0x54b   : > { %v6012_v1 = vpop.f32.mrf.mxu1 }
 0x54d   : > { %v1407_v3 = vpop.f32.mrf.mxu1 }
 0x54e   : > { %v1408_v5 = vadd.f32 %v5237_v62, %v1407_v3 }
 0x550   : > { %v1660_v6 = vpack.c.bf16 %v1408_v5, %v1405_v4 }
 0x552   : > { %6057 = vmatprep.mubr.msk.bf16.mxu0 %vm1128_vm1, %v1660_v6 }
 0x553   : > { %6058 = vmatmul.mubr.msk.bf16.vlgmr.msra.gmra.mxu0 %vm1128_vm1, %v1661_v7  ;;  %v6729_v7 = vld [vmem:[#allocation2 + $0x8] sm:$0x1] }
 0x567   : > { %v6051_v9 = vpop.f32.mrf.mxu1 }
 0x568   : > { %v1655_v10 = vadd.f32 %v6051_v9, %v5289_v8 }
 0x569   : > { %v1646_v11 = vpop.f32.mrf.mxu1 }
 0x56a   : > { %v1760_v12 = vpack.c.bf16 %v1655_v10, %v1655_v10  ;;  %v1647_v16 = vadd.f32 %v5289_v8, %v1646_v11  ;;  %v5322_v10 = vld [vmem:[%s6985_s19] ss:$0 sm:$0xff]  ;;  %v6730_v11 = vld [vmem:[#allocation2 + $0x28] sm:$0xff] }
 0x56b   : > { %v6052_v13 = vpop.f32.mrf.mxu1 }
 0x56c   : > { %v1768_v14 = vand.u32 %v1760_v12, %v7120_v42 }
 0x56d   : > { %v1649_v15 = vpop.f32.mrf.mxu1 }
 0x56e   : > { %v1650_v17 = vadd.f32 %v5289_v8, %v1649_v15  ;;  %6061 = vmatprep.subr.bf16.mxu0 %v1768_v14 }
 0x56f   : > { %6062 = vmatpush3.bf16.msra.mxu0 %v1768_v14 }
 0x570   : > { %v1759_v18 = vpack.c.bf16 %v1650_v17, %v1647_v16 }
 0x572   : > { %6063 = vmatprep.subr.bf16.mxu0 %v1759_v18 }
 0x573   : > { %6064 = vmatpush3.bf16.msra.mxu0 %v1759_v18  ;;  %v6731_v18 = vld [vmem:[#allocation2 + $0x10] sm:$0xff] }
 0x574   : > { %6069 = vmatprep.subr.bf16.mxu0 %v6389_v46 }
 0x5f1   : > { %v7168_v19 = vpop.f32.mrf.mxu1 }
 0x5f3   : > { %v7170_v20 = vpop.f32.mrf.mxu1 }
 0x5f5   : > { %v6092_v21 = vpop.f32.mrf.mxu1 }
 0x5f7   : > { %v1974_v13 = vpop.f32.mrf.mxu1 }
 0x613   : > { %v6059_v22 = vpop.f32.mrf.mxu0 }
 0x614   : > { %v1730_v27 = vsel %vm1196_vm3, %v6059_v22, -inf }
 0x615   : > { %v1710_v23 = vpop.f32.mrf.mxu0 }
 0x616   : > { %v1724_v24 = vsel %vm1189_vm2, %v1710_v23, -inf }
 0x617   : > { %1725 = vmax.xlane.f32.xlu0 %v1724_v24  ;;  %v6060_v25 = vpop.f32.mrf.mxu0  ;;  %v6396_v24 = vld [vmem:[%s7010_s15 + $0xe8] ss:$16 sps:$4 sm:$0xff]  }
 0x618   : > { %v6398_v25 = vld [vmem:[%s7010_s15 + $0xec] ss:$16 sps:$4 sm:$0xff]  }
 0x619   : > { %v1713_v26 = vpop.f32.mrf.mxu0  ;;  %2316 = vmatprep.subr.bf16.mxu1 %v6398_v25 }
 0x61a   : > { %v1727_v28 = vsel %vm1189_vm2, %v1713_v26, -inf  ;;  %2317 = vmatpush1.bf16.msra.mxu1 %v6396_v24 }
 0x61b   : > { %1731 = vmax.xlane.f32.xlu0 %v1730_v27  ;;  %1728 = vmax.xlane.f32.xlu1 %v1727_v28 }
 0x6a0   : > { %v1726_v29 = vpop.xlane.xlu0 %1725 }
 0x6a1   : > { %v1733_v30 = vsub.f32 %v1710_v23, %v1726_v29  ;;  %v6395_v23 = vld [vmem:[%s7010_s15 + $0xe4] ss:$16 sps:$4 sm:$0xff]  }
 0x6a3   : > { %v1736_v31 = vmul.f32 1.442695, %v1733_v30 }
 0x6a4   : > { %v1732_v32 = vpop.xlane.xlu0 %1731  ;;  %v1729_v33 = vpop.xlane.xlu1 %1728 }
 0x6a5   : > { %6627 = vpow2.f32 %v1736_v31  ;;  %v1735_v34 = vsub.f32 %v6059_v22, %v1732_v32  ;;  %v1734_v35 = vsub.f32 %v1713_v26, %v1729_v33  ;;  %v6393_v22 = vld [vmem:[%s7010_s15 + $0xe0] ss:$16 sps:$4 sm:$0xff]  }
 0x6a7   : > { %v1740_v36 = vmul.f32 1.442695, %v1735_v34  ;;  %v1738_v37 = vmul.f32 1.442695, %v1734_v35 }
 0x6a9   : > { %6629 = vpow2.f32 %v1740_v36 }
 0x6aa   : > { %6631 = vpow2.f32 %v1738_v37 }
 0x6b2   : > { %v6628_v38 = vpop.eup %6627 }
 0x6b3   : > { %v1742_v39 = vsel %vm1189_vm2, %v6628_v38, 0.0 }
 0x6b4   : > { %1743 = vadd.xlane.f32.xlu1 %v1742_v39  ;;  %v7220_v39 = vld [vmem:[#allocation2] sm:$0xff] }
 0x6b6   : > { %v6630_v40 = vpop.eup %6629 }
 0x6b7   : > { %v6632_v43 = vpop.eup %6631  ;;  %v1748_v44 = vsel %vm1196_vm3, %v6630_v40, 0.0 }
 0x6b8   : > { %1749 = vadd.xlane.f32.xlu1 %v1748_v44  ;;  %v1745_v45 = vsel %vm1189_vm2, %v6632_v43, 0.0 }
 0x6b9   : > { %1746 = vadd.xlane.f32.xlu0 %v1745_v45  ;;  %v6401_v45 = vld [vmem:[%s7010_s15 + $0xc4] ss:$16 sps:$4 sm:$0xff]  }
 0x73d   : > { %v1744_v47 = vpop.xlane.xlu1 %1743 }
 0x73e   : > { %6633 = vrcp.f32 %v1744_v47  ;;  %v6399_v47 = vld [vmem:[%s7010_s15 + $0xc0] ss:$16 sps:$4 sm:$0xff]  }
 0x741   : > { %v1750_v48 = vpop.xlane.xlu1 %1749 }
 0x742   : > { %v1747_v49 = vpop.xlane.xlu0 %1746  ;;  %6635 = vrcp.f32 %v1750_v48  ;;  %v6402_v48 = vld [vmem:[%s7010_s15 + $0xc8] ss:$16 sps:$4 sm:$0xff]  }
 0x743   : > { %6637 = vrcp.f32 %v1747_v49  ;;  %v6407_v49 = vld [vmem:[%s7010_s15 + $0xa4] ss:$16 sps:$4 sm:$0xff]  }
 0x74b   : > { %v6634_v50 = vpop.eup %6633 }
 0x74c   : > { %v1754_v53 = vmul.f32 %v6634_v50, %v6628_v38  ;;  %v6410_v50 = vld [vmem:[%s7010_s15 + $0xac] ss:$16 sps:$4 sm:$0xff]  }
 0x74f   : > { %v6636_v0 = vpop.eup %6635 }
 0x750   : > { %v6638_v51 = vpop.eup %6637  ;;  %v1756_v52 = vmul.f32 %v6636_v0, %v6630_v40  ;;  %v7222_v40 = vld [vmem:[#allocation2 + $0x18] sm:$0xff]  ;;  %v6405_v0 = vld [vmem:[%s7010_s15 + $0xa0] ss:$16 sps:$4 sm:$0xff]  }
 0x751   : > { %v1755_v54 = vmul.f32 %v6638_v51, %v6632_v43  ;;  %v7224_v43 = vld [vmem:[#allocation2 + $0x20] sm:$0x1]  ;;  %v6408_v51 = vld [vmem:[%s7010_s15 + $0xa8] ss:$16 sps:$4 sm:$0xff]  }
 0x752   : > { %v1758_v55 = vpack.c.bf16 %v1756_v52, %v1756_v52  ;;  %v2855_v44 = vsel %vm710_vm0, %v7224_v43, 0.0  ;;  %v6413_v52 = vld [vmem:[%s7010_s15 + $0x84] ss:$16 sps:$4 sm:$0xff]  }
 0x753   : > { %v1757_v56 = vpack.c.bf16 %v1755_v54, %v1754_v53  ;;  %v6416_v53 = vld [vmem:[%s7010_s15 + $0x8c] ss:$16 sps:$4 sm:$0xff]   ;;  %v6411_v54 = vld [vmem:[%s7010_s15 + $0x80] ss:$16 sps:$4 sm:$0xff]  }
 0x755   : > { %6065 = vmatprep.mubr.msk.bf16.mxu0 %vm1189_vm2, %v1757_v56  ;;  %v6419_v56 = vld [vmem:[%s7010_s15 + $0x64] ss:$16 sps:$4 sm:$0xff]  }
 0x756   : > { %6066 = vmatmul.mubr.msk.bf16.vlgmr.msra.gmra.mxu0 %vm1189_vm2, %v1758_v55  ;;  %v6414_v55 = vld [vmem:[%s7010_s15 + $0x88] ss:$16 sps:$4 sm:$0xff]  }
 0x757   : > { %6070 = vmatpush3.bf16.msra.mxu0 %v6389_v46  ;;  %v6404_v46 = vld [vmem:[%s7010_s15 + $0xcc] ss:$16 sps:$4 sm:$0xff]  }
 0x758   : > { %6071 = vmatprep.subr.bf16.mxu0 %v6390_v57  ;;  %2318 = vmatprep.subr.bf16.mxu1 %v6404_v46 }
 0x759   : > { %2319 = vmatpush1.bf16.msra.mxu1 %v6402_v48 }
 0x75a   : > { %2320 = vmatprep.subr.bf16.mxu1 %v6410_v50 }
 0x75b   : > { %6072 = vmatpush3.bf16.msra.mxu0 %v6390_v57  ;;  %v6422_v57 = vld [vmem:[%s7010_s15 + $0x6c] ss:$16 sps:$4 sm:$0xff]  }
 0x75c   : > { %6073 = vmatprep.subr.bf16.mxu0 %v6391_v58 }
 0x75d   : > { %2321 = vmatpush1.bf16.msra.mxu1 %v6408_v51 }
 0x75e   : > { %2322 = vmatprep.subr.bf16.mxu1 %v6416_v53  ;;  %v6443_v53 = vld [vmem:[%s7020_s8 + $0x38] sm:$0xff]  }
 0x75f   : > { %6074 = vmatpush3.bf16.msra.mxu0 %v6391_v58  ;;  %v6417_v58 = vld [vmem:[%s7010_s15 + $0x60] ss:$16 sps:$4 sm:$0xff]  }
 0x760   : > { %6075 = vmatprep.subr.bf16.mxu0 %v6392_v59 }
 0x761   : > { %2323 = vmatpush1.bf16.msra.mxu1 %v6414_v55  ;;  %v6445_v55 = vld [vmem:[%s7020_s8 + $0x70] sm:$0xff]  }
 0x762   : > { %2324 = vmatprep.subr.bf16.mxu1 %v6422_v57  ;;  %v6447_v57 = vld [vmem:[%s7020_s8 + $0x30] sm:$0xff]  }
 0x763   : > { %6076 = vmatpush3.bf16.msra.mxu0 %v6392_v59  ;;  %v6420_v59 = vld [vmem:[%s7010_s15 + $0x68] ss:$16 sps:$4 sm:$0xff]  }
 0x764   : > { %2265 = vmatprep.subr.bf16.mxu0 %v6395_v23 }
 0x765   : > { %2325 = vmatpush1.bf16.msra.mxu1 %v6420_v59  ;;  %v6449_v59 = vld [vmem:[%s7020_s8 + $0x68] sm:$0xff]  }
 0x816   : > { %v6067_v60 = vpop.f32.mrf.mxu0 }
 0x817   : > { %v1819_v2 = vpack.c.bf16 %v6067_v60, %v6067_v60  ;;  %v6423_v60 = vld [vmem:[%s7010_s15 + $0x40] ss:$16 sps:$4 sm:$0xff]  }
 0x818   : > { %v1804_v63 = vpop.f32.mrf.mxu0 }
 0x81a   : > { %v6068_v61 = vpop.f32.mrf.mxu0 }
 0x81b   : > { %v6426_v61 = vld [vmem:[%s7010_s15 + $0x48] ss:$16 sps:$4 sm:$0xff]  }
 0x81c   : > { %v1807_v62 = vpop.f32.mrf.mxu0 }
 0x81d   : > { %v1818_v1 = vpack.c.bf16 %v1807_v62, %v1804_v63  ;;  %v6425_v63 = vld [vmem:[%s7010_s15 + $0x44] ss:$16 sps:$4 sm:$0xff]   ;;  %v6428_v62 = vld [vmem:[%s7010_s15 + $0x4c] ss:$16 sps:$4 sm:$0xff]  }
 0x81e   : > { %2326 = vmatprep.subr.bf16.mxu1 %v6428_v62  ;;  %v6453_v62 = vld [vmem:[%s7020_s8 + $0x60] sm:$0xff]  }
 0x81f   : > { %6077 = vmatprep.mubr.msk.bf16.mxu0 %vm1128_vm1, %v1818_v1  ;;  %v6429_v1 = vld [vmem:[%s7010_s15 + $0x20] ss:$16 sps:$4 sm:$0xff]   ;;  %2327 = vmatpush1.bf16.msra.mxu1 %v6426_v61  ;;  %v6452_v61 = vld [vmem:[%s7020_s8 + $0xa8] sm:$0xff]  }
 0x820   : > { %6078 = vmatmul.mubr.msk.bf16.vlgmr.msra.gmra.mxu0 %vm1128_vm1, %v1819_v2  ;;  %v6431_v2 = vld [vmem:[%s7010_s15 + $0x24] ss:$16 sps:$4 sm:$0xff]  }
 0x821   : > { %2297 = vmatprep.mubr.bf16.mxu0 %v6824_v41  ;;  %2266 = vmatpush1.bf16.msra.mxu0 %v6393_v22 }
 0x822   : > { %2267 = vmatprep.subr.bf16.mxu0 %v6401_v45 }
 0x825   : > { %2268 = vmatpush1.bf16.msra.mxu0 %v6399_v47 }
 0x826   : > { %2269 = vmatprep.subr.bf16.mxu0 %v6407_v49 }
 0x829   : > { %2270 = vmatpush1.bf16.msra.mxu0 %v6405_v0 }
 0x82a   : > { %2271 = vmatprep.subr.bf16.mxu0 %v6413_v52  ;;  %v6442_v52 = vld [vmem:[%s7020_s8 + $0xf8] sm:$0xff]  }
 0x82d   : > { %2272 = vmatpush1.bf16.msra.mxu0 %v6411_v54  ;;  %v6444_v54 = vld [vmem:[%s7020_s8 + $0xb8] sm:$0xff]  }
 0x82e   : > { %2273 = vmatprep.subr.bf16.mxu0 %v6419_v56  ;;  %v6446_v56 = vld [vmem:[%s7020_s8 + $0xf0] sm:$0xff]  }
 0x831   : > { %2274 = vmatpush1.bf16.msra.mxu0 %v6417_v58  ;;  %v6448_v58 = vld [vmem:[%s7020_s8 + $0xb0] sm:$0xff]  }
 0x832   : > { %2275 = vmatprep.subr.bf16.mxu0 %v6425_v63  ;;  %v6451_v63 = vld [vmem:[%s7020_s8 + $0x28] sm:$0xff]  }
 0x835   : > { %2276 = vmatpush1.bf16.msra.mxu0 %v6423_v60  ;;  %v6450_v60 = vld [vmem:[%s7020_s8 + $0xe8] sm:$0xff]  }
 0x836   : > { %2277 = vmatprep.subr.bf16.mxu0 %v6431_v2  ;;  %v6455_v2 = vld [vmem:[%s7020_s8 + $0x20] sm:$0xff]  }
 0x839   : > { %2278 = vmatpush1.bf16.msra.mxu0 %v6429_v1  ;;  %v6454_v1 = vld [vmem:[%s7020_s8 + $0xe0] sm:$0xff]  }
 0x8e0   : > { %v6079_v3 = vpop.f32.mrf.mxu0 }
 0x8e1   : > { %v1980_v4 = vadd.f32 %v7168_v19, %v6079_v3  ;;  %v6432_v3 = vld [vmem:[%s7010_s15 + $0x28] ss:$16 sps:$4 sm:$0xff]  }
 0x8e2   : > { %v1893_v5 = vpop.f32.mrf.mxu0 }
 0x8e3   : > { %v1972_v6 = vadd.f32 %v7170_v20, %v1893_v5  ;;  %v1987_v8 = vadd.f32 %v6729_v7, %v1980_v4  ;;  %v6434_v4 = vld [vmem:[%s7010_s15 + $0x2c] ss:$16 sps:$4 sm:$0xff]   ;;  %v6437_v5 = vld [vmem:[%s7010_s15 + $0x4] ss:$16 sps:$4 sm:$0xff]   ;;  %v6435_v7 = vld [vmem:[%s7010_s15] ss:$16 sps:$4 sm:$0xff]  }
 0x8e4   : > { %v6080_v9 = vpop.f32.mrf.mxu0  ;;  %2328 = vmatprep.subr.bf16.mxu1 %v6434_v4  ;;  %2279 = vmatprep.subr.bf16.mxu0 %v6437_v5  ;;  %v6457_v4 = vld [vmem:[%s7020_s8 + $0x58] sm:$0xff]  }
 0x8e5   : > { %v1985_v12 = vadd.f32 %v6730_v11, %v1972_v6  ;;  %v7192_v17 = vadd.f32 %v5322_v10, %v1987_v8  ;;  %v6440_v6 = vld [vmem:[%s7010_s15 + $0xc] ss:$16 sps:$4 sm:$0xff]   ;;  %2329 = vmatpush1.bf16.msra.mxu1 %v6432_v3  ;;  %v6438_v8 = vld [vmem:[%s7010_s15 + $0x8] ss:$16 sps:$4 sm:$0xff]   ;;  %2280 = vmatpush1.bf16.msra.mxu0 %v6435_v7  ;;  %v6456_v3 = vld [vmem:[%s7020_s8 + $0xa0] sm:$0xff]  }
 0x8e6   : > { %v1896_v14 = vpop.f32.mrf.mxu0  ;;  %2330 = vmatprep.subr.bf16.mxu1 %v6440_v6  ;;  %v6458_v5 = vld [vmem:[%s7020_s8 + $0xd8] sm:$0xff]  }
 0x8e7   : > { %v1975_v15 = vadd.f32 %v1974_v13, %v1896_v14  ;;  %v7190_v16 = vadd.f32 %v5322_v10, %v1985_v12  ;;  %v2001_v21 = vsel %vm710_vm0, %v7192_v17, 0.0  ;;  %v6459_v6 = vld [vmem:[%s7020_s8 + $0x18] sm:$0xff]  }
 0x8e8   : > { %v6460_v7 = vld [vmem:[%s7020_s8 + $0x98] sm:$0xff]  }
 0x8e9   : > { %v1986_v19 = vadd.f32 %v6731_v18, %v1975_v15  ;;  %1997 = vadd.xlane.f32.xlu0 %v7190_v16  ;;  %2331 = vmatpush1.bf16.msra.mxu1 %v6438_v8  ;;  %v6461_v8 = vld [vmem:[%s7020_s8 + $0x50] sm:$0xff]  }
 0x8ea   : > { %5745 = vmatprep.subr.bf16.mxu1 %v6442_v52 }
 0x8eb   : > { %v7195_v20 = vadd.f32 %v5322_v10, %v1986_v19 }
 0x8ed   : > { %1999 = vadd.xlane.f32.xlu1 %v7195_v20  ;;  %2002 = vadd.xlane.f32.xlu0 %v2001_v21 }
 0x972   : > { %v1998_v26 = vpop.xlane.xlu0 %1997 }
 0x973   : > { %v2004_v27 = vmul.f32 0.0078125, %v1998_v26 }
 0x975   : > { %v7205_v28 = vsub.f32 %v7190_v16, %v2004_v27 }
 0x976   : > { %v2000_v29 = vpop.xlane.xlu1 %1999  ;;  %v2003_v30 = vpop.xlane.xlu0 %2002 }
 0x977   : > { %v2005_v31 = vmul.f32 0.0078125, %v2000_v29  ;;  %v2006_v32 = vmul.f32 0.0078125, %v2003_v30  ;;  %v2010_v33 = vmul.f32 %v7205_v28, %v7205_v28 }
 0x979   : > { %v7210_v34 = vsub.f32 %v7195_v20, %v2005_v31  ;;  %v7213_v35 = vsub.f32 %v7192_v17, %v2006_v32  ;;  %2013 = vadd.xlane.f32.xlu1 %v2010_v33 }
 0x97b   : > { %v2011_v36 = vmul.f32 %v7210_v34, %v7210_v34  ;;  %v2012_v37 = vmul.f32 %v7213_v35, %v7213_v35 }
 0x97d   : > { %2015 = vadd.xlane.f32.xlu0 %v2011_v36  ;;  %v2017_v38 = vsel %vm710_vm0, %v2012_v37, 0.0 }
 0x97e   : > { %2018 = vadd.xlane.f32.xlu1 %v2017_v38 }
 0x981   : > { %2851 = vadd.xlane.f32.xlu0 %v7220_v39 }
 0x982   : > { %2853 = vadd.xlane.f32.xlu1 %v7222_v40 }
 0x985   : > { %2856 = vadd.xlane.f32.xlu0 %v2855_v44 }
 0xa02   : > { %v2014_v9 = vpop.xlane.xlu1 %2013 }
 0xa03   : > { %v2020_v10 = vmul.f32 0.0078125, %v2014_v9  ;;  %v6462_v9 = vld [vmem:[%s7020_s8 + $0xd0] sm:$0xff]  }
 0xa05   : > { %v2023_v11 = vadd.f32 1e-05, %v2020_v10  ;;  %v6463_v10 = vld [vmem:[%s7020_s8 + $0x10] sm:$0xff]  }
 0xa06   : > { %v2016_v12 = vpop.xlane.xlu0 %2015 }
 0xa07   : > { %6639 = vrsqrt.f32 %v2023_v11  ;;  %v2021_v13 = vmul.f32 0.0078125, %v2016_v12  ;;  %v2019_v14 = vpop.xlane.xlu1 %2018  ;;  %v6464_v11 = vld [vmem:[%s7020_s8 + $0x90] sm:$0xff]   ;;  %v6465_v12 = vld [vmem:[%s7020_s8 + $0x48] sm:$0xff]  }
 0xa08   : > { %v2022_v15 = vmul.f32 0.0078125, %v2019_v14  ;;  %v6467_v14 = vld [vmem:[%s7020_s8 + $0x8] sm:$0xff]  }
 0xa09   : > { %v2024_v18 = vadd.f32 1e-05, %v2021_v13  ;;  %v6466_v13 = vld [vmem:[%s7020_s8 + $0xc8] sm:$0xff]  }
 0xa0a   : > { %v2025_v19 = vadd.f32 1e-05, %v2022_v15  ;;  %v2852_v21 = vpop.xlane.xlu0 %2851  ;;  %v6468_v15 = vld [vmem:[%s7020_s8 + $0x88] sm:$0xff]  }
 0xa0b   : > { %6641 = vrsqrt.f32 %v2024_v18  ;;  %v2858_v22 = vmul.f32 0.0078125, %v2852_v21  ;;  %v2854_v23 = vpop.xlane.xlu1 %2853  ;;  %v6469_v18 = vld [vmem:[%s7020_s8 + $0x40] sm:$0xff]  }
 0xa0c   : > { %6643 = vrsqrt.f32 %v2025_v19  ;;  %v2859_v24 = vmul.f32 0.0078125, %v2854_v23  ;;  %v6470_v19 = vld [vmem:[%s7020_s8 + $0xc0] sm:$0xff]   ;;  %v7314_v23 = vld [vmem:[%s6995_s1 + $0x38] sm:$0xff]  }
 0xa0d   : > { %v7259_v25 = vsub.f32 %v7220_v39, %v2858_v22  ;;  %v5323_v39 = vld [vmem:[%s6990_s5] ss:$0 sm:$0xff] }
 0xa0e   : > { %v7262_v26 = vsub.f32 %v7222_v40, %v2859_v24  ;;  %v2857_v27 = vpop.xlane.xlu0 %2856  ;;  %v6471_v21 = vld [vmem:[%s7020_s8] sm:$0xff]   ;;  %v7317_v24 = vld [vmem:[%s6995_s1 + $0xb8] sm:$0xff]  }
 0xa0f   : > { %v2860_v29 = vmul.f32 0.0078125, %v2857_v27  ;;  %v2864_v30 = vmul.f32 %v7259_v25, %v7259_v25  ;;  %v6472_v22 = vld [vmem:[%s7020_s8 + $0x80] sm:$0xff]   ;;  %v2085_v27 = vlaneseq }
 0xa10   : > { %v2865_v31 = vmul.f32 %v7262_v26, %v7262_v26 }
 0xa11   : > { %v7269_v32 = vsub.f32 %v7224_v43, %v2860_v29  ;;  %2867 = vadd.xlane.f32.xlu1 %v2864_v30  ;;  %v5324_v43 = vld [vmem:[%s7000_s2] ss:$0 sm:$0xff]  ;;  %v2086_v29 = vshrl.u32 %v2085_v27, 7 }
 0xa12   : > { %2869 = vadd.xlane.f32.xlu0 %v2865_v31 }
 0xa13   : > { %v2866_v33 = vmul.f32 %v7269_v32, %v7269_v32  ;;  %v2087_v30 = vsub.s32 0, %v2086_v29  ;;  %v2095_v31 = vsub.s32 2, %v2086_v29 }
 0xa14   : > { %v6640_v36 = vpop.eup %6639 }
 0xa15   : > { %v2871_v37 = vsel %vm710_vm0, %v2866_v33, 0.0  ;;  %v2029_v38 = vmul.f32 %v6640_v36, %v7205_v28  ;;  %v701_v33 = vld [vmem:[%s7015_s24] sm:$0xf]  ;;  %v2091_v36 = vsub.s32 1, %v2086_v29 }
 0xa16   : > { %2872 = vadd.xlane.f32.xlu1 %v2871_v37  ;;  %v2099_v37 = vsub.s32 3, %v2086_v29 }
 0xa17   : > { %v2038_v46 = vmul.f32 %v5323_v39, %v2029_v38  ;;  %v7322_v38 = vrot.slane %v701_v33, %v2087_v30 }
 0xa18   : > { %v6642_v40 = vpop.eup %6641 }
 0xa19   : > { %v6644_v44 = vpop.eup %6643  ;;  %v2030_v45 = vmul.f32 %v6642_v40, %v7210_v34  ;;  %v2047_v49 = vadd.f32 %v5324_v43, %v2038_v46  ;;  %v7326_v40 = vrot.slane %v701_v33, %v2091_v36 }
 0xa1a   : > { %v2031_v48 = vmul.f32 %v6644_v44, %v7213_v35  ;;  %v6441_v35 = vld [vmem:[%s7020_s8 + $0x78] sm:$0xff]   ;;  %v7328_v44 = vrot.slane %v701_v33, %v2099_v37 }
 0xa1b   : > { %v2039_v47 = vmul.f32 %v5323_v39, %v2030_v45  ;;  %5717 = vmatprep.subr.bf16.mxu0 %v6441_v35 }
 0xa1c   : > { %v2040_v51 = vmul.f32 %v5323_v39, %v2031_v48  ;;  %v7324_v39 = vrot.slane %v701_v33, %v2095_v31 }
 0xa1d   : > { %v2048_v50 = vadd.f32 %v5324_v43, %v2039_v47 }
 0xa1e   : > { %v2049_v28 = vadd.f32 %v5324_v43, %v2040_v51 }
 0xa1f   : > { %v2050_v0 = vpack.c.bf16 %v2048_v50, %v2047_v49 }
 0xa20   : > { %v2051_v34 = vpack.c.bf16 %v2049_v28, %v2049_v28 }
 0xa21   : > { %2298 = vmatmul.mubr.bf16.vlgmr.msra.gmra.mxu0 %v2050_v0  ;;  %2349 = vmatmul.mubr.bf16.vlgmr.msra.gmra.mxu1 %v2050_v0 }
 0xa22   : > { %2307 = vmatprep.mubr.bf16.mxu0 %v6824_v41  ;;  %2358 = vmatprep.mubr.bf16.mxu1 %v6824_v41 }
 0xa23   : > { %5718 = vmatpush3.bf16.msra.mxu0 %v6443_v53  ;;  %5746 = vmatpush3.bf16.msra.mxu1 %v6444_v54 }
 0xa24   : > { %5719 = vmatprep.subr.bf16.mxu0 %v6445_v55  ;;  %5747 = vmatprep.subr.bf16.mxu1 %v6446_v56 }
 0xa27   : > { %5720 = vmatpush3.bf16.msra.mxu0 %v6447_v57  ;;  %5748 = vmatpush3.bf16.msra.mxu1 %v6448_v58 }
 0xa28   : > { %5721 = vmatprep.subr.bf16.mxu0 %v6449_v59  ;;  %5749 = vmatprep.subr.bf16.mxu1 %v6450_v60 }
 0xa29   : > { %2308 = vmatmul.mubr.bf16.gmra.mxu0 %v2051_v34  ;;  %2359 = vmatmul.mubr.bf16.gmra.mxu1 %v2051_v34 }
 0xa2b   : > { %5722 = vmatpush3.bf16.msra.mxu0 %v6451_v63  ;;  %5750 = vmatpush3.bf16.msra.mxu1 %v6452_v61 }
 0xa2c   : > { %5723 = vmatprep.subr.bf16.mxu0 %v6453_v62  ;;  %5751 = vmatprep.subr.bf16.mxu1 %v6454_v1 }
 0xa2f   : > { %5724 = vmatpush3.bf16.msra.mxu0 %v6455_v2  ;;  %5752 = vmatpush3.bf16.msra.mxu1 %v6456_v3 }
 0xa30   : > { %5725 = vmatprep.subr.bf16.mxu0 %v6457_v4  ;;  %5753 = vmatprep.subr.bf16.mxu1 %v6458_v5 }
 0xa33   : > { %5726 = vmatpush3.bf16.msra.mxu0 %v6459_v6  ;;  %5754 = vmatpush3.bf16.msra.mxu1 %v6460_v7 }
 0xa34   : > { %5727 = vmatprep.subr.bf16.mxu0 %v6461_v8  ;;  %5755 = vmatprep.subr.bf16.mxu1 %v6462_v9 }
 0xa37   : > { %5728 = vmatpush3.bf16.msra.mxu0 %v6463_v10  ;;  %5756 = vmatpush3.bf16.msra.mxu1 %v6464_v11 }
 0xa38   : > { %5729 = vmatprep.subr.bf16.mxu0 %v6465_v12  ;;  %5757 = vmatprep.subr.bf16.mxu1 %v6466_v13 }
 0xa3b   : > { %5730 = vmatpush3.bf16.msra.mxu0 %v6467_v14  ;;  %5758 = vmatpush3.bf16.msra.mxu1 %v6468_v15 }
 0xa3c   : > { %5731 = vmatprep.subr.bf16.mxu0 %v6469_v18  ;;  %5759 = vmatprep.subr.bf16.mxu1 %v6470_v19 }
 0xa3f   : > { %5732 = vmatpush3.bf16.msra.mxu0 %v6471_v21  ;;  %5760 = vmatpush3.bf16.msra.mxu1 %v6472_v22 }
 0xa40   : > { %6093 = vmatprep.subr.bf16.mxu0 %v7314_v23  ;;  %6113 = vmatprep.subr.bf16.mxu1 %v7317_v24 }
 0xa9a   : > { %v2868_v50 = vpop.xlane.xlu1 %2867 }
 0xa9b   : > { %v2870_v0 = vpop.xlane.xlu0 %2869  ;;  %v2874_v58 = vmul.f32 0.0078125, %v2868_v50 }
 0xa9c   : > { %v7352_v59 = vmul.f32 0.0078125, %v2870_v0 }
 0xae1   : > { %v2299_v45 = vpop.f32.mrf.mxu0  ;;  %v2350_v46 = vpop.f32.mrf.mxu1 }
 0xae2   : > { %v7331_v43 = vadd.f32 %v2299_v45, %v7322_v38  ;;  %v7334_v47 = vadd.f32 %v2350_v46, %v7324_v39 }
 0xae3   : > { %v2301_v48 = vpop.f32.mrf.mxu0  ;;  %v2352_v49 = vpop.f32.mrf.mxu1 }
 0xae4   : > { %v2367_v51 = vmul.f32 %v7331_v43, %v7331_v43  ;;  %v2369_v28 = vmul.f32 %v7334_v47, %v7334_v47  ;;  %v7341_v34 = vadd.f32 %v2301_v48, %v7326_v40  ;;  %v7344_v35 = vadd.f32 %v2352_v49, %v7328_v44 }
 0xae5   : > { %v2303_v52 = vpop.f32.mrf.mxu0  ;;  %v2354_v53 = vpop.f32.mrf.mxu1 }
 0xae6   : > { %v2379_v54 = vmul.f32 %v2367_v51, %v7331_v43  ;;  %v2381_v55 = vmul.f32 %v2369_v28, %v7334_v47  ;;  %v2368_v56 = vmul.f32 %v7341_v34, %v7341_v34  ;;  %v2370_v57 = vmul.f32 %v7344_v35, %v7344_v35 }
 0xae7   : > { %v7355_v60 = vadd.f32 %v2303_v52, %v7322_v38  ;;  %v7358_v63 = vadd.f32 %v2354_v53, %v7324_v39  ;;  %v2305_v61 = vpop.f32.mrf.mxu0  ;;  %v2356_v62 = vpop.f32.mrf.mxu1 }
 0xae8   : > { %v2391_v1 = vmul.f32 0.044715, %v2379_v54  ;;  %v2393_v2 = vmul.f32 0.044715, %v2381_v55  ;;  %v2380_v3 = vmul.f32 %v2368_v56, %v7341_v34  ;;  %v2382_v4 = vmul.f32 %v2370_v57, %v7344_v35 }
 0xae9   : > { %v2371_v5 = vmul.f32 %v7355_v60, %v7355_v60  ;;  %v2373_v6 = vmul.f32 %v7358_v63, %v7358_v63  ;;  %v7367_v7 = vadd.f32 %v2305_v61, %v7326_v40  ;;  %v7370_v8 = vadd.f32 %v2356_v62, %v7328_v44  ;;  %v2309_v9 = vpop.f32.mrf.mxu0  ;;  %v2360_v10 = vpop.f32.mrf.mxu1 }
 0xaea   : > { %v2403_v11 = vadd.f32 %v2391_v1, %v7331_v43  ;;  %v2405_v12 = vadd.f32 %v2393_v2, %v7334_v47  ;;  %v2392_v13 = vmul.f32 0.044715, %v2380_v3  ;;  %v2394_v14 = vmul.f32 0.044715, %v2382_v4 }
 0xaeb   : > { %v2383_v15 = vmul.f32 %v2371_v5, %v7355_v60  ;;  %v2385_v18 = vmul.f32 %v2373_v6, %v7358_v63  ;;  %v2372_v19 = vmul.f32 %v7367_v7, %v7367_v7  ;;  %v2374_v21 = vmul.f32 %v7370_v8, %v7370_v8  ;;  %v2311_v22 = vpop.f32.mrf.mxu0  ;;  %v2362_v27 = vpop.f32.mrf.mxu1 }
 0xaec   : > { %v2415_v29 = vmul.f32 0.7978846, %v2403_v11  ;;  %v2417_v30 = vmul.f32 0.7978846, %v2405_v12  ;;  %v2404_v31 = vadd.f32 %v2392_v13, %v7341_v34  ;;  %v2406_v33 = vadd.f32 %v2394_v14, %v7344_v35 }
 0xaed   : > { %v2395_v36 = vmul.f32 0.044715, %v2383_v15  ;;  %v2397_v37 = vmul.f32 0.044715, %v2385_v18  ;;  %v2384_v45 = vmul.f32 %v2372_v19, %v7367_v7  ;;  %v2386_v46 = vmul.f32 %v2374_v21, %v7370_v8  ;;  %v2313_v48 = vpop.f32.mrf.mxu0  ;;  %v2364_v49 = vpop.f32.mrf.mxu1 }
 0xaee   : > { %6645 = vtanh.f32 %v2415_v29  ;;  %v2416_v50 = vmul.f32 0.7978846, %v2404_v31  ;;  %v2418_v0 = vmul.f32 0.7978846, %v2406_v33  ;;  %v7385_v51 = vadd.f32 %v2309_v9, %v7322_v38 }
 0xaef   : > { %6647 = vtanh.f32 %v2417_v30  ;;  %v2407_v28 = vadd.f32 %v2395_v36, %v7355_v60  ;;  %v2409_v52 = vadd.f32 %v2397_v37, %v7358_v63  ;;  %v2396_v53 = vmul.f32 0.044715, %v2384_v45  ;;  %v2314_v54 = vpop.f32.mrf.mxu0  ;;  %v2365_v55 = vpop.f32.mrf.mxu1 }
 0xaf0   : > { %6649 = vtanh.f32 %v2416_v50  ;;  %v2398_v56 = vmul.f32 0.044715, %v2386_v46  ;;  %v2375_v57 = vmul.f32 %v7385_v51, %v7385_v51  ;;  %v7392_v61 = vadd.f32 %v2360_v10, %v7324_v39 }
 0xaf1   : > { %6651 = vtanh.f32 %v2418_v0  ;;  %v2419_v62 = vmul.f32 0.7978846, %v2407_v28  ;;  %v2421_v1 = vmul.f32 0.7978846, %v2409_v52  ;;  %v2408_v2 = vadd.f32 %v2396_v53, %v7367_v7 }
 0xaf2   : > { %v2410_v3 = vadd.f32 %v2398_v56, %v7370_v8  ;;  %v2387_v4 = vmul.f32 %v2375_v57, %v7385_v51  ;;  %v2377_v5 = vmul.f32 %v7392_v61, %v7392_v61  ;;  %v7400_v6 = vadd.f32 %v2311_v22, %v7326_v40 }
 0xaf3   : > { %v2877_v9 = vadd.f32 1e-05, %v2874_v58  ;;  %6653 = vtanh.f32 %v2419_v62  ;;  %v2420_v11 = vmul.f32 0.7978846, %v2408_v2  ;;  %v7403_v10 = vadd.f32 %v2362_v27, %v7328_v44 }
 0xaf4   : > { %6655 = vtanh.f32 %v2421_v1  ;;  %v2422_v12 = vmul.f32 0.7978846, %v2410_v3  ;;  %v2399_v13 = vmul.f32 0.044715, %v2387_v4  ;;  %v2389_v14 = vmul.f32 %v2377_v5, %v7392_v61 }
 0xaf5   : > { %v2878_v15 = vadd.f32 1e-05, %v7352_v59  ;;  %6657 = vtanh.f32 %v2420_v11  ;;  %v2376_v18 = vmul.f32 %v7400_v6, %v7400_v6  ;;  %v2378_v19 = vmul.f32 %v7403_v10, %v7403_v10 }
 0xaf6   : > { %6659 = vtanh.f32 %v2422_v12  ;;  %v2411_v58 = vadd.f32 %v2399_v13, %v7385_v51  ;;  %v2401_v21 = vmul.f32 0.044715, %v2389_v14 }
 0xaf7   : > { %v2388_v22 = vmul.f32 %v2376_v18, %v7400_v6  ;;  %v2390_v27 = vmul.f32 %v2378_v19, %v7403_v10  ;;  %6661 = vrsqrt.f32 %v2877_v9  ;;  %v2873_v9 = vpop.xlane.xlu1 %2872 }
 0xaf8   : > { %v2423_v29 = vmul.f32 0.7978846, %v2411_v58  ;;  %v2413_v30 = vadd.f32 %v2401_v21, %v7392_v61  ;;  %6663 = vrsqrt.f32 %v2878_v15 }
 0xaf9   : > { %v2400_v59 = vmul.f32 0.044715, %v2388_v22  ;;  %v2402_v31 = vmul.f32 0.044715, %v2390_v27 }
 0xafa   : > { %6665 = vtanh.f32 %v2423_v29  ;;  %v2425_v33 = vmul.f32 0.7978846, %v2413_v30  ;;  %v2876_v29 = vmul.f32 0.0078125, %v2873_v9 }
 0xafb   : > { %v6646_v36 = vpop.eup %6645  ;;  %v2412_v37 = vadd.f32 %v2400_v59, %v7400_v6  ;;  %v2414_v45 = vadd.f32 %v2402_v31, %v7403_v10 }
 0xafc   : > { %v6648_v46 = vpop.eup %6647  ;;  %6667 = vtanh.f32 %v2425_v33  ;;  %v2439_v53 = vadd.f32 1.0, %v6646_v36 }
 0xafd   : > { %v6650_v48 = vpop.eup %6649  ;;  %v2424_v49 = vmul.f32 0.7978846, %v2412_v37  ;;  %v2426_v50 = vmul.f32 0.7978846, %v2414_v45  ;;  %v2441_v56 = vadd.f32 1.0, %v6648_v46 }
 0xafe   : > { %v6652_v0 = vpop.eup %6651  ;;  %v2440_v28 = vadd.f32 1.0, %v6650_v48  ;;  %v2451_v11 = vmul.f32 0.5, %v2439_v53 }
 0xaff   : > { %6669 = vtanh.f32 %v2424_v49  ;;  %v2442_v54 = vadd.f32 1.0, %v6652_v0  ;;  %v2453_v18 = vmul.f32 0.5, %v2441_v56 }
 0xb00   : > { %v6654_v52 = vpop.eup %6653  ;;  %6671 = vtanh.f32 %v2426_v50  ;;  %v2452_v5 = vmul.f32 0.5, %v2440_v28  ;;  %v2463_v33 = vmul.f32 %v2451_v11, %v7331_v43  ;;  %v2879_v43 = vadd.f32 1e-05, %v2876_v29  ;;  %v6486_v29 = vld [vmem:[%s6995_s1 + $0x88] sm:$0xff]  }
 0xb01   : > { %v6656_v55 = vpop.eup %6655  ;;  %v2443_v57 = vadd.f32 1.0, %v6654_v52  ;;  %v2454_v14 = vmul.f32 0.5, %v2442_v54 }
 0xb02   : > { %v6658_v62 = vpop.eup %6657  ;;  %v2445_v1 = vadd.f32 1.0, %v6656_v55  ;;  %v2464_v59 = vmul.f32 %v2452_v5, %v7341_v34  ;;  %6673 = vrsqrt.f32 %v2879_v43  ;;  %v6733_v5 = vld [vmem:[%s6980_s18] ss:$0 sm:$0xff]  ;;  %v6501_v43 = vld [vmem:[%s6995_s1 + $0xd8] sm:$0xff]  }
 0xb03   : > { %v6660_v2 = vpop.eup %6659  ;;  %v2455_v3 = vmul.f32 0.5, %v2443_v57  ;;  %v2444_v4 = vadd.f32 1.0, %v6658_v62  ;;  %v2466_v36 = vmul.f32 %v2454_v14, %v7344_v35  ;;  %v6476_v35 = vld [vmem:[%s6995_s1 + $0xb0] sm:$0xff]   ;;  %v6477_v57 = vld [vmem:[%s6995_s1 + $0x28] sm:$0xff]  }
 0xb04   : > { %v2457_v12 = vmul.f32 0.5, %v2445_v1  ;;  %v2446_v13 = vadd.f32 1.0, %v6660_v2  ;;  %v6662_v15 = vpop.eup %6661  ;;  %v6478_v1 = vld [vmem:[%s6995_s1 + $0xa8] sm:$0xff]  }
 0xb05   : > { %v2456_v19 = vmul.f32 0.5, %v2444_v4  ;;  %v6664_v58 = vpop.eup %6663  ;;  %v2467_v21 = vmul.f32 %v2455_v3, %v7355_v60  ;;  %v2883_v60 = vmul.f32 %v6662_v15, %v7259_v25  ;;  %v6480_v15 = vld [vmem:[%s6995_s1 + $0xa0] sm:$0xff]  }
 0xb06   : > { %v2458_v22 = vmul.f32 0.5, %v2446_v13  ;;  %v2469_v30 = vmul.f32 %v2457_v12, %v7358_v63  ;;  %v2884_v48 = vmul.f32 %v6664_v58, %v7262_v26  ;;  %v2465_v63 = vmul.f32 %v2453_v18, %v7334_v47  ;;  %v6732_v26 = vld [vmem:[%s6975_s25] ss:$0 sm:$0xff]  ;;  %v6482_v18 = vld [vmem:[%s6995_s1 + $0x98] sm:$0xff]  }
 0xb07   : > { %v6666_v27 = vpop.eup %6665  ;;  %v2468_v31 = vmul.f32 %v2456_v19, %v7367_v7  ;;  %v2475_v34 = vpack.c.bf16 %v2467_v21, %v2463_v33  ;;  %v6475_v7 = vld [vmem:[%s6995_s1 + $0x30] sm:$0xff]   ;;  %v2886_v53 = vmul.f32 %v6732_v26, %v2883_v60  ;;  %v6493_v60 = vld [vmem:[%s6995_s1 + $0x118] sm:$0xff]  }
 0xb08   : > { %v2470_v37 = vmul.f32 %v2458_v22, %v7370_v8  ;;  %v2447_v45 = vadd.f32 1.0, %v6666_v27  ;;  %v2477_v28 = vpack.c.bf16 %v2469_v30, %v2465_v63  ;;  %v2887_v54 = vmul.f32 %v6732_v26, %v2884_v48  ;;  %v6483_v19 = vld [vmem:[%s6995_s1 + $0x10] sm:$0xff]   ;;  %v6485_v27 = vld [vmem:[%s6995_s1 + $0x8] sm:$0xff]  }
 0xb09   : > { %v6668_v46 = vpop.eup %6667  ;;  %v2476_v49 = vpack.c.bf16 %v2468_v31, %v2464_v59  ;;  %v2889_v9 = vadd.f32 %v6733_v5, %v2886_v53  ;;  %v6484_v21 = vld [vmem:[%s6995_s1 + $0x90] sm:$0xff]   ;;  %v6487_v59 = vld [vmem:[%s6995_s1] sm:$0xff]   ;;  %v6495_v63 = vld [vmem:[%s6995_s1 + $0x108] sm:$0xff]  }
 0xb0a   : > { %v2478_v50 = vpack.c.bf16 %v2470_v37, %v2466_v36  ;;  %v2449_v0 = vadd.f32 1.0, %v6668_v46  ;;  %v2459_v52 = vmul.f32 0.5, %v2447_v45  ;;  %v6488_v31 = vld [vmem:[%s6995_s1 + $0x80] sm:$0xff]   ;;  %v6489_v36 = vld [vmem:[%s6995_s1 + $0x138] sm:$0xff]   ;;  %v6490_v37 = vld [vmem:[%s6995_s1 + $0x130] sm:$0xff]  }
 0xb0b   : > { %2777 = vmatprep.mubr.bf16.mxu0 %v2476_v49  ;;  %v6491_v45 = vld [vmem:[%s6995_s1 + $0x128] sm:$0xff]   ;;  %v6492_v46 = vld [vmem:[%s6995_s1 + $0x120] sm:$0xff]   ;;  %v6494_v48 = vld [vmem:[%s6995_s1 + $0x110] sm:$0xff]  }
 0xb0c   : > { %v6670_v8 = vpop.eup %6669  ;;  %2825 = vmatprep.mubr.bf16.mxu1 %v2478_v50  ;;  %2778 = vmatmul.mubr.bf16.vlgmr.msra.gmra.mxu0 %v2475_v34  ;;  %v2461_v55 = vmul.f32 0.5, %v2449_v0  ;;  %v2471_v3 = vmul.f32 %v2459_v52, %v7385_v51  ;;  %v6496_v49 = vld [vmem:[%s6995_s1 + $0x100] sm:$0xff]   ;;  %v6497_v34 = vld [vmem:[%s6995_s1 + $0xf8] sm:$0xff]   ;;  %v6498_v50 = vld [vmem:[%s6995_s1 + $0xf0] sm:$0xff]  }
 0xb0d   : > { %v6672_v25 = vpop.eup %6671  ;;  %2826 = vmatmul.mubr.bf16.vlgmr.msra.gmra.mxu1 %v2477_v28  ;;  %6094 = vmatpush3.bf16.msra.mxu0 %v7314_v23  ;;  %v2448_v47 = vadd.f32 1.0, %v6670_v8  ;;  %v6500_v0 = vld [vmem:[%s6995_s1 + $0xe0] sm:$0xff]   ;;  %v6502_v28 = vld [vmem:[%s6995_s1 + $0xd0] sm:$0xff]  }
 0xb0e   : > { %6114 = vmatpush3.bf16.msra.mxu1 %v7317_v24  ;;  %v2450_v56 = vadd.f32 1.0, %v6672_v25  ;;  %6095 = vmatprep.subr.bf16.mxu0 %v6475_v7  ;;  %v2473_v23 = vmul.f32 %v2461_v55, %v7392_v61  ;;  %v2890_v24 = vadd.f32 %v6733_v5, %v2887_v54  ;;  %v2479_v14 = vpack.c.bf16 %v2471_v3, %v2471_v3  ;;  %v6479_v61 = vld [vmem:[%s6995_s1 + $0x20] sm:$0xff]  }
 0xb0f   : > { %v2460_v62 = vmul.f32 0.5, %v2448_v47  ;;  %6115 = vmatprep.subr.bf16.mxu1 %v6476_v35  ;;  %v6674_v58 = vpop.eup %6673  ;;  %v6504_v8 = vld [vmem:[%s6995_s1 + $0xc0] sm:$0xff]  }
 0xb10   : > { %v2462_v2 = vmul.f32 0.5, %v2450_v56  ;;  %v2481_v51 = vpack.c.bf16 %v2473_v23, %v2473_v23  ;;  %v2885_v22 = vmul.f32 %v6674_v58, %v7269_v32 }
 0xb11   : > { %v2472_v4 = vmul.f32 %v2460_v62, %v7400_v6  ;;  %6096 = vmatpush3.bf16.msra.mxu0 %v6475_v7  ;;  %v7439_v6 = vpack.c.bf16 %v2890_v24, %v2889_v9  ;;  %v6499_v7 = vld [vmem:[%s6995_s1 + $0xe8] sm:$0xff]  }
 0xb12   : > { %v2474_v11 = vmul.f32 %v2462_v2, %v7403_v10  ;;  %6116 = vmatpush3.bf16.msra.mxu1 %v6476_v35  ;;  %6097 = vmatprep.subr.bf16.mxu0 %v6477_v57  ;;  %v6481_v10 = vld [vmem:[%s6995_s1 + $0x18] sm:$0xff]   ;;  %v2888_v30 = vmul.f32 %v6732_v26, %v2885_v22  ;;  %v6503_v35 = vld [vmem:[%s6995_s1 + $0xc8] sm:$0xff]   ;;  %v5357_v26 = vld [vmem:[%s7025_s4] ss:$0 sm:$0xff] }
 0xb13   : > { %v2480_v12 = vpack.c.bf16 %v2472_v4, %v2472_v4  ;;  %6117 = vmatprep.subr.bf16.mxu1 %v6478_v1 }
 0xb14   : > { %v2482_v13 = vpack.c.bf16 %v2474_v11, %v2474_v11  ;;  %v2891_v33 = vadd.f32 %v6733_v5, %v2888_v30 }
 0xb15   : > { %2785 = vmatprep.mubr.bf16.mxu0 %v2480_v12  ;;  %6098 = vmatpush3.bf16.msra.mxu0 %v6477_v57 }
 0xb16   : > { %2833 = vmatprep.mubr.bf16.mxu1 %v2482_v13  ;;  %2786 = vmatmul.mubr.bf16.gmra.mxu0 %v2479_v14  ;;  %v7455_v32 = vpack.c.bf16 %v2891_v33, %v2891_v33 }
 0xb17   : > { %2834 = vmatmul.mubr.bf16.gmra.mxu1 %v2481_v51  ;;  %6109 = vmatprep.mubr.bf16.mxu0 %v7439_v6 }
 0xb18   : > { %6118 = vmatpush3.bf16.msra.mxu1 %v6478_v1  ;;  %6129 = vmatprep.mubr.bf16.mxu1 %v7439_v6 }
 0xb19   : > { %6099 = vmatprep.subr.bf16.mxu0 %v6479_v61  ;;  %6119 = vmatprep.subr.bf16.mxu1 %v6480_v15 }
 0xb1a   : > { %6100 = vmatpush3.bf16.msra.mxu0 %v6479_v61 }
 0xb1b   : > { %6101 = vmatprep.subr.bf16.mxu0 %v6481_v10 }
 0xb1c   : > { %6120 = vmatpush3.bf16.msra.mxu1 %v6480_v15 }
 0xb1d   : > { %6121 = vmatprep.subr.bf16.mxu1 %v6482_v18 }
 0xb1e   : > { %6102 = vmatpush3.bf16.msra.mxu0 %v6481_v10 }
 0xb1f   : > { %6103 = vmatprep.subr.bf16.mxu0 %v6483_v19 }
 0xb20   : > { %6122 = vmatpush3.bf16.msra.mxu1 %v6482_v18 }
 0xb21   : > { %6123 = vmatprep.subr.bf16.mxu1 %v6484_v21 }
 0xb22   : > { %6104 = vmatpush3.bf16.msra.mxu0 %v6483_v19 }
 0xb23   : > { %6105 = vmatprep.subr.bf16.mxu0 %v6485_v27 }
 0xb24   : > { %6124 = vmatpush3.bf16.msra.mxu1 %v6484_v21 }
 0xb25   : > { %6125 = vmatprep.subr.bf16.mxu1 %v6486_v29 }
 0xb26   : > { %6106 = vmatpush3.bf16.msra.mxu0 %v6485_v27 }
 0xb27   : > { %6107 = vmatprep.subr.bf16.mxu0 %v6487_v59 }
 0xb28   : > { %6126 = vmatpush3.bf16.msra.mxu1 %v6486_v29  ;;  %v5416_v29 = vld [vmem:[%s7005_s17 + $0x2] ss:$0 sm:$0xff] }
 0xb29   : > { %6127 = vmatprep.subr.bf16.mxu1 %v6488_v31 }
 0xb2a   : > { %6108 = vmatpush3.bf16.msra.mxu0 %v6487_v59 }
 0xb2b   : > { %6133 = vmatprep.subr.bf16.mxu0 %v6489_v36 }
 0xb2c   : > { %6128 = vmatpush3.bf16.msra.mxu1 %v6488_v31 }
 0xb2d   : > { %6110 = vmatmul.mubr.bf16.vlgmr.msra.gmra.mxu0 %v7455_v32 }
 0xb2e   : > { %6134 = vmatpush3.bf16.msra.mxu0 %v6489_v36  ;;  %6149 = vmatprep.mubr.bf16.mxu0 %v7439_v6 }
 0xb2f   : > { %6130 = vmatmul.mubr.bf16.vlgmr.msra.gmra.mxu1 %v7455_v32  ;;  %6135 = vmatprep.subr.bf16.mxu0 %v6490_v37 }
 0xb32   : > { %6136 = vmatpush3.bf16.msra.mxu0 %v6490_v37  ;;  %v5390_v37 = vld [vmem:[%s7005_s17] ss:$0 sm:$0xff] }
 0xb33   : > { %6137 = vmatprep.subr.bf16.mxu0 %v6491_v45 }
 0xb36   : > { %6138 = vmatpush3.bf16.msra.mxu0 %v6491_v45 }
 0xb37   : > { %6139 = vmatprep.subr.bf16.mxu0 %v6492_v46 }
 0xb3a   : > { %6140 = vmatpush3.bf16.msra.mxu0 %v6492_v46 }
 0xb3b   : > { %6141 = vmatprep.subr.bf16.mxu0 %v6493_v60 }
 0xb3e   : > { %6142 = vmatpush3.bf16.msra.mxu0 %v6493_v60 }
 0xb3f   : > { %6143 = vmatprep.subr.bf16.mxu0 %v6494_v48 }
 0xb42   : > { %6144 = vmatpush3.bf16.msra.mxu0 %v6494_v48 }
 0xb43   : > { %6145 = vmatprep.subr.bf16.mxu0 %v6495_v63 }
 0xb46   : > { %6146 = vmatpush3.bf16.msra.mxu0 %v6495_v63 }
 0xb47   : > { %6147 = vmatprep.subr.bf16.mxu0 %v6496_v49 }
 0xb4a   : > { %6148 = vmatpush3.bf16.msra.mxu0 %v6496_v49 }
 0xb4b   : > { %6189 = vmatprep.subr.bf16.mxu0 %v6497_v34 }
 0xb4d   : > { %6150 = vmatmul.mubr.bf16.vlgmr.msra.gmra.mxu0 %v7455_v32 }
 0xb4e   : > { %6190 = vmatpush3.bf16.msra.mxu0 %v6497_v34  ;;  %6205 = vmatprep.mubr.bf16.mxu0 %v7439_v6 }
 0xb4f   : > { %6191 = vmatprep.subr.bf16.mxu0 %v6498_v50 }
 0xb52   : > { %6192 = vmatpush3.bf16.msra.mxu0 %v6498_v50 }
 0xb53   : > { %6193 = vmatprep.subr.bf16.mxu0 %v6499_v7 }
 0xb56   : > { %6194 = vmatpush3.bf16.msra.mxu0 %v6499_v7 }
 0xb57   : > { %6195 = vmatprep.subr.bf16.mxu0 %v6500_v0 }
 0xb5a   : > { %6196 = vmatpush3.bf16.msra.mxu0 %v6500_v0 }
 0xb5b   : > { %6197 = vmatprep.subr.bf16.mxu0 %v6501_v43 }
 0xb5e   : > { %6198 = vmatpush3.bf16.msra.mxu0 %v6501_v43 }
 0xb5f   : > { %6199 = vmatprep.subr.bf16.mxu0 %v6502_v28 }
 0xb62   : > { %6200 = vmatpush3.bf16.msra.mxu0 %v6502_v28 }
 0xb63   : > { %6201 = vmatprep.subr.bf16.mxu0 %v6503_v35 }
 0xb66   : > { %6202 = vmatpush3.bf16.msra.mxu0 %v6503_v35  ;;  %v5442_v35 = vld [vmem:[%s7005_s17 + $0x4] ss:$0 sm:$0xff] }
 0xb67   : > { %6203 = vmatprep.subr.bf16.mxu0 %v6504_v8 }
 0xb6a   : > { %6204 = vmatpush3.bf16.msra.mxu0 %v6504_v8 }
 0xb6d   : > { %6206 = vmatmul.mubr.bf16.vlgmr.msra.gmra.mxu0 %v7455_v32 }
 0xbcc   : > { %v5733_v52 = vpop.f32.mrf.mxu0 }
 0xbcd   : > { %v5761_v25 = vpop.f32.mrf.mxu1 }
 0xbce   : > { %v5734_v53 = vpop.f32.mrf.mxu0 }
 0xbcf   : > { %v5735_v54 = vadd.f32 %v5734_v53, %v5733_v52  ;;  %v5762_v47 = vpop.f32.mrf.mxu1 }
 0xbd0   : > { %v5736_v55 = vpop.f32.mrf.mxu0  ;;  %v5763_v57 = vadd.f32 %v5762_v47, %v5761_v25 }
 0xbd1   : > { %v2780_v56 = vadd.f32 %v5735_v54, %v5357_v26  ;;  %v5764_v62 = vpop.f32.mrf.mxu1 }
 0xbd2   : > { %v5737_v1 = vpop.f32.mrf.mxu0 }
 0xbd3   : > { %v2828_v2 = vadd.f32 %v5763_v57, %v2780_v56  ;;  %v5738_v3 = vadd.f32 %v5737_v1, %v5736_v55  ;;  %v5765_v4 = vpop.f32.mrf.mxu1 }
 0xbd4   : > { %v5766_v9 = vadd.f32 %v5765_v4, %v5764_v62  ;;  %v5498_v62 = vld [vmem:[%s7005_s17 + $0x3] ss:$0 sm:$0xff] }
 0xbd5   : > { %v2841_v23 = vadd.f32 %v2828_v2, %v7190_v16  ;;  %v2783_v5 = vadd.f32 %v5738_v3, %v5357_v26 }
 0xbd6   : > { %v5739_v24 = vpop.f32.mrf.mxu0 }
 0xbd7   : > { %2844 = vst [vmem:[#allocation2 + $0x28] sm:$0xff] %v2841_v23  ;;  %v2831_v11 = vadd.f32 %v5766_v9, %v2783_v5  ;;  %v5767_v12 = vpop.f32.mrf.mxu1 }
 0xbd8   : > { %v5740_v13 = vpop.f32.mrf.mxu0 }
 0xbd9   : > { %v2842_v14 = vadd.f32 %v2831_v11, %v7195_v20  ;;  %v5741_v51 = vadd.f32 %v5740_v13, %v5739_v24  ;;  %v5768_v61 = vpop.f32.mrf.mxu1 }
 0xbda   : > { %v5742_v15 = vpop.f32.mrf.mxu0  ;;  %v5769_v18 = vadd.f32 %v5768_v61, %v5767_v12 }
 0xbdb   : > { %2845 = vst [vmem:[#allocation2 + $0x10] sm:$0xff] %v2842_v14  ;;  %v2788_v10 = vadd.f32 %v5741_v51, %v5357_v26  ;;  %v5770_v19 = vpop.f32.mrf.mxu1 }
 0xbdc   : > { %v5743_v58 = vpop.f32.mrf.mxu0 }
 0xbdd   : > { %v2836_v16 = vadd.f32 %v5769_v18, %v2788_v10  ;;  %v5771_v21 = vpop.f32.mrf.mxu1 }
 0xbdf   : > { %v2843_v22 = vadd.f32 %v2836_v16, %v7192_v17 }
 0xbe1   : > { %2846 = vst [vmem:[#allocation2 + $0x8] sm:$0x1] %v2843_v22 }
 0xbed   : > { %v6111_v27 = vpop.f32.mrf.mxu0 }
 0xbee   : > { %v3008_v43 = vadd.f32 %v6111_v27, %v5390_v37 }
 0xbef   : > { %v6131_v30 = vpop.f32.mrf.mxu1  ;;  %v2999_v59 = vpop.f32.mrf.mxu0 }
 0xbf0   : > { %v3127_v31 = vadd.f32 %v6131_v30, %v5416_v29  ;;  %v3000_v48 = vadd.f32 %v5390_v37, %v2999_v59  ;;  %v3252_v28 = vpack.c.bf16 %v3008_v43, %v3008_v43 }
 0xbf1   : > { %v3118_v20 = vpop.f32.mrf.mxu1  ;;  %v6112_v33 = vpop.f32.mrf.mxu0 }
 0xbf2   : > { %v3254_v36 = vpack.c.bf16 %v3127_v31, %v3127_v31  ;;  %v3119_v49 = vadd.f32 %v5416_v29, %v3118_v20 }
 0xbf3   : > { %v6132_v45 = vpop.f32.mrf.mxu1  ;;  %v3002_v46 = vpop.f32.mrf.mxu0 }
 0xbf4   : > { %v3265_v60 = vsel %vm1128_vm1, %v3254_v36, 0  ;;  %6273 = vmatprep.subr.msk.bf16.mxu1 %vm1128_vm1, %v3254_v36  ;;  %v3003_v63 = vadd.f32 %v5390_v37, %v3002_v46 }
 0xbf5   : > { %v3121_v17 = vpop.f32.mrf.mxu1  ;;  %6154 = vmatpush3.bf16.xpose.msra.mxu1 %v3265_v60  ;;  %v6505_v60 = vld [vmem:[%s6995_s1 + $0x78] sm:$0xff]  }
 0xbf6   : > { %v3251_v34 = vpack.c.bf16 %v3003_v63, %v3000_v48  ;;  %v3122_v50 = vadd.f32 %v5416_v29, %v3121_v17 }
 0xbf8   : > { %v3253_v7 = vpack.c.bf16 %v3122_v50, %v3119_v49  ;;  %6157 = vmatprep.mubr.msk.bf16.mxu1 %vm1128_vm1, %v3251_v34 }
 0xbfa   : > { %6274 = vmatprep.subr.msk.bf16.mxu1 %vm1128_vm1, %v3253_v7  ;;  %v3262_v0 = vsel %vm1128_vm1, %v3253_v7, 0 }
 0xbfd   : > { %6156 = vmatpush3.bf16.xpose.msra.mxu1 %v3262_v0 }
 0xc04   : > { %6158 = vmatmul.mubr.msk.bf16.vlgmr.msra.gmra.mxu1 %vm1128_vm1, %v3252_v28 }
 0xc0d   : > { %v6151_v8 = vpop.f32.mrf.mxu0 }
 0xc0e   : > { %v3246_v52 = vadd.f32 %v6151_v8, %v5442_v35  ;;  %v6506_v8 = vld [vmem:[%s6995_s1 + $0x70] sm:$0xff]  }
 0xc0f   : > { %v3237_v25 = vpop.f32.mrf.mxu0 }
 0xc10   : > { %v3351_v26 = vpack.c.bf16 %v3246_v52, %v3246_v52  ;;  %v3238_v55 = vadd.f32 %v5442_v35, %v3237_v25  ;;  %v6507_v52 = vld [vmem:[%s6995_s1 + $0x68] sm:$0xff]   ;;  %v6508_v25 = vld [vmem:[%s6995_s1 + $0x60] sm:$0xff]  }
 0xc11   : > { %v6152_v53 = vpop.f32.mrf.mxu0 }
 0xc12   : > { %v3359_v54 = vand.u32 %v3351_v26, %v7120_v42  ;;  %v6509_v26 = vld [vmem:[%s6995_s1 + $0x58] sm:$0xff]   ;;  %v6510_v53 = vld [vmem:[%s6995_s1 + $0x50] sm:$0xff]  }
 0xc13   : > { %v3240_v47 = vpop.f32.mrf.mxu0 }
 0xc14   : > { %v3241_v56 = vadd.f32 %v5442_v35, %v3240_v47  ;;  %6161 = vmatprep.subr.bf16.mxu1 %v3359_v54  ;;  %v6512_v47 = vld [vmem:[%s6995_s1 + $0x40] sm:$0xff]  }
 0xc15   : > { %6162 = vmatpush3.bf16.msra.mxu1 %v3359_v54  ;;  %v6511_v54 = vld [vmem:[%s6995_s1 + $0x48] sm:$0xff]  }
 0xc16   : > { %v3350_v57 = vpack.c.bf16 %v3241_v56, %v3238_v55  ;;  %v6513_v55 = vld [vmem:[%s6995_s1 + $0x178] sm:$0xff]   ;;  %v6514_v56 = vld [vmem:[%s6995_s1 + $0x170] sm:$0xff]  }
 0xc18   : > { %6163 = vmatprep.subr.bf16.mxu1 %v3350_v57 }
 0xc19   : > { %6164 = vmatpush3.bf16.msra.mxu1 %v3350_v57  ;;  %v6515_v57 = vld [vmem:[%s6995_s1 + $0x168] sm:$0xff]  }
 0xc1a   : > { %6169 = vmatprep.subr.bf16.mxu1 %v6505_v60 }
 0xc2d   : > { %v6207_v1 = vpop.f32.mrf.mxu0 }
 0xc2e   : > { %v3652_v2 = vadd.f32 %v6207_v1, %v5498_v62  ;;  %v6517_v1 = vld [vmem:[%s6995_s1 + $0x158] sm:$0xff]  }
 0xc2f   : > { %v3643_v3 = vpop.f32.mrf.mxu0 }
 0xc30   : > { %v3779_v4 = vpack.c.bf16 %v3652_v2, %v3652_v2  ;;  %v3644_v24 = vadd.f32 %v5498_v62, %v3643_v3  ;;  %v6518_v2 = vld [vmem:[%s6995_s1 + $0x150] sm:$0xff]   ;;  %v6519_v3 = vld [vmem:[%s6995_s1 + $0x148] sm:$0xff]  }
 0xc31   : > { %v6208_v23 = vpop.f32.mrf.mxu0 }
 0xc32   : > { %v3790_v5 = vsel %vm1128_vm1, %v3779_v4, 0  ;;  %6275 = vmatprep.subr.msk.bf16.mxu0 %vm1128_vm1, %v3779_v4  ;;  %v6521_v4 = vld [vmem:[%s6964_s23 + $0x18] sm:$0xff]   ;;  %v6522_v23 = vld [vmem:[%s6964_s23 + $0x10] sm:$0xff]  }
 0xc33   : > { %v3646_v9 = vpop.f32.mrf.mxu0  ;;  %6230 = vmatpush3.bf16.xpose.msra.mxu0 %v3790_v5  ;;  %v6523_v5 = vld [vmem:[%s6964_s23 + $0x8] sm:$0xff]  }
 0xc34   : > { %v3647_v11 = vadd.f32 %v5498_v62, %v3646_v9  ;;  %v6516_v62 = vld [vmem:[%s6995_s1 + $0x160] sm:$0xff]   ;;  %v6524_v9 = vld [vmem:[%s6964_s23] sm:$0xff]  }
 0xc36   : > { %v3778_v12 = vpack.c.bf16 %v3647_v11, %v3644_v24 }
 0xc38   : > { %6276 = vmatprep.subr.msk.bf16.mxu0 %vm1128_vm1, %v3778_v12  ;;  %v3787_v13 = vsel %vm1128_vm1, %v3778_v12, 0 }
 0xc3b   : > { %6232 = vmatpush3.bf16.xpose.msra.mxu0 %v3787_v13 }
 0xcc4   : > { %v6159_v14 = vpop.f32.mrf.mxu1 }
 0xcc5   : > { %v3321_v18 = vsel %vm1196_vm3, %v6159_v14, -inf }
 0xcc6   : > { %v3301_v51 = vpop.f32.mrf.mxu1 }
 0xcc7   : > { %v3315_v61 = vsel %vm1189_vm2, %v3301_v51, -inf }
 0xcc8   : > { %3316 = vmax.xlane.f32.xlu0 %v3315_v61  ;;  %v6160_v15 = vpop.f32.mrf.mxu1 }
 0xcc9   : > { %v5472_v15 = vld [vmem:[%s7005_s17 + $0x1] ss:$0 sm:$0xff] }
 0xcca   : > { %v3304_v10 = vpop.f32.mrf.mxu1 }
 0xccb   : > { %v3318_v19 = vsel %vm1189_vm2, %v3304_v10, -inf }
 0xccc   : > { %3322 = vmax.xlane.f32.xlu0 %v3321_v18  ;;  %3319 = vmax.xlane.f32.xlu1 %v3318_v19 }
 0xd51   : > { %v3317_v58 = vpop.xlane.xlu0 %3316 }
 0xd52   : > { %v3324_v16 = vsub.f32 %v3301_v51, %v3317_v58 }
 0xd54   : > { %v3327_v21 = vmul.f32 1.442695, %v3324_v16 }
 0xd55   : > { %v3323_v22 = vpop.xlane.xlu0 %3322  ;;  %v3320_v27 = vpop.xlane.xlu1 %3319 }
 0xd56   : > { %6675 = vpow2.f32 %v3327_v21  ;;  %v3326_v29 = vsub.f32 %v6159_v14, %v3323_v22  ;;  %v3325_v30 = vsub.f32 %v3304_v10, %v3320_v27  ;;  %v5524_v27 = vld [vmem:[%s7005_s17 + $0x5] ss:$0 sm:$0xff] }
 0xd58   : > { %v3331_v59 = vmul.f32 1.442695, %v3326_v29  ;;  %v3329_v31 = vmul.f32 1.442695, %v3325_v30 }
 0xd5a   : > { %6677 = vpow2.f32 %v3331_v59 }
 0xd5b   : > { %6679 = vpow2.f32 %v3329_v31 }
 0xd63   : > { %v6676_v20 = vpop.eup %6675 }
 0xd64   : > { %v3333_v33 = vsel %vm1189_vm2, %v6676_v20, 0.0 }
 0xd65   : > { %3334 = vadd.xlane.f32.xlu1 %v3333_v33 }
 0xd67   : > { %v6678_v36 = vpop.eup %6677 }
 0xd68   : > { %v6680_v37 = vpop.eup %6679  ;;  %v3339_v45 = vsel %vm1196_vm3, %v6678_v36, 0.0 }
 0xd69   : > { %3340 = vadd.xlane.f32.xlu1 %v3339_v45  ;;  %v3336_v46 = vsel %vm1189_vm2, %v6680_v37, 0.0 }
 0xd6a   : > { %3337 = vadd.xlane.f32.xlu0 %v3336_v46 }
 0xdee   : > { %v3335_v48 = vpop.xlane.xlu1 %3334 }
 0xdef   : > { %6681 = vrcp.f32 %v3335_v48 }
 0xdf2   : > { %v3341_v63 = vpop.xlane.xlu1 %3340 }
 0xdf3   : > { %v3338_v17 = vpop.xlane.xlu0 %3337  ;;  %6683 = vrcp.f32 %v3341_v63 }
 0xdf4   : > { %6685 = vrcp.f32 %v3338_v17 }
 0xdfc   : > { %v6682_v49 = vpop.eup %6681 }
 0xdfd   : > { %v3345_v0 = vmul.f32 %v6682_v49, %v6676_v20 }
 0xe00   : > { %v6684_v34 = vpop.eup %6683 }
 0xe01   : > { %v6686_v50 = vpop.eup %6685  ;;  %v3347_v7 = vmul.f32 %v6684_v34, %v6678_v36 }
 0xe02   : > { %v3346_v43 = vmul.f32 %v6686_v50, %v6680_v37 }
 0xe03   : > { %v3349_v28 = vpack.c.bf16 %v3347_v7, %v3347_v7 }
 0xe04   : > { %v3348_v35 = vpack.c.bf16 %v3346_v43, %v3345_v0 }
 0xe06   : > { %6165 = vmatprep.mubr.msk.bf16.mxu1 %vm1189_vm2, %v3348_v35 }
 0xe07   : > { %6166 = vmatmul.mubr.msk.bf16.vlgmr.msra.gmra.mxu1 %vm1189_vm2, %v3349_v28 }
 0xe08   : > { %6170 = vmatpush3.bf16.msra.mxu1 %v6505_v60  ;;  %6185 = vmatprep.mubr.bf16.mxu1 %v7439_v6 }
 0xe09   : > { %6171 = vmatprep.subr.bf16.mxu1 %v6506_v8 }
 0xe0c   : > { %6172 = vmatpush3.bf16.msra.mxu1 %v6506_v8 }
 0xe0d   : > { %6173 = vmatprep.subr.bf16.mxu1 %v6507_v52 }
 0xe10   : > { %6174 = vmatpush3.bf16.msra.mxu1 %v6507_v52 }
 0xe11   : > { %6175 = vmatprep.subr.bf16.mxu1 %v6508_v25 }
 0xe14   : > { %6176 = vmatpush3.bf16.msra.mxu1 %v6508_v25 }
 0xe15   : > { %6177 = vmatprep.subr.bf16.mxu1 %v6509_v26 }
 0xe18   : > { %6178 = vmatpush3.bf16.msra.mxu1 %v6509_v26 }
 0xe19   : > { %6179 = vmatprep.subr.bf16.mxu1 %v6510_v53 }
 0xe1c   : > { %6180 = vmatpush3.bf16.msra.mxu1 %v6510_v53 }
 0xe1d   : > { %6181 = vmatprep.subr.bf16.mxu1 %v6511_v54 }
 0xe20   : > { %6182 = vmatpush3.bf16.msra.mxu1 %v6511_v54 }
 0xe21   : > { %6183 = vmatprep.subr.bf16.mxu1 %v6512_v47 }
 0xe24   : > { %6184 = vmatpush3.bf16.msra.mxu1 %v6512_v47 }
 0xe25   : > { %6209 = vmatprep.subr.bf16.mxu1 %v6513_v55 }
 0xe27   : > { %6186 = vmatmul.mubr.bf16.vlgmr.msra.gmra.mxu1 %v7455_v32 }
 0xe28   : > { %6210 = vmatpush3.bf16.msra.mxu1 %v6513_v55  ;;  %6225 = vmatprep.mubr.bf16.mxu1 %v7439_v6  ;;  %v6520_v6 = vld [vmem:[%s6995_s1 + $0x140] sm:$0xff]  }
 0xe29   : > { %6211 = vmatprep.subr.bf16.mxu1 %v6514_v56 }
 0xe2c   : > { %6212 = vmatpush3.bf16.msra.mxu1 %v6514_v56 }
 0xe2d   : > { %6213 = vmatprep.subr.bf16.mxu1 %v6515_v57 }
 0xe30   : > { %6214 = vmatpush3.bf16.msra.mxu1 %v6515_v57 }
 0xe31   : > { %6215 = vmatprep.subr.bf16.mxu1 %v6516_v62 }
 0xe34   : > { %6216 = vmatpush3.bf16.msra.mxu1 %v6516_v62 }
 0xe35   : > { %6217 = vmatprep.subr.bf16.mxu1 %v6517_v1 }
 0xe38   : > { %6218 = vmatpush3.bf16.msra.mxu1 %v6517_v1 }
 0xe39   : > { %6219 = vmatprep.subr.bf16.mxu1 %v6518_v2 }
 0xe3c   : > { %6220 = vmatpush3.bf16.msra.mxu1 %v6518_v2  ;;  %v6525_v2 = vld [vmem:[%s6964_s23 + $0x38] sm:$0xff]  }
 0xe3d   : > { %6221 = vmatprep.subr.bf16.mxu1 %v6519_v3 }
 0xe40   : > { %6222 = vmatpush3.bf16.msra.mxu1 %v6519_v3 }
 0xe41   : > { %6223 = vmatprep.subr.bf16.mxu1 %v6520_v6 }
 0xe44   : > { %6224 = vmatpush3.bf16.msra.mxu1 %v6520_v6 }
 0xe45   : > { %6257 = vmatprep.subr.bf16.mxu1 %v6521_v4 }
 0xe47   : > { %6226 = vmatmul.mubr.bf16.vlgmr.msra.gmra.mxu1 %v7455_v32 }
 0xe48   : > { %6258 = vmatpush3.bf16.msra.mxu1 %v6521_v4 }
 0xe49   : > { %6259 = vmatprep.subr.bf16.mxu1 %v6522_v23 }
 0xe4c   : > { %6260 = vmatpush3.bf16.msra.mxu1 %v6522_v23 }
 0xe4d   : > { %6261 = vmatprep.subr.bf16.mxu1 %v6523_v5 }
 0xe50   : > { %6262 = vmatpush3.bf16.msra.mxu1 %v6523_v5 }
 0xe51   : > { %6263 = vmatprep.subr.bf16.mxu1 %v6524_v9 }
 0xe54   : > { %6264 = vmatpush3.bf16.msra.mxu1 %v6524_v9 }
 0xec7   : > { %v6167_v24 = vpop.f32.mrf.mxu1 }
 0xec8   : > { %v3410_v51 = vpack.c.bf16 %v6167_v24, %v6167_v24 }
 0xec9   : > { %v3395_v11 = vpop.f32.mrf.mxu1 }
 0xecb   : > { %v6168_v12 = vpop.f32.mrf.mxu1 }
 0xecd   : > { %v3398_v13 = vpop.f32.mrf.mxu1 }
 0xece   : > { %v3409_v14 = vpack.c.bf16 %v3398_v13, %v3395_v11 }
 0xed0   : > { %6265 = vmatprep.mubr.msk.bf16.mxu1 %vm1128_vm1, %v3409_v14 }
 0xed1   : > { %6266 = vmatmul.mubr.msk.bf16.vlgmr.msra.gmra.mxu1 %vm1128_vm1, %v3410_v51  ;;  %v6526_v51 = vld [vmem:[%s6964_s23 + $0x30] sm:$0xff]  }
 0xed2   : > { %4424 = vmatprep.mubr.bf16.mxu1 %v6824_v41 }
 0xee7   : > { %v6187_v32 = vpop.f32.mrf.mxu1 }
 0xee8   : > { %v3533_v18 = vadd.f32 %v6187_v32, %v5472_v15  ;;  %v6527_v32 = vld [vmem:[%s6964_s23 + $0x28] sm:$0xff]  }
 0xee9   : > { %v3524_v61 = vpop.f32.mrf.mxu1 }
 0xeea   : > { %v3525_v58 = vadd.f32 %v5472_v15, %v3524_v61  ;;  %v3777_v22 = vpack.c.bf16 %v3533_v18, %v3533_v18  ;;  %v6528_v61 = vld [vmem:[%s6964_s23 + $0x20] sm:$0xff]  }
 0xeeb   : > { %v6188_v10 = vpop.f32.mrf.mxu1 }
 0xeed   : > { %v3527_v19 = vpop.f32.mrf.mxu1 }
 0xeee   : > { %v3528_v16 = vadd.f32 %v5472_v15, %v3527_v19 }
 0xef0   : > { %v3776_v21 = vpack.c.bf16 %v3528_v16, %v3525_v58 }
 0xef2   : > { %6233 = vmatprep.mubr.msk.bf16.mxu0 %vm1128_vm1, %v3776_v21 }
 0xef3   : > { %6234 = vmatmul.mubr.msk.bf16.vlgmr.msra.gmra.mxu0 %vm1128_vm1, %v3777_v22 }
 0xf07   : > { %v6227_v29 = vpop.f32.mrf.mxu1 }
 0xf08   : > { %v3771_v30 = vadd.f32 %v6227_v29, %v5524_v27 }
 0xf09   : > { %v3762_v59 = vpop.f32.mrf.mxu1 }
 0xf0a   : > { %v3876_v31 = vpack.c.bf16 %v3771_v30, %v3771_v30  ;;  %v3763_v37 = vadd.f32 %v5524_v27, %v3762_v59  ;;  %v6734_v30 = vld [vmem:[#allocation2 + $0x20] sm:$0x1] }
 0xf0b   : > { %v6228_v20 = vpop.f32.mrf.mxu1 }
 0xf0c   : > { %v3884_v33 = vand.u32 %v3876_v31, %v7120_v42  ;;  %v6735_v20 = vld [vmem:[#allocation2] sm:$0xff] }
 0xf0d   : > { %v3765_v36 = vpop.f32.mrf.mxu1 }
 0xf0e   : > { %v3766_v45 = vadd.f32 %v5524_v27, %v3765_v36  ;;  %6237 = vmatprep.subr.bf16.mxu0 %v3884_v33 }
 0xf0f   : > { %6238 = vmatpush3.bf16.msra.mxu0 %v3884_v33 }
 0xf10   : > { %v3875_v46 = vpack.c.bf16 %v3766_v45, %v3763_v37 }
 0xf12   : > { %6239 = vmatprep.subr.bf16.mxu0 %v3875_v46 }
 0xf13   : > { %6240 = vmatpush3.bf16.msra.mxu0 %v3875_v46  ;;  %v6736_v46 = vld [vmem:[%s6985_s19] ss:$0 sm:$0xff] }
 0xf14   : > { %6245 = vmatprep.subr.bf16.mxu0 %v6525_v2 }
 0xf91   : > { %v7537_v60 = vpop.f32.mrf.mxu1 }
 0xf93   : > { %v7539_v48 = vpop.f32.mrf.mxu1 }
 0xf95   : > { %v6268_v63 = vpop.f32.mrf.mxu1 }
 0xf97   : > { %v4089_v36 = vpop.f32.mrf.mxu1 }
 0xfb3   : > { %v6235_v17 = vpop.f32.mrf.mxu0 }
 0xfb4   : > { %v3846_v7 = vsel %vm1196_vm3, %v6235_v17, -inf }
 0xfb5   : > { %v3826_v49 = vpop.f32.mrf.mxu0 }
 0xfb6   : > { %v3840_v34 = vsel %vm1189_vm2, %v3826_v49, -inf }
 0xfb7   : > { %3841 = vmax.xlane.f32.xlu0 %v3840_v34  ;;  %v6236_v50 = vpop.f32.mrf.mxu0 }
 0xfb8   : > { %v6529_v50 = vld [vmem:[%s7010_s15 + $0xe0] ss:$16 sps:$4 sm:$0xff]  }
 0xfb9   : > { %v3829_v42 = vpop.f32.mrf.mxu0 }
 0xfba   : > { %v3843_v0 = vsel %vm1189_vm2, %v3829_v42, -inf }
 0xfbb   : > { %3847 = vmax.xlane.f32.xlu0 %v3846_v7  ;;  %3844 = vmax.xlane.f32.xlu1 %v3843_v0  ;;  %v6532_v7 = vld [vmem:[%s7010_s15 + $0xe8] ss:$16 sps:$4 sm:$0xff]   ;;  %v6534_v0 = vld [vmem:[%s7010_s15 + $0xec] ss:$16 sps:$4 sm:$0xff]  }
 0xfbc   : > { %4392 = vmatprep.subr.bf16.mxu1 %v6534_v0  ;;  %v6738_v0 = vld [vmem:[%s6990_s5] ss:$0 sm:$0xff] }
 0xfbd   : > { %4393 = vmatpush1.bf16.msra.mxu1 %v6532_v7 }
0x1040   : > { %v3842_v43 = vpop.xlane.xlu0 %3841 }
0x1041   : > { %v3849_v28 = vsub.f32 %v3826_v49, %v3842_v43 }
0x1043   : > { %v3852_v35 = vmul.f32 1.442695, %v3849_v28 }
0x1044   : > { %v3848_v8 = vpop.xlane.xlu0 %3847  ;;  %v3845_v52 = vpop.xlane.xlu1 %3844 }
0x1045   : > { %6687 = vpow2.f32 %v3852_v35  ;;  %v3851_v25 = vsub.f32 %v6235_v17, %v3848_v8  ;;  %v3850_v26 = vsub.f32 %v3829_v42, %v3845_v52  ;;  %v6531_v42 = vld [vmem:[%s7010_s15 + $0xe4] ss:$16 sps:$4 sm:$0xff]  }
0x1047   : > { %v3856_v53 = vmul.f32 1.442695, %v3851_v25  ;;  %v3854_v54 = vmul.f32 1.442695, %v3850_v26 }
0x1049   : > { %6689 = vpow2.f32 %v3856_v53 }
0x104a   : > { %6691 = vpow2.f32 %v3854_v54 }
0x1052   : > { %v6688_v47 = vpop.eup %6687 }
0x1053   : > { %v3858_v55 = vsel %vm1189_vm2, %v6688_v47, 0.0 }
0x1054   : > { %3859 = vadd.xlane.f32.xlu1 %v3858_v55 }
0x1056   : > { %v6690_v56 = vpop.eup %6689 }
0x1057   : > { %v6692_v57 = vpop.eup %6691  ;;  %v3864_v62 = vsel %vm1196_vm3, %v6690_v56, 0.0 }
0x1058   : > { %3865 = vadd.xlane.f32.xlu1 %v3864_v62  ;;  %v3861_v1 = vsel %vm1189_vm2, %v6692_v57, 0.0  ;;  %v6537_v62 = vld [vmem:[%s7010_s15 + $0xc4] ss:$16 sps:$4 sm:$0xff]  }
0x1059   : > { %3862 = vadd.xlane.f32.xlu0 %v3861_v1  ;;  %v6540_v1 = vld [vmem:[%s7010_s15 + $0xcc] ss:$16 sps:$4 sm:$0xff]  }
0x105a   : > { %4394 = vmatprep.subr.bf16.mxu1 %v6540_v1  ;;  %v6581_v1 = vld [vmem:[%s7020_s8 + $0x70] sm:$0xff]  }
0x10dd   : > { %v3860_v3 = vpop.xlane.xlu1 %3859 }
0x10de   : > { %6693 = vrcp.f32 %v3860_v3  ;;  %v6538_v3 = vld [vmem:[%s7010_s15 + $0xc8] ss:$16 sps:$4 sm:$0xff]  }
0x10df   : > { %4395 = vmatpush1.bf16.msra.mxu1 %v6538_v3  ;;  %v6584_v3 = vld [vmem:[%s7020_s8 + $0xb0] sm:$0xff]  }
0x10e1   : > { %v3866_v6 = vpop.xlane.xlu1 %3865 }
0x10e2   : > { %v3863_v4 = vpop.xlane.xlu0 %3862  ;;  %6695 = vrcp.f32 %v3866_v6  ;;  %v6543_v6 = vld [vmem:[%s7010_s15 + $0xa4] ss:$16 sps:$4 sm:$0xff]  }
0x10e3   : > { %6697 = vrcp.f32 %v3863_v4  ;;  %v6546_v4 = vld [vmem:[%s7010_s15 + $0xac] ss:$16 sps:$4 sm:$0xff]  }
0x10e4   : > { %4396 = vmatprep.subr.bf16.mxu1 %v6546_v4  ;;  %v6586_v4 = vld [vmem:[%s7020_s8 + $0xe8] sm:$0xff]  }
0x10eb   : > { %v6694_v23 = vpop.eup %6693 }
0x10ec   : > { %v3870_v11 = vmul.f32 %v6694_v23, %v6688_v47  ;;  %v6541_v23 = vld [vmem:[%s7010_s15 + $0xa0] ss:$16 sps:$4 sm:$0xff]  }
0x10ef   : > { %v6696_v5 = vpop.eup %6695 }
0x10f0   : > { %v6698_v9 = vpop.eup %6697  ;;  %v3872_v24 = vmul.f32 %v6696_v5, %v6690_v56  ;;  %v6544_v5 = vld [vmem:[%s7010_s15 + $0xa8] ss:$16 sps:$4 sm:$0xff]  }
0x10f1   : > { %v3871_v12 = vmul.f32 %v6698_v9, %v6692_v57  ;;  %4397 = vmatpush1.bf16.msra.mxu1 %v6544_v5  ;;  %v6549_v9 = vld [vmem:[%s7010_s15 + $0x84] ss:$16 sps:$4 sm:$0xff]   ;;  %v6588_v5 = vld [vmem:[%s7020_s8 + $0xa8] sm:$0xff]  }
0x10f2   : > { %v3874_v13 = vpack.c.bf16 %v3872_v24, %v3872_v24  ;;  %v6552_v24 = vld [vmem:[%s7010_s15 + $0x8c] ss:$16 sps:$4 sm:$0xff]  }
0x10f3   : > { %v3873_v14 = vpack.c.bf16 %v3871_v12, %v3870_v11  ;;  %v6547_v11 = vld [vmem:[%s7010_s15 + $0x80] ss:$16 sps:$4 sm:$0xff]   ;;  %v6550_v12 = vld [vmem:[%s7010_s15 + $0x88] ss:$16 sps:$4 sm:$0xff]   ;;  %4398 = vmatprep.subr.bf16.mxu1 %v6552_v24 }
0x10f4   : > { %v6590_v24 = vld [vmem:[%s7020_s8 + $0xe0] sm:$0xff]  }
0x10f5   : > { %6241 = vmatprep.mubr.msk.bf16.mxu0 %vm1189_vm2, %v3873_v14  ;;  %v6558_v14 = vld [vmem:[%s7010_s15 + $0x6c] ss:$16 sps:$4 sm:$0xff]   ;;  %4399 = vmatpush1.bf16.msra.mxu1 %v6550_v12  ;;  %v6592_v12 = vld [vmem:[%s7020_s8 + $0xa0] sm:$0xff]  }
0x10f6   : > { %6242 = vmatmul.mubr.msk.bf16.vlgmr.msra.gmra.mxu0 %vm1189_vm2, %v3874_v13  ;;  %v6555_v13 = vld [vmem:[%s7010_s15 + $0x64] ss:$16 sps:$4 sm:$0xff]   ;;  %4400 = vmatprep.subr.bf16.mxu1 %v6558_v14  ;;  %v6594_v14 = vld [vmem:[%s7020_s8 + $0xd8] sm:$0xff]  }
0x10f7   : > { %6246 = vmatpush3.bf16.msra.mxu0 %v6525_v2  ;;  %v6535_v2 = vld [vmem:[%s7010_s15 + $0xc0] ss:$16 sps:$4 sm:$0xff]  }
0x10f8   : > { %6247 = vmatprep.subr.bf16.mxu0 %v6526_v51 }
0x10fb   : > { %6248 = vmatpush3.bf16.msra.mxu0 %v6526_v51  ;;  %v6553_v51 = vld [vmem:[%s7010_s15 + $0x60] ss:$16 sps:$4 sm:$0xff]  }
0x10fc   : > { %6249 = vmatprep.subr.bf16.mxu0 %v6527_v32 }
0x10ff   : > { %6250 = vmatpush3.bf16.msra.mxu0 %v6527_v32  ;;  %v6556_v32 = vld [vmem:[%s7010_s15 + $0x68] ss:$16 sps:$4 sm:$0xff]  }
0x1100   : > { %6251 = vmatprep.subr.bf16.mxu0 %v6528_v61  ;;  %4401 = vmatpush1.bf16.msra.mxu1 %v6556_v32  ;;  %v6596_v32 = vld [vmem:[%s7020_s8 + $0x98] sm:$0xff]  }
0x1103   : > { %6252 = vmatpush3.bf16.msra.mxu0 %v6528_v61  ;;  %v6561_v61 = vld [vmem:[%s7010_s15 + $0x44] ss:$16 sps:$4 sm:$0xff]  }
0x1104   : > { %4341 = vmatprep.subr.bf16.mxu0 %v6531_v42 }
0x11b6   : > { %v6243_v15 = vpop.f32.mrf.mxu0 }
0x11b7   : > { %v3935_v16 = vpack.c.bf16 %v6243_v15, %v6243_v15  ;;  %v6564_v15 = vld [vmem:[%s7010_s15 + $0x4c] ss:$16 sps:$4 sm:$0xff]  }
0x11b8   : > { %v3920_v10 = vpop.f32.mrf.mxu0  ;;  %4402 = vmatprep.subr.bf16.mxu1 %v6564_v15  ;;  %v6598_v15 = vld [vmem:[%s7020_s8 + $0xd0] sm:$0xff]  }
0x11ba   : > { %v6244_v18 = vpop.f32.mrf.mxu0 }
0x11bb   : > { %v6562_v18 = vld [vmem:[%s7010_s15 + $0x48] ss:$16 sps:$4 sm:$0xff]  }
0x11bc   : > { %v3923_v19 = vpop.f32.mrf.mxu0  ;;  %4403 = vmatpush1.bf16.msra.mxu1 %v6562_v18  ;;  %v6600_v18 = vld [vmem:[%s7020_s8 + $0x90] sm:$0xff]  }
0x11bd   : > { %v3934_v58 = vpack.c.bf16 %v3923_v19, %v3920_v10  ;;  %v6559_v10 = vld [vmem:[%s7010_s15 + $0x40] ss:$16 sps:$4 sm:$0xff]   ;;  %v6567_v19 = vld [vmem:[%s7010_s15 + $0x24] ss:$16 sps:$4 sm:$0xff]  }
0x11bf   : > { %6253 = vmatprep.mubr.msk.bf16.mxu0 %vm1128_vm1, %v3934_v58  ;;  %v6570_v58 = vld [vmem:[%s7010_s15 + $0x2c] ss:$16 sps:$4 sm:$0xff]  }
0x11c0   : > { %6254 = vmatmul.mubr.msk.bf16.vlgmr.msra.gmra.mxu0 %vm1128_vm1, %v3935_v16  ;;  %v6565_v16 = vld [vmem:[%s7010_s15 + $0x20] ss:$16 sps:$4 sm:$0xff]   ;;  %4404 = vmatprep.subr.bf16.mxu1 %v6570_v58  ;;  %v6602_v58 = vld [vmem:[%s7020_s8 + $0xc8] sm:$0xff]  }
0x11c1   : > { %4373 = vmatprep.mubr.bf16.mxu0 %v6824_v41  ;;  %4342 = vmatpush1.bf16.msra.mxu0 %v6529_v50 }
0x11c2   : > { %4343 = vmatprep.subr.bf16.mxu0 %v6537_v62  ;;  %v6580_v62 = vld [vmem:[%s7020_s8 + $0xb8] sm:$0xff]  }
0x11c5   : > { %4344 = vmatpush1.bf16.msra.mxu0 %v6535_v2  ;;  %v6583_v2 = vld [vmem:[%s7020_s8 + $0x30] sm:$0xff]  }
0x11c6   : > { %4345 = vmatprep.subr.bf16.mxu0 %v6543_v6  ;;  %v6585_v6 = vld [vmem:[%s7020_s8 + $0x68] sm:$0xff]  }
0x11c9   : > { %4346 = vmatpush1.bf16.msra.mxu0 %v6541_v23  ;;  %v6587_v23 = vld [vmem:[%s7020_s8 + $0x28] sm:$0xff]  }
0x11ca   : > { %4347 = vmatprep.subr.bf16.mxu0 %v6549_v9  ;;  %v6589_v9 = vld [vmem:[%s7020_s8 + $0x60] sm:$0xff]  }
0x11cd   : > { %4348 = vmatpush1.bf16.msra.mxu0 %v6547_v11  ;;  %v6591_v11 = vld [vmem:[%s7020_s8 + $0x20] sm:$0xff]  }
0x11ce   : > { %4349 = vmatprep.subr.bf16.mxu0 %v6555_v13  ;;  %v6593_v13 = vld [vmem:[%s7020_s8 + $0x58] sm:$0xff]  }
0x11d1   : > { %4350 = vmatpush1.bf16.msra.mxu0 %v6553_v51  ;;  %v6595_v51 = vld [vmem:[%s7020_s8 + $0x18] sm:$0xff]  }
0x11d2   : > { %4351 = vmatprep.subr.bf16.mxu0 %v6561_v61  ;;  %v6597_v61 = vld [vmem:[%s7020_s8 + $0x50] sm:$0xff]  }
0x11d5   : > { %4352 = vmatpush1.bf16.msra.mxu0 %v6559_v10  ;;  %v6599_v10 = vld [vmem:[%s7020_s8 + $0x10] sm:$0xff]  }
0x11d6   : > { %4353 = vmatprep.subr.bf16.mxu0 %v6567_v19  ;;  %v6601_v19 = vld [vmem:[%s7020_s8 + $0x48] sm:$0xff]  }
0x11d9   : > { %4354 = vmatpush1.bf16.msra.mxu0 %v6565_v16  ;;  %v6603_v16 = vld [vmem:[%s7020_s8 + $0x8] sm:$0xff]  }
0x1280   : > { %v6255_v21 = vpop.f32.mrf.mxu0 }
0x1281   : > { %v4095_v22 = vadd.f32 %v7537_v60, %v6255_v21  ;;  %v6737_v60 = vld [vmem:[#allocation2 + $0x18] sm:$0xff] }
0x1282   : > { %v4008_v27 = vpop.f32.mrf.mxu0  ;;  %v6568_v21 = vld [vmem:[%s7010_s15 + $0x28] ss:$16 sps:$4 sm:$0xff]  }
0x1283   : > { %v4087_v29 = vadd.f32 %v7539_v48, %v4008_v27  ;;  %v4102_v59 = vadd.f32 %v6734_v30, %v4095_v22  ;;  %v6573_v22 = vld [vmem:[%s7010_s15 + $0x4] ss:$16 sps:$4 sm:$0xff]   ;;  %v6576_v27 = vld [vmem:[%s7010_s15 + $0xc] ss:$16 sps:$4 sm:$0xff]   ;;  %4405 = vmatpush1.bf16.msra.mxu1 %v6568_v21  ;;  %v6574_v30 = vld [vmem:[%s7010_s15 + $0x8] ss:$16 sps:$4 sm:$0xff]  }
0x1284   : > { %v6256_v31 = vpop.f32.mrf.mxu0  ;;  %4355 = vmatprep.subr.bf16.mxu0 %v6573_v22  ;;  %4406 = vmatprep.subr.bf16.mxu1 %v6576_v27  ;;  %v6604_v21 = vld [vmem:[%s7020_s8 + $0x88] sm:$0xff]   ;;  %v6605_v22 = vld [vmem:[%s7020_s8 + $0x40] sm:$0xff]  }
0x1285   : > { %v4100_v33 = vadd.f32 %v6735_v20, %v4087_v29  ;;  %v7561_v17 = vadd.f32 %v6736_v46, %v4102_v59  ;;  %v6571_v29 = vld [vmem:[%s7010_s15] ss:$16 sps:$4 sm:$0xff]  }
0x1286   : > { %v4011_v37 = vpop.f32.mrf.mxu0  ;;  %4356 = vmatpush1.bf16.msra.mxu0 %v6571_v29  ;;  %v6606_v27 = vld [vmem:[%s7020_s8 + $0xc0] sm:$0xff]  }
0x1287   : > { %v4090_v45 = vadd.f32 %v4089_v36, %v4011_v37  ;;  %v7559_v63 = vadd.f32 %v6736_v46, %v4100_v33  ;;  %v4110_v34 = vsel %vm710_vm0, %v7561_v17, 0.0  ;;  %4407 = vmatpush1.bf16.msra.mxu1 %v6574_v30  ;;  %v6607_v29 = vld [vmem:[%s7020_s8] sm:$0xff]  }
0x1288   : > { %v6608_v30 = vld [vmem:[%s7020_s8 + $0x80] sm:$0xff]  }
0x1289   : > { %v4101_v49 = vadd.f32 %v6737_v60, %v4090_v45  ;;  %4106 = vadd.xlane.f32.xlu0 %v7559_v63 }
0x128b   : > { %v7564_v48 = vadd.f32 %v6736_v46, %v4101_v49 }
0x128d   : > { %4108 = vadd.xlane.f32.xlu1 %v7564_v48  ;;  %4111 = vadd.xlane.f32.xlu0 %v4110_v34 }
0x1312   : > { %v4107_v43 = vpop.xlane.xlu0 %4106 }
0x1313   : > { %v4113_v28 = vmul.f32 0.0078125, %v4107_v43 }
0x1315   : > { %v7574_v35 = vsub.f32 %v7559_v63, %v4113_v28 }
0x1316   : > { %v4109_v8 = vpop.xlane.xlu1 %4108  ;;  %v4112_v52 = vpop.xlane.xlu0 %4111 }
0x1317   : > { %v4114_v25 = vmul.f32 0.0078125, %v4109_v8  ;;  %v4115_v26 = vmul.f32 0.0078125, %v4112_v52  ;;  %v4119_v53 = vmul.f32 %v7574_v35, %v7574_v35  ;;  %v6739_v52 = vld [vmem:[%s7000_s2] ss:$0 sm:$0xff] }
0x1319   : > { %v7579_v54 = vsub.f32 %v7564_v48, %v4114_v25  ;;  %v7582_v47 = vsub.f32 %v7561_v17, %v4115_v26  ;;  %4122 = vadd.xlane.f32.xlu1 %v4119_v53 }
0x131b   : > { %v4120_v55 = vmul.f32 %v7579_v54, %v7579_v54  ;;  %v4121_v56 = vmul.f32 %v7582_v47, %v7582_v47 }
0x131d   : > { %4124 = vadd.xlane.f32.xlu0 %v4120_v55  ;;  %v4126_v57 = vsel %vm710_vm0, %v4121_v56, 0.0  ;;  %v6578_v56 = vld [vmem:[%s7020_s8 + $0xf8] sm:$0xff]  }
0x131e   : > { %4127 = vadd.xlane.f32.xlu1 %v4126_v57  ;;  %v6579_v57 = vld [vmem:[%s7020_s8 + $0x38] sm:$0xff]   ;;  %5889 = vmatprep.subr.bf16.mxu1 %v6578_v56 }
0x13a2   : > { %v4123_v59 = vpop.xlane.xlu1 %4122 }
0x13a3   : > { %v4129_v31 = vmul.f32 0.0078125, %v4123_v59 }
0x13a5   : > { %v4132_v20 = vadd.f32 1e-05, %v4129_v31 }
0x13a6   : > { %v4125_v33 = vpop.xlane.xlu0 %4124 }
0x13a7   : > { %6699 = vrsqrt.f32 %v4132_v20  ;;  %v4130_v36 = vmul.f32 0.0078125, %v4125_v33  ;;  %v4128_v37 = vpop.xlane.xlu1 %4127 }
0x13a8   : > { %v4131_v45 = vmul.f32 0.0078125, %v4128_v37 }
0x13a9   : > { %v4133_v46 = vadd.f32 1e-05, %v4130_v36 }
0x13aa   : > { %v4134_v60 = vadd.f32 1e-05, %v4131_v45 }
0x13ab   : > { %6701 = vrsqrt.f32 %v4133_v46 }
0x13ac   : > { %6703 = vrsqrt.f32 %v4134_v60 }
0x13b4   : > { %v6700_v49 = vpop.eup %6699 }
0x13b5   : > { %v4138_v34 = vmul.f32 %v6700_v49, %v7574_v35 }
0x13b7   : > { %v4141_v43 = vmul.f32 %v6738_v0, %v4138_v34 }
0x13b8   : > { %v6702_v50 = vpop.eup %6701 }
0x13b9   : > { %v6704_v42 = vpop.eup %6703  ;;  %v4139_v7 = vmul.f32 %v6702_v50, %v7579_v54  ;;  %v4144_v25 = vadd.f32 %v6739_v52, %v4141_v43 }
0x13ba   : > { %v4140_v8 = vmul.f32 %v6704_v42, %v7582_v47  ;;  %v6577_v47 = vld [vmem:[%s7020_s8 + $0x78] sm:$0xff]  }
0x13bb   : > { %v4142_v28 = vmul.f32 %v6738_v0, %v4139_v7  ;;  %5861 = vmatprep.subr.bf16.mxu0 %v6577_v47 }
0x13bc   : > { %v4143_v55 = vmul.f32 %v6738_v0, %v4140_v8 }
0x13bd   : > { %v4145_v26 = vadd.f32 %v6739_v52, %v4142_v28 }
0x13be   : > { %v4146_v35 = vadd.f32 %v6739_v52, %v4143_v55 }
0x13bf   : > { %v4147_v53 = vpack.c.bf16 %v4145_v26, %v4144_v25 }
0x13c0   : > { %v4148_v54 = vpack.c.bf16 %v4146_v35, %v4146_v35 }
0x13c1   : > { %4374 = vmatmul.mubr.bf16.vlgmr.msra.gmra.mxu0 %v4147_v53  ;;  %4425 = vmatmul.mubr.bf16.vlgmr.msra.gmra.mxu1 %v4147_v53 }
0x13c2   : > { %4383 = vmatprep.mubr.bf16.mxu0 %v6824_v41  ;;  %4434 = vmatprep.mubr.bf16.mxu1 %v6824_v41  ;;  %v6582_v41 = vld [vmem:[%s7020_s8 + $0xf0] sm:$0xff]  }
0x13c3   : > { %5862 = vmatpush3.bf16.msra.mxu0 %v6579_v57  ;;  %5890 = vmatpush3.bf16.msra.mxu1 %v6580_v62 }
0x13c4   : > { %5863 = vmatprep.subr.bf16.mxu0 %v6581_v1  ;;  %5891 = vmatprep.subr.bf16.mxu1 %v6582_v41 }
0x13c7   : > { %5864 = vmatpush3.bf16.msra.mxu0 %v6583_v2  ;;  %5892 = vmatpush3.bf16.msra.mxu1 %v6584_v3 }
0x13c8   : > { %5865 = vmatprep.subr.bf16.mxu0 %v6585_v6  ;;  %5893 = vmatprep.subr.bf16.mxu1 %v6586_v4 }
0x13c9   : > { %4384 = vmatmul.mubr.bf16.gmra.mxu0 %v4148_v54  ;;  %4435 = vmatmul.mubr.bf16.gmra.mxu1 %v4148_v54 }
0x13cb   : > { %5866 = vmatpush3.bf16.msra.mxu0 %v6587_v23  ;;  %5894 = vmatpush3.bf16.msra.mxu1 %v6588_v5 }
0x13cc   : > { %5867 = vmatprep.subr.bf16.mxu0 %v6589_v9  ;;  %5895 = vmatprep.subr.bf16.mxu1 %v6590_v24 }
0x13cf   : > { %5868 = vmatpush3.bf16.msra.mxu0 %v6591_v11  ;;  %5896 = vmatpush3.bf16.msra.mxu1 %v6592_v12 }
0x13d0   : > { %5869 = vmatprep.subr.bf16.mxu0 %v6593_v13  ;;  %5897 = vmatprep.subr.bf16.mxu1 %v6594_v14 }
0x13d3   : > { %5870 = vmatpush3.bf16.msra.mxu0 %v6595_v51  ;;  %5898 = vmatpush3.bf16.msra.mxu1 %v6596_v32 }
0x13d4   : > { %5871 = vmatprep.subr.bf16.mxu0 %v6597_v61  ;;  %5899 = vmatprep.subr.bf16.mxu1 %v6598_v15 }
0x13d7   : > { %5872 = vmatpush3.bf16.msra.mxu0 %v6599_v10  ;;  %5900 = vmatpush3.bf16.msra.mxu1 %v6600_v18 }
0x13d8   : > { %5873 = vmatprep.subr.bf16.mxu0 %v6601_v19  ;;  %5901 = vmatprep.subr.bf16.mxu1 %v6602_v58 }
0x13db   : > { %5874 = vmatpush3.bf16.msra.mxu0 %v6603_v16  ;;  %5902 = vmatpush3.bf16.msra.mxu1 %v6604_v21 }
0x13dc   : > { %5875 = vmatprep.subr.bf16.mxu0 %v6605_v22  ;;  %5903 = vmatprep.subr.bf16.mxu1 %v6606_v27 }
0x13df   : > { %5876 = vmatpush3.bf16.msra.mxu0 %v6607_v29  ;;  %5904 = vmatpush3.bf16.msra.mxu1 %v6608_v30 }
0x1481   : > { %v4375_v59 = vpop.f32.mrf.mxu0  ;;  %v4426_v31 = vpop.f32.mrf.mxu1 }
0x1482   : > { %v7657_v20 = vadd.f32 %v4375_v59, %v7322_v38  ;;  %v7660_v33 = vadd.f32 %v4426_v31, %v7324_v39 }
0x1483   : > { %v4377_v36 = vpop.f32.mrf.mxu0  ;;  %v4428_v37 = vpop.f32.mrf.mxu1 }
0x1484   : > { %v4443_v45 = vmul.f32 %v7657_v20, %v7657_v20  ;;  %v4445_v46 = vmul.f32 %v7660_v33, %v7660_v33  ;;  %v7667_v60 = vadd.f32 %v4377_v36, %v7326_v40  ;;  %v7670_v49 = vadd.f32 %v4428_v37, %v7328_v44 }
0x1485   : > { %v4379_v34 = vpop.f32.mrf.mxu0  ;;  %v4430_v50 = vpop.f32.mrf.mxu1 }
0x1486   : > { %v4455_v42 = vmul.f32 %v4443_v45, %v7657_v20  ;;  %v4457_v7 = vmul.f32 %v4445_v46, %v7660_v33  ;;  %v4444_v0 = vmul.f32 %v7667_v60, %v7667_v60  ;;  %v4446_v43 = vmul.f32 %v7670_v49, %v7670_v49 }
0x1487   : > { %v7679_v28 = vadd.f32 %v4379_v34, %v7322_v38  ;;  %v7682_v8 = vadd.f32 %v4430_v50, %v7324_v39  ;;  %v4381_v52 = vpop.f32.mrf.mxu0  ;;  %v4432_v25 = vpop.f32.mrf.mxu1 }
0x1488   : > { %v4467_v26 = vmul.f32 0.044715, %v4455_v42  ;;  %v4469_v53 = vmul.f32 0.044715, %v4457_v7  ;;  %v4456_v55 = vmul.f32 %v4444_v0, %v7667_v60  ;;  %v4458_v35 = vmul.f32 %v4446_v43, %v7670_v49 }
0x1489   : > { %v4447_v54 = vmul.f32 %v7679_v28, %v7679_v28  ;;  %v4449_v47 = vmul.f32 %v7682_v8, %v7682_v8  ;;  %v7691_v56 = vadd.f32 %v4381_v52, %v7326_v40  ;;  %v7694_v57 = vadd.f32 %v4432_v25, %v7328_v44  ;;  %v4385_v62 = vpop.f32.mrf.mxu0  ;;  %v4436_v1 = vpop.f32.mrf.mxu1 }
0x148a   : > { %v4479_v41 = vadd.f32 %v4467_v26, %v7657_v20  ;;  %v4481_v2 = vadd.f32 %v4469_v53, %v7660_v33  ;;  %v4468_v3 = vmul.f32 0.044715, %v4456_v55  ;;  %v4470_v6 = vmul.f32 0.044715, %v4458_v35 }
0x148b   : > { %v4459_v4 = vmul.f32 %v4447_v54, %v7679_v28  ;;  %v4461_v23 = vmul.f32 %v4449_v47, %v7682_v8  ;;  %v4448_v5 = vmul.f32 %v7691_v56, %v7691_v56  ;;  %v4450_v9 = vmul.f32 %v7694_v57, %v7694_v57  ;;  %v4387_v24 = vpop.f32.mrf.mxu0  ;;  %v4438_v11 = vpop.f32.mrf.mxu1 }
0x148c   : > { %v4491_v12 = vmul.f32 0.7978846, %v4479_v41  ;;  %v4493_v13 = vmul.f32 0.7978846, %v4481_v2  ;;  %v4480_v14 = vadd.f32 %v4468_v3, %v7667_v60  ;;  %v4482_v51 = vadd.f32 %v4470_v6, %v7670_v49 }
0x148d   : > { %v4471_v32 = vmul.f32 0.044715, %v4459_v4  ;;  %v4473_v61 = vmul.f32 0.044715, %v4461_v23  ;;  %v4460_v15 = vmul.f32 %v4448_v5, %v7691_v56  ;;  %v4462_v10 = vmul.f32 %v4450_v9, %v7694_v57  ;;  %v4389_v18 = vpop.f32.mrf.mxu0  ;;  %v4440_v19 = vpop.f32.mrf.mxu1 }
0x148e   : > { %6705 = vtanh.f32 %v4491_v12  ;;  %v4492_v58 = vmul.f32 0.7978846, %v4480_v14  ;;  %v4494_v16 = vmul.f32 0.7978846, %v4482_v51  ;;  %v7709_v21 = vadd.f32 %v4385_v62, %v7322_v38 }
0x148f   : > { %6707 = vtanh.f32 %v4493_v13  ;;  %v4483_v22 = vadd.f32 %v4471_v32, %v7679_v28  ;;  %v4485_v27 = vadd.f32 %v4473_v61, %v7682_v8  ;;  %v4472_v29 = vmul.f32 0.044715, %v4460_v15  ;;  %v4390_v30 = vpop.f32.mrf.mxu0  ;;  %v4441_v59 = vpop.f32.mrf.mxu1 }
0x1490   : > { %6709 = vtanh.f32 %v4492_v58  ;;  %v4474_v31 = vmul.f32 0.044715, %v4462_v10  ;;  %v4451_v36 = vmul.f32 %v7709_v21, %v7709_v21  ;;  %v7716_v37 = vadd.f32 %v4436_v1, %v7324_v39 }
0x1491   : > { %6711 = vtanh.f32 %v4494_v16  ;;  %v4495_v45 = vmul.f32 0.7978846, %v4483_v22  ;;  %v4497_v38 = vmul.f32 0.7978846, %v4485_v27  ;;  %v4484_v46 = vadd.f32 %v4472_v29, %v7691_v56 }
0x1492   : > { %v4486_v34 = vadd.f32 %v4474_v31, %v7694_v57  ;;  %v4463_v50 = vmul.f32 %v4451_v36, %v7709_v21  ;;  %v4453_v42 = vmul.f32 %v7716_v37, %v7716_v37  ;;  %v7724_v7 = vadd.f32 %v4387_v24, %v7326_v40 }
0x1493   : > { %6713 = vtanh.f32 %v4495_v45  ;;  %v4496_v0 = vmul.f32 0.7978846, %v4484_v46  ;;  %v7727_v39 = vadd.f32 %v4438_v11, %v7328_v44 }
0x1494   : > { %6715 = vtanh.f32 %v4497_v38  ;;  %v4498_v43 = vmul.f32 0.7978846, %v4486_v34  ;;  %v4475_v52 = vmul.f32 0.044715, %v4463_v50  ;;  %v4465_v25 = vmul.f32 %v4453_v42, %v7716_v37 }
0x1495   : > { %6717 = vtanh.f32 %v4496_v0  ;;  %v4452_v26 = vmul.f32 %v7724_v7, %v7724_v7  ;;  %v4454_v53 = vmul.f32 %v7727_v39, %v7727_v39 }
0x1496   : > { %6719 = vtanh.f32 %v4498_v43  ;;  %v4487_v40 = vadd.f32 %v4475_v52, %v7709_v21  ;;  %v4477_v55 = vmul.f32 0.044715, %v4465_v25 }
0x1497   : > { %v4464_v35 = vmul.f32 %v4452_v26, %v7724_v7  ;;  %v4466_v44 = vmul.f32 %v4454_v53, %v7727_v39 }
0x1498   : > { %v4499_v54 = vmul.f32 0.7978846, %v4487_v40  ;;  %v4489_v47 = vadd.f32 %v4477_v55, %v7716_v37 }
0x1499   : > { %v4476_v62 = vmul.f32 0.044715, %v4464_v35  ;;  %v4478_v1 = vmul.f32 0.044715, %v4466_v44 }
0x149a   : > { %6721 = vtanh.f32 %v4499_v54  ;;  %v4501_v41 = vmul.f32 0.7978846, %v4489_v47 }
0x149b   : > { %v6706_v2 = vpop.eup %6705  ;;  %v4488_v3 = vadd.f32 %v4476_v62, %v7724_v7  ;;  %v4490_v6 = vadd.f32 %v4478_v1, %v7727_v39 }
0x149c   : > { %v6708_v4 = vpop.eup %6707  ;;  %6723 = vtanh.f32 %v4501_v41  ;;  %v4515_v13 = vadd.f32 1.0, %v6706_v2 }
0x149d   : > { %v6710_v23 = vpop.eup %6709  ;;  %v4500_v5 = vmul.f32 0.7978846, %v4488_v3  ;;  %v4502_v9 = vmul.f32 0.7978846, %v4490_v6  ;;  %v4517_v32 = vadd.f32 1.0, %v6708_v4 }
0x149e   : > { %v6712_v24 = vpop.eup %6711  ;;  %v4516_v11 = vadd.f32 1.0, %v6710_v23  ;;  %v4527_v22 = vmul.f32 0.5, %v4515_v13 }
0x149f   : > { %6725 = vtanh.f32 %v4500_v5  ;;  %v4518_v14 = vadd.f32 1.0, %v6712_v24  ;;  %v4529_v59 = vmul.f32 0.5, %v4517_v32 }
0x14a0   : > { %v6714_v12 = vpop.eup %6713  ;;  %6727 = vtanh.f32 %v4502_v9  ;;  %v4528_v16 = vmul.f32 0.5, %v4516_v11  ;;  %v4539_v42 = vmul.f32 %v4527_v22, %v7657_v20 }
0x14a1   : > { %v6716_v51 = vpop.eup %6715  ;;  %v4519_v61 = vadd.f32 1.0, %v6714_v12  ;;  %v4530_v30 = vmul.f32 0.5, %v4518_v14  ;;  %v4541_v26 = vmul.f32 %v4529_v59, %v7660_v33 }
0x14a2   : > { %v6718_v15 = vpop.eup %6717  ;;  %v4521_v10 = vadd.f32 1.0, %v6716_v51  ;;  %v4540_v34 = vmul.f32 %v4528_v16, %v7667_v60 }
0x14a3   : > { %v6720_v18 = vpop.eup %6719  ;;  %v4531_v19 = vmul.f32 0.5, %v4519_v61  ;;  %v4520_v58 = vadd.f32 1.0, %v6718_v15  ;;  %v4542_v0 = vmul.f32 %v4530_v30, %v7670_v49 }
0x14a4   : > { %v4533_v27 = vmul.f32 0.5, %v4521_v10  ;;  %v4522_v29 = vadd.f32 1.0, %v6720_v18 }
0x14a5   : > { %v4532_v31 = vmul.f32 0.5, %v4520_v58  ;;  %v4543_v36 = vmul.f32 %v4531_v19, %v7679_v28 }
0x14a6   : > { %v4534_v45 = vmul.f32 0.5, %v4522_v29  ;;  %v4545_v46 = vmul.f32 %v4533_v27, %v7682_v8 }
0x14a7   : > { %v6722_v38 = vpop.eup %6721  ;;  %v4544_v50 = vmul.f32 %v4532_v31, %v7691_v56  ;;  %v4551_v28 = vpack.c.bf16 %v4543_v36, %v4539_v42 }
0x14a8   : > { %v4546_v43 = vmul.f32 %v4534_v45, %v7694_v57  ;;  %v4523_v52 = vadd.f32 1.0, %v6722_v38  ;;  %v4553_v35 = vpack.c.bf16 %v4545_v46, %v4541_v26 }
0x14a9   : > { %v6724_v25 = vpop.eup %6723  ;;  %v4552_v53 = vpack.c.bf16 %v4544_v50, %v4540_v34 }
0x14aa   : > { %v4554_v40 = vpack.c.bf16 %v4546_v43, %v4542_v0  ;;  %v4525_v55 = vadd.f32 1.0, %v6724_v25  ;;  %v4535_v60 = vmul.f32 0.5, %v4523_v52 }
0x14ab   : > { %4847 = vmatprep.mubr.bf16.mxu0 %v4552_v53 }
0x14ac   : > { %v6726_v8 = vpop.eup %6725  ;;  %4895 = vmatprep.mubr.bf16.mxu1 %v4554_v40  ;;  %4848 = vmatmul.mubr.bf16.vlgmr.msra.gmra.mxu0 %v4551_v28  ;;  %v4537_v49 = vmul.f32 0.5, %v4525_v55  ;;  %v4547_v47 = vmul.f32 %v4535_v60, %v7709_v21 }
0x14ad   : > { %v6728_v56 = vpop.eup %6727  ;;  %4896 = vmatmul.mubr.bf16.vlgmr.msra.gmra.mxu1 %v4553_v35  ;;  %v4524_v20 = vadd.f32 1.0, %v6726_v8 }
0x14ae   : > { %v4526_v44 = vadd.f32 1.0, %v6728_v56  ;;  %v4549_v62 = vmul.f32 %v4537_v49, %v7716_v37  ;;  %v4555_v3 = vpack.c.bf16 %v4547_v47, %v4547_v47 }
0x14af   : > { %v4536_v57 = vmul.f32 0.5, %v4524_v20 }
0x14b0   : > { %v4538_v54 = vmul.f32 0.5, %v4526_v44  ;;  %v4557_v6 = vpack.c.bf16 %v4549_v62, %v4549_v62 }
0x14b1   : > { %v4548_v33 = vmul.f32 %v4536_v57, %v7724_v7  ;;  %v6740_v7 = vld [vmem:[%s7025_s4] ss:$0 sm:$0xff]  ;;  %s7842_s4 = sld [smem:[#allocation21_spill]] (!%p5621_p9) }
0x14b2   : > { %v4550_v1 = vmul.f32 %v4538_v54, %v7727_v39 }
0x14b3   : > { %v4556_v41 = vpack.c.bf16 %v4548_v33, %v4548_v33 }
0x14b4   : > { %v4558_v2 = vpack.c.bf16 %v4550_v1, %v4550_v1 }
0x14b5   : > { %4855 = vmatprep.mubr.bf16.mxu0 %v4556_v41 }
0x14b6   : > { %4903 = vmatprep.mubr.bf16.mxu1 %v4558_v2  ;;  %4856 = vmatmul.mubr.bf16.gmra.mxu0 %v4555_v3 }
0x14b7   : > { %4904 = vmatmul.mubr.bf16.gmra.mxu1 %v4557_v6 }
0x156c   : > { %v5877_v4 = vpop.f32.mrf.mxu0 }
0x156d   : > { %v5905_v23 = vpop.f32.mrf.mxu1 }
0x156e   : > { %v5878_v5 = vpop.f32.mrf.mxu0 }
0x156f   : > { %v5879_v9 = vadd.f32 %v5878_v5, %v5877_v4  ;;  %v5906_v21 = vpop.f32.mrf.mxu1 }
0x1570   : > { %v5880_v24 = vpop.f32.mrf.mxu0  ;;  %v5907_v37 = vadd.f32 %v5906_v21, %v5905_v23 }
0x1571   : > { %v4850_v11 = vadd.f32 %v6740_v7, %v5879_v9  ;;  %v5908_v12 = vpop.f32.mrf.mxu1 }
0x1572   : > { %v5881_v13 = vpop.f32.mrf.mxu0 }
0x1573   : > { %v4898_v39 = vadd.f32 %v5907_v37, %v4850_v11  ;;  %v5882_v14 = vadd.f32 %v5881_v13, %v5880_v24  ;;  %v5909_v51 = vpop.f32.mrf.mxu1 }
0x1574   : > { %v5910_v15 = vadd.f32 %v5909_v51, %v5908_v12 }
0x1575   : > { %v4911_v32 = vadd.f32 %v4898_v39, %v7559_v63  ;;  %v4853_v61 = vadd.f32 %v6740_v7, %v5882_v14 }
0x1576   : > { %v5883_v10 = vpop.f32.mrf.mxu0 }
0x1577   : > { %4914 = vst [vmem:[#allocation2] sm:$0xff] %v4911_v32  ;;  %v4901_v18 = vadd.f32 %v5910_v15, %v4853_v61  ;;  %v5911_v19 = vpop.f32.mrf.mxu1 }
0x1578   : > { %v5884_v58 = vpop.f32.mrf.mxu0 }
0x1579   : > { %v4912_v16 = vadd.f32 %v4901_v18, %v7564_v48  ;;  %v5885_v22 = vadd.f32 %v5884_v58, %v5883_v10  ;;  %v5912_v27 = vpop.f32.mrf.mxu1 }
0x157a   : > { %v5886_v29 = vpop.f32.mrf.mxu0  ;;  %v5913_v59 = vadd.f32 %v5912_v27, %v5911_v19 }
0x157b   : > { %4915 = vst [vmem:[#allocation2 + $0x18] sm:$0xff] %v4912_v16  ;;  %v4858_v30 = vadd.f32 %v6740_v7, %v5885_v22  ;;  %v5914_v31 = vpop.f32.mrf.mxu1 }
0x157c   : > { %v5887_v36 = vpop.f32.mrf.mxu0 }
0x157d   : > { %v4906_v45 = vadd.f32 %v5913_v59, %v4858_v30  ;;  %v5915_v38 = vpop.f32.mrf.mxu1  ;;  %4920 = sbr.rel (%p5621_p9) target bundleno = 5514 (0x158a), region = 84 }
0x157f   : > { %v4913_v63 = vadd.f32 %v4906_v45, %v7561_v17 }
0x1581   : > { %4916 = vst [vmem:[#allocation2 + $0x20] sm:$0x1] %v4913_v63 }
0x1582   : > { %v4921_v46 = vld [vmem:[#allocation2 + $0x28] sm:$0xff]  ;;  %v4922_v34 = vld [vmem:[#allocation2 + $0x10] sm:$0xff]  ;;  %v4924_v17 = vld [vmem:[#allocation2] sm:$0xff] }
0x1583   : > { %v4923_v50 = vld [vmem:[#allocation2 + $0x8] sm:$0x1]  ;;  %4927 = vst [vmem:[%s7842_s4] sm:$0xff] %v4921_v46  ;;  %4928 = vst [vmem:[%s7842_s4 + $0x8] sm:$0xff] %v4922_v34  ;;  %v4925_v48 = vld [vmem:[#allocation2 + $0x18] sm:$0xff] }
0x1584   : > { %4929 = vst [vmem:[%s7842_s4 + $0x10] sm:$0x1] %v4923_v50  ;;  %4930 = vst [vmem:[%s7842_s4 + $0x18] sm:$0xff] %v4924_v17 }
0x1585   : > { %4931 = vst [vmem:[%s7842_s4 + $0x20] sm:$0xff] %v4925_v48 }
0x1588   : > { %v4926_v42 = vld [vmem:[#allocation2 + $0x20] sm:$0x1] }
0x1589   : > { %4932 = vst [vmem:[%s7842_s4 + $0x28] sm:$0x1] %v4926_v42 }
0x158a PF: > { %s26_s30 = sadd.s32 1, %s6819_s30   ;;  %s7843_s12 = sld [smem:[#allocation8_spill]] }
0x158b   : > { %p23_p10 = scmp.ge.s32.totalorder %s26_s30, 4   ;;  %s7844_s28 = sld [smem:[#allocation6_spill]] }
0x158c   : > { %s7845_s29 = sld [smem:[#allocation7_spill]]  ;;  %s7846_s25 = smov %s6803_s26 }
0x158d   : > { %s7847_s26 = smov %s6807_s27  ;;  %25 = sbr.rel (!%p23_p10) target bundleno = 18 (0x12), region = 168 }
0x1590   : > { %s7848_s27 = smov %s7843_s12 }
0x1592   :  { %4957 = vsyncpa [#allocation4], 1 }
0x1593   :  { %4959 = vsyncpa [#allocation4 + $0x1], 1 }

</bundles_post_ra>
